<compile_context>
chip_gen: v5e
topology: v5e:2x2
jax: 0.10.0
libtpu: 0.0.40
codegen_flags: <defaults>
</compile_context>

<pallas_src>
import functools

import jax
import jax.numpy as jnp
from jax.experimental import pallas as pl
from jax.experimental.pallas import tpu as pltpu

NEG_SLOPE = 0.01          # torch.nn.LeakyReLU default
EPS = 1e-5                # torch.nn.InstanceNorm2d default
VMEM_LIMIT = 32 * 1024 * 1024   # safe on v5e/v6e (128 MiB) and v7x (64 MiB)

# (cin, cout, k, stride, pad, fused_lrelu, instance_norm_after)
CONV_CFGS = (
    (3,   32, 3, 1, 1, True,  False),
    (32,  64, 4, 2, 1, True,  False),
    (64, 128, 3, 1, 1, False, True),
    (128, 128, 4, 2, 1, True,  False),
    (128, 256, 3, 1, 1, False, True),
    (256, 256, 3, 1, 1, False, True),
    (256,   1, 3, 1, 1, False, False),
)


def _ceil_to(x, m):
    return (x + m - 1) // m * m


# ----------------------------------------------------------------------------
# Tiled matmul + bias (+ LeakyReLU) kernel  — bf16 operands, f32 accumulation
# ----------------------------------------------------------------------------
def _matmul_bias_act_kernel(x_ref, w_ref, b_ref, o_ref, acc_ref, *, apply_act):
    @pl.when(pl.program_id(2) == 0)
    def _():
        acc_ref[...] = jnp.zeros_like(acc_ref)

    acc_ref[...] += jnp.dot(x_ref[...], w_ref[...],
                            preferred_element_type=jnp.float32)

    @pl.when(pl.program_id(2) == pl.num_programs(2) - 1)
    def _():
        y = acc_ref[...] + b_ref[...]                 # f32 epilogue
        if apply_act:
            y = jnp.where(y >= 0, y, NEG_SLOPE * y)   # LeakyReLU
        o_ref[...] = y.astype(o_ref.dtype)


def matmul_bias_act(x, wp, bp, n_out, apply_act):
    """x: (M, K) bf16; wp: (Kp, Np) bf16 pre-padded; bp: (1, Np) f32.
    Returns (M, n_out) f32."""
    M, K = x.shape
    Kp, Np = wp.shape

    # M tiling (bf16 sublane pack -> multiple of 16).
    Mp = _ceil_to(M, 16)
    tm = min(256, Mp)
    Mp = _ceil_to(Mp, tm)
    # N tiling (Np is already a multiple of 128).
    tn = min(256, Np)
    Npp = _ceil_to(Np, tn)
    # K tiling: largest friendly tile dividing Kp (Kp is a multiple of 128).
    tk = 128
    for cand in (1024, 768, 640, 512, 384, 256, 128):
        if Kp % cand == 0:
            tk = cand
            break

    xp = x
    if Mp != M or Kp != K:
        xp = jnp.pad(x, ((0, Mp - M), (0, Kp - K)))
    if Npp != Np:
        wp = jnp.pad(wp, ((0, 0), (0, Npp - Np)))
        bp = jnp.pad(bp, ((0, 0), (0, Npp - Np)))
        Np = Npp

    grid = (Mp // tm, Np // tn, Kp // tk)
    out = pl.pallas_call(
        functools.partial(_matmul_bias_act_kernel, apply_act=apply_act),
        out_shape=jax.ShapeDtypeStruct((Mp, Np), jnp.float32),
        grid=grid,
        in_specs=[
            pl.BlockSpec((tm, tk), lambda i, j, k: (i, k)),
            pl.BlockSpec((tk, tn), lambda i, j, k: (k, j)),
            pl.BlockSpec((1, tn), lambda i, j, k: (0, j)),
        ],
        out_specs=pl.BlockSpec((tm, tn), lambda i, j, k: (i, j)),
        scratch_shapes=[pltpu.VMEM((tm, tn), jnp.float32)],
        compiler_params=pltpu.CompilerParams(
            dimension_semantics=("parallel", "parallel", "arbitrary"),
            vmem_limit_bytes=VMEM_LIMIT),
    )(xp, wp, bp)
    return out[:M, :n_out]


# ----------------------------------------------------------------------------
# InstanceNorm (no affine, biased var) + LeakyReLU, tiled over (batch, C/128)
# ----------------------------------------------------------------------------
def _inorm_lrelu_kernel(x_ref, o_ref):
    x = x_ref[...]                                   # (1, P, ct) f32
    mean = jnp.mean(x, axis=1, keepdims=True)
    xc = x - mean
    var = jnp.mean(xc * xc, axis=1, keepdims=True)   # biased (torch default)
    y = xc * jax.lax.rsqrt(var + EPS)
    o_ref[...] = jnp.where(y >= 0, y, NEG_SLOPE * y)  # fused LeakyReLU


def instance_norm_lrelu(x):
    """x: (N, P, C) f32; normalize over P per (n, c), then LeakyReLU."""
    N, P, C = x.shape
    ct = 128 if C % 128 == 0 else C
    return pl.pallas_call(
        _inorm_lrelu_kernel,
        out_shape=jax.ShapeDtypeStruct((N, P, C), jnp.float32),
        grid=(N, C // ct),
        in_specs=[pl.BlockSpec((1, P, ct), lambda n, c: (n, 0, c))],
        out_specs=pl.BlockSpec((1, P, ct), lambda n, c: (n, 0, c)),
        compiler_params=pltpu.CompilerParams(
            dimension_semantics=("parallel", "parallel"),
            vmem_limit_bytes=VMEM_LIMIT),
    )(x)


# ----------------------------------------------------------------------------
# Conv2d = im2col (bf16 glue) + tiled Pallas matmul
# ----------------------------------------------------------------------------
def conv2d(x, wp, bp, kh, kw, stride, pad, cout, apply_act):
    """x: NHWC f32; wp/bp: pre-packed (Kp,Np)/(1,Np)."""
    N, H, W, cin = x.shape
    Ho = (H + 2 * pad - kh) // stride + 1
    Wo = (W + 2 * pad - kw) // stride + 1

    xb = x.astype(jnp.bfloat16)                       # halve im2col HBM bytes
    xpd = jnp.pad(xb, ((0, 0), (pad, pad), (pad, pad), (0, 0)))
    cols = []
    for i in range(kh):
        for j in range(kw):
            cols.append(
                xpd[:, i:i + stride * Ho:stride, j:j + stride * Wo:stride, :])
    patches = jnp.concatenate(cols, axis=-1).reshape(N * Ho * Wo, kh * kw * cin)

    y = matmul_bias_act(patches, wp, bp, cout, apply_act)
    return y.reshape(N, Ho, Wo, cout)


# ----------------------------------------------------------------------------
# Discriminator (single pass over a batched input)
# ----------------------------------------------------------------------------
def discriminator(x_nchw, packed_params):
    x = jnp.transpose(x_nchw, (0, 2, 3, 1)).astype(jnp.float32)  # NCHW -> NHWC
    for (wp, bp), (cin, cout, k, stride, pad, act, inorm) in zip(
            packed_params, CONV_CFGS):
        x = conv2d(x, wp, bp, k, k, stride, pad, cout, act)
        if inorm:
            n, h, w, c = x.shape
            x = instance_norm_lrelu(x.reshape(n, h * w, c)).reshape(n, h, w, c)
    return jnp.transpose(x, (0, 3, 1, 2))             # (N, 1, H/4, W/4)


def forward(packed_params, generate_content_feature, style_feature,
            gray_style_feature, smooth_gray_feature):
    # Batch all four discriminator calls into one pass.
    x_all = jnp.concatenate(
        [generate_content_feature, style_feature,
         gray_style_feature, smooth_gray_feature], axis=0)
    d_all = discriminator(x_all, packed_params)        # (4B, 1, Ho, Wo)
    d_gen, d_style, d_gray, d_smooth = jnp.split(d_all, 4, axis=0)

    # jnp.squeeze (all singleton dims) mirrors torch.squeeze semantics.
    d_loss = jnp.squeeze(d_style - 1.0)
    t_loss = (jnp.squeeze(d_gen) + jnp.squeeze(d_gray)
              + 0.1 * jnp.squeeze(d_smooth))
    return d_loss + t_loss


# ----------------------------------------------------------------------------
# Parameter init (PyTorch Conv2d default) and one-time packing
# ----------------------------------------------------------------------------
def init_params(key):
    params = []
    for i, (cin, cout, k, _, _, _, _) in enumerate(CONV_CFGS):
        kw_key, kb_key = jax.random.split(jax.random.fold_in(key, i))
        bound = 1.0 / float(cin * k * k) ** 0.5
        w = jax.random.uniform(kw_key, (cout, cin, k, k), jnp.float32,
                               -bound, bound)
        b = jax.random.uniform(kb_key, (cout,), jnp.float32, -bound, bound)
        params.append((w, b))
    return params


def pack_params(params):
    """Transpose Conv2d weights to (K, N) matmul layout, cast to bf16 and pad
    K/N to multiples of 128 ONCE (outside the jitted forward)."""
    packed = []
    for (w, b) in params:
        cout, cin, kh, kw = w.shape
        k_dim = kh * kw * cin
        kp = _ceil_to(k_dim, 128)
        np_ = _ceil_to(cout, 128)
        wm = jnp.transpose(w, (2, 3, 1, 0)).reshape(k_dim, cout)
        wp = jnp.pad(wm, ((0, kp - k_dim), (0, np_ - cout))).astype(jnp.bfloat16)
        bp = jnp.pad(b.astype(jnp.float32), (0, np_ - cout)).reshape(1, np_)
        packed.append((wp, bp))
    return packed


if __name__ == "__main__":
    key = jax.random.PRNGKey(0)
    params = init_params(key)
    packed = jax.tree_util.tree_map(lambda a: a, pack_params(params))

    # Small synthetic inputs consistent with the module: NCHW, 3 channels.
    B, C, H, W = 2, 3, 16, 16
    k1, k2, k3, k4 = jax.random.split(jax.random.fold_in(key, 1000), 4)
    generate_content_feature = jax.random.normal(k1, (B, C, H, W), jnp.float32)
    style_feature = jax.random.normal(k2, (B, C, H, W), jnp.float32)
    gray_style_feature = jax.random.normal(k3, (B, C, H, W), jnp.float32)
    smooth_gray_feature = jax.random.normal(k4, (B, C, H, W), jnp.float32)

    fwd = jax.jit(forward)
    out = fwd(packed, generate_content_feature, style_feature,
              gray_style_feature, smooth_gray_feature)
    jax.block_until_ready(out)

    assert out.shape == (B, H // 4, W // 4), out.shape
    assert jnp.all(jnp.isfinite(out))
    print("KERNEL_OK")
</pallas_src>

<mosaic_0001>
module attributes {stable_mosaic.version = 11 : i64} {
  func.func @_matmul_bias_act_kernel(%arg0: i32, %arg1: i32, %arg2: i32, %arg3: memref<256x128xbf16, #tpu.memory_space<vmem>>, %arg4: memref<128x128xbf16, #tpu.memory_space<vmem>>, %arg5: memref<1x128xf32, #tpu.memory_space<vmem>>, %arg6: memref<256x128xf32, #tpu.memory_space<vmem>>, %arg7: memref<256x128xf32, #tpu.memory_space<vmem>>) attributes {dimension_semantics = [#tpu.dimension_semantics<parallel>, #tpu.dimension_semantics<parallel>, #tpu.dimension_semantics<arbitrary>], iteration_bounds = array<i64: 8, 1, 1>, scalar_prefetch = 0 : i64, scratch_operands = 1 : i64, tpu.core_type = #tpu.core_type<tc>, window_params = [{transform_indices = @transform_0, window_bounds = array<i64: 256, 128>}, {transform_indices = @transform_1, window_bounds = array<i64: 128, 128>}, {transform_indices = @transform_2, window_bounds = array<i64: 1, 128>}, {transform_indices = @transform_3, window_bounds = array<i64: 256, 128>}]} {
    %c0_i32 = arith.constant 0 : i32
    %0 = arith.cmpi eq, %arg2, %c0_i32 : i32
    %1 = arith.extui %0 : i1 to i32
    %c0_i32_0 = arith.constant 0 : i32
    %2 = arith.cmpi ne, %1, %c0_i32_0 : i32
    scf.if %2 {
      %cst_10 = arith.constant 0.000000e+00 : f32
      %12 = vector.broadcast %cst_10 : f32 to vector<256x128xf32>
      %c0_11 = arith.constant 0 : index
      %c0_12 = arith.constant 0 : index
      %13 = vector.load %arg7[%c0_11, %c0_12] : memref<256x128xf32, #tpu.memory_space<vmem>>, vector<256x128xf32>
      tpu.vector_store %arg7[%c0_11, %c0_12], %12 {strides = array<i32>} : memref<256x128xf32, #tpu.memory_space<vmem>>, vector<256x128xf32>,
    } else {
    }
    %c0 = arith.constant 0 : index
    %c0_1 = arith.constant 0 : index
    %3 = vector.load %arg7[%c0, %c0_1] : memref<256x128xf32, #tpu.memory_space<vmem>>, vector<256x128xf32>
    %c0_2 = arith.constant 0 : index
    %c0_3 = arith.constant 0 : index
    %4 = vector.load %arg3[%c0_2, %c0_3] : memref<256x128xbf16, #tpu.memory_space<vmem>>, vector<256x128xbf16>
    %c0_4 = arith.constant 0 : index
    %c0_5 = arith.constant 0 : index
    %5 = vector.load %arg4[%c0_4, %c0_5] : memref<128x128xbf16, #tpu.memory_space<vmem>>, vector<128x128xbf16>
    %cst = arith.constant dense<0.000000e+00> : vector<256x128xf32>
    %6 = tpu.matmul %4, %5, %cst {dimension_numbers = #tpu.dot_dimension_numbers<[1], [0], [0], [1], [0, 0, 1, 1], [], []>} : vector<256x128xbf16>, vector<128x128xbf16>, vector<256x128xf32> -> vector<256x128xf32>
    %7 = arith.addf %3, %6 : vector<256x128xf32>
    %c0_6 = arith.constant 0 : index
    %c0_7 = arith.constant 0 : index
    %8 = vector.load %arg7[%c0_6, %c0_7] : memref<256x128xf32, #tpu.memory_space<vmem>>, vector<256x128xf32>
    tpu.vector_store %arg7[%c0_6, %c0_7], %7 {strides = array<i32>} : memref<256x128xf32, #tpu.memory_space<vmem>>, vector<256x128xf32>,
    %c0_i32_8 = arith.constant 0 : i32
    %9 = arith.cmpi eq, %arg2, %c0_i32_8 : i32
    %10 = arith.extui %9 : i1 to i32
    %c0_i32_9 = arith.constant 0 : i32
    %11 = arith.cmpi ne, %10, %c0_i32_9 : i32
    scf.if %11 {
      %c0_10 = arith.constant 0 : index
      %c0_11 = arith.constant 0 : index
      %12 = vector.load %arg7[%c0_10, %c0_11] : memref<256x128xf32, #tpu.memory_space<vmem>>, vector<256x128xf32>
      %c0_12 = arith.constant 0 : index
      %c0_13 = arith.constant 0 : index
      %13 = vector.load %arg5[%c0_12, %c0_13] : memref<1x128xf32, #tpu.memory_space<vmem>>, vector<1x128xf32>
      %14 = vector.broadcast %13 : vector<1x128xf32> to vector<256x128xf32>
      %15 = arith.addf %12, %14 : vector<256x128xf32>
      %cst_14 = arith.constant 0.000000e+00 : f32
      %16 = vector.broadcast %cst_14 : f32 to vector<256x128xf32>
      %17 = arith.cmpf oge, %15, %16 : vector<256x128xf32>
      %cst_15 = arith.constant 0.00999999977 : f32
      %18 = vector.broadcast %cst_15 : f32 to vector<256x128xf32>
      %19 = arith.mulf %18, %15 : vector<256x128xf32>
      %20 = arith.select %17, %15, %19 : vector<256x128xi1>, vector<256x128xf32>
      %c0_16 = arith.constant 0 : index
      %c0_17 = arith.constant 0 : index
      %21 = vector.load %arg6[%c0_16, %c0_17] : memref<256x128xf32, #tpu.memory_space<vmem>>, vector<256x128xf32>
      tpu.vector_store %arg6[%c0_16, %c0_17], %20 {strides = array<i32>} : memref<256x128xf32, #tpu.memory_space<vmem>>, vector<256x128xf32>,
    } else {
    }
    return
  }
  func.func @transform_0(%arg0: i32, %arg1: i32, %arg2: i32) -> (i32, i32) {
    %c0_i32 = arith.constant 0 : i32
    return %arg0, %arg2 : i32, i32
  }
  func.func @transform_1(%arg0: i32, %arg1: i32, %arg2: i32) -> (i32, i32) {
    %c0_i32 = arith.constant 0 : i32
    return %arg2, %arg1 : i32, i32
  }
  func.func @transform_2(%arg0: i32, %arg1: i32, %arg2: i32) -> (i32, i32) {
    %c0_i32 = arith.constant 0 : i32
    %c0_i32_0 = arith.constant 0 : i32
    return %c0_i32, %arg1 : i32, i32
  }
  func.func @transform_3(%arg0: i32, %arg1: i32, %arg2: i32) -> (i32, i32) {
    %c0_i32 = arith.constant 0 : i32
    return %arg0, %arg1 : i32, i32
  }
}

module attributes {stable_mosaic.version = 11 : i64} {
  func.func @_matmul_bias_act_kernel(%arg0: i32, %arg1: i32, %arg2: i32, %arg3: memref<256x512xbf16, #tpu.memory_space<vmem>>, %arg4: memref<512x128xbf16, #tpu.memory_space<vmem>>, %arg5: memref<1x128xf32, #tpu.memory_space<vmem>>, %arg6: memref<256x128xf32, #tpu.memory_space<vmem>>, %arg7: memref<256x128xf32, #tpu.memory_space<vmem>>) attributes {dimension_semantics = [#tpu.dimension_semantics<parallel>, #tpu.dimension_semantics<parallel>, #tpu.dimension_semantics<arbitrary>], iteration_bounds = array<i64: 2, 1, 1>, scalar_prefetch = 0 : i64, scratch_operands = 1 : i64, tpu.core_type = #tpu.core_type<tc>, window_params = [{transform_indices = @transform_0, window_bounds = array<i64: 256, 512>}, {transform_indices = @transform_1, window_bounds = array<i64: 512, 128>}, {transform_indices = @transform_2, window_bounds = array<i64: 1, 128>}, {transform_indices = @transform_3, window_bounds = array<i64: 256, 128>}]} {
    %c0_i32 = arith.constant 0 : i32
    %0 = arith.cmpi eq, %arg2, %c0_i32 : i32
    %1 = arith.extui %0 : i1 to i32
    %c0_i32_0 = arith.constant 0 : i32
    %2 = arith.cmpi ne, %1, %c0_i32_0 : i32
    scf.if %2 {
      %cst_10 = arith.constant 0.000000e+00 : f32
      %12 = vector.broadcast %cst_10 : f32 to vector<256x128xf32>
      %c0_11 = arith.constant 0 : index
      %c0_12 = arith.constant 0 : index
      %13 = vector.load %arg7[%c0_11, %c0_12] : memref<256x128xf32, #tpu.memory_space<vmem>>, vector<256x128xf32>
      tpu.vector_store %arg7[%c0_11, %c0_12], %12 {strides = array<i32>} : memref<256x128xf32, #tpu.memory_space<vmem>>, vector<256x128xf32>,
    } else {
    }
    %c0 = arith.constant 0 : index
    %c0_1 = arith.constant 0 : index
    %3 = vector.load %arg7[%c0, %c0_1] : memref<256x128xf32, #tpu.memory_space<vmem>>, vector<256x128xf32>
    %c0_2 = arith.constant 0 : index
    %c0_3 = arith.constant 0 : index
    %4 = vector.load %arg3[%c0_2, %c0_3] : memref<256x512xbf16, #tpu.memory_space<vmem>>, vector<256x512xbf16>
    %c0_4 = arith.constant 0 : index
    %c0_5 = arith.constant 0 : index
    %5 = vector.load %arg4[%c0_4, %c0_5] : memref<512x128xbf16, #tpu.memory_space<vmem>>, vector<512x128xbf16>
    %cst = arith.constant dense<0.000000e+00> : vector<256x128xf32>
    %6 = tpu.matmul %4, %5, %cst {dimension_numbers = #tpu.dot_dimension_numbers<[1], [0], [0], [1], [0, 0, 1, 1], [], []>} : vector<256x512xbf16>, vector<512x128xbf16>, vector<256x128xf32> -> vector<256x128xf32>
    %7 = arith.addf %3, %6 : vector<256x128xf32>
    %c0_6 = arith.constant 0 : index
    %c0_7 = arith.constant 0 : index
    %8 = vector.load %arg7[%c0_6, %c0_7] : memref<256x128xf32, #tpu.memory_space<vmem>>, vector<256x128xf32>
    tpu.vector_store %arg7[%c0_6, %c0_7], %7 {strides = array<i32>} : memref<256x128xf32, #tpu.memory_space<vmem>>, vector<256x128xf32>,
    %c0_i32_8 = arith.constant 0 : i32
    %9 = arith.cmpi eq, %arg2, %c0_i32_8 : i32
    %10 = arith.extui %9 : i1 to i32
    %c0_i32_9 = arith.constant 0 : i32
    %11 = arith.cmpi ne, %10, %c0_i32_9 : i32
    scf.if %11 {
      %c0_10 = arith.constant 0 : index
      %c0_11 = arith.constant 0 : index
      %12 = vector.load %arg7[%c0_10, %c0_11] : memref<256x128xf32, #tpu.memory_space<vmem>>, vector<256x128xf32>
      %c0_12 = arith.constant 0 : index
      %c0_13 = arith.constant 0 : index
      %13 = vector.load %arg5[%c0_12, %c0_13] : memref<1x128xf32, #tpu.memory_space<vmem>>, vector<1x128xf32>
      %14 = vector.broadcast %13 : vector<1x128xf32> to vector<256x128xf32>
      %15 = arith.addf %12, %14 : vector<256x128xf32>
      %cst_14 = arith.constant 0.000000e+00 : f32
      %16 = vector.broadcast %cst_14 : f32 to vector<256x128xf32>
      %17 = arith.cmpf oge, %15, %16 : vector<256x128xf32>
      %cst_15 = arith.constant 0.00999999977 : f32
      %18 = vector.broadcast %cst_15 : f32 to vector<256x128xf32>
      %19 = arith.mulf %18, %15 : vector<256x128xf32>
      %20 = arith.select %17, %15, %19 : vector<256x128xi1>, vector<256x128xf32>
      %c0_16 = arith.constant 0 : index
      %c0_17 = arith.constant 0 : index
      %21 = vector.load %arg6[%c0_16, %c0_17] : memref<256x128xf32, #tpu.memory_space<vmem>>, vector<256x128xf32>
      tpu.vector_store %arg6[%c0_16, %c0_17], %20 {strides = array<i32>} : memref<256x128xf32, #tpu.memory_space<vmem>>, vector<256x128xf32>,
    } else {
    }
    return
  }
  func.func @transform_0(%arg0: i32, %arg1: i32, %arg2: i32) -> (i32, i32) {
    %c0_i32 = arith.constant 0 : i32
    return %arg0, %arg2 : i32, i32
  }
  func.func @transform_1(%arg0: i32, %arg1: i32, %arg2: i32) -> (i32, i32) {
    %c0_i32 = arith.constant 0 : i32
    return %arg2, %arg1 : i32, i32
  }
  func.func @transform_2(%arg0: i32, %arg1: i32, %arg2: i32) -> (i32, i32) {
    %c0_i32 = arith.constant 0 : i32
    %c0_i32_0 = arith.constant 0 : i32
    return %c0_i32, %arg1 : i32, i32
  }
  func.func @transform_3(%arg0: i32, %arg1: i32, %arg2: i32) -> (i32, i32) {
    %c0_i32 = arith.constant 0 : i32
    return %arg0, %arg1 : i32, i32
  }
}

module attributes {stable_mosaic.version = 11 : i64} {
  func.func @_inorm_lrelu_kernel(%arg0: i32, %arg1: i32, %arg2: memref<1x64x128xf32, #tpu.memory_space<vmem>>, %arg3: memref<1x64x128xf32, #tpu.memory_space<vmem>>) attributes {dimension_semantics = [#tpu.dimension_semantics<parallel>, #tpu.dimension_semantics<parallel>], iteration_bounds = array<i64: 8, 1>, scalar_prefetch = 0 : i64, scratch_operands = 0 : i64, tpu.core_type = #tpu.core_type<tc>, window_params = [{transform_indices = @transform_0, window_bounds = array<i64: 1, 64, 128>}, {transform_indices = @transform_1, window_bounds = array<i64: 1, 64, 128>}]} {
    %c0 = arith.constant 0 : index
    %c0_0 = arith.constant 0 : index
    %c0_1 = arith.constant 0 : index
    %0 = vector.load %arg2[%c0, %c0_0, %c0_1] : memref<1x64x128xf32, #tpu.memory_space<vmem>>, vector<1x64x128xf32>
    %cst = arith.constant dense<0.000000e+00> : vector<1x128xf32>
    %1 = vector.multi_reduction <add>, %0, %cst [1] : vector<1x64x128xf32> to vector<1x128xf32>
    %2 = vector.shape_cast %1 : vector<1x128xf32> to vector<1x1x128xf32>
    %cst_2 = arith.constant 6.400000e+01 : f32
    %3 = vector.broadcast %cst_2 : f32 to vector<1x1x128xf32>
    %4 = arith.divf %2, %3 : vector<1x1x128xf32>
    %5 = vector.broadcast %4 : vector<1x1x128xf32> to vector<1x64x128xf32>
    %6 = arith.subf %0, %5 : vector<1x64x128xf32>
    %7 = arith.mulf %6, %6 : vector<1x64x128xf32>
    %cst_3 = arith.constant dense<0.000000e+00> : vector<1x128xf32>
    %8 = vector.multi_reduction <add>, %7, %cst_3 [1] : vector<1x64x128xf32> to vector<1x128xf32>
    %9 = vector.shape_cast %8 : vector<1x128xf32> to vector<1x1x128xf32>
    %cst_4 = arith.constant 6.400000e+01 : f32
    %10 = vector.broadcast %cst_4 : f32 to vector<1x1x128xf32>
    %11 = arith.divf %9, %10 : vector<1x1x128xf32>
    %cst_5 = arith.constant 9.99999974E-6 : f32
    %12 = vector.broadcast %cst_5 : f32 to vector<1x1x128xf32>
    %13 = arith.addf %11, %12 : vector<1x1x128xf32>
    %14 = math.rsqrt %13 : vector<1x1x128xf32>
    %15 = vector.broadcast %14 : vector<1x1x128xf32> to vector<1x64x128xf32>
    %16 = arith.mulf %6, %15 : vector<1x64x128xf32>
    %cst_6 = arith.constant 0.000000e+00 : f32
    %17 = vector.broadcast %cst_6 : f32 to vector<1x64x128xf32>
    %18 = arith.cmpf oge, %16, %17 : vector<1x64x128xf32>
    %cst_7 = arith.constant 0.00999999977 : f32
    %19 = vector.broadcast %cst_7 : f32 to vector<1x64x128xf32>
    %20 = arith.mulf %19, %16 : vector<1x64x128xf32>
    %21 = arith.select %18, %16, %20 : vector<1x64x128xi1>, vector<1x64x128xf32>
    %c0_8 = arith.constant 0 : index
    %c0_9 = arith.constant 0 : index
    %c0_10 = arith.constant 0 : index
    %22 = vector.load %arg3[%c0_8, %c0_9, %c0_10] : memref<1x64x128xf32, #tpu.memory_space<vmem>>, vector<1x64x128xf32>
    tpu.vector_store %arg3[%c0_8, %c0_9, %c0_10], %21 {strides = array<i32>} : memref<1x64x128xf32, #tpu.memory_space<vmem>>, vector<1x64x128xf32>,
    return
  }
  func.func @transform_0(%arg0: i32, %arg1: i32) -> (i32, i32, i32) {
    %c0_i32 = arith.constant 0 : i32
    %c0_i32_0 = arith.constant 0 : i32
    return %arg0, %c0_i32, %arg1 : i32, i32, i32
  }
  func.func @transform_1(%arg0: i32, %arg1: i32) -> (i32, i32, i32) {
    %c0_i32 = arith.constant 0 : i32
    %c0_i32_0 = arith.constant 0 : i32
    return %arg0, %c0_i32, %arg1 : i32, i32, i32
  }
}

module attributes {stable_mosaic.version = 11 : i64} {
  func.func @_matmul_bias_act_kernel(%arg0: i32, %arg1: i32, %arg2: i32, %arg3: memref<256x640xbf16, #tpu.memory_space<vmem>>, %arg4: memref<640x128xbf16, #tpu.memory_space<vmem>>, %arg5: memref<1x128xf32, #tpu.memory_space<vmem>>, %arg6: memref<256x128xf32, #tpu.memory_space<vmem>>, %arg7: memref<256x128xf32, #tpu.memory_space<vmem>>) attributes {dimension_semantics = [#tpu.dimension_semantics<parallel>, #tpu.dimension_semantics<parallel>, #tpu.dimension_semantics<arbitrary>], iteration_bounds = array<i64: 2, 1, 1>, scalar_prefetch = 0 : i64, scratch_operands = 1 : i64, tpu.core_type = #tpu.core_type<tc>, window_params = [{transform_indices = @transform_0, window_bounds = array<i64: 256, 640>}, {transform_indices = @transform_1, window_bounds = array<i64: 640, 128>}, {transform_indices = @transform_2, window_bounds = array<i64: 1, 128>}, {transform_indices = @transform_3, window_bounds = array<i64: 256, 128>}]} {
    %c0_i32 = arith.constant 0 : i32
    %0 = arith.cmpi eq, %arg2, %c0_i32 : i32
    %1 = arith.extui %0 : i1 to i32
    %c0_i32_0 = arith.constant 0 : i32
    %2 = arith.cmpi ne, %1, %c0_i32_0 : i32
    scf.if %2 {
      %cst_10 = arith.constant 0.000000e+00 : f32
      %12 = vector.broadcast %cst_10 : f32 to vector<256x128xf32>
      %c0_11 = arith.constant 0 : index
      %c0_12 = arith.constant 0 : index
      %13 = vector.load %arg7[%c0_11, %c0_12] : memref<256x128xf32, #tpu.memory_space<vmem>>, vector<256x128xf32>
      tpu.vector_store %arg7[%c0_11, %c0_12], %12 {strides = array<i32>} : memref<256x128xf32, #tpu.memory_space<vmem>>, vector<256x128xf32>,
    } else {
    }
    %c0 = arith.constant 0 : index
    %c0_1 = arith.constant 0 : index
    %3 = vector.load %arg7[%c0, %c0_1] : memref<256x128xf32, #tpu.memory_space<vmem>>, vector<256x128xf32>
    %c0_2 = arith.constant 0 : index
    %c0_3 = arith.constant 0 : index
    %4 = vector.load %arg3[%c0_2, %c0_3] : memref<256x640xbf16, #tpu.memory_space<vmem>>, vector<256x640xbf16>
    %c0_4 = arith.constant 0 : index
    %c0_5 = arith.constant 0 : index
    %5 = vector.load %arg4[%c0_4, %c0_5] : memref<640x128xbf16, #tpu.memory_space<vmem>>, vector<640x128xbf16>
    %cst = arith.constant dense<0.000000e+00> : vector<256x128xf32>
    %6 = tpu.matmul %4, %5, %cst {dimension_numbers = #tpu.dot_dimension_numbers<[1], [0], [0], [1], [0, 0, 1, 1], [], []>} : vector<256x640xbf16>, vector<640x128xbf16>, vector<256x128xf32> -> vector<256x128xf32>
    %7 = arith.addf %3, %6 : vector<256x128xf32>
    %c0_6 = arith.constant 0 : index
    %c0_7 = arith.constant 0 : index
    %8 = vector.load %arg7[%c0_6, %c0_7] : memref<256x128xf32, #tpu.memory_space<vmem>>, vector<256x128xf32>
    tpu.vector_store %arg7[%c0_6, %c0_7], %7 {strides = array<i32>} : memref<256x128xf32, #tpu.memory_space<vmem>>, vector<256x128xf32>,
    %c0_i32_8 = arith.constant 0 : i32
    %9 = arith.cmpi eq, %arg2, %c0_i32_8 : i32
    %10 = arith.extui %9 : i1 to i32
    %c0_i32_9 = arith.constant 0 : i32
    %11 = arith.cmpi ne, %10, %c0_i32_9 : i32
    scf.if %11 {
      %c0_10 = arith.constant 0 : index
      %c0_11 = arith.constant 0 : index
      %12 = vector.load %arg7[%c0_10, %c0_11] : memref<256x128xf32, #tpu.memory_space<vmem>>, vector<256x128xf32>
      %c0_12 = arith.constant 0 : index
      %c0_13 = arith.constant 0 : index
      %13 = vector.load %arg5[%c0_12, %c0_13] : memref<1x128xf32, #tpu.memory_space<vmem>>, vector<1x128xf32>
      %14 = vector.broadcast %13 : vector<1x128xf32> to vector<256x128xf32>
      %15 = arith.addf %12, %14 : vector<256x128xf32>
      %c0_14 = arith.constant 0 : index
      %c0_15 = arith.constant 0 : index
      %16 = vector.load %arg6[%c0_14, %c0_15] : memref<256x128xf32, #tpu.memory_space<vmem>>, vector<256x128xf32>
      tpu.vector_store %arg6[%c0_14, %c0_15], %15 {strides = array<i32>} : memref<256x128xf32, #tpu.memory_space<vmem>>, vector<256x128xf32>,
    } else {
    }
    return
  }
  func.func @transform_0(%arg0: i32, %arg1: i32, %arg2: i32) -> (i32, i32) {
    %c0_i32 = arith.constant 0 : i32
    return %arg0, %arg2 : i32, i32
  }
  func.func @transform_1(%arg0: i32, %arg1: i32, %arg2: i32) -> (i32, i32) {
    %c0_i32 = arith.constant 0 : i32
    return %arg2, %arg1 : i32, i32
  }
  func.func @transform_2(%arg0: i32, %arg1: i32, %arg2: i32) -> (i32, i32) {
    %c0_i32 = arith.constant 0 : i32
    %c0_i32_0 = arith.constant 0 : i32
    return %c0_i32, %arg1 : i32, i32
  }
  func.func @transform_3(%arg0: i32, %arg1: i32, %arg2: i32) -> (i32, i32) {
    %c0_i32 = arith.constant 0 : i32
    return %arg0, %arg1 : i32, i32
  }
}

module attributes {stable_mosaic.version = 11 : i64} {
  func.func @_matmul_bias_act_kernel(%arg0: i32, %arg1: i32, %arg2: i32, %arg3: memref<128x1024xbf16, #tpu.memory_space<vmem>>, %arg4: memref<1024x128xbf16, #tpu.memory_space<vmem>>, %arg5: memref<1x128xf32, #tpu.memory_space<vmem>>, %arg6: memref<128x128xf32, #tpu.memory_space<vmem>>, %arg7: memref<128x128xf32, #tpu.memory_space<vmem>>) attributes {dimension_semantics = [#tpu.dimension_semantics<parallel>, #tpu.dimension_semantics<parallel>, #tpu.dimension_semantics<arbitrary>], iteration_bounds = array<i64: 1, 1, 2>, scalar_prefetch = 0 : i64, scratch_operands = 1 : i64, tpu.core_type = #tpu.core_type<tc>, window_params = [{transform_indices = @transform_0, window_bounds = array<i64: 128, 1024>}, {transform_indices = @transform_1, window_bounds = array<i64: 1024, 128>}, {transform_indices = @transform_2, window_bounds = array<i64: 1, 128>}, {transform_indices = @transform_3, window_bounds = array<i64: 128, 128>}]} {
    %c0_i32 = arith.constant 0 : i32
    %0 = arith.cmpi eq, %arg2, %c0_i32 : i32
    %1 = arith.extui %0 : i1 to i32
    %c0_i32_0 = arith.constant 0 : i32
    %2 = arith.cmpi ne, %1, %c0_i32_0 : i32
    scf.if %2 {
      %cst_9 = arith.constant 0.000000e+00 : f32
      %12 = vector.broadcast %cst_9 : f32 to vector<128x128xf32>
      %c0_10 = arith.constant 0 : index
      %c0_11 = arith.constant 0 : index
      %13 = vector.load %arg7[%c0_10, %c0_11] : memref<128x128xf32, #tpu.memory_space<vmem>>, vector<128x128xf32>
      tpu.vector_store %arg7[%c0_10, %c0_11], %12 {strides = array<i32>} : memref<128x128xf32, #tpu.memory_space<vmem>>, vector<128x128xf32>,
    } else {
    }
    %c0 = arith.constant 0 : index
    %c0_1 = arith.constant 0 : index
    %3 = vector.load %arg7[%c0, %c0_1] : memref<128x128xf32, #tpu.memory_space<vmem>>, vector<128x128xf32>
    %c0_2 = arith.constant 0 : index
    %c0_3 = arith.constant 0 : index
    %4 = vector.load %arg3[%c0_2, %c0_3] : memref<128x1024xbf16, #tpu.memory_space<vmem>>, vector<128x1024xbf16>
    %c0_4 = arith.constant 0 : index
    %c0_5 = arith.constant 0 : index
    %5 = vector.load %arg4[%c0_4, %c0_5] : memref<1024x128xbf16, #tpu.memory_space<vmem>>, vector<1024x128xbf16>
    %cst = arith.constant dense<0.000000e+00> : vector<128x128xf32>
    %6 = tpu.matmul %4, %5, %cst {dimension_numbers = #tpu.dot_dimension_numbers<[1], [0], [0], [1], [0, 0, 1, 1], [], []>} : vector<128x1024xbf16>, vector<1024x128xbf16>, vector<128x128xf32> -> vector<128x128xf32>
    %7 = arith.addf %3, %6 : vector<128x128xf32>
    %c0_6 = arith.constant 0 : index
    %c0_7 = arith.constant 0 : index
    %8 = vector.load %arg7[%c0_6, %c0_7] : memref<128x128xf32, #tpu.memory_space<vmem>>, vector<128x128xf32>
    tpu.vector_store %arg7[%c0_6, %c0_7], %7 {strides = array<i32>} : memref<128x128xf32, #tpu.memory_space<vmem>>, vector<128x128xf32>,
    %c1_i32 = arith.constant 1 : i32
    %9 = arith.cmpi eq, %arg2, %c1_i32 : i32
    %10 = arith.extui %9 : i1 to i32
    %c0_i32_8 = arith.constant 0 : i32
    %11 = arith.cmpi ne, %10, %c0_i32_8 : i32
    scf.if %11 {
      %c0_9 = arith.constant 0 : index
      %c0_10 = arith.constant 0 : index
      %12 = vector.load %arg7[%c0_9, %c0_10] : memref<128x128xf32, #tpu.memory_space<vmem>>, vector<128x128xf32>
      %c0_11 = arith.constant 0 : index
      %c0_12 = arith.constant 0 : index
      %13 = vector.load %arg5[%c0_11, %c0_12] : memref<1x128xf32, #tpu.memory_space<vmem>>, vector<1x128xf32>
      %14 = vector.broadcast %13 : vector<1x128xf32> to vector<128x128xf32>
      %15 = arith.addf %12, %14 : vector<128x128xf32>
      %cst_13 = arith.constant 0.000000e+00 : f32
      %16 = vector.broadcast %cst_13 : f32 to vector<128x128xf32>
      %17 = arith.cmpf oge, %15, %16 : vector<128x128xf32>
      %cst_14 = arith.constant 0.00999999977 : f32
      %18 = vector.broadcast %cst_14 : f32 to vector<128x128xf32>
      %19 = arith.mulf %18, %15 : vector<128x128xf32>
      %20 = arith.select %17, %15, %19 : vector<128x128xi1>, vector<128x128xf32>
      %c0_15 = arith.constant 0 : index
      %c0_16 = arith.constant 0 : index
      %21 = vector.load %arg6[%c0_15, %c0_16] : memref<128x128xf32, #tpu.memory_space<vmem>>, vector<128x128xf32>
      tpu.vector_store %arg6[%c0_15, %c0_16], %20 {strides = array<i32>} : memref<128x128xf32, #tpu.memory_space<vmem>>, vector<128x128xf32>,
    } else {
    }
    return
  }
  func.func @transform_0(%arg0: i32, %arg1: i32, %arg2: i32) -> (i32, i32) {
    %c0_i32 = arith.constant 0 : i32
    return %arg0, %arg2 : i32, i32
  }
  func.func @transform_1(%arg0: i32, %arg1: i32, %arg2: i32) -> (i32, i32) {
    %c0_i32 = arith.constant 0 : i32
    return %arg2, %arg1 : i32, i32
  }
  func.func @transform_2(%arg0: i32, %arg1: i32, %arg2: i32) -> (i32, i32) {
    %c0_i32 = arith.constant 0 : i32
    %c0_i32_0 = arith.constant 0 : i32
    return %c0_i32, %arg1 : i32, i32
  }
  func.func @transform_3(%arg0: i32, %arg1: i32, %arg2: i32) -> (i32, i32) {
    %c0_i32 = arith.constant 0 : i32
    return %arg0, %arg1 : i32, i32
  }
}

module attributes {stable_mosaic.version = 11 : i64} {
  func.func @_matmul_bias_act_kernel(%arg0: i32, %arg1: i32, %arg2: i32, %arg3: memref<128x384xbf16, #tpu.memory_space<vmem>>, %arg4: memref<384x256xbf16, #tpu.memory_space<vmem>>, %arg5: memref<1x256xf32, #tpu.memory_space<vmem>>, %arg6: memref<128x256xf32, #tpu.memory_space<vmem>>, %arg7: memref<128x256xf32, #tpu.memory_space<vmem>>) attributes {dimension_semantics = [#tpu.dimension_semantics<parallel>, #tpu.dimension_semantics<parallel>, #tpu.dimension_semantics<arbitrary>], iteration_bounds = array<i64: 1, 1, 3>, scalar_prefetch = 0 : i64, scratch_operands = 1 : i64, tpu.core_type = #tpu.core_type<tc>, window_params = [{transform_indices = @transform_0, window_bounds = array<i64: 128, 384>}, {transform_indices = @transform_1, window_bounds = array<i64: 384, 256>}, {transform_indices = @transform_2, window_bounds = array<i64: 1, 256>}, {transform_indices = @transform_3, window_bounds = array<i64: 128, 256>}]} {
    %c0_i32 = arith.constant 0 : i32
    %0 = arith.cmpi eq, %arg2, %c0_i32 : i32
    %1 = arith.extui %0 : i1 to i32
    %c0_i32_0 = arith.constant 0 : i32
    %2 = arith.cmpi ne, %1, %c0_i32_0 : i32
    scf.if %2 {
      %cst_9 = arith.constant 0.000000e+00 : f32
      %12 = vector.broadcast %cst_9 : f32 to vector<128x256xf32>
      %c0_10 = arith.constant 0 : index
      %c0_11 = arith.constant 0 : index
      %13 = vector.load %arg7[%c0_10, %c0_11] : memref<128x256xf32, #tpu.memory_space<vmem>>, vector<128x256xf32>
      tpu.vector_store %arg7[%c0_10, %c0_11], %12 {strides = array<i32>} : memref<128x256xf32, #tpu.memory_space<vmem>>, vector<128x256xf32>,
    } else {
    }
    %c0 = arith.constant 0 : index
    %c0_1 = arith.constant 0 : index
    %3 = vector.load %arg7[%c0, %c0_1] : memref<128x256xf32, #tpu.memory_space<vmem>>, vector<128x256xf32>
    %c0_2 = arith.constant 0 : index
    %c0_3 = arith.constant 0 : index
    %4 = vector.load %arg3[%c0_2, %c0_3] : memref<128x384xbf16, #tpu.memory_space<vmem>>, vector<128x384xbf16>
    %c0_4 = arith.constant 0 : index
    %c0_5 = arith.constant 0 : index
    %5 = vector.load %arg4[%c0_4, %c0_5] : memref<384x256xbf16, #tpu.memory_space<vmem>>, vector<384x256xbf16>
    %cst = arith.constant dense<0.000000e+00> : vector<128x256xf32>
    %6 = tpu.matmul %4, %5, %cst {dimension_numbers = #tpu.dot_dimension_numbers<[1], [0], [0], [1], [0, 0, 1, 1], [], []>} : vector<128x384xbf16>, vector<384x256xbf16>, vector<128x256xf32> -> vector<128x256xf32>
    %7 = arith.addf %3, %6 : vector<128x256xf32>
    %c0_6 = arith.constant 0 : index
    %c0_7 = arith.constant 0 : index
    %8 = vector.load %arg7[%c0_6, %c0_7] : memref<128x256xf32, #tpu.memory_space<vmem>>, vector<128x256xf32>
    tpu.vector_store %arg7[%c0_6, %c0_7], %7 {strides = array<i32>} : memref<128x256xf32, #tpu.memory_space<vmem>>, vector<128x256xf32>,
    %c2_i32 = arith.constant 2 : i32
    %9 = arith.cmpi eq, %arg2, %c2_i32 : i32
    %10 = arith.extui %9 : i1 to i32
    %c0_i32_8 = arith.constant 0 : i32
    %11 = arith.cmpi ne, %10, %c0_i32_8 : i32
    scf.if %11 {
      %c0_9 = arith.constant 0 : index
      %c0_10 = arith.constant 0 : index
      %12 = vector.load %arg7[%c0_9, %c0_10] : memref<128x256xf32, #tpu.memory_space<vmem>>, vector<128x256xf32>
      %c0_11 = arith.constant 0 : index
      %c0_12 = arith.constant 0 : index
      %13 = vector.load %arg5[%c0_11, %c0_12] : memref<1x256xf32, #tpu.memory_space<vmem>>, vector<1x256xf32>
      %14 = vector.broadcast %13 : vector<1x256xf32> to vector<128x256xf32>
      %15 = arith.addf %12, %14 : vector<128x256xf32>
      %c0_13 = arith.constant 0 : index
      %c0_14 = arith.constant 0 : index
      %16 = vector.load %arg6[%c0_13, %c0_14] : memref<128x256xf32, #tpu.memory_space<vmem>>, vector<128x256xf32>
      tpu.vector_store %arg6[%c0_13, %c0_14], %15 {strides = array<i32>} : memref<128x256xf32, #tpu.memory_space<vmem>>, vector<128x256xf32>,
    } else {
    }
    return
  }
  func.func @transform_0(%arg0: i32, %arg1: i32, %arg2: i32) -> (i32, i32) {
    %c0_i32 = arith.constant 0 : i32
    return %arg0, %arg2 : i32, i32
  }
  func.func @transform_1(%arg0: i32, %arg1: i32, %arg2: i32) -> (i32, i32) {
    %c0_i32 = arith.constant 0 : i32
    return %arg2, %arg1 : i32, i32
  }
  func.func @transform_2(%arg0: i32, %arg1: i32, %arg2: i32) -> (i32, i32) {
    %c0_i32 = arith.constant 0 : i32
    %c0_i32_0 = arith.constant 0 : i32
    return %c0_i32, %arg1 : i32, i32
  }
  func.func @transform_3(%arg0: i32, %arg1: i32, %arg2: i32) -> (i32, i32) {
    %c0_i32 = arith.constant 0 : i32
    return %arg0, %arg1 : i32, i32
  }
}

module attributes {stable_mosaic.version = 11 : i64} {
  func.func @_inorm_lrelu_kernel(%arg0: i32, %arg1: i32, %arg2: memref<1x16x128xf32, #tpu.memory_space<vmem>>, %arg3: memref<1x16x128xf32, #tpu.memory_space<vmem>>) attributes {dimension_semantics = [#tpu.dimension_semantics<parallel>, #tpu.dimension_semantics<parallel>], iteration_bounds = array<i64: 8, 2>, scalar_prefetch = 0 : i64, scratch_operands = 0 : i64, tpu.core_type = #tpu.core_type<tc>, window_params = [{transform_indices = @transform_0, window_bounds = array<i64: 1, 16, 128>}, {transform_indices = @transform_1, window_bounds = array<i64: 1, 16, 128>}]} {
    %c0 = arith.constant 0 : index
    %c0_0 = arith.constant 0 : index
    %c0_1 = arith.constant 0 : index
    %0 = vector.load %arg2[%c0, %c0_0, %c0_1] : memref<1x16x128xf32, #tpu.memory_space<vmem>>, vector<1x16x128xf32>
    %cst = arith.constant dense<0.000000e+00> : vector<1x128xf32>
    %1 = vector.multi_reduction <add>, %0, %cst [1] : vector<1x16x128xf32> to vector<1x128xf32>
    %2 = vector.shape_cast %1 : vector<1x128xf32> to vector<1x1x128xf32>
    %cst_2 = arith.constant 1.600000e+01 : f32
    %3 = vector.broadcast %cst_2 : f32 to vector<1x1x128xf32>
    %4 = arith.divf %2, %3 : vector<1x1x128xf32>
    %5 = vector.broadcast %4 : vector<1x1x128xf32> to vector<1x16x128xf32>
    %6 = arith.subf %0, %5 : vector<1x16x128xf32>
    %7 = arith.mulf %6, %6 : vector<1x16x128xf32>
    %cst_3 = arith.constant dense<0.000000e+00> : vector<1x128xf32>
    %8 = vector.multi_reduction <add>, %7, %cst_3 [1] : vector<1x16x128xf32> to vector<1x128xf32>
    %9 = vector.shape_cast %8 : vector<1x128xf32> to vector<1x1x128xf32>
    %cst_4 = arith.constant 1.600000e+01 : f32
    %10 = vector.broadcast %cst_4 : f32 to vector<1x1x128xf32>
    %11 = arith.divf %9, %10 : vector<1x1x128xf32>
    %cst_5 = arith.constant 9.99999974E-6 : f32
    %12 = vector.broadcast %cst_5 : f32 to vector<1x1x128xf32>
    %13 = arith.addf %11, %12 : vector<1x1x128xf32>
    %14 = math.rsqrt %13 : vector<1x1x128xf32>
    %15 = vector.broadcast %14 : vector<1x1x128xf32> to vector<1x16x128xf32>
    %16 = arith.mulf %6, %15 : vector<1x16x128xf32>
    %cst_6 = arith.constant 0.000000e+00 : f32
    %17 = vector.broadcast %cst_6 : f32 to vector<1x16x128xf32>
    %18 = arith.cmpf oge, %16, %17 : vector<1x16x128xf32>
    %cst_7 = arith.constant 0.00999999977 : f32
    %19 = vector.broadcast %cst_7 : f32 to vector<1x16x128xf32>
    %20 = arith.mulf %19, %16 : vector<1x16x128xf32>
    %21 = arith.select %18, %16, %20 : vector<1x16x128xi1>, vector<1x16x128xf32>
    %c0_8 = arith.constant 0 : index
    %c0_9 = arith.constant 0 : index
    %c0_10 = arith.constant 0 : index
    %22 = vector.load %arg3[%c0_8, %c0_9, %c0_10] : memref<1x16x128xf32, #tpu.memory_space<vmem>>, vector<1x16x128xf32>
    tpu.vector_store %arg3[%c0_8, %c0_9, %c0_10], %21 {strides = array<i32>} : memref<1x16x128xf32, #tpu.memory_space<vmem>>, vector<1x16x128xf32>,
    return
  }
  func.func @transform_0(%arg0: i32, %arg1: i32) -> (i32, i32, i32) {
    %c0_i32 = arith.constant 0 : i32
    %c0_i32_0 = arith.constant 0 : i32
    return %arg0, %c0_i32, %arg1 : i32, i32, i32
  }
  func.func @transform_1(%arg0: i32, %arg1: i32) -> (i32, i32, i32) {
    %c0_i32 = arith.constant 0 : i32
    %c0_i32_0 = arith.constant 0 : i32
    return %arg0, %c0_i32, %arg1 : i32, i32, i32
  }
}

module attributes {stable_mosaic.version = 11 : i64} {
  func.func @_matmul_bias_act_kernel(%arg0: i32, %arg1: i32, %arg2: i32, %arg3: memref<128x768xbf16, #tpu.memory_space<vmem>>, %arg4: memref<768x128xbf16, #tpu.memory_space<vmem>>, %arg5: memref<1x128xf32, #tpu.memory_space<vmem>>, %arg6: memref<128x128xf32, #tpu.memory_space<vmem>>, %arg7: memref<128x128xf32, #tpu.memory_space<vmem>>) attributes {dimension_semantics = [#tpu.dimension_semantics<parallel>, #tpu.dimension_semantics<parallel>, #tpu.dimension_semantics<arbitrary>], iteration_bounds = array<i64: 1, 1, 3>, scalar_prefetch = 0 : i64, scratch_operands = 1 : i64, tpu.core_type = #tpu.core_type<tc>, window_params = [{transform_indices = @transform_0, window_bounds = array<i64: 128, 768>}, {transform_indices = @transform_1, window_bounds = array<i64: 768, 128>}, {transform_indices = @transform_2, window_bounds = array<i64: 1, 128>}, {transform_indices = @transform_3, window_bounds = array<i64: 128, 128>}]} {
    %c0_i32 = arith.constant 0 : i32
    %0 = arith.cmpi eq, %arg2, %c0_i32 : i32
    %1 = arith.extui %0 : i1 to i32
    %c0_i32_0 = arith.constant 0 : i32
    %2 = arith.cmpi ne, %1, %c0_i32_0 : i32
    scf.if %2 {
      %cst_9 = arith.constant 0.000000e+00 : f32
      %12 = vector.broadcast %cst_9 : f32 to vector<128x128xf32>
      %c0_10 = arith.constant 0 : index
      %c0_11 = arith.constant 0 : index
      %13 = vector.load %arg7[%c0_10, %c0_11] : memref<128x128xf32, #tpu.memory_space<vmem>>, vector<128x128xf32>
      tpu.vector_store %arg7[%c0_10, %c0_11], %12 {strides = array<i32>} : memref<128x128xf32, #tpu.memory_space<vmem>>, vector<128x128xf32>,
    } else {
    }
    %c0 = arith.constant 0 : index
    %c0_1 = arith.constant 0 : index
    %3 = vector.load %arg7[%c0, %c0_1] : memref<128x128xf32, #tpu.memory_space<vmem>>, vector<128x128xf32>
    %c0_2 = arith.constant 0 : index
    %c0_3 = arith.constant 0 : index
    %4 = vector.load %arg3[%c0_2, %c0_3] : memref<128x768xbf16, #tpu.memory_space<vmem>>, vector<128x768xbf16>
    %c0_4 = arith.constant 0 : index
    %c0_5 = arith.constant 0 : index
    %5 = vector.load %arg4[%c0_4, %c0_5] : memref<768x128xbf16, #tpu.memory_space<vmem>>, vector<768x128xbf16>
    %cst = arith.constant dense<0.000000e+00> : vector<128x128xf32>
    %6 = tpu.matmul %4, %5, %cst {dimension_numbers = #tpu.dot_dimension_numbers<[1], [0], [0], [1], [0, 0, 1, 1], [], []>} : vector<128x768xbf16>, vector<768x128xbf16>, vector<128x128xf32> -> vector<128x128xf32>
    %7 = arith.addf %3, %6 : vector<128x128xf32>
    %c0_6 = arith.constant 0 : index
    %c0_7 = arith.constant 0 : index
    %8 = vector.load %arg7[%c0_6, %c0_7] : memref<128x128xf32, #tpu.memory_space<vmem>>, vector<128x128xf32>
    tpu.vector_store %arg7[%c0_6, %c0_7], %7 {strides = array<i32>} : memref<128x128xf32, #tpu.memory_space<vmem>>, vector<128x128xf32>,
    %c2_i32 = arith.constant 2 : i32
    %9 = arith.cmpi eq, %arg2, %c2_i32 : i32
    %10 = arith.extui %9 : i1 to i32
    %c0_i32_8 = arith.constant 0 : i32
    %11 = arith.cmpi ne, %10, %c0_i32_8 : i32
    scf.if %11 {
      %c0_9 = arith.constant 0 : index
      %c0_10 = arith.constant 0 : index
      %12 = vector.load %arg7[%c0_9, %c0_10] : memref<128x128xf32, #tpu.memory_space<vmem>>, vector<128x128xf32>
      %c0_11 = arith.constant 0 : index
      %c0_12 = arith.constant 0 : index
      %13 = vector.load %arg5[%c0_11, %c0_12] : memref<1x128xf32, #tpu.memory_space<vmem>>, vector<1x128xf32>
      %14 = vector.broadcast %13 : vector<1x128xf32> to vector<128x128xf32>
      %15 = arith.addf %12, %14 : vector<128x128xf32>
      %c0_13 = arith.constant 0 : index
      %c0_14 = arith.constant 0 : index
      %16 = vector.load %arg6[%c0_13, %c0_14] : memref<128x128xf32, #tpu.memory_space<vmem>>, vector<128x128xf32>
      tpu.vector_store %arg6[%c0_13, %c0_14], %15 {strides = array<i32>} : memref<128x128xf32, #tpu.memory_space<vmem>>, vector<128x128xf32>,
    } else {
    }
    return
  }
  func.func @transform_0(%arg0: i32, %arg1: i32, %arg2: i32) -> (i32, i32) {
    %c0_i32 = arith.constant 0 : i32
    return %arg0, %arg2 : i32, i32
  }
  func.func @transform_1(%arg0: i32, %arg1: i32, %arg2: i32) -> (i32, i32) {
    %c0_i32 = arith.constant 0 : i32
    return %arg2, %arg1 : i32, i32
  }
  func.func @transform_2(%arg0: i32, %arg1: i32, %arg2: i32) -> (i32, i32) {
    %c0_i32 = arith.constant 0 : i32
    %c0_i32_0 = arith.constant 0 : i32
    return %c0_i32, %arg1 : i32, i32
  }
  func.func @transform_3(%arg0: i32, %arg1: i32, %arg2: i32) -> (i32, i32) {
    %c0_i32 = arith.constant 0 : i32
    return %arg0, %arg1 : i32, i32
  }
}

module attributes {stable_mosaic.version = 11 : i64} {
  func.func @_matmul_bias_act_kernel(%arg0: i32, %arg1: i32, %arg2: i32, %arg3: memref<128x768xbf16, #tpu.memory_space<vmem>>, %arg4: memref<768x256xbf16, #tpu.memory_space<vmem>>, %arg5: memref<1x256xf32, #tpu.memory_space<vmem>>, %arg6: memref<128x256xf32, #tpu.memory_space<vmem>>, %arg7: memref<128x256xf32, #tpu.memory_space<vmem>>) attributes {dimension_semantics = [#tpu.dimension_semantics<parallel>, #tpu.dimension_semantics<parallel>, #tpu.dimension_semantics<arbitrary>], iteration_bounds = array<i64: 1, 1, 3>, scalar_prefetch = 0 : i64, scratch_operands = 1 : i64, tpu.core_type = #tpu.core_type<tc>, window_params = [{transform_indices = @transform_0, window_bounds = array<i64: 128, 768>}, {transform_indices = @transform_1, window_bounds = array<i64: 768, 256>}, {transform_indices = @transform_2, window_bounds = array<i64: 1, 256>}, {transform_indices = @transform_3, window_bounds = array<i64: 128, 256>}]} {
    %c0_i32 = arith.constant 0 : i32
    %0 = arith.cmpi eq, %arg2, %c0_i32 : i32
    %1 = arith.extui %0 : i1 to i32
    %c0_i32_0 = arith.constant 0 : i32
    %2 = arith.cmpi ne, %1, %c0_i32_0 : i32
    scf.if %2 {
      %cst_9 = arith.constant 0.000000e+00 : f32
      %12 = vector.broadcast %cst_9 : f32 to vector<128x256xf32>
      %c0_10 = arith.constant 0 : index
      %c0_11 = arith.constant 0 : index
      %13 = vector.load %arg7[%c0_10, %c0_11] : memref<128x256xf32, #tpu.memory_space<vmem>>, vector<128x256xf32>
      tpu.vector_store %arg7[%c0_10, %c0_11], %12 {strides = array<i32>} : memref<128x256xf32, #tpu.memory_space<vmem>>, vector<128x256xf32>,
    } else {
    }
    %c0 = arith.constant 0 : index
    %c0_1 = arith.constant 0 : index
    %3 = vector.load %arg7[%c0, %c0_1] : memref<128x256xf32, #tpu.memory_space<vmem>>, vector<128x256xf32>
    %c0_2 = arith.constant 0 : index
    %c0_3 = arith.constant 0 : index
    %4 = vector.load %arg3[%c0_2, %c0_3] : memref<128x768xbf16, #tpu.memory_space<vmem>>, vector<128x768xbf16>
    %c0_4 = arith.constant 0 : index
    %c0_5 = arith.constant 0 : index
    %5 = vector.load %arg4[%c0_4, %c0_5] : memref<768x256xbf16, #tpu.memory_space<vmem>>, vector<768x256xbf16>
    %cst = arith.constant dense<0.000000e+00> : vector<128x256xf32>
    %6 = tpu.matmul %4, %5, %cst {dimension_numbers = #tpu.dot_dimension_numbers<[1], [0], [0], [1], [0, 0, 1, 1], [], []>} : vector<128x768xbf16>, vector<768x256xbf16>, vector<128x256xf32> -> vector<128x256xf32>
    %7 = arith.addf %3, %6 : vector<128x256xf32>
    %c0_6 = arith.constant 0 : index
    %c0_7 = arith.constant 0 : index
    %8 = vector.load %arg7[%c0_6, %c0_7] : memref<128x256xf32, #tpu.memory_space<vmem>>, vector<128x256xf32>
    tpu.vector_store %arg7[%c0_6, %c0_7], %7 {strides = array<i32>} : memref<128x256xf32, #tpu.memory_space<vmem>>, vector<128x256xf32>,
    %c2_i32 = arith.constant 2 : i32
    %9 = arith.cmpi eq, %arg2, %c2_i32 : i32
    %10 = arith.extui %9 : i1 to i32
    %c0_i32_8 = arith.constant 0 : i32
    %11 = arith.cmpi ne, %10, %c0_i32_8 : i32
    scf.if %11 {
      %c0_9 = arith.constant 0 : index
      %c0_10 = arith.constant 0 : index
      %12 = vector.load %arg7[%c0_9, %c0_10] : memref<128x256xf32, #tpu.memory_space<vmem>>, vector<128x256xf32>
      %c0_11 = arith.constant 0 : index
      %c0_12 = arith.constant 0 : index
      %13 = vector.load %arg5[%c0_11, %c0_12] : memref<1x256xf32, #tpu.memory_space<vmem>>, vector<1x256xf32>
      %14 = vector.broadcast %13 : vector<1x256xf32> to vector<128x256xf32>
      %15 = arith.addf %12, %14 : vector<128x256xf32>
      %c0_13 = arith.constant 0 : index
      %c0_14 = arith.constant 0 : index
      %16 = vector.load %arg6[%c0_13, %c0_14] : memref<128x256xf32, #tpu.memory_space<vmem>>, vector<128x256xf32>
      tpu.vector_store %arg6[%c0_13, %c0_14], %15 {strides = array<i32>} : memref<128x256xf32, #tpu.memory_space<vmem>>, vector<128x256xf32>,
    } else {
    }
    return
  }
  func.func @transform_0(%arg0: i32, %arg1: i32, %arg2: i32) -> (i32, i32) {
    %c0_i32 = arith.constant 0 : i32
    return %arg0, %arg2 : i32, i32
  }
  func.func @transform_1(%arg0: i32, %arg1: i32, %arg2: i32) -> (i32, i32) {
    %c0_i32 = arith.constant 0 : i32
    return %arg2, %arg1 : i32, i32
  }
  func.func @transform_2(%arg0: i32, %arg1: i32, %arg2: i32) -> (i32, i32) {
    %c0_i32 = arith.constant 0 : i32
    %c0_i32_0 = arith.constant 0 : i32
    return %c0_i32, %arg1 : i32, i32
  }
  func.func @transform_3(%arg0: i32, %arg1: i32, %arg2: i32) -> (i32, i32) {
    %c0_i32 = arith.constant 0 : i32
    return %arg0, %arg1 : i32, i32
  }
}

</mosaic_0001>

<bundles_post_ra>
// kernel: forward.10
= control target key start
LH: loop header
LB: loop body
LE: loop exit
PB: predicated region body
PF: predicated region fallthrough
CT: control target
= control target key end

     0   :  { %s1208_s12 = smov 0   ;;  %s1210_s13 = smov 0   ;;  %s1361_s0 = inlined_call_operand.vmem [shape: bf16[2048,128], index: 0, kind: input, shape index: {}]   ;;  %s1362_s1 = inlined_call_operand.vmem [shape: bf16[128,128], index: 1, kind: input, shape index: {}]   ;;  %s1363_s2 = inlined_call_operand.vmem [shape: f32[1,128], index: 2, kind: input, shape index: {}]   ;;  %s1364_s3 = inlined_call_operand.vmem [shape: f32[2048,128], index: 3, kind: output, shape index: {}]  }
   0x1   :  { %s1212_s14 = smov 0  }
   0x2 LB: > { %s32_s15 = sadd.s32 1, %s1182_s13  ;;  %p988_p0 = scmp.ge.s32.totalorder %s1186_s14, 1  ;;  %s1186_s14 = sphi %s1212_s14, %s13_s14   ;;  %s1182_s13 = sphi %s1210_s13, %s1366_s13   ;;  %s1178_s12 = sphi %s1208_s12, %s1365_s12  }
   0x3   : > { %p34_p1 = scmp.ge.s32.totalorder %s32_s15, 8  ;;  %p188_p2 = scmp.lt.s32.totalorder %s1186_s14, 9 }
   0x5   : > { %s1368_s15 = smov (%p34_p1, %s32_s15), 0  ;;  %p189_p3 = pnand %p988_p0, %p188_p2 }
   0x6   : > { %s989_s24 = sshll.u32 (!%p189_p3), %s1178_s12, 5 }
   0x7   : > { %192 = sbr.rel (%p189_p3) target bundleno = 240 (0xf0), region = 32  ;;  %p230_p4 = scmp.lt.s32.totalorder (!%p189_p3), %s989_s24, 255 }
   0xc   : > { %v1114_v0 = vld [vmem:[%s1362_s1 + $0x38] sm:$0xff]  ;;  %v1113_v1 = vld [vmem:[%s1362_s1 + $0x30] sm:$0xff]  ;;  %v1112_v2 = vld [vmem:[%s1362_s1 + $0x28] sm:$0xff]  ;;  %s1370_s24 = smov (!%p230_p4, %s989_s24), 255 }
   0xd   : > { %519 = vmatpush.bf16.msra.mxu0 %v1114_v0  ;;  %1115 = vmatpush.bf16.msra.mxu1 %v1114_v0  ;;  %v1111_v3 = vld [vmem:[%s1362_s1 + $0x20] sm:$0xff]  ;;  %v1110_v4 = vld [vmem:[%s1362_s1 + $0x18] sm:$0xff]  ;;  %v1109_v5 = vld [vmem:[%s1362_s1 + $0x10] sm:$0xff]  ;;  %s990_s4 = sshll.u32 %s1370_s24, 2  ;;  %s992_s12 = sshll.u32 %s1370_s24, 3 }
   0xe   : > { %1116 = vmatpush.bf16.msra.mxu2 %v1114_v0  ;;  %1117 = vmatpush.bf16.msra.mxu3 %v1114_v0  ;;  %v1108_v6 = vld [vmem:[%s1362_s1 + $0x8] sm:$0xff]  ;;  %v1107_v7 = vld [vmem:[%s1362_s1] sm:$0xff]  ;;  %s1259_s9 = scalar_lea.vmem %s1361_s0, %s990_s4  ;;  %s1288_s18 = scalar_lea.vmem %s1364_s3, %s992_s12 }
   0xf   : > { %v1091_v8 = vld [vmem:[%s1259_s9] sm:$0xff]  ;;  %v1092_v12 = vld [vmem:[%s1259_s9 + $0x8] sm:$0xff]  ;;  %v1093_v16 = vld [vmem:[%s1259_s9 + $0x10] sm:$0xff] }
  0x10   : > { %v1095_v9 = vld [vmem:[%s1259_s9 + $0x20] sm:$0xff]  ;;  %v1096_v13 = vld [vmem:[%s1259_s9 + $0x28] sm:$0xff]  ;;  %v1097_v17 = vld [vmem:[%s1259_s9 + $0x30] sm:$0xff] }
  0x11   : > { %520 = vmatpush.bf16.msra.mxu0 %v1113_v1  ;;  %1118 = vmatpush.bf16.msra.mxu1 %v1113_v1  ;;  %v1099_v10 = vld [vmem:[%s1259_s9 + $0x40] sm:$0xff]  ;;  %v1100_v14 = vld [vmem:[%s1259_s9 + $0x48] sm:$0xff]  ;;  %v1101_v18 = vld [vmem:[%s1259_s9 + $0x50] sm:$0xff] }
  0x12   : > { %1119 = vmatpush.bf16.msra.mxu2 %v1113_v1  ;;  %1120 = vmatpush.bf16.msra.mxu3 %v1113_v1  ;;  %v1103_v11 = vld [vmem:[%s1259_s9 + $0x60] sm:$0xff]  ;;  %v1104_v15 = vld [vmem:[%s1259_s9 + $0x68] sm:$0xff]  ;;  %v1105_v19 = vld [vmem:[%s1259_s9 + $0x70] sm:$0xff] }
  0x13   : > { %v1094_v20 = vld [vmem:[%s1259_s9 + $0x18] sm:$0xff]  ;;  %v1280_v24 = vld [vmem:[%s1363_s2] ss:$0 sm:$0xff] }
  0x14   : > { %v1098_v21 = vld [vmem:[%s1259_s9 + $0x38] sm:$0xff] }
  0x15   : > { %521 = vmatpush.bf16.msra.mxu0 %v1112_v2  ;;  %1121 = vmatpush.bf16.msra.mxu1 %v1112_v2  ;;  %v1102_v22 = vld [vmem:[%s1259_s9 + $0x58] sm:$0xff] }
  0x16   : > { %1122 = vmatpush.bf16.msra.mxu2 %v1112_v2  ;;  %1123 = vmatpush.bf16.msra.mxu3 %v1112_v2  ;;  %v1106_v23 = vld [vmem:[%s1259_s9 + $0x78] sm:$0xff] }
  0x19   : > { %522 = vmatpush.bf16.msra.mxu0 %v1111_v3  ;;  %1124 = vmatpush.bf16.msra.mxu1 %v1111_v3 }
  0x1a   : > { %1125 = vmatpush.bf16.msra.mxu2 %v1111_v3  ;;  %1126 = vmatpush.bf16.msra.mxu3 %v1111_v3 }
  0x1d   : > { %523 = vmatpush.bf16.msra.mxu0 %v1110_v4  ;;  %1127 = vmatpush.bf16.msra.mxu1 %v1110_v4 }
  0x1e   : > { %1128 = vmatpush.bf16.msra.mxu2 %v1110_v4  ;;  %1129 = vmatpush.bf16.msra.mxu3 %v1110_v4 }
  0x21   : > { %524 = vmatpush.bf16.msra.mxu0 %v1109_v5  ;;  %1130 = vmatpush.bf16.msra.mxu1 %v1109_v5 }
  0x22   : > { %1131 = vmatpush.bf16.msra.mxu2 %v1109_v5  ;;  %1132 = vmatpush.bf16.msra.mxu3 %v1109_v5 }
  0x25   : > { %525 = vmatpush.bf16.msra.mxu0 %v1108_v6  ;;  %1133 = vmatpush.bf16.msra.mxu1 %v1108_v6 }
  0x26   : > { %1134 = vmatpush.bf16.msra.mxu2 %v1108_v6  ;;  %1135 = vmatpush.bf16.msra.mxu3 %v1108_v6 }
  0x29   : > { %526 = vmatpush.bf16.msra.mxu0 %v1107_v7  ;;  %1136 = vmatpush.bf16.msra.mxu1 %v1107_v7 }
  0x2a   : > { %1137 = vmatpush.bf16.msra.mxu2 %v1107_v7  ;;  %1138 = vmatpush.bf16.msra.mxu3 %v1107_v7 }
  0x2c   : > { %527 = vmatmul.bf16.vlgmr.msra.gmra.mxu0 %v1091_v8  ;;  %547 = vmatmul.bf16.vlgmr.msra.gmra.mxu1 %v1095_v9 }
  0x2d   : > { %567 = vmatmul.bf16.vlgmr.msra.gmra.mxu2 %v1099_v10  ;;  %587 = vmatmul.bf16.vlgmr.msra.gmra.mxu3 %v1103_v11 }
  0x3c   : > { %532 = vmatmul.bf16.gmra.mxu0 %v1092_v12  ;;  %552 = vmatmul.bf16.gmra.mxu1 %v1096_v13 }
  0x3d   : > { %572 = vmatmul.bf16.gmra.mxu2 %v1100_v14  ;;  %592 = vmatmul.bf16.gmra.mxu3 %v1104_v15 }
  0x4c   : > { %537 = vmatmul.bf16.gmra.mxu0 %v1093_v16  ;;  %557 = vmatmul.bf16.gmra.mxu1 %v1097_v17 }
  0x4d   : > { %577 = vmatmul.bf16.gmra.mxu2 %v1101_v18  ;;  %597 = vmatmul.bf16.gmra.mxu3 %v1105_v19 }
  0x5c   : > { %542 = vmatmul.bf16.gmra.mxu0 %v1094_v20  ;;  %562 = vmatmul.bf16.gmra.mxu1 %v1098_v21 }
  0x5d   : > { %582 = vmatmul.bf16.gmra.mxu2 %v1102_v22  ;;  %602 = vmatmul.bf16.gmra.mxu3 %v1106_v23 }
  0xa9   : > { %v528_v25 = vpop.f32.mrf.mxu0  ;;  %v548_v26 = vpop.f32.mrf.mxu1 }
  0xaa   : > { %v711_v27 = vadd.f32 %v1280_v24, %v528_v25  ;;  %v719_v28 = vadd.f32 %v1280_v24, %v548_v26 }
  0xac   : > { %vm743_vm0 = vcmp.ge.f32.partialorder %v711_v27, 0.0  ;;  %v775_v29 = vmul.f32 0.01, %v711_v27  ;;  %vm751_vm1 = vcmp.ge.f32.partialorder %v719_v28, 0.0  ;;  %v783_v30 = vmul.f32 0.01, %v719_v28 }
  0xae   : > { %v807_v31 = vsel %vm743_vm0, %v711_v27, %v775_v29  ;;  %v815_v32 = vsel %vm751_vm1, %v719_v28, %v783_v30 }
  0xaf   : > { %839 = vst [vmem:[%s1288_s18] sm:$0xff] %v807_v31 }
  0xb0   : > { %847 = vst [vmem:[%s1288_s18 + $0x40] sm:$0xff] %v815_v32  ;;  %v568_v33 = vpop.f32.mrf.mxu2  ;;  %v588_v34 = vpop.f32.mrf.mxu3 }
  0xb1   : > { %v727_v35 = vadd.f32 %v1280_v24, %v568_v33  ;;  %v735_v36 = vadd.f32 %v1280_v24, %v588_v34  ;;  %v530_v37 = vpop.f32.mrf.mxu0  ;;  %v550_v38 = vpop.f32.mrf.mxu1 }
  0xb2   : > { %v712_v39 = vadd.f32 %v1280_v24, %v530_v37  ;;  %v720_v40 = vadd.f32 %v1280_v24, %v550_v38 }
  0xb3   : > { %vm759_vm2 = vcmp.ge.f32.partialorder %v727_v35, 0.0  ;;  %v791_v41 = vmul.f32 0.01, %v727_v35  ;;  %vm767_vm3 = vcmp.ge.f32.partialorder %v735_v36, 0.0  ;;  %v799_v42 = vmul.f32 0.01, %v735_v36 }
  0xb4   : > { %vm744_vm4 = vcmp.ge.f32.partialorder %v712_v39, 0.0  ;;  %v776_v43 = vmul.f32 0.01, %v712_v39  ;;  %vm752_vm5 = vcmp.ge.f32.partialorder %v720_v40, 0.0  ;;  %v784_v44 = vmul.f32 0.01, %v720_v40 }
  0xb5   : > { %v823_v45 = vsel %vm759_vm2, %v727_v35, %v791_v41  ;;  %v831_v46 = vsel %vm767_vm3, %v735_v36, %v799_v42 }
  0xb6   : > { %855 = vst [vmem:[%s1288_s18 + $0x80] sm:$0xff] %v823_v45  ;;  %v808_v47 = vsel %vm744_vm4, %v712_v39, %v776_v43  ;;  %v816_v48 = vsel %vm752_vm5, %v720_v40, %v784_v44 }
  0xb7   : > { %863 = vst [vmem:[%s1288_s18 + $0xc0] sm:$0xff] %v831_v46 }
  0xb8   : > { %840 = vst [vmem:[%s1288_s18 + $0x8] sm:$0xff] %v808_v47  ;;  %v570_v49 = vpop.f32.mrf.mxu2  ;;  %v590_v50 = vpop.f32.mrf.mxu3 }
  0xb9   : > { %848 = vst [vmem:[%s1288_s18 + $0x48] sm:$0xff] %v816_v48  ;;  %v728_v51 = vadd.f32 %v1280_v24, %v570_v49  ;;  %v736_v52 = vadd.f32 %v1280_v24, %v590_v50  ;;  %v533_v53 = vpop.f32.mrf.mxu0  ;;  %v553_v54 = vpop.f32.mrf.mxu1 }
  0xba   : > { %v713_v55 = vadd.f32 %v1280_v24, %v533_v53  ;;  %v721_v56 = vadd.f32 %v1280_v24, %v553_v54 }
  0xbb   : > { %vm760_vm6 = vcmp.ge.f32.partialorder %v728_v51, 0.0  ;;  %v792_v57 = vmul.f32 0.01, %v728_v51  ;;  %vm768_vm7 = vcmp.ge.f32.partialorder %v736_v52, 0.0  ;;  %v800_v58 = vmul.f32 0.01, %v736_v52 }
  0xbc   : > { %vm745_vm8 = vcmp.ge.f32.partialorder %v713_v55, 0.0  ;;  %v777_v59 = vmul.f32 0.01, %v713_v55  ;;  %vm753_vm9 = vcmp.ge.f32.partialorder %v721_v56, 0.0  ;;  %v785_v60 = vmul.f32 0.01, %v721_v56 }
  0xbd   : > { %v824_v61 = vsel %vm760_vm6, %v728_v51, %v792_v57  ;;  %v832_v62 = vsel %vm768_vm7, %v736_v52, %v800_v58 }
  0xbe   : > { %856 = vst [vmem:[%s1288_s18 + $0x88] sm:$0xff] %v824_v61  ;;  %v809_v63 = vsel %vm745_vm8, %v713_v55, %v777_v59  ;;  %v817_v0 = vsel %vm753_vm9, %v721_v56, %v785_v60 }
  0xbf   : > { %864 = vst [vmem:[%s1288_s18 + $0xc8] sm:$0xff] %v832_v62 }
  0xc0   : > { %841 = vst [vmem:[%s1288_s18 + $0x10] sm:$0xff] %v809_v63  ;;  %v573_v1 = vpop.f32.mrf.mxu2  ;;  %v593_v2 = vpop.f32.mrf.mxu3 }
  0xc1   : > { %849 = vst [vmem:[%s1288_s18 + $0x50] sm:$0xff] %v817_v0  ;;  %v729_v3 = vadd.f32 %v1280_v24, %v573_v1  ;;  %v737_v4 = vadd.f32 %v1280_v24, %v593_v2  ;;  %v535_v5 = vpop.f32.mrf.mxu0  ;;  %v555_v6 = vpop.f32.mrf.mxu1 }
  0xc2   : > { %v714_v7 = vadd.f32 %v1280_v24, %v535_v5  ;;  %v722_v8 = vadd.f32 %v1280_v24, %v555_v6 }
  0xc3   : > { %vm761_vm10 = vcmp.ge.f32.partialorder %v729_v3, 0.0  ;;  %v793_v9 = vmul.f32 0.01, %v729_v3  ;;  %vm769_vm11 = vcmp.ge.f32.partialorder %v737_v4, 0.0  ;;  %v801_v10 = vmul.f32 0.01, %v737_v4 }
  0xc4   : > { %vm746_vm12 = vcmp.ge.f32.partialorder %v714_v7, 0.0  ;;  %v778_v11 = vmul.f32 0.01, %v714_v7  ;;  %vm754_vm13 = vcmp.ge.f32.partialorder %v722_v8, 0.0  ;;  %v786_v12 = vmul.f32 0.01, %v722_v8 }
  0xc5   : > { %v825_v13 = vsel %vm761_vm10, %v729_v3, %v793_v9  ;;  %v833_v14 = vsel %vm769_vm11, %v737_v4, %v801_v10 }
  0xc6   : > { %857 = vst [vmem:[%s1288_s18 + $0x90] sm:$0xff] %v825_v13  ;;  %v810_v15 = vsel %vm746_vm12, %v714_v7, %v778_v11  ;;  %v818_v16 = vsel %vm754_vm13, %v722_v8, %v786_v12 }
  0xc7   : > { %865 = vst [vmem:[%s1288_s18 + $0xd0] sm:$0xff] %v833_v14 }
  0xc8   : > { %842 = vst [vmem:[%s1288_s18 + $0x18] sm:$0xff] %v810_v15  ;;  %v575_v17 = vpop.f32.mrf.mxu2  ;;  %v595_v18 = vpop.f32.mrf.mxu3 }
  0xc9   : > { %850 = vst [vmem:[%s1288_s18 + $0x58] sm:$0xff] %v818_v16  ;;  %v730_v19 = vadd.f32 %v1280_v24, %v575_v17  ;;  %v738_v20 = vadd.f32 %v1280_v24, %v595_v18  ;;  %v538_v21 = vpop.f32.mrf.mxu0  ;;  %v558_v22 = vpop.f32.mrf.mxu1 }
  0xca   : > { %v715_v23 = vadd.f32 %v1280_v24, %v538_v21  ;;  %v723_v25 = vadd.f32 %v1280_v24, %v558_v22 }
  0xcb   : > { %vm762_vm14 = vcmp.ge.f32.partialorder %v730_v19, 0.0  ;;  %v794_v26 = vmul.f32 0.01, %v730_v19  ;;  %vm770_vm15 = vcmp.ge.f32.partialorder %v738_v20, 0.0  ;;  %v802_v27 = vmul.f32 0.01, %v738_v20 }
  0xcc   : > { %vm747_vm0 = vcmp.ge.f32.partialorder %v715_v23, 0.0  ;;  %v779_v28 = vmul.f32 0.01, %v715_v23  ;;  %vm755_vm1 = vcmp.ge.f32.partialorder %v723_v25, 0.0  ;;  %v787_v29 = vmul.f32 0.01, %v723_v25 }
  0xcd   : > { %v826_v30 = vsel %vm762_vm14, %v730_v19, %v794_v26  ;;  %v834_v31 = vsel %vm770_vm15, %v738_v20, %v802_v27 }
  0xce   : > { %858 = vst [vmem:[%s1288_s18 + $0x98] sm:$0xff] %v826_v30  ;;  %v811_v32 = vsel %vm747_vm0, %v715_v23, %v779_v28  ;;  %v819_v33 = vsel %vm755_vm1, %v723_v25, %v787_v29 }
  0xcf   : > { %866 = vst [vmem:[%s1288_s18 + $0xd8] sm:$0xff] %v834_v31 }
  0xd0   : > { %843 = vst [vmem:[%s1288_s18 + $0x20] sm:$0xff] %v811_v32  ;;  %v578_v34 = vpop.f32.mrf.mxu2  ;;  %v598_v35 = vpop.f32.mrf.mxu3 }
  0xd1   : > { %851 = vst [vmem:[%s1288_s18 + $0x60] sm:$0xff] %v819_v33  ;;  %v731_v36 = vadd.f32 %v1280_v24, %v578_v34  ;;  %v739_v37 = vadd.f32 %v1280_v24, %v598_v35  ;;  %v540_v38 = vpop.f32.mrf.mxu0  ;;  %v560_v39 = vpop.f32.mrf.mxu1 }
  0xd2   : > { %v716_v40 = vadd.f32 %v1280_v24, %v540_v38  ;;  %v724_v41 = vadd.f32 %v1280_v24, %v560_v39 }
  0xd3   : > { %vm763_vm2 = vcmp.ge.f32.partialorder %v731_v36, 0.0  ;;  %v795_v42 = vmul.f32 0.01, %v731_v36  ;;  %vm771_vm3 = vcmp.ge.f32.partialorder %v739_v37, 0.0  ;;  %v803_v43 = vmul.f32 0.01, %v739_v37 }
  0xd4   : > { %vm748_vm4 = vcmp.ge.f32.partialorder %v716_v40, 0.0  ;;  %v780_v44 = vmul.f32 0.01, %v716_v40  ;;  %vm756_vm5 = vcmp.ge.f32.partialorder %v724_v41, 0.0  ;;  %v788_v45 = vmul.f32 0.01, %v724_v41 }
  0xd5   : > { %v827_v46 = vsel %vm763_vm2, %v731_v36, %v795_v42  ;;  %v835_v47 = vsel %vm771_vm3, %v739_v37, %v803_v43 }
  0xd6   : > { %859 = vst [vmem:[%s1288_s18 + $0xa0] sm:$0xff] %v827_v46  ;;  %v812_v48 = vsel %vm748_vm4, %v716_v40, %v780_v44  ;;  %v820_v49 = vsel %vm756_vm5, %v724_v41, %v788_v45 }
  0xd7   : > { %867 = vst [vmem:[%s1288_s18 + $0xe0] sm:$0xff] %v835_v47 }
  0xd8   : > { %844 = vst [vmem:[%s1288_s18 + $0x28] sm:$0xff] %v812_v48  ;;  %v580_v50 = vpop.f32.mrf.mxu2  ;;  %v600_v51 = vpop.f32.mrf.mxu3 }
  0xd9   : > { %852 = vst [vmem:[%s1288_s18 + $0x68] sm:$0xff] %v820_v49  ;;  %v732_v52 = vadd.f32 %v1280_v24, %v580_v50  ;;  %v740_v53 = vadd.f32 %v1280_v24, %v600_v51  ;;  %v543_v54 = vpop.f32.mrf.mxu0  ;;  %v563_v55 = vpop.f32.mrf.mxu1 }
  0xda   : > { %v717_v56 = vadd.f32 %v1280_v24, %v543_v54  ;;  %v725_v57 = vadd.f32 %v1280_v24, %v563_v55 }
  0xdb   : > { %vm764_vm6 = vcmp.ge.f32.partialorder %v732_v52, 0.0  ;;  %v796_v58 = vmul.f32 0.01, %v732_v52  ;;  %vm772_vm7 = vcmp.ge.f32.partialorder %v740_v53, 0.0  ;;  %v804_v59 = vmul.f32 0.01, %v740_v53 }
  0xdc   : > { %vm749_vm8 = vcmp.ge.f32.partialorder %v717_v56, 0.0  ;;  %v781_v60 = vmul.f32 0.01, %v717_v56  ;;  %vm757_vm9 = vcmp.ge.f32.partialorder %v725_v57, 0.0  ;;  %v789_v61 = vmul.f32 0.01, %v725_v57 }
  0xdd   : > { %v828_v62 = vsel %vm764_vm6, %v732_v52, %v796_v58  ;;  %v836_v63 = vsel %vm772_vm7, %v740_v53, %v804_v59 }
  0xde   : > { %860 = vst [vmem:[%s1288_s18 + $0xa8] sm:$0xff] %v828_v62  ;;  %v813_v0 = vsel %vm749_vm8, %v717_v56, %v781_v60  ;;  %v821_v1 = vsel %vm757_vm9, %v725_v57, %v789_v61 }
  0xdf   : > { %868 = vst [vmem:[%s1288_s18 + $0xe8] sm:$0xff] %v836_v63 }
  0xe0   : > { %845 = vst [vmem:[%s1288_s18 + $0x30] sm:$0xff] %v813_v0  ;;  %v583_v2 = vpop.f32.mrf.mxu2  ;;  %v603_v3 = vpop.f32.mrf.mxu3 }
  0xe1   : > { %853 = vst [vmem:[%s1288_s18 + $0x70] sm:$0xff] %v821_v1  ;;  %v733_v4 = vadd.f32 %v1280_v24, %v583_v2  ;;  %v741_v5 = vadd.f32 %v1280_v24, %v603_v3  ;;  %v545_v6 = vpop.f32.mrf.mxu0  ;;  %v565_v7 = vpop.f32.mrf.mxu1 }
  0xe2   : > { %v718_v8 = vadd.f32 %v1280_v24, %v545_v6  ;;  %v726_v9 = vadd.f32 %v1280_v24, %v565_v7 }
  0xe3   : > { %vm765_vm10 = vcmp.ge.f32.partialorder %v733_v4, 0.0  ;;  %v797_v10 = vmul.f32 0.01, %v733_v4  ;;  %vm773_vm11 = vcmp.ge.f32.partialorder %v741_v5, 0.0  ;;  %v805_v11 = vmul.f32 0.01, %v741_v5 }
  0xe4   : > { %vm750_vm12 = vcmp.ge.f32.partialorder %v718_v8, 0.0  ;;  %v782_v12 = vmul.f32 0.01, %v718_v8  ;;  %vm758_vm13 = vcmp.ge.f32.partialorder %v726_v9, 0.0  ;;  %v790_v13 = vmul.f32 0.01, %v726_v9 }
  0xe5   : > { %v829_v14 = vsel %vm765_vm10, %v733_v4, %v797_v10  ;;  %v837_v15 = vsel %vm773_vm11, %v741_v5, %v805_v11 }
  0xe6   : > { %861 = vst [vmem:[%s1288_s18 + $0xb0] sm:$0xff] %v829_v14  ;;  %v814_v16 = vsel %vm750_vm12, %v718_v8, %v782_v12  ;;  %v822_v17 = vsel %vm758_vm13, %v726_v9, %v790_v13 }
  0xe7   : > { %869 = vst [vmem:[%s1288_s18 + $0xf0] sm:$0xff] %v837_v15 }
  0xe8   : > { %846 = vst [vmem:[%s1288_s18 + $0x38] sm:$0xff] %v814_v16  ;;  %v585_v18 = vpop.f32.mrf.mxu2  ;;  %v605_v19 = vpop.f32.mrf.mxu3 }
  0xe9   : > { %854 = vst [vmem:[%s1288_s18 + $0x78] sm:$0xff] %v822_v17  ;;  %v734_v20 = vadd.f32 %v1280_v24, %v585_v18  ;;  %v742_v21 = vadd.f32 %v1280_v24, %v605_v19 }
  0xeb   : > { %vm766_vm14 = vcmp.ge.f32.partialorder %v734_v20, 0.0  ;;  %v798_v22 = vmul.f32 0.01, %v734_v20  ;;  %vm774_vm15 = vcmp.ge.f32.partialorder %v742_v21, 0.0  ;;  %v806_v23 = vmul.f32 0.01, %v742_v21 }
  0xed   : > { %v830_v25 = vsel %vm766_vm14, %v734_v20, %v798_v22  ;;  %v838_v26 = vsel %vm774_vm15, %v742_v21, %v806_v23 }
  0xee   : > { %862 = vst [vmem:[%s1288_s18 + $0xb8] sm:$0xff] %v830_v25 }
  0xef   : > { %870 = vst [vmem:[%s1288_s18 + $0xf8] sm:$0xff] %v838_v26 }
  0xf0 PF: > { %s13_s14 = sadd.s32 1, %s1186_s14   ;;  %s1365_s12 = smov %s1182_s13 }
  0xf1   : > { %p10_p5 = scmp.ge.s32.totalorder %s13_s14, 10   ;;  %s1366_s13 = smov %s1368_s15 }
  0xf3   :  { %12 = sbr.rel (!%p10_p5) target bundleno = 2 (0x2), region = 76 }

// kernel: forward.11
= control target key start
LH: loop header
LB: loop body
LE: loop exit
PB: predicated region body
PF: predicated region fallthrough
CT: control target
= control target key end

     0   :  { %s2272_s12 = smov 0   ;;  %s2274_s13 = smov 0   ;;  %s2609_s0 = inlined_call_operand.vmem [shape: bf16[512,512], index: 0, kind: input, shape index: {}]   ;;  %s2610_s1 = inlined_call_operand.vmem [shape: bf16[512,128], index: 1, kind: input, shape index: {}]   ;;  %s2611_s2 = inlined_call_operand.vmem [shape: f32[1,128], index: 2, kind: input, shape index: {}]   ;;  %s2612_s3 = inlined_call_operand.vmem [shape: f32[512,128], index: 3, kind: output, shape index: {}]  }
   0x1   :  { %s2276_s14 = smov 0  }
   0x2 LB: > { %s32_s15 = sadd.s32 1, %s2246_s13  ;;  %p1714_p0 = scmp.ge.s32.totalorder %s2250_s14, 1  ;;  %s2250_s14 = sphi %s2276_s14, %s13_s14   ;;  %s2246_s13 = sphi %s2274_s13, %s2614_s13   ;;  %s2242_s12 = sphi %s2272_s12, %s2613_s12  }
   0x3   : > { %p34_p1 = scmp.ge.s32.totalorder %s32_s15, 2  ;;  %p191_p2 = scmp.lt.s32.totalorder %s2250_s14, 3 }
   0x5   : > { %s2616_s15 = smov (%p34_p1, %s32_s15), 0  ;;  %p192_p3 = pnand %p1714_p0, %p191_p2 }
   0x6   : > { %s1715_s17 = sshll.u32 (!%p192_p3), %s2242_s12, 5 }
   0x7   : > { %195 = sbr.rel (%p192_p3) target bundleno = 436 (0x1b4), region = 32  ;;  %p236_p4 = scmp.lt.s32.totalorder (!%p192_p3), %s1715_s17, 63 }
   0xc   : > { %v2178_v0 = vld [vmem:[%s2610_s1 + $0x38] sm:$0xff]  ;;  %v2177_v4 = vld [vmem:[%s2610_s1 + $0x30] sm:$0xff]  ;;  %v2176_v8 = vld [vmem:[%s2610_s1 + $0x28] sm:$0xff]  ;;  %s2618_s17 = smov (!%p236_p4, %s1715_s17), 63 }
   0xd   : > { %v2186_v1 = vld [vmem:[%s2610_s1 + $0x78] sm:$0xff]  ;;  %975 = vmatpush.bf16.msra.mxu0 %v2178_v0  ;;  %v2185_v5 = vld [vmem:[%s2610_s1 + $0x70] sm:$0xff]  ;;  %v2184_v9 = vld [vmem:[%s2610_s1 + $0x68] sm:$0xff]  ;;  %s2106_s19 = sshll.u32 %s2618_s17, 4  ;;  %s1719_s18 = sshll.u32 %s2618_s17, 3 }
   0xe   : > { %v2194_v2 = vld [vmem:[%s2610_s1 + $0xb8] sm:$0xff]  ;;  %1064 = vmatpush.bf16.msra.mxu1 %v2186_v1  ;;  %v2193_v6 = vld [vmem:[%s2610_s1 + $0xb0] sm:$0xff]  ;;  %v2192_v10 = vld [vmem:[%s2610_s1 + $0xa8] sm:$0xff]  ;;  %s2377_s12 = scalar_lea.vmem %s2609_s0, %s2106_s19  ;;  %s2487_s21 = scalar_lea.vmem %s2612_s3, %s1719_s18 }
   0xf   : > { %v2202_v3 = vld [vmem:[%s2610_s1 + $0xf8] sm:$0xff]  ;;  %1153 = vmatpush.bf16.msra.mxu2 %v2194_v2  ;;  %v2201_v7 = vld [vmem:[%s2610_s1 + $0xf0] sm:$0xff]  ;;  %v2200_v11 = vld [vmem:[%s2610_s1 + $0xe8] sm:$0xff] }
  0x10   : > { %1242 = vmatpush.bf16.msra.mxu3 %v2202_v3  ;;  %v2175_v12 = vld [vmem:[%s2610_s1 + $0x20] sm:$0xff]  ;;  %v2174_v16 = vld [vmem:[%s2610_s1 + $0x18] sm:$0xff]  ;;  %v2173_v20 = vld [vmem:[%s2610_s1 + $0x10] sm:$0xff] }
  0x11   : > { %976 = vmatpush.bf16.msra.mxu0 %v2177_v4  ;;  %v2183_v13 = vld [vmem:[%s2610_s1 + $0x60] sm:$0xff]  ;;  %v2182_v17 = vld [vmem:[%s2610_s1 + $0x58] sm:$0xff]  ;;  %v2181_v21 = vld [vmem:[%s2610_s1 + $0x50] sm:$0xff] }
  0x12   : > { %1065 = vmatpush.bf16.msra.mxu1 %v2185_v5  ;;  %v2191_v14 = vld [vmem:[%s2610_s1 + $0xa0] sm:$0xff]  ;;  %v2190_v18 = vld [vmem:[%s2610_s1 + $0x98] sm:$0xff]  ;;  %v2189_v22 = vld [vmem:[%s2610_s1 + $0x90] sm:$0xff] }
  0x13   : > { %1154 = vmatpush.bf16.msra.mxu2 %v2193_v6  ;;  %v2199_v15 = vld [vmem:[%s2610_s1 + $0xe0] sm:$0xff]  ;;  %v2198_v19 = vld [vmem:[%s2610_s1 + $0xd8] sm:$0xff]  ;;  %v2197_v23 = vld [vmem:[%s2610_s1 + $0xd0] sm:$0xff] }
  0x14   : > { %1243 = vmatpush.bf16.msra.mxu3 %v2201_v7  ;;  %v2172_v24 = vld [vmem:[%s2610_s1 + $0x8] sm:$0xff]  ;;  %v2171_v28 = vld [vmem:[%s2610_s1] sm:$0xff]  ;;  %v2109_v33 = vld [vmem:[%s2377_s12 + $0xc] sm:$0xf0] }
  0x15   : > { %977 = vmatpush.bf16.msra.mxu0 %v2176_v8  ;;  %v2180_v25 = vld [vmem:[%s2610_s1 + $0x48] sm:$0xff]  ;;  %v2179_v29 = vld [vmem:[%s2610_s1 + $0x40] sm:$0xff]  ;;  %v1724_v35 = vld [vmem:[%s2377_s12 + $0x10] sm:$0xf0] }
  0x16   : > { %1066 = vmatpush.bf16.msra.mxu1 %v2184_v9  ;;  %v2188_v26 = vld [vmem:[%s2610_s1 + $0x88] sm:$0xff]  ;;  %v2187_v30 = vld [vmem:[%s2610_s1 + $0x80] sm:$0xff]  ;;  %v2110_v37 = vld [vmem:[%s2377_s12 + $0x14] sm:$0xf0] }
  0x17   : > { %1155 = vmatpush.bf16.msra.mxu2 %v2192_v10  ;;  %v2196_v27 = vld [vmem:[%s2610_s1 + $0xc8] sm:$0xff]  ;;  %v2195_v31 = vld [vmem:[%s2610_s1 + $0xc0] sm:$0xff]  ;;  %v1732_v39 = vld [vmem:[%s2377_s12 + $0x18] sm:$0xf0] }
  0x18   : > { %1244 = vmatpush.bf16.msra.mxu3 %v2200_v11  ;;  %v1722_v32 = vld [vmem:[%s2377_s12] sm:$0xf]  ;;  %v2107_v34 = vld [vmem:[%s2377_s12 + $0x4] sm:$0xf]  ;;  %v1730_v36 = vld [vmem:[%s2377_s12 + $0x8] sm:$0xf] }
  0x19   : > { %978 = vmatpush.bf16.msra.mxu0 %v2175_v12  ;;  %v2108_v38 = vld [vmem:[%s2377_s12 + $0xc] sm:$0xf]  ;;  %v1723_v40 = vor.u32 %v2109_v33, %v1722_v32  ;;  %v1727_v41 = vor.u32 %v2107_v34, %v1724_v35  ;;  %v1731_v42 = vor.u32 %v2110_v37, %v1730_v36  ;;  %v1738_v44 = vld [vmem:[%s2377_s12 + $0x20] sm:$0xf]  ;;  %v2113_v45 = vld [vmem:[%s2377_s12 + $0x2c] sm:$0xf0] }
  0x1a   : > { %1067 = vmatpush.bf16.msra.mxu1 %v2183_v13  ;;  %v1735_v43 = vor.u32 %v2108_v38, %v1732_v39  ;;  %v2111_v46 = vld [vmem:[%s2377_s12 + $0x24] sm:$0xf]  ;;  %v1740_v47 = vld [vmem:[%s2377_s12 + $0x30] sm:$0xf0]  ;;  %v1746_v48 = vld [vmem:[%s2377_s12 + $0x28] sm:$0xf]  ;;  %v1739_v52 = vor.u32 %v2113_v45, %v1738_v44 }
  0x1b   : > { %1156 = vmatpush.bf16.msra.mxu2 %v2191_v14  ;;  %v2114_v49 = vld [vmem:[%s2377_s12 + $0x34] sm:$0xf0]  ;;  %v2112_v50 = vld [vmem:[%s2377_s12 + $0x2c] sm:$0xf]  ;;  %v1748_v51 = vld [vmem:[%s2377_s12 + $0x38] sm:$0xf0]  ;;  %v1743_v53 = vor.u32 %v2111_v46, %v1740_v47 }
  0x1c   : > { %1245 = vmatpush.bf16.msra.mxu3 %v2199_v15  ;;  %v1747_v54 = vor.u32 %v2114_v49, %v1746_v48  ;;  %v1751_v55 = vor.u32 %v2112_v50, %v1748_v51  ;;  %v1754_v56 = vld [vmem:[%s2377_s12 + $0x40] sm:$0xf]  ;;  %v2117_v57 = vld [vmem:[%s2377_s12 + $0x4c] sm:$0xf0]  ;;  %v2115_v58 = vld [vmem:[%s2377_s12 + $0x44] sm:$0xf] }
  0x1d   : > { %979 = vmatpush.bf16.msra.mxu0 %v2174_v16  ;;  %v1756_v59 = vld [vmem:[%s2377_s12 + $0x50] sm:$0xf0]  ;;  %v1762_v60 = vld [vmem:[%s2377_s12 + $0x48] sm:$0xf]  ;;  %v2118_v61 = vld [vmem:[%s2377_s12 + $0x54] sm:$0xf0]  ;;  %v1755_v0 = vor.u32 %v2117_v57, %v1754_v56 }
  0x1e   : > { %1068 = vmatpush.bf16.msra.mxu1 %v2182_v17  ;;  %v2116_v62 = vld [vmem:[%s2377_s12 + $0x4c] sm:$0xf]  ;;  %v1764_v63 = vld [vmem:[%s2377_s12 + $0x58] sm:$0xf0]  ;;  %v1759_v1 = vor.u32 %v2115_v58, %v1756_v59  ;;  %v1763_v2 = vor.u32 %v2118_v61, %v1762_v60  ;;  %v1770_v4 = vld [vmem:[%s2377_s12 + $0x60] sm:$0xf] }
  0x1f   : > { %1157 = vmatpush.bf16.msra.mxu2 %v2190_v18  ;;  %v1767_v3 = vor.u32 %v2116_v62, %v1764_v63  ;;  %v2121_v5 = vld [vmem:[%s2377_s12 + $0x6c] sm:$0xf0]  ;;  %v2119_v6 = vld [vmem:[%s2377_s12 + $0x64] sm:$0xf]  ;;  %v1772_v7 = vld [vmem:[%s2377_s12 + $0x70] sm:$0xf0] }
  0x20   : > { %1246 = vmatpush.bf16.msra.mxu3 %v2198_v19  ;;  %v1778_v8 = vld [vmem:[%s2377_s12 + $0x68] sm:$0xf]  ;;  %v2122_v9 = vld [vmem:[%s2377_s12 + $0x74] sm:$0xf0]  ;;  %v2120_v10 = vld [vmem:[%s2377_s12 + $0x6c] sm:$0xf]  ;;  %v1771_v12 = vor.u32 %v2121_v5, %v1770_v4  ;;  %v1775_v13 = vor.u32 %v2119_v6, %v1772_v7 }
  0x21   : > { %980 = vmatpush.bf16.msra.mxu0 %v2173_v20  ;;  %v1780_v11 = vld [vmem:[%s2377_s12 + $0x78] sm:$0xf0]  ;;  %v1779_v14 = vor.u32 %v2122_v9, %v1778_v8  ;;  %v1786_v16 = vld [vmem:[%s2377_s12 + $0x80] sm:$0xf]  ;;  %v2125_v17 = vld [vmem:[%s2377_s12 + $0x8c] sm:$0xf0] }
  0x22   : > { %1069 = vmatpush.bf16.msra.mxu1 %v2181_v21  ;;  %v1783_v15 = vor.u32 %v2120_v10, %v1780_v11  ;;  %v2123_v18 = vld [vmem:[%s2377_s12 + $0x84] sm:$0xf]  ;;  %v1788_v19 = vld [vmem:[%s2377_s12 + $0x90] sm:$0xf0]  ;;  %v1794_v20 = vld [vmem:[%s2377_s12 + $0x88] sm:$0xf] }
  0x23   : > { %1158 = vmatpush.bf16.msra.mxu2 %v2189_v22  ;;  %v2126_v21 = vld [vmem:[%s2377_s12 + $0x94] sm:$0xf0]  ;;  %v2124_v22 = vld [vmem:[%s2377_s12 + $0x8c] sm:$0xf]  ;;  %v1810_v32 = vld [vmem:[%s2377_s12 + $0xa8] sm:$0xf] }
  0x24   : > { %1247 = vmatpush.bf16.msra.mxu3 %v2197_v23  ;;  %v1796_v23 = vld [vmem:[%s2377_s12 + $0x98] sm:$0xf0]  ;;  %v2130_v33 = vld [vmem:[%s2377_s12 + $0xb4] sm:$0xf0]  ;;  %v2128_v34 = vld [vmem:[%s2377_s12 + $0xac] sm:$0xf] }
  0x25   : > { %981 = vmatpush.bf16.msra.mxu0 %v2172_v24  ;;  %v1787_v24 = vor.u32 %v2125_v17, %v1786_v16  ;;  %v1812_v35 = vld [vmem:[%s2377_s12 + $0xb8] sm:$0xf0]  ;;  %v1811_v38 = vor.u32 %v2130_v33, %v1810_v32  ;;  %v1826_v44 = vld [vmem:[%s2377_s12 + $0xc8] sm:$0xf]  ;;  %v2134_v45 = vld [vmem:[%s2377_s12 + $0xd4] sm:$0xf0] }
  0x26   : > { %1070 = vmatpush.bf16.msra.mxu1 %v2180_v25  ;;  %v1791_v25 = vor.u32 %v2123_v18, %v1788_v19  ;;  %v1815_v39 = vor.u32 %v2128_v34, %v1812_v35  ;;  %v2132_v46 = vld [vmem:[%s2377_s12 + $0xcc] sm:$0xf]  ;;  %v1828_v47 = vld [vmem:[%s2377_s12 + $0xd8] sm:$0xf0]  ;;  %v1827_v50 = vor.u32 %v2134_v45, %v1826_v44  ;;  %v1842_v56 = vld [vmem:[%s2377_s12 + $0xe8] sm:$0xf] }
  0x27   : > { %1159 = vmatpush.bf16.msra.mxu2 %v2188_v26  ;;  %v1795_v26 = vor.u32 %v2126_v21, %v1794_v20  ;;  %v1831_v51 = vor.u32 %v2132_v46, %v1828_v47  ;;  %v2138_v57 = vld [vmem:[%s2377_s12 + $0xf4] sm:$0xf0]  ;;  %v2136_v58 = vld [vmem:[%s2377_s12 + $0xec] sm:$0xf]  ;;  %v1844_v59 = vld [vmem:[%s2377_s12 + $0xf8] sm:$0xf0] }
  0x28   : > { %1248 = vmatpush.bf16.msra.mxu3 %v2196_v27  ;;  %v1799_v27 = vor.u32 %v2124_v22, %v1796_v23  ;;  %v1843_v62 = vor.u32 %v2138_v57, %v1842_v56  ;;  %v1847_v63 = vor.u32 %v2136_v58, %v1844_v59  ;;  %v1858_v4 = vld [vmem:[%s2377_s12 + $0x108] sm:$0xf]  ;;  %v2142_v5 = vld [vmem:[%s2377_s12 + $0x114] sm:$0xf0]  ;;  %v2140_v6 = vld [vmem:[%s2377_s12 + $0x10c] sm:$0xf] }
  0x29   : > { %982 = vmatpush.bf16.msra.mxu0 %v2171_v28  ;;  %v1802_v28 = vld [vmem:[%s2377_s12 + $0xa0] sm:$0xf]  ;;  %v1860_v7 = vld [vmem:[%s2377_s12 + $0x118] sm:$0xf0]  ;;  %v2145_v23 = vld [vmem:[%s2377_s12 + $0x12c] sm:$0xf0] }
  0x2a   : > { %1071 = vmatpush.bf16.msra.mxu1 %v2179_v29  ;;  %v2129_v29 = vld [vmem:[%s2377_s12 + $0xac] sm:$0xf0]  ;;  %v2472_v18 = vld [vmem:[%s2611_s2] ss:$0 sm:$0xff]  ;;  %v2147_v57 = vld [vmem:[%s2377_s12 + $0x144] sm:$0xf] }
  0x2b   : > { %1160 = vmatpush.bf16.msra.mxu2 %v2187_v30  ;;  %v2127_v30 = vld [vmem:[%s2377_s12 + $0xa4] sm:$0xf]  ;;  %v1803_v36 = vor.u32 %v2129_v29, %v1802_v28  ;;  %v1866_v22 = vld [vmem:[%s2377_s12 + $0x120] sm:$0xf]  ;;  %v2146_v28 = vld [vmem:[%s2377_s12 + $0x134] sm:$0xf0] }
  0x2c   : > { %1249 = vmatpush.bf16.msra.mxu3 %v2195_v31  ;;  %983 = vmatmul.bf16.vlgmr.msra.gmra.mxu0 %v1723_v40  ;;  %v1804_v31 = vld [vmem:[%s2377_s12 + $0xb0] sm:$0xf0]  ;;  %v1818_v40 = vld [vmem:[%s2377_s12 + $0xc0] sm:$0xf]  ;;  %v2144_v29 = vld [vmem:[%s2377_s12 + $0x12c] sm:$0xf]  ;;  %v1867_v35 = vor.u32 %v2145_v23, %v1866_v22 }
  0x2d   : > { %1072 = vmatmul.bf16.vlgmr.msra.gmra.mxu1 %v1727_v41  ;;  %v1807_v37 = vor.u32 %v2127_v30, %v1804_v31  ;;  %v2133_v41 = vld [vmem:[%s2377_s12 + $0xcc] sm:$0xf0]  ;;  %v1876_v30 = vld [vmem:[%s2377_s12 + $0x138] sm:$0xf0]  ;;  %v1884_v58 = vld [vmem:[%s2377_s12 + $0x150] sm:$0xf0] }
  0x2e   : > { %1161 = vmatmul.bf16.vlgmr.msra.gmra.mxu2 %v1731_v42  ;;  %v2131_v42 = vld [vmem:[%s2377_s12 + $0xc4] sm:$0xf]  ;;  %v1819_v48 = vor.u32 %v2133_v41, %v1818_v40  ;;  %v1890_v59 = vld [vmem:[%s2377_s12 + $0x148] sm:$0xf]  ;;  %v1898_v23 = vld [vmem:[%s2377_s12 + $0x160] sm:$0xf] }
  0x2f   : > { %1250 = vmatmul.bf16.vlgmr.msra.gmra.mxu3 %v1735_v43  ;;  %v1820_v43 = vld [vmem:[%s2377_s12 + $0xd0] sm:$0xf0] }
  0x30   : > { %v1823_v49 = vor.u32 %v2131_v42, %v1820_v43  ;;  %v1879_v42 = vor.u32 %v2144_v29, %v1876_v30  ;;  %v2154_v29 = vld [vmem:[%s2377_s12 + $0x174] sm:$0xf0]  ;;  %v2152_v30 = vld [vmem:[%s2377_s12 + $0x16c] sm:$0xf] }
  0x3c   : > { %988 = vmatmul.bf16.gmra.mxu0 %v1739_v52  ;;  %v1834_v52 = vld [vmem:[%s2377_s12 + $0xe0] sm:$0xf] }
  0x3d   : > { %1077 = vmatmul.bf16.gmra.mxu1 %v1743_v53  ;;  %v2137_v53 = vld [vmem:[%s2377_s12 + $0xec] sm:$0xf0] }
  0x3e   : > { %1166 = vmatmul.bf16.gmra.mxu2 %v1747_v54  ;;  %v2135_v54 = vld [vmem:[%s2377_s12 + $0xe4] sm:$0xf]  ;;  %v1835_v60 = vor.u32 %v2137_v53, %v1834_v52 }
  0x3f   : > { %1255 = vmatmul.bf16.gmra.mxu3 %v1751_v55  ;;  %v1836_v55 = vld [vmem:[%s2377_s12 + $0xf0] sm:$0xf0] }
  0x40   : > { %v1839_v61 = vor.u32 %v2135_v54, %v1836_v55  ;;  %v1882_v54 = vld [vmem:[%s2377_s12 + $0x140] sm:$0xf]  ;;  %v2149_v55 = vld [vmem:[%s2377_s12 + $0x14c] sm:$0xf0] }
  0x4c   : > { %993 = vmatmul.bf16.gmra.mxu0 %v1755_v0  ;;  %v1850_v0 = vld [vmem:[%s2377_s12 + $0x100] sm:$0xf] }
  0x4d   : > { %1082 = vmatmul.bf16.gmra.mxu1 %v1759_v1  ;;  %v2141_v1 = vld [vmem:[%s2377_s12 + $0x10c] sm:$0xf0] }
  0x4e   : > { %1171 = vmatmul.bf16.gmra.mxu2 %v1763_v2  ;;  %v2139_v2 = vld [vmem:[%s2377_s12 + $0x104] sm:$0xf]  ;;  %v1851_v8 = vor.u32 %v2141_v1, %v1850_v0 }
  0x4f   : > { %1260 = vmatmul.bf16.gmra.mxu3 %v1767_v3  ;;  %v1852_v3 = vld [vmem:[%s2377_s12 + $0x110] sm:$0xf0] }
  0x50   : > { %v1855_v9 = vor.u32 %v2139_v2, %v1852_v3  ;;  %v1883_v3 = vor.u32 %v2149_v55, %v1882_v54  ;;  %v1914_v55 = vld [vmem:[%s2377_s12 + $0x180] sm:$0xf] }
  0x5c   : > { %998 = vmatmul.bf16.gmra.mxu0 %v1771_v12  ;;  %v1859_v12 = vor.u32 %v2142_v5, %v1858_v4  ;;  %v1887_v4 = vor.u32 %v2147_v57, %v1884_v58  ;;  %v2155_v58 = vld [vmem:[%s2377_s12 + $0x184] sm:$0xf] }
  0x5d   : > { %1087 = vmatmul.bf16.gmra.mxu1 %v1775_v13  ;;  %v1863_v13 = vor.u32 %v2140_v6, %v1860_v7 }
  0x5e   : > { %1176 = vmatmul.bf16.gmra.mxu2 %v1779_v14 }
  0x5f   : > { %1265 = vmatmul.bf16.gmra.mxu3 %v1783_v15 }
  0x6c   : > { %1003 = vmatmul.bf16.gmra.mxu0 %v1787_v24 }
  0x6d   : > { %1092 = vmatmul.bf16.gmra.mxu1 %v1791_v25  ;;  %v2143_v25 = vld [vmem:[%s2377_s12 + $0x124] sm:$0xf] }
  0x6e   : > { %1181 = vmatmul.bf16.gmra.mxu2 %v1795_v26  ;;  %v1868_v26 = vld [vmem:[%s2377_s12 + $0x130] sm:$0xf0] }
  0x6f   : > { %1270 = vmatmul.bf16.gmra.mxu3 %v1799_v27  ;;  %v1874_v27 = vld [vmem:[%s2377_s12 + $0x128] sm:$0xf] }
  0x70   : > { %v1875_v41 = vor.u32 %v2146_v28, %v1874_v27  ;;  %v1900_v27 = vld [vmem:[%s2377_s12 + $0x170] sm:$0xf0]  ;;  %v1906_v28 = vld [vmem:[%s2377_s12 + $0x168] sm:$0xf] }
  0x7c   : > { %1008 = vmatmul.bf16.gmra.mxu0 %v1803_v36  ;;  %v1871_v36 = vor.u32 %v2143_v25, %v1868_v26  ;;  %v2151_v26 = vld [vmem:[%s2377_s12 + $0x164] sm:$0xf] }
  0x7d   : > { %1097 = vmatmul.bf16.gmra.mxu1 %v1807_v37 }
  0x7e   : > { %1186 = vmatmul.bf16.gmra.mxu2 %v1811_v38 }
  0x7f   : > { %1275 = vmatmul.bf16.gmra.mxu3 %v1815_v39 }
  0x8c   : > { %1013 = vmatmul.bf16.gmra.mxu0 %v1819_v48 }
  0x8d   : > { %1102 = vmatmul.bf16.gmra.mxu1 %v1823_v49 }
  0x8e   : > { %1191 = vmatmul.bf16.gmra.mxu2 %v1827_v50 }
  0x8f   : > { %1280 = vmatmul.bf16.gmra.mxu3 %v1831_v51 }
  0x9c   : > { %1018 = vmatmul.bf16.gmra.mxu0 %v1835_v60  ;;  %v2150_v60 = vld [vmem:[%s2377_s12 + $0x154] sm:$0xf0] }
  0x9d   : > { %1107 = vmatmul.bf16.gmra.mxu1 %v1839_v61  ;;  %v2148_v61 = vld [vmem:[%s2377_s12 + $0x14c] sm:$0xf] }
  0x9e   : > { %1196 = vmatmul.bf16.gmra.mxu2 %v1843_v62  ;;  %v1892_v62 = vld [vmem:[%s2377_s12 + $0x158] sm:$0xf0] }
  0x9f   : > { %1285 = vmatmul.bf16.gmra.mxu3 %v1847_v63 }
  0xa9   : > { %v984_v10 = vpop.f32.mrf.mxu0 }
  0xaa   : > { %v1073_v11 = vpop.f32.mrf.mxu1 }
  0xab   : > { %v1074_v14 = vadd.f32 %v1073_v11, %v984_v10  ;;  %v1895_v10 = vor.u32 %v2148_v61, %v1892_v62  ;;  %v2158_v61 = vld [vmem:[%s2377_s12 + $0x194] sm:$0xf0]  ;;  %v2156_v62 = vld [vmem:[%s2377_s12 + $0x18c] sm:$0xf] }
  0xac   : > { %1023 = vmatmul.bf16.gmra.mxu0 %v1851_v8 }
  0xad   : > { %1112 = vmatmul.bf16.gmra.mxu1 %v1855_v9  ;;  %v1891_v9 = vor.u32 %v2150_v60, %v1890_v59  ;;  %v1916_v59 = vld [vmem:[%s2377_s12 + $0x190] sm:$0xf0]  ;;  %v1922_v60 = vld [vmem:[%s2377_s12 + $0x188] sm:$0xf] }
  0xae   : > { %1201 = vmatmul.bf16.gmra.mxu2 %v1859_v12 }
  0xaf   : > { %1290 = vmatmul.bf16.gmra.mxu3 %v1863_v13 }
  0xb1   : > { %v1162_v15 = vpop.f32.mrf.mxu2  ;;  %v986_v19 = vpop.f32.mrf.mxu0 }
  0xb2   : > { %v1251_v16 = vpop.f32.mrf.mxu3  ;;  %v1163_v17 = vadd.f32 %v1162_v15, %v1074_v14  ;;  %v1075_v20 = vpop.f32.mrf.mxu1 }
  0xb3   : > { %v1076_v32 = vadd.f32 %v1075_v20, %v986_v19 }
  0xb4   : > { %v1252_v21 = vadd.f32 %v1251_v16, %v1163_v17 }
  0xb6   : > { %v1434_v24 = vadd.f32 %v2472_v18, %v1252_v21 }
  0xb8   : > { %vm1466_vm0 = vcmp.ge.f32.partialorder %v1434_v24, 0.0  ;;  %v1498_v31 = vmul.f32 0.01, %v1434_v24 }
  0xb9   : > { %v1164_v33 = vpop.f32.mrf.mxu2  ;;  %v989_v39 = vpop.f32.mrf.mxu0 }
  0xba   : > { %v1253_v34 = vpop.f32.mrf.mxu3  ;;  %v1530_v37 = vsel %vm1466_vm0, %v1434_v24, %v1498_v31  ;;  %v1165_v38 = vadd.f32 %v1164_v33, %v1076_v32  ;;  %v1078_v40 = vpop.f32.mrf.mxu1  ;;  %v2153_v24 = vld [vmem:[%s2377_s12 + $0x16c] sm:$0xf0]  ;;  %v1908_v31 = vld [vmem:[%s2377_s12 + $0x178] sm:$0xf0] }
  0xbb   : > { %1562 = vst [vmem:[%s2487_s21] sm:$0xff] %v1530_v37  ;;  %v1079_v45 = vadd.f32 %v1078_v40, %v989_v39  ;;  %v1903_v37 = vor.u32 %v2151_v26, %v1900_v27  ;;  %v2159_v27 = vld [vmem:[%s2377_s12 + $0x1a4] sm:$0xf] }
  0xbc   : > { %v1254_v43 = vadd.f32 %v1253_v34, %v1165_v38  ;;  %1028 = vmatmul.bf16.gmra.mxu0 %v1867_v35 }
  0xbd   : > { %1117 = vmatmul.bf16.gmra.mxu1 %v1871_v36  ;;  %v1899_v36 = vor.u32 %v2153_v24, %v1898_v23  ;;  %v1930_v24 = vld [vmem:[%s2377_s12 + $0x1a0] sm:$0xf] }
  0xbe   : > { %v1435_v44 = vadd.f32 %v2472_v18, %v1254_v43  ;;  %1206 = vmatmul.bf16.gmra.mxu2 %v1875_v41  ;;  %v1911_v43 = vor.u32 %v2152_v30, %v1908_v31  ;;  %v2162_v30 = vld [vmem:[%s2377_s12 + $0x1b4] sm:$0xf0]  ;;  %v2160_v31 = vld [vmem:[%s2377_s12 + $0x1ac] sm:$0xf] }
  0xbf   : > { %1295 = vmatmul.bf16.gmra.mxu3 %v1879_v42  ;;  %v1907_v42 = vor.u32 %v2154_v29, %v1906_v28  ;;  %v1932_v28 = vld [vmem:[%s2377_s12 + $0x1b0] sm:$0xf0]  ;;  %v1938_v29 = vld [vmem:[%s2377_s12 + $0x1a8] sm:$0xf] }
  0xc0   : > { %vm1467_vm1 = vcmp.ge.f32.partialorder %v1435_v44, 0.0  ;;  %v1499_v46 = vmul.f32 0.01, %v1435_v44 }
  0xc1   : > { %v1167_v47 = vpop.f32.mrf.mxu2  ;;  %v991_v51 = vpop.f32.mrf.mxu0 }
  0xc2   : > { %v1256_v48 = vpop.f32.mrf.mxu3  ;;  %v1531_v49 = vsel %vm1467_vm1, %v1435_v44, %v1499_v46  ;;  %v1168_v50 = vadd.f32 %v1167_v47, %v1079_v45  ;;  %v1080_v52 = vpop.f32.mrf.mxu1 }
  0xc3   : > { %1563 = vst [vmem:[%s2487_s21 + $0x8] sm:$0xff] %v1531_v49  ;;  %v1081_v0 = vadd.f32 %v1080_v52, %v991_v51 }
  0xc4   : > { %v1257_v53 = vadd.f32 %v1256_v48, %v1168_v50 }
  0xc6   : > { %v1436_v56 = vadd.f32 %v2472_v18, %v1257_v53 }
  0xc8   : > { %vm1468_vm2 = vcmp.ge.f32.partialorder %v1436_v56, 0.0  ;;  %v1500_v63 = vmul.f32 0.01, %v1436_v56 }
  0xc9   : > { %v1169_v1 = vpop.f32.mrf.mxu2  ;;  %v994_v7 = vpop.f32.mrf.mxu0 }
  0xca   : > { %v1258_v2 = vpop.f32.mrf.mxu3  ;;  %v1532_v5 = vsel %vm1468_vm2, %v1436_v56, %v1500_v63  ;;  %v1170_v6 = vadd.f32 %v1169_v1, %v1081_v0  ;;  %v1083_v8 = vpop.f32.mrf.mxu1  ;;  %v2157_v56 = vld [vmem:[%s2377_s12 + $0x18c] sm:$0xf0]  ;;  %v1924_v63 = vld [vmem:[%s2377_s12 + $0x198] sm:$0xf0] }
  0xcb   : > { %1564 = vst [vmem:[%s2487_s21 + $0x10] sm:$0xff] %v1532_v5  ;;  %v1084_v13 = vadd.f32 %v1083_v8, %v994_v7  ;;  %v1919_v5 = vor.u32 %v2155_v58, %v1916_v59  ;;  %v2163_v59 = vld [vmem:[%s2377_s12 + $0x1c4] sm:$0xf] }
  0xcc   : > { %v1259_v11 = vadd.f32 %v1258_v2, %v1170_v6  ;;  %1033 = vmatmul.bf16.gmra.mxu0 %v1883_v3 }
  0xcd   : > { %1122 = vmatmul.bf16.gmra.mxu1 %v1887_v4  ;;  %v1915_v4 = vor.u32 %v2157_v56, %v1914_v55  ;;  %v1946_v56 = vld [vmem:[%s2377_s12 + $0x1c0] sm:$0xf] }
  0xce   : > { %v1437_v12 = vadd.f32 %v2472_v18, %v1259_v11  ;;  %1211 = vmatmul.bf16.gmra.mxu2 %v1891_v9  ;;  %v1927_v11 = vor.u32 %v2156_v62, %v1924_v63  ;;  %v2166_v62 = vld [vmem:[%s2377_s12 + $0x1d4] sm:$0xf0]  ;;  %v2164_v63 = vld [vmem:[%s2377_s12 + $0x1cc] sm:$0xf] }
  0xcf   : > { %1300 = vmatmul.bf16.gmra.mxu3 %v1895_v10  ;;  %v1923_v10 = vor.u32 %v2158_v61, %v1922_v60  ;;  %v1948_v60 = vld [vmem:[%s2377_s12 + $0x1d0] sm:$0xf0]  ;;  %v1954_v61 = vld [vmem:[%s2377_s12 + $0x1c8] sm:$0xf] }
  0xd0   : > { %vm1469_vm3 = vcmp.ge.f32.partialorder %v1437_v12, 0.0  ;;  %v1501_v14 = vmul.f32 0.01, %v1437_v12 }
  0xd1   : > { %v1172_v15 = vpop.f32.mrf.mxu2  ;;  %v996_v20 = vpop.f32.mrf.mxu0 }
  0xd2   : > { %v1261_v16 = vpop.f32.mrf.mxu3  ;;  %v1533_v17 = vsel %vm1469_vm3, %v1437_v12, %v1501_v14  ;;  %v1173_v19 = vadd.f32 %v1172_v15, %v1084_v13  ;;  %v1085_v21 = vpop.f32.mrf.mxu1 }
  0xd3   : > { %1565 = vst [vmem:[%s2487_s21 + $0x18] sm:$0xff] %v1533_v17  ;;  %v1086_v33 = vadd.f32 %v1085_v21, %v996_v20 }
  0xd4   : > { %v1262_v22 = vadd.f32 %v1261_v16, %v1173_v19 }
  0xd6   : > { %v1438_v25 = vadd.f32 %v2472_v18, %v1262_v22 }
  0xd8   : > { %vm1470_vm4 = vcmp.ge.f32.partialorder %v1438_v25, 0.0  ;;  %v1502_v32 = vmul.f32 0.01, %v1438_v25 }
  0xd9   : > { %v1174_v34 = vpop.f32.mrf.mxu2  ;;  %v999_v40 = vpop.f32.mrf.mxu0 }
  0xda   : > { %v1263_v35 = vpop.f32.mrf.mxu3  ;;  %v1534_v38 = vsel %vm1470_vm4, %v1438_v25, %v1502_v32  ;;  %v1175_v39 = vadd.f32 %v1174_v34, %v1086_v33  ;;  %v1088_v41 = vpop.f32.mrf.mxu1  ;;  %v2161_v25 = vld [vmem:[%s2377_s12 + $0x1ac] sm:$0xf0]  ;;  %v1940_v32 = vld [vmem:[%s2377_s12 + $0x1b8] sm:$0xf0] }
  0xdb   : > { %1566 = vst [vmem:[%s2487_s21 + $0x20] sm:$0xff] %v1534_v38  ;;  %v1089_v46 = vadd.f32 %v1088_v41, %v999_v40  ;;  %v1935_v38 = vor.u32 %v2159_v27, %v1932_v28  ;;  %v2167_v28 = vld [vmem:[%s2377_s12 + $0x1e4] sm:$0xf] }
  0xdc   : > { %v1264_v44 = vadd.f32 %v1263_v35, %v1175_v39  ;;  %1038 = vmatmul.bf16.gmra.mxu0 %v1899_v36 }
  0xdd   : > { %1127 = vmatmul.bf16.gmra.mxu1 %v1903_v37  ;;  %v1931_v37 = vor.u32 %v2161_v25, %v1930_v24  ;;  %v1962_v25 = vld [vmem:[%s2377_s12 + $0x1e0] sm:$0xf] }
  0xde   : > { %v1439_v45 = vadd.f32 %v2472_v18, %v1264_v44  ;;  %1216 = vmatmul.bf16.gmra.mxu2 %v1907_v42  ;;  %v1943_v44 = vor.u32 %v2160_v31, %v1940_v32  ;;  %v2170_v31 = vld [vmem:[%s2377_s12 + $0x1f4] sm:$0xf0]  ;;  %v2168_v32 = vld [vmem:[%s2377_s12 + $0x1ec] sm:$0xf] }
  0xdf   : > { %1305 = vmatmul.bf16.gmra.mxu3 %v1911_v43  ;;  %v1939_v43 = vor.u32 %v2162_v30, %v1938_v29  ;;  %v1964_v29 = vld [vmem:[%s2377_s12 + $0x1f0] sm:$0xf0]  ;;  %v1970_v30 = vld [vmem:[%s2377_s12 + $0x1e8] sm:$0xf] }
  0xe0   : > { %vm1471_vm5 = vcmp.ge.f32.partialorder %v1439_v45, 0.0  ;;  %v1503_v47 = vmul.f32 0.01, %v1439_v45 }
  0xe1   : > { %v1177_v48 = vpop.f32.mrf.mxu2  ;;  %v1001_v52 = vpop.f32.mrf.mxu0 }
  0xe2   : > { %v1266_v49 = vpop.f32.mrf.mxu3  ;;  %v1535_v50 = vsel %vm1471_vm5, %v1439_v45, %v1503_v47  ;;  %v1178_v51 = vadd.f32 %v1177_v48, %v1089_v46  ;;  %v1090_v53 = vpop.f32.mrf.mxu1 }
  0xe3   : > { %1567 = vst [vmem:[%s2487_s21 + $0x28] sm:$0xff] %v1535_v50  ;;  %v1091_v1 = vadd.f32 %v1090_v53, %v1001_v52 }
  0xe4   : > { %v1267_v54 = vadd.f32 %v1266_v49, %v1178_v51 }
  0xe6   : > { %v1440_v57 = vadd.f32 %v2472_v18, %v1267_v54 }
  0xe8   : > { %vm1472_vm6 = vcmp.ge.f32.partialorder %v1440_v57, 0.0  ;;  %v1504_v0 = vmul.f32 0.01, %v1440_v57 }
  0xe9   : > { %v1179_v2 = vpop.f32.mrf.mxu2  ;;  %v1004_v8 = vpop.f32.mrf.mxu0 }
  0xea   : > { %v1268_v3 = vpop.f32.mrf.mxu3  ;;  %v1536_v6 = vsel %vm1472_vm6, %v1440_v57, %v1504_v0  ;;  %v1180_v7 = vadd.f32 %v1179_v2, %v1091_v1  ;;  %v1093_v9 = vpop.f32.mrf.mxu1  ;;  %v2165_v57 = vld [vmem:[%s2377_s12 + $0x1cc] sm:$0xf0]  ;;  %v1956_v0 = vld [vmem:[%s2377_s12 + $0x1d8] sm:$0xf0] }
  0xeb   : > { %1568 = vst [vmem:[%s2487_s21 + $0x30] sm:$0xff] %v1536_v6  ;;  %v1094_v14 = vadd.f32 %v1093_v9, %v1004_v8  ;;  %v1951_v6 = vor.u32 %v2163_v59, %v1948_v60 }
  0xec   : > { %v1269_v12 = vadd.f32 %v1268_v3, %v1180_v7  ;;  %1043 = vmatmul.bf16.gmra.mxu0 %v1915_v4 }
  0xed   : > { %1132 = vmatmul.bf16.gmra.mxu1 %v1919_v5  ;;  %v1947_v5 = vor.u32 %v2165_v57, %v1946_v56 }
  0xee   : > { %v1441_v13 = vadd.f32 %v2472_v18, %v1269_v12  ;;  %1221 = vmatmul.bf16.gmra.mxu2 %v1923_v10  ;;  %v1959_v12 = vor.u32 %v2164_v63, %v1956_v0 }
  0xef   : > { %1310 = vmatmul.bf16.gmra.mxu3 %v1927_v11  ;;  %v1955_v11 = vor.u32 %v2166_v62, %v1954_v61 }
  0xf0   : > { %vm1473_vm7 = vcmp.ge.f32.partialorder %v1441_v13, 0.0  ;;  %v1505_v15 = vmul.f32 0.01, %v1441_v13 }
  0xf1   : > { %v1182_v16 = vpop.f32.mrf.mxu2  ;;  %v1006_v21 = vpop.f32.mrf.mxu0 }
  0xf2   : > { %v1271_v17 = vpop.f32.mrf.mxu3  ;;  %v1537_v19 = vsel %vm1473_vm7, %v1441_v13, %v1505_v15  ;;  %v1183_v20 = vadd.f32 %v1182_v16, %v1094_v14  ;;  %v1095_v22 = vpop.f32.mrf.mxu1 }
  0xf3   : > { %1569 = vst [vmem:[%s2487_s21 + $0x38] sm:$0xff] %v1537_v19  ;;  %v1096_v34 = vadd.f32 %v1095_v22, %v1006_v21 }
  0xf4   : > { %v1272_v23 = vadd.f32 %v1271_v17, %v1183_v20 }
  0xf6   : > { %v1442_v26 = vadd.f32 %v2472_v18, %v1272_v23 }
  0xf8   : > { %vm1474_vm8 = vcmp.ge.f32.partialorder %v1442_v26, 0.0  ;;  %v1506_v33 = vmul.f32 0.01, %v1442_v26 }
  0xf9   : > { %v1184_v35 = vpop.f32.mrf.mxu2  ;;  %v1009_v41 = vpop.f32.mrf.mxu0 }
  0xfa   : > { %v1273_v36 = vpop.f32.mrf.mxu3  ;;  %v1538_v39 = vsel %vm1474_vm8, %v1442_v26, %v1506_v33  ;;  %v1185_v40 = vadd.f32 %v1184_v35, %v1096_v34  ;;  %v1098_v42 = vpop.f32.mrf.mxu1  ;;  %v2169_v26 = vld [vmem:[%s2377_s12 + $0x1ec] sm:$0xf0]  ;;  %v1972_v33 = vld [vmem:[%s2377_s12 + $0x1f8] sm:$0xf0] }
  0xfb   : > { %1570 = vst [vmem:[%s2487_s21 + $0x40] sm:$0xff] %v1538_v39  ;;  %v1099_v47 = vadd.f32 %v1098_v42, %v1009_v41  ;;  %v1967_v39 = vor.u32 %v2167_v28, %v1964_v29 }
  0xfc   : > { %v1274_v45 = vadd.f32 %v1273_v36, %v1185_v40  ;;  %1048 = vmatmul.bf16.gmra.mxu0 %v1931_v37 }
  0xfd   : > { %1137 = vmatmul.bf16.gmra.mxu1 %v1935_v38  ;;  %v1963_v38 = vor.u32 %v2169_v26, %v1962_v25 }
  0xfe   : > { %v1443_v46 = vadd.f32 %v2472_v18, %v1274_v45  ;;  %1226 = vmatmul.bf16.gmra.mxu2 %v1939_v43  ;;  %v1975_v45 = vor.u32 %v2168_v32, %v1972_v33 }
  0xff   : > { %1315 = vmatmul.bf16.gmra.mxu3 %v1943_v44  ;;  %v1971_v44 = vor.u32 %v2170_v31, %v1970_v30 }
 0x100   : > { %vm1475_vm9 = vcmp.ge.f32.partialorder %v1443_v46, 0.0  ;;  %v1507_v48 = vmul.f32 0.01, %v1443_v46 }
 0x101   : > { %v1187_v49 = vpop.f32.mrf.mxu2  ;;  %v1011_v53 = vpop.f32.mrf.mxu0 }
 0x102   : > { %v1276_v50 = vpop.f32.mrf.mxu3  ;;  %v1539_v51 = vsel %vm1475_vm9, %v1443_v46, %v1507_v48  ;;  %v1188_v52 = vadd.f32 %v1187_v49, %v1099_v47  ;;  %v1100_v54 = vpop.f32.mrf.mxu1 }
 0x103   : > { %1571 = vst [vmem:[%s2487_s21 + $0x48] sm:$0xff] %v1539_v51  ;;  %v1101_v2 = vadd.f32 %v1100_v54, %v1011_v53 }
 0x104   : > { %v1277_v55 = vadd.f32 %v1276_v50, %v1188_v52 }
 0x106   : > { %v1444_v58 = vadd.f32 %v2472_v18, %v1277_v55 }
 0x108   : > { %vm1476_vm10 = vcmp.ge.f32.partialorder %v1444_v58, 0.0  ;;  %v1508_v1 = vmul.f32 0.01, %v1444_v58 }
 0x109   : > { %v1189_v3 = vpop.f32.mrf.mxu2  ;;  %v1014_v9 = vpop.f32.mrf.mxu0 }
 0x10a   : > { %v1278_v4 = vpop.f32.mrf.mxu3  ;;  %v1540_v7 = vsel %vm1476_vm10, %v1444_v58, %v1508_v1  ;;  %v1190_v8 = vadd.f32 %v1189_v3, %v1101_v2  ;;  %v1103_v10 = vpop.f32.mrf.mxu1 }
 0x10b   : > { %1572 = vst [vmem:[%s2487_s21 + $0x50] sm:$0xff] %v1540_v7  ;;  %v1104_v15 = vadd.f32 %v1103_v10, %v1014_v9 }
 0x10c   : > { %v1279_v13 = vadd.f32 %v1278_v4, %v1190_v8  ;;  %1053 = vmatmul.bf16.gmra.mxu0 %v1947_v5 }
 0x10d   : > { %1142 = vmatmul.bf16.gmra.mxu1 %v1951_v6 }
 0x10e   : > { %v1445_v14 = vadd.f32 %v2472_v18, %v1279_v13  ;;  %1231 = vmatmul.bf16.gmra.mxu2 %v1955_v11 }
 0x10f   : > { %1320 = vmatmul.bf16.gmra.mxu3 %v1959_v12 }
 0x110   : > { %vm1477_vm11 = vcmp.ge.f32.partialorder %v1445_v14, 0.0  ;;  %v1509_v16 = vmul.f32 0.01, %v1445_v14 }
 0x111   : > { %v1192_v17 = vpop.f32.mrf.mxu2  ;;  %v1016_v22 = vpop.f32.mrf.mxu0 }
 0x112   : > { %v1281_v19 = vpop.f32.mrf.mxu3  ;;  %v1541_v20 = vsel %vm1477_vm11, %v1445_v14, %v1509_v16  ;;  %v1193_v21 = vadd.f32 %v1192_v17, %v1104_v15  ;;  %v1105_v23 = vpop.f32.mrf.mxu1 }
 0x113   : > { %1573 = vst [vmem:[%s2487_s21 + $0x58] sm:$0xff] %v1541_v20  ;;  %v1106_v35 = vadd.f32 %v1105_v23, %v1016_v22 }
 0x114   : > { %v1282_v24 = vadd.f32 %v1281_v19, %v1193_v21 }
 0x116   : > { %v1446_v27 = vadd.f32 %v2472_v18, %v1282_v24 }
 0x118   : > { %vm1478_vm12 = vcmp.ge.f32.partialorder %v1446_v27, 0.0  ;;  %v1510_v34 = vmul.f32 0.01, %v1446_v27 }
 0x119   : > { %v1194_v36 = vpop.f32.mrf.mxu2  ;;  %v1019_v42 = vpop.f32.mrf.mxu0 }
 0x11a   : > { %v1283_v37 = vpop.f32.mrf.mxu3  ;;  %v1542_v40 = vsel %vm1478_vm12, %v1446_v27, %v1510_v34  ;;  %v1195_v41 = vadd.f32 %v1194_v36, %v1106_v35  ;;  %v1108_v43 = vpop.f32.mrf.mxu1 }
 0x11b   : > { %1574 = vst [vmem:[%s2487_s21 + $0x60] sm:$0xff] %v1542_v40  ;;  %v1109_v48 = vadd.f32 %v1108_v43, %v1019_v42 }
 0x11c   : > { %v1284_v46 = vadd.f32 %v1283_v37, %v1195_v41  ;;  %1058 = vmatmul.bf16.gmra.mxu0 %v1963_v38 }
 0x11d   : > { %1147 = vmatmul.bf16.gmra.mxu1 %v1967_v39 }
 0x11e   : > { %v1447_v47 = vadd.f32 %v2472_v18, %v1284_v46  ;;  %1236 = vmatmul.bf16.gmra.mxu2 %v1971_v44 }
 0x11f   : > { %1325 = vmatmul.bf16.gmra.mxu3 %v1975_v45 }
 0x120   : > { %vm1479_vm13 = vcmp.ge.f32.partialorder %v1447_v47, 0.0  ;;  %v1511_v49 = vmul.f32 0.01, %v1447_v47 }
 0x121   : > { %v1197_v50 = vpop.f32.mrf.mxu2  ;;  %v1021_v54 = vpop.f32.mrf.mxu0 }
 0x122   : > { %v1286_v51 = vpop.f32.mrf.mxu3  ;;  %v1543_v52 = vsel %vm1479_vm13, %v1447_v47, %v1511_v49  ;;  %v1198_v53 = vadd.f32 %v1197_v50, %v1109_v48  ;;  %v1110_v55 = vpop.f32.mrf.mxu1 }
 0x123   : > { %1575 = vst [vmem:[%s2487_s21 + $0x68] sm:$0xff] %v1543_v52  ;;  %v1111_v59 = vadd.f32 %v1110_v55, %v1021_v54 }
 0x124   : > { %v1287_v56 = vadd.f32 %v1286_v51, %v1198_v53 }
 0x126   : > { %v1448_v57 = vadd.f32 %v2472_v18, %v1287_v56 }
 0x128   : > { %vm1480_vm14 = vcmp.ge.f32.partialorder %v1448_v57, 0.0  ;;  %v1512_v58 = vmul.f32 0.01, %v1448_v57 }
 0x129   : > { %v1199_v60 = vpop.f32.mrf.mxu2  ;;  %v1024_v0 = vpop.f32.mrf.mxu0 }
 0x12a   : > { %v1288_v61 = vpop.f32.mrf.mxu3  ;;  %v1544_v62 = vsel %vm1480_vm14, %v1448_v57, %v1512_v58  ;;  %v1200_v63 = vadd.f32 %v1199_v60, %v1111_v59  ;;  %v1113_v1 = vpop.f32.mrf.mxu1 }
 0x12b   : > { %1576 = vst [vmem:[%s2487_s21 + $0x70] sm:$0xff] %v1544_v62  ;;  %v1114_v4 = vadd.f32 %v1113_v1, %v1024_v0 }
 0x12c   : > { %v1289_v2 = vadd.f32 %v1288_v61, %v1200_v63 }
 0x12e   : > { %v1449_v3 = vadd.f32 %v2472_v18, %v1289_v2 }
 0x130   : > { %vm1481_vm15 = vcmp.ge.f32.partialorder %v1449_v3, 0.0  ;;  %v1513_v5 = vmul.f32 0.01, %v1449_v3 }
 0x131   : > { %v1202_v6 = vpop.f32.mrf.mxu2  ;;  %v1026_v10 = vpop.f32.mrf.mxu0 }
 0x132   : > { %v1291_v7 = vpop.f32.mrf.mxu3  ;;  %v1545_v8 = vsel %vm1481_vm15, %v1449_v3, %v1513_v5  ;;  %v1203_v9 = vadd.f32 %v1202_v6, %v1114_v4  ;;  %v1115_v11 = vpop.f32.mrf.mxu1 }
 0x133   : > { %1577 = vst [vmem:[%s2487_s21 + $0x78] sm:$0xff] %v1545_v8  ;;  %v1116_v15 = vadd.f32 %v1115_v11, %v1026_v10 }
 0x134   : > { %v1292_v12 = vadd.f32 %v1291_v7, %v1203_v9 }
 0x136   : > { %v1450_v13 = vadd.f32 %v2472_v18, %v1292_v12 }
 0x138   : > { %vm1482_vm0 = vcmp.ge.f32.partialorder %v1450_v13, 0.0  ;;  %v1514_v14 = vmul.f32 0.01, %v1450_v13 }
 0x139   : > { %v1204_v16 = vpop.f32.mrf.mxu2  ;;  %v1029_v21 = vpop.f32.mrf.mxu0 }
 0x13a   : > { %v1293_v17 = vpop.f32.mrf.mxu3  ;;  %v1546_v19 = vsel %vm1482_vm0, %v1450_v13, %v1514_v14  ;;  %v1205_v20 = vadd.f32 %v1204_v16, %v1116_v15  ;;  %v1118_v22 = vpop.f32.mrf.mxu1 }
 0x13b   : > { %1578 = vst [vmem:[%s2487_s21 + $0x80] sm:$0xff] %v1546_v19  ;;  %v1119_v25 = vadd.f32 %v1118_v22, %v1029_v21 }
 0x13c   : > { %v1294_v23 = vadd.f32 %v1293_v17, %v1205_v20 }
 0x13e   : > { %v1451_v24 = vadd.f32 %v2472_v18, %v1294_v23 }
 0x140   : > { %vm1483_vm1 = vcmp.ge.f32.partialorder %v1451_v24, 0.0  ;;  %v1515_v26 = vmul.f32 0.01, %v1451_v24 }
 0x141   : > { %v1207_v27 = vpop.f32.mrf.mxu2  ;;  %v1031_v31 = vpop.f32.mrf.mxu0 }
 0x142   : > { %v1296_v28 = vpop.f32.mrf.mxu3  ;;  %v1547_v29 = vsel %vm1483_vm1, %v1451_v24, %v1515_v26  ;;  %v1208_v30 = vadd.f32 %v1207_v27, %v1119_v25  ;;  %v1120_v32 = vpop.f32.mrf.mxu1 }
 0x143   : > { %1579 = vst [vmem:[%s2487_s21 + $0x88] sm:$0xff] %v1547_v29  ;;  %v1121_v36 = vadd.f32 %v1120_v32, %v1031_v31 }
 0x144   : > { %v1297_v33 = vadd.f32 %v1296_v28, %v1208_v30 }
 0x146   : > { %v1452_v34 = vadd.f32 %v2472_v18, %v1297_v33 }
 0x148   : > { %vm1484_vm2 = vcmp.ge.f32.partialorder %v1452_v34, 0.0  ;;  %v1516_v35 = vmul.f32 0.01, %v1452_v34 }
 0x149   : > { %v1209_v37 = vpop.f32.mrf.mxu2  ;;  %v1034_v41 = vpop.f32.mrf.mxu0 }
 0x14a   : > { %v1298_v38 = vpop.f32.mrf.mxu3  ;;  %v1548_v39 = vsel %vm1484_vm2, %v1452_v34, %v1516_v35  ;;  %v1210_v40 = vadd.f32 %v1209_v37, %v1121_v36  ;;  %v1123_v42 = vpop.f32.mrf.mxu1 }
 0x14b   : > { %1580 = vst [vmem:[%s2487_s21 + $0x90] sm:$0xff] %v1548_v39  ;;  %v1124_v45 = vadd.f32 %v1123_v42, %v1034_v41 }
 0x14c   : > { %v1299_v43 = vadd.f32 %v1298_v38, %v1210_v40 }
 0x14e   : > { %v1453_v44 = vadd.f32 %v2472_v18, %v1299_v43 }
 0x150   : > { %vm1485_vm3 = vcmp.ge.f32.partialorder %v1453_v44, 0.0  ;;  %v1517_v46 = vmul.f32 0.01, %v1453_v44 }
 0x151   : > { %v1212_v47 = vpop.f32.mrf.mxu2  ;;  %v1036_v51 = vpop.f32.mrf.mxu0 }
 0x152   : > { %v1301_v48 = vpop.f32.mrf.mxu3  ;;  %v1549_v49 = vsel %vm1485_vm3, %v1453_v44, %v1517_v46  ;;  %v1213_v50 = vadd.f32 %v1212_v47, %v1124_v45  ;;  %v1125_v52 = vpop.f32.mrf.mxu1 }
 0x153   : > { %1581 = vst [vmem:[%s2487_s21 + $0x98] sm:$0xff] %v1549_v49  ;;  %v1126_v56 = vadd.f32 %v1125_v52, %v1036_v51 }
 0x154   : > { %v1302_v53 = vadd.f32 %v1301_v48, %v1213_v50 }
 0x156   : > { %v1454_v54 = vadd.f32 %v2472_v18, %v1302_v53 }
 0x158   : > { %vm1486_vm4 = vcmp.ge.f32.partialorder %v1454_v54, 0.0  ;;  %v1518_v55 = vmul.f32 0.01, %v1454_v54 }
 0x159   : > { %v1214_v57 = vpop.f32.mrf.mxu2  ;;  %v1039_v61 = vpop.f32.mrf.mxu0 }
 0x15a   : > { %v1303_v58 = vpop.f32.mrf.mxu3  ;;  %v1550_v59 = vsel %vm1486_vm4, %v1454_v54, %v1518_v55  ;;  %v1215_v60 = vadd.f32 %v1214_v57, %v1126_v56  ;;  %v1128_v62 = vpop.f32.mrf.mxu1 }
 0x15b   : > { %1582 = vst [vmem:[%s2487_s21 + $0xa0] sm:$0xff] %v1550_v59  ;;  %v1129_v1 = vadd.f32 %v1128_v62, %v1039_v61 }
 0x15c   : > { %v1304_v63 = vadd.f32 %v1303_v58, %v1215_v60 }
 0x15e   : > { %v1455_v0 = vadd.f32 %v2472_v18, %v1304_v63 }
 0x160   : > { %vm1487_vm5 = vcmp.ge.f32.partialorder %v1455_v0, 0.0  ;;  %v1519_v2 = vmul.f32 0.01, %v1455_v0 }
 0x161   : > { %v1217_v3 = vpop.f32.mrf.mxu2  ;;  %v1041_v7 = vpop.f32.mrf.mxu0 }
 0x162   : > { %v1306_v4 = vpop.f32.mrf.mxu3  ;;  %v1551_v5 = vsel %vm1487_vm5, %v1455_v0, %v1519_v2  ;;  %v1218_v6 = vadd.f32 %v1217_v3, %v1129_v1  ;;  %v1130_v8 = vpop.f32.mrf.mxu1 }
 0x163   : > { %1583 = vst [vmem:[%s2487_s21 + $0xa8] sm:$0xff] %v1551_v5  ;;  %v1131_v12 = vadd.f32 %v1130_v8, %v1041_v7 }
 0x164   : > { %v1307_v9 = vadd.f32 %v1306_v4, %v1218_v6 }
 0x166   : > { %v1456_v10 = vadd.f32 %v2472_v18, %v1307_v9 }
 0x168   : > { %vm1488_vm6 = vcmp.ge.f32.partialorder %v1456_v10, 0.0  ;;  %v1520_v11 = vmul.f32 0.01, %v1456_v10 }
 0x169   : > { %v1219_v13 = vpop.f32.mrf.mxu2  ;;  %v1044_v17 = vpop.f32.mrf.mxu0 }
 0x16a   : > { %v1308_v14 = vpop.f32.mrf.mxu3  ;;  %v1552_v15 = vsel %vm1488_vm6, %v1456_v10, %v1520_v11  ;;  %v1220_v16 = vadd.f32 %v1219_v13, %v1131_v12  ;;  %v1133_v19 = vpop.f32.mrf.mxu1 }
 0x16b   : > { %1584 = vst [vmem:[%s2487_s21 + $0xb0] sm:$0xff] %v1552_v15  ;;  %v1134_v22 = vadd.f32 %v1133_v19, %v1044_v17 }
 0x16c   : > { %v1309_v20 = vadd.f32 %v1308_v14, %v1220_v16 }
 0x16e   : > { %v1457_v21 = vadd.f32 %v2472_v18, %v1309_v20 }
 0x170   : > { %vm1489_vm7 = vcmp.ge.f32.partialorder %v1457_v21, 0.0  ;;  %v1521_v23 = vmul.f32 0.01, %v1457_v21 }
 0x171   : > { %v1222_v24 = vpop.f32.mrf.mxu2  ;;  %v1046_v28 = vpop.f32.mrf.mxu0 }
 0x172   : > { %v1311_v25 = vpop.f32.mrf.mxu3  ;;  %v1553_v26 = vsel %vm1489_vm7, %v1457_v21, %v1521_v23  ;;  %v1223_v27 = vadd.f32 %v1222_v24, %v1134_v22  ;;  %v1135_v29 = vpop.f32.mrf.mxu1 }
 0x173   : > { %1585 = vst [vmem:[%s2487_s21 + $0xb8] sm:$0xff] %v1553_v26  ;;  %v1136_v33 = vadd.f32 %v1135_v29, %v1046_v28 }
 0x174   : > { %v1312_v30 = vadd.f32 %v1311_v25, %v1223_v27 }
 0x176   : > { %v1458_v31 = vadd.f32 %v2472_v18, %v1312_v30 }
 0x178   : > { %vm1490_vm8 = vcmp.ge.f32.partialorder %v1458_v31, 0.0  ;;  %v1522_v32 = vmul.f32 0.01, %v1458_v31 }
 0x179   : > { %v1224_v34 = vpop.f32.mrf.mxu2  ;;  %v1049_v38 = vpop.f32.mrf.mxu0 }
 0x17a   : > { %v1313_v35 = vpop.f32.mrf.mxu3  ;;  %v1554_v36 = vsel %vm1490_vm8, %v1458_v31, %v1522_v32  ;;  %v1225_v37 = vadd.f32 %v1224_v34, %v1136_v33  ;;  %v1138_v39 = vpop.f32.mrf.mxu1 }
 0x17b   : > { %1586 = vst [vmem:[%s2487_s21 + $0xc0] sm:$0xff] %v1554_v36  ;;  %v1139_v42 = vadd.f32 %v1138_v39, %v1049_v38 }
 0x17c   : > { %v1314_v40 = vadd.f32 %v1313_v35, %v1225_v37 }
 0x17e   : > { %v1459_v41 = vadd.f32 %v2472_v18, %v1314_v40 }
 0x180   : > { %vm1491_vm9 = vcmp.ge.f32.partialorder %v1459_v41, 0.0  ;;  %v1523_v43 = vmul.f32 0.01, %v1459_v41 }
 0x181   : > { %v1227_v44 = vpop.f32.mrf.mxu2  ;;  %v1051_v48 = vpop.f32.mrf.mxu0 }
 0x182   : > { %v1316_v45 = vpop.f32.mrf.mxu3  ;;  %v1555_v46 = vsel %vm1491_vm9, %v1459_v41, %v1523_v43  ;;  %v1228_v47 = vadd.f32 %v1227_v44, %v1139_v42  ;;  %v1140_v49 = vpop.f32.mrf.mxu1 }
 0x183   : > { %1587 = vst [vmem:[%s2487_s21 + $0xc8] sm:$0xff] %v1555_v46  ;;  %v1141_v53 = vadd.f32 %v1140_v49, %v1051_v48 }
 0x184   : > { %v1317_v50 = vadd.f32 %v1316_v45, %v1228_v47 }
 0x186   : > { %v1460_v51 = vadd.f32 %v2472_v18, %v1317_v50 }
 0x188   : > { %vm1492_vm10 = vcmp.ge.f32.partialorder %v1460_v51, 0.0  ;;  %v1524_v52 = vmul.f32 0.01, %v1460_v51 }
 0x189   : > { %v1229_v54 = vpop.f32.mrf.mxu2  ;;  %v1054_v58 = vpop.f32.mrf.mxu0 }
 0x18a   : > { %v1318_v55 = vpop.f32.mrf.mxu3  ;;  %v1556_v56 = vsel %vm1492_vm10, %v1460_v51, %v1524_v52  ;;  %v1230_v57 = vadd.f32 %v1229_v54, %v1141_v53  ;;  %v1143_v59 = vpop.f32.mrf.mxu1 }
 0x18b   : > { %1588 = vst [vmem:[%s2487_s21 + $0xd0] sm:$0xff] %v1556_v56  ;;  %v1144_v62 = vadd.f32 %v1143_v59, %v1054_v58 }
 0x18c   : > { %v1319_v60 = vadd.f32 %v1318_v55, %v1230_v57 }
 0x18e   : > { %v1461_v61 = vadd.f32 %v2472_v18, %v1319_v60 }
 0x190   : > { %vm1493_vm11 = vcmp.ge.f32.partialorder %v1461_v61, 0.0  ;;  %v1525_v63 = vmul.f32 0.01, %v1461_v61 }
 0x191   : > { %v1232_v0 = vpop.f32.mrf.mxu2  ;;  %v1056_v4 = vpop.f32.mrf.mxu0 }
 0x192   : > { %v1321_v1 = vpop.f32.mrf.mxu3  ;;  %v1557_v2 = vsel %vm1493_vm11, %v1461_v61, %v1525_v63  ;;  %v1233_v3 = vadd.f32 %v1232_v0, %v1144_v62  ;;  %v1145_v5 = vpop.f32.mrf.mxu1 }
 0x193   : > { %1589 = vst [vmem:[%s2487_s21 + $0xd8] sm:$0xff] %v1557_v2  ;;  %v1146_v9 = vadd.f32 %v1145_v5, %v1056_v4 }
 0x194   : > { %v1322_v6 = vadd.f32 %v1321_v1, %v1233_v3 }
 0x196   : > { %v1462_v7 = vadd.f32 %v2472_v18, %v1322_v6 }
 0x198   : > { %vm1494_vm12 = vcmp.ge.f32.partialorder %v1462_v7, 0.0  ;;  %v1526_v8 = vmul.f32 0.01, %v1462_v7 }
 0x199   : > { %v1234_v10 = vpop.f32.mrf.mxu2  ;;  %v1059_v14 = vpop.f32.mrf.mxu0 }
 0x19a   : > { %v1323_v11 = vpop.f32.mrf.mxu3  ;;  %v1558_v12 = vsel %vm1494_vm12, %v1462_v7, %v1526_v8  ;;  %v1235_v13 = vadd.f32 %v1234_v10, %v1146_v9  ;;  %v1148_v15 = vpop.f32.mrf.mxu1 }
 0x19b   : > { %1590 = vst [vmem:[%s2487_s21 + $0xe0] sm:$0xff] %v1558_v12  ;;  %v1149_v19 = vadd.f32 %v1148_v15, %v1059_v14 }
 0x19c   : > { %v1324_v16 = vadd.f32 %v1323_v11, %v1235_v13 }
 0x19e   : > { %v1463_v17 = vadd.f32 %v2472_v18, %v1324_v16 }
 0x1a0   : > { %vm1495_vm13 = vcmp.ge.f32.partialorder %v1463_v17, 0.0  ;;  %v1527_v20 = vmul.f32 0.01, %v1463_v17 }
 0x1a1   : > { %v1237_v21 = vpop.f32.mrf.mxu2  ;;  %v1061_v26 = vpop.f32.mrf.mxu0 }
 0x1a2   : > { %v1326_v22 = vpop.f32.mrf.mxu3  ;;  %v1559_v23 = vsel %vm1495_vm13, %v1463_v17, %v1527_v20  ;;  %v1238_v24 = vadd.f32 %v1237_v21, %v1149_v19  ;;  %v1150_v27 = vpop.f32.mrf.mxu1 }
 0x1a3   : > { %1591 = vst [vmem:[%s2487_s21 + $0xe8] sm:$0xff] %v1559_v23  ;;  %v1151_v30 = vadd.f32 %v1150_v27, %v1061_v26 }
 0x1a4   : > { %v1327_v25 = vadd.f32 %v1326_v22, %v1238_v24 }
 0x1a6   : > { %v1464_v28 = vadd.f32 %v2472_v18, %v1327_v25 }
 0x1a8   : > { %vm1496_vm14 = vcmp.ge.f32.partialorder %v1464_v28, 0.0  ;;  %v1528_v29 = vmul.f32 0.01, %v1464_v28 }
 0x1a9   : > { %v1239_v31 = vpop.f32.mrf.mxu2 }
 0x1aa   : > { %v1560_v32 = vsel %vm1496_vm14, %v1464_v28, %v1528_v29  ;;  %v1240_v33 = vadd.f32 %v1239_v31, %v1151_v30  ;;  %v1328_v34 = vpop.f32.mrf.mxu3 }
 0x1ab   : > { %1592 = vst [vmem:[%s2487_s21 + $0xf0] sm:$0xff] %v1560_v32 }
 0x1ac   : > { %v1329_v35 = vadd.f32 %v1328_v34, %v1240_v33 }
 0x1ae   : > { %v1465_v36 = vadd.f32 %v2472_v18, %v1329_v35 }
 0x1b0   : > { %vm1497_vm15 = vcmp.ge.f32.partialorder %v1465_v36, 0.0  ;;  %v1529_v37 = vmul.f32 0.01, %v1465_v36 }
 0x1b2   : > { %v1561_v38 = vsel %vm1497_vm15, %v1465_v36, %v1529_v37 }
 0x1b3   : > { %1593 = vst [vmem:[%s2487_s21 + $0xf8] sm:$0xff] %v1561_v38 }
 0x1b4 PF: > { %s13_s14 = sadd.s32 1, %s2250_s14   ;;  %s2613_s12 = smov %s2246_s13 }
 0x1b5   : > { %p10_p5 = scmp.ge.s32.totalorder %s13_s14, 4   ;;  %s2614_s13 = smov %s2616_s15 }
 0x1b7   :  { %12 = sbr.rel (!%p10_p5) target bundleno = 2 (0x2), region = 76 }

// kernel: forward.13
= control target key start
LH: loop header
LB: loop body
LE: loop exit
PB: predicated region body
PF: predicated region fallthrough
CT: control target
= control target key end

     0   :  { %s418_s6 = smov 0   ;;  %s420_s7 = smov 0   ;;  %s468_s0 = inlined_call_operand.vmem [shape: f32[8,64,128], index: 0, kind: input, shape index: {}]   ;;  %s469_s1 = inlined_call_operand.vmem [shape: f32[8,64,128], index: 1, kind: output, shape index: {}]  }
   0x1   :  { %s422_s8 = smov 0  }
   0x2 LB: > { %s23_s9 = sadd.s32 1, %s401_s7  ;;  %p345_p0 = scmp.ge.s32.totalorder %s405_s8, 1  ;;  %s405_s8 = sphi %s422_s8, %s11_s8   ;;  %s401_s7 = sphi %s420_s7, %s471_s7   ;;  %s397_s6 = sphi %s418_s6, %s470_s6  }
   0x3   : > { %p25_p1 = scmp.ge.s32.totalorder %s23_s9, 8  ;;  %p106_p2 = scmp.lt.s32.totalorder %s405_s8, 9 }
   0x5   : > { %s473_s9 = smov (%p25_p1, %s23_s9), 0  ;;  %p107_p3 = pnand %p345_p0, %p106_p2 }
   0x6   : > { %p132_p4 = scmp.lt.s32.totalorder (!%p107_p3), %s397_s6, 7 }
   0x7   : > { %110 = sbr.rel (%p107_p3) target bundleno = 109 (0x6d), region = 24 }
   0xc   : > { %s475_s6 = smov (!%p132_p4, %s397_s6), 7  ;;  %v407_v0 = vmov 64.0  }
   0xd   : > { %s352_s10 = sshll.u32 %s475_s6, 6  ;;  %379 = vrcp.f32 %v407_v0 }
   0xe   : > { %s139_s13 = scalar_lea.vmem %s468_s0, %s352_s10  ;;  %s449_s16 = scalar_lea.vmem %s469_s1, %s352_s10 }
   0xf   : > { %v148_v1 = vld [vmem:[%s139_s13] sm:$0xff]  ;;  %v149_v2 = vld [vmem:[%s139_s13 + $0x8] sm:$0xff]  ;;  %v150_v3 = vld [vmem:[%s139_s13 + $0x10] sm:$0xff] }
  0x10   : > { %v156_v4 = vadd.f32 %v149_v2, %v148_v1  ;;  %v151_v5 = vld [vmem:[%s139_s13 + $0x18] sm:$0xff]  ;;  %v152_v7 = vld [vmem:[%s139_s13 + $0x20] sm:$0xff]  ;;  %v153_v10 = vld [vmem:[%s139_s13 + $0x28] sm:$0xff] }
  0x11   : > { %v154_v12 = vld [vmem:[%s139_s13 + $0x30] sm:$0xff]  ;;  %v155_v15 = vld [vmem:[%s139_s13 + $0x38] sm:$0xff] }
  0x12   : > { %v157_v6 = vadd.f32 %v156_v4, %v150_v3 }
  0x13   : > { %v380_v8 = vpop.eup %379 }
  0x14   : > { %v158_v9 = vadd.f32 %v157_v6, %v151_v5  ;;  %v170_v13 = vmul.f32 64.0, %v380_v8  ;;  %vm174_vm0 = vweird.f32 %v380_v8 }
  0x16   : > { %v159_v11 = vadd.f32 %v158_v9, %v152_v7  ;;  %v171_v17 = vsub.f32 1.0, %v170_v13 }
  0x18   : > { %v160_v14 = vadd.f32 %v159_v11, %v153_v10  ;;  %v172_v20 = vmul.f32 %v380_v8, %v171_v17 }
  0x1a   : > { %v161_v16 = vadd.f32 %v160_v14, %v154_v12  ;;  %v173_v23 = vadd.f32 %v380_v8, %v172_v20 }
  0x1c   : > { %v162_v18 = vadd.f32 %v161_v16, %v155_v15  ;;  %v175_v26 = vsel %vm174_vm0, %v380_v8, %v173_v23 }
  0x1e   : > { %v163_v19 = vrot.slane %v162_v18, 4 }
  0x20   : > { %v164_v21 = vadd.f32 %v163_v19, %v162_v18 }
  0x22   : > { %v165_v22 = vrot.slane %v164_v21, 2 }
  0x24   : > { %v166_v24 = vadd.f32 %v165_v22, %v164_v21 }
  0x26   : > { %v167_v25 = vrot.slane %v166_v24, 1 }
  0x28   : > { %v168_v27 = vadd.f32 %v167_v25, %v166_v24 }
  0x2a   : > { %v176_v28 = vmul.f32 %v175_v26, %v168_v27 }
  0x2c   : > { %v177_v29 = vsub.f32 %v148_v1, %v176_v28  ;;  %v178_v30 = vsub.f32 %v149_v2, %v176_v28  ;;  %v179_v31 = vsub.f32 %v150_v3, %v176_v28  ;;  %v180_v32 = vsub.f32 %v151_v5, %v176_v28 }
  0x2d   : > { %v181_v33 = vsub.f32 %v152_v7, %v176_v28  ;;  %v182_v37 = vsub.f32 %v153_v10, %v176_v28  ;;  %v183_v40 = vsub.f32 %v154_v12, %v176_v28  ;;  %v184_v43 = vsub.f32 %v155_v15, %v176_v28 }
  0x2e   : > { %v185_v34 = vmul.f32 %v177_v29, %v177_v29  ;;  %v186_v35 = vmul.f32 %v178_v30, %v178_v30  ;;  %v187_v36 = vmul.f32 %v179_v31, %v179_v31  ;;  %v188_v38 = vmul.f32 %v180_v32, %v180_v32 }
  0x2f   : > { %v189_v41 = vmul.f32 %v181_v33, %v181_v33  ;;  %v190_v44 = vmul.f32 %v182_v37, %v182_v37  ;;  %v191_v46 = vmul.f32 %v183_v40, %v183_v40  ;;  %v192_v48 = vmul.f32 %v184_v43, %v184_v43 }
  0x30   : > { %v193_v39 = vadd.f32 %v186_v35, %v185_v34 }
  0x32   : > { %v194_v42 = vadd.f32 %v193_v39, %v187_v36 }
  0x34   : > { %v195_v45 = vadd.f32 %v194_v42, %v188_v38 }
  0x36   : > { %v196_v47 = vadd.f32 %v195_v45, %v189_v41 }
  0x38   : > { %v197_v49 = vadd.f32 %v196_v47, %v190_v44 }
  0x3a   : > { %v198_v50 = vadd.f32 %v197_v49, %v191_v46 }
  0x3c   : > { %v199_v51 = vadd.f32 %v198_v50, %v192_v48 }
  0x3e   : > { %v200_v52 = vrot.slane %v199_v51, 4 }
  0x40   : > { %v201_v53 = vadd.f32 %v200_v52, %v199_v51 }
  0x42   : > { %v202_v54 = vrot.slane %v201_v53, 2 }
  0x44   : > { %v203_v55 = vadd.f32 %v202_v54, %v201_v53 }
  0x46   : > { %v204_v56 = vrot.slane %v203_v55, 1 }
  0x48   : > { %v205_v57 = vadd.f32 %v204_v56, %v203_v55 }
  0x4a   : > { %v206_v58 = vmul.f32 %v205_v57, %v175_v26 }
  0x4c   : > { %v207_v59 = vadd.f32 1e-05, %v206_v58 }
  0x4e   : > { %381 = vrsqrt.f32 %v207_v59  ;;  %vm214_vm1 = vweird.f32 %v207_v59 }
  0x54   : > { %v382_v60 = vpop.eup %381 }
  0x55   : > { %v209_v61 = vmul.f32 %v382_v60, %v207_v59  ;;  %vm215_vm2 = vweird.f32 %v382_v60 }
  0x56   : > { %vm216_vm3 = vmor %vm214_vm1, %vm215_vm2 }
  0x57   : > { %v210_v62 = vmul.f32 %v382_v60, %v209_v61 }
  0x59   : > { %v211_v63 = vmul.f32 0.5, %v210_v62 }
  0x5b   : > { %v212_v0 = vsub.f32 1.5, %v211_v63 }
  0x5d   : > { %v213_v1 = vmul.f32 %v382_v60, %v212_v0 }
  0x5f   : > { %v217_v2 = vsel %vm216_vm3, %v382_v60, %v213_v1 }
  0x60   : > { %v218_v3 = vmul.f32 %v217_v2, %v177_v29  ;;  %v219_v4 = vmul.f32 %v217_v2, %v178_v30  ;;  %v220_v5 = vmul.f32 %v217_v2, %v179_v31  ;;  %v221_v6 = vmul.f32 %v217_v2, %v180_v32 }
  0x61   : > { %v222_v7 = vmul.f32 %v217_v2, %v181_v33  ;;  %v223_v8 = vmul.f32 %v217_v2, %v182_v37  ;;  %v224_v9 = vmul.f32 %v217_v2, %v183_v40  ;;  %v225_v10 = vmul.f32 %v217_v2, %v184_v43 }
  0x62   : > { %vm226_vm4 = vcmp.ge.f32.partialorder %v218_v3, 0.0  ;;  %v234_v11 = vmul.f32 0.01, %v218_v3  ;;  %vm227_vm5 = vcmp.ge.f32.partialorder %v219_v4, 0.0  ;;  %v235_v12 = vmul.f32 0.01, %v219_v4 }
  0x63   : > { %vm228_vm6 = vcmp.ge.f32.partialorder %v220_v5, 0.0  ;;  %v236_v13 = vmul.f32 0.01, %v220_v5  ;;  %vm229_vm7 = vcmp.ge.f32.partialorder %v221_v6, 0.0  ;;  %v237_v14 = vmul.f32 0.01, %v221_v6 }
  0x64   : > { %v242_v15 = vsel %vm226_vm4, %v218_v3, %v234_v11  ;;  %v243_v16 = vsel %vm227_vm5, %v219_v4, %v235_v12  ;;  %vm230_vm8 = vcmp.ge.f32.partialorder %v222_v7, 0.0  ;;  %v238_v17 = vmul.f32 0.01, %v222_v7 }
  0x65   : > { %250 = vst [vmem:[%s449_s16] sm:$0xff] %v242_v15  ;;  %v244_v18 = vsel %vm228_vm6, %v220_v5, %v236_v13  ;;  %v245_v19 = vsel %vm229_vm7, %v221_v6, %v237_v14  ;;  %vm231_vm9 = vcmp.ge.f32.partialorder %v223_v8, 0.0  ;;  %v239_v20 = vmul.f32 0.01, %v223_v8 }
  0x66   : > { %251 = vst [vmem:[%s449_s16 + $0x8] sm:$0xff] %v243_v16  ;;  %v246_v21 = vsel %vm230_vm8, %v222_v7, %v238_v17  ;;  %vm232_vm10 = vcmp.ge.f32.partialorder %v224_v9, 0.0  ;;  %v240_v22 = vmul.f32 0.01, %v224_v9  ;;  %vm233_vm11 = vcmp.ge.f32.partialorder %v225_v10, 0.0 }
  0x67   : > { %252 = vst [vmem:[%s449_s16 + $0x10] sm:$0xff] %v244_v18  ;;  %v247_v23 = vsel %vm231_vm9, %v223_v8, %v239_v20  ;;  %v241_v24 = vmul.f32 0.01, %v225_v10 }
  0x68   : > { %253 = vst [vmem:[%s449_s16 + $0x18] sm:$0xff] %v245_v19  ;;  %v248_v25 = vsel %vm232_vm10, %v224_v9, %v240_v22 }
  0x69   : > { %254 = vst [vmem:[%s449_s16 + $0x20] sm:$0xff] %v246_v21  ;;  %v249_v26 = vsel %vm233_vm11, %v225_v10, %v241_v24 }
  0x6a   : > { %255 = vst [vmem:[%s449_s16 + $0x28] sm:$0xff] %v247_v23 }
  0x6b   : > { %256 = vst [vmem:[%s449_s16 + $0x30] sm:$0xff] %v248_v25 }
  0x6c   : > { %257 = vst [vmem:[%s449_s16 + $0x38] sm:$0xff] %v249_v26 }
  0x6d PF: > { %s11_s8 = sadd.s32 1, %s405_s8   ;;  %s470_s6 = smov %s401_s7 }
  0x6e   : > { %p8_p5 = scmp.ge.s32.totalorder %s11_s8, 10   ;;  %s471_s7 = smov %s473_s9 }
  0x70   :  { %10 = sbr.rel (!%p8_p5) target bundleno = 2 (0x2), region = 54 }

// kernel: forward.12
= control target key start
LH: loop header
LB: loop body
LE: loop exit
PB: predicated region body
PF: predicated region fallthrough
CT: control target
= control target key end

     0   :  { %s2600_s12 = smov 0   ;;  %s2602_s13 = smov 0   ;;  %s3089_s0 = inlined_call_operand.vmem [shape: bf16[512,640], index: 0, kind: input, shape index: {}]   ;;  %s3090_s1 = inlined_call_operand.vmem [shape: bf16[640,128], index: 1, kind: input, shape index: {}]   ;;  %s3091_s2 = inlined_call_operand.vmem [shape: f32[1,128], index: 2, kind: input, shape index: {}]   ;;  %s3092_s3 = inlined_call_operand.vmem [shape: f32[512,128], index: 3, kind: output, shape index: {}]  }
   0x1   :  { %s2604_s14 = smov 0  }
   0x2 LB: > { %s32_s15 = sadd.s32 1, %s2574_s13  ;;  %p1899_p0 = scmp.ge.s32.totalorder %s2578_s14, 1  ;;  %s2578_s14 = sphi %s2604_s14, %s13_s14   ;;  %s2574_s13 = sphi %s2602_s13, %s3094_s13   ;;  %s2570_s12 = sphi %s2600_s12, %s3093_s12  }
   0x3   : > { %p34_p1 = scmp.ge.s32.totalorder %s32_s15, 2  ;;  %p191_p2 = scmp.lt.s32.totalorder %s2578_s14, 3 }
   0x5   : > { %s3096_s15 = smov (%p34_p1, %s32_s15), 0  ;;  %p192_p3 = pnand %p1899_p0, %p191_p2 }
   0x6   : > { %s1900_s22 = sshll.u32 (!%p192_p3), %s2570_s12, 5 }
   0x7   : > { %195 = sbr.rel (%p192_p3) target bundleno = 497 (0x1f1), region = 32  ;;  %p236_p4 = scmp.lt.s32.totalorder (!%p192_p3), %s1900_s22, 63 }
   0xc   : > { %v2473_v0 = vld [vmem:[%s3090_s1 + $0x38] sm:$0xff]  ;;  %v2472_v1 = vld [vmem:[%s3090_s1 + $0x30] sm:$0xff]  ;;  %v2471_v2 = vld [vmem:[%s3090_s1 + $0x28] sm:$0xff]  ;;  %s3098_s22 = smov (!%p236_p4, %s1900_s22), 63 }
   0xd   : > { %2506 = vmatpush.bf16.msra.mxu1 %v2473_v0  ;;  %2507 = vmatpush.bf16.msra.mxu2 %v2473_v0  ;;  %v2470_v3 = vld [vmem:[%s3090_s1 + $0x20] sm:$0xff]  ;;  %v2469_v4 = vld [vmem:[%s3090_s1 + $0x18] sm:$0xff]  ;;  %v2468_v5 = vld [vmem:[%s3090_s1 + $0x10] sm:$0xff]  ;;  %s2530_s29 = smul.u32 20, %s3098_s22  ;;  %s1903_s8 = sshll.u32 %s3098_s22, 3 }
   0xe   : > { %2508 = vmatpush.bf16.msra.mxu3 %v2473_v0  ;;  %1167 = vmatpush.bf16.msra.mxu0 %v2473_v0  ;;  %v2467_v6 = vld [vmem:[%s3090_s1 + $0x8] sm:$0xff]  ;;  %v2466_v7 = vld [vmem:[%s3090_s1] sm:$0xff]  ;;  %v2489_v16 = vld [vmem:[%s3090_s1 + $0xb8] sm:$0xff]  ;;  %s2929_s16 = scalar_lea.vmem %s3092_s3, %s1903_s8 }
   0xf   : > { %s2648_s7 = scalar_lea.vmem %s3089_s0, %s2530_s29  ;;  %v2497_v17 = vld [vmem:[%s3090_s1 + $0xf8] sm:$0xff]  ;;  %v2488_v24 = vld [vmem:[%s3090_s1 + $0xb0] sm:$0xff]  ;;  %v2487_v28 = vld [vmem:[%s3090_s1 + $0xa8] sm:$0xff] }
  0x10   : > { %v1986_v8 = vld [vmem:[%s2648_s7 + $0xa0] sm:$0xf]  ;;  %v2408_v9 = vld [vmem:[%s2648_s7 + $0xb0] sm:$0xf0]  ;;  %v2481_v22 = vld [vmem:[%s3090_s1 + $0x78] sm:$0xff] }
  0x11   : > { %2509 = vmatpush.bf16.msra.mxu1 %v2472_v1  ;;  %2510 = vmatpush.bf16.msra.mxu2 %v2472_v1  ;;  %v2066_v10 = vld [vmem:[%s2648_s7 + $0x140] sm:$0xf]  ;;  %v2428_v11 = vld [vmem:[%s2648_s7 + $0x150] sm:$0xf0]  ;;  %v1987_v18 = vor.u32 %v2408_v9, %v1986_v8  ;;  %v2505_v23 = vld [vmem:[%s3090_s1 + $0x138] sm:$0xff] }
  0x12   : > { %2511 = vmatpush.bf16.msra.mxu3 %v2472_v1  ;;  %1168 = vmatpush.bf16.msra.mxu0 %v2472_v1  ;;  %v2146_v12 = vld [vmem:[%s2648_s7 + $0x1e0] sm:$0xf]  ;;  %v2448_v13 = vld [vmem:[%s2648_s7 + $0x1f0] sm:$0xf0]  ;;  %v2067_v19 = vor.u32 %v2428_v11, %v2066_v10  ;;  %v2495_v29 = vld [vmem:[%s3090_s1 + $0xe8] sm:$0xff] }
  0x13   : > { %v1906_v14 = vld [vmem:[%s2648_s7] sm:$0xf]  ;;  %v2388_v15 = vld [vmem:[%s2648_s7 + $0x10] sm:$0xf0]  ;;  %v2147_v20 = vor.u32 %v2448_v13, %v2146_v12  ;;  %v2479_v30 = vld [vmem:[%s3090_s1 + $0x68] sm:$0xff] }
  0x14   : > { %v1907_v21 = vor.u32 %v2388_v15, %v1906_v14  ;;  %v2496_v25 = vld [vmem:[%s3090_s1 + $0xf0] sm:$0xff]  ;;  %v2503_v31 = vld [vmem:[%s3090_s1 + $0x128] sm:$0xff]  ;;  %v2486_v33 = vld [vmem:[%s3090_s1 + $0xa0] sm:$0xff] }
  0x15   : > { %2512 = vmatpush.bf16.msra.mxu1 %v2471_v2  ;;  %2513 = vmatpush.bf16.msra.mxu2 %v2471_v2  ;;  %v2480_v26 = vld [vmem:[%s3090_s1 + $0x70] sm:$0xff]  ;;  %v2006_v32 = vld [vmem:[%s2648_s7 + $0xc8] sm:$0xf]  ;;  %v2494_v34 = vld [vmem:[%s3090_s1 + $0xe0] sm:$0xff] }
  0x16   : > { %2514 = vmatpush.bf16.msra.mxu3 %v2471_v2  ;;  %1169 = vmatpush.bf16.msra.mxu0 %v2471_v2  ;;  %v2504_v27 = vld [vmem:[%s3090_s1 + $0x130] sm:$0xff]  ;;  %v2413_v35 = vld [vmem:[%s2648_s7 + $0xd8] sm:$0xf0]  ;;  %v2086_v36 = vld [vmem:[%s2648_s7 + $0x168] sm:$0xf] }
  0x17   : > { %v2433_v37 = vld [vmem:[%s2648_s7 + $0x178] sm:$0xf0]  ;;  %v2166_v38 = vld [vmem:[%s2648_s7 + $0x208] sm:$0xf]  ;;  %v2478_v42 = vld [vmem:[%s3090_s1 + $0x60] sm:$0xff]  ;;  %v2007_v46 = vor.u32 %v2413_v35, %v2006_v32 }
  0x18   : > { %v2453_v39 = vld [vmem:[%s2648_s7 + $0x218] sm:$0xf0]  ;;  %v1926_v40 = vld [vmem:[%s2648_s7 + $0x28] sm:$0xf]  ;;  %v2502_v43 = vld [vmem:[%s3090_s1 + $0x120] sm:$0xff]  ;;  %v2087_v47 = vor.u32 %v2433_v37, %v2086_v36 }
  0x19   : > { %2515 = vmatpush.bf16.msra.mxu1 %v2470_v3  ;;  %2516 = vmatpush.bf16.msra.mxu2 %v2470_v3  ;;  %v2393_v41 = vld [vmem:[%s2648_s7 + $0x38] sm:$0xf0]  ;;  %v2167_v48 = vor.u32 %v2453_v39, %v2166_v38  ;;  %v2484_v52 = vld [vmem:[%s3090_s1 + $0x90] sm:$0xff]  ;;  %v2483_v56 = vld [vmem:[%s3090_s1 + $0x88] sm:$0xff] }
  0x1a   : > { %2517 = vmatpush.bf16.msra.mxu3 %v2470_v3  ;;  %1170 = vmatpush.bf16.msra.mxu0 %v2470_v3  ;;  %v2485_v44 = vld [vmem:[%s3090_s1 + $0x98] sm:$0xff]  ;;  %v1927_v49 = vor.u32 %v2393_v41, %v1926_v40  ;;  %v2492_v53 = vld [vmem:[%s3090_s1 + $0xd0] sm:$0xff]  ;;  %v2491_v57 = vld [vmem:[%s3090_s1 + $0xc8] sm:$0xff] }
  0x1b   : > { %v2493_v45 = vld [vmem:[%s3090_s1 + $0xd8] sm:$0xff]  ;;  %v2476_v54 = vld [vmem:[%s3090_s1 + $0x50] sm:$0xff]  ;;  %v2475_v58 = vld [vmem:[%s3090_s1 + $0x48] sm:$0xff] }
  0x1c   : > { %v2477_v50 = vld [vmem:[%s3090_s1 + $0x58] sm:$0xff]  ;;  %v2500_v55 = vld [vmem:[%s3090_s1 + $0x110] sm:$0xff]  ;;  %v2499_v59 = vld [vmem:[%s3090_s1 + $0x108] sm:$0xff] }
  0x1d   : > { %2518 = vmatpush.bf16.msra.mxu1 %v2469_v4  ;;  %2519 = vmatpush.bf16.msra.mxu2 %v2469_v4  ;;  %v2501_v51 = vld [vmem:[%s3090_s1 + $0x118] sm:$0xff]  ;;  %v2026_v60 = vld [vmem:[%s2648_s7 + $0xf0] sm:$0xf]  ;;  %v2482_v61 = vld [vmem:[%s3090_s1 + $0x80] sm:$0xff] }
  0x1e   : > { %2520 = vmatpush.bf16.msra.mxu3 %v2469_v4  ;;  %1171 = vmatpush.bf16.msra.mxu0 %v2469_v4  ;;  %v2490_v62 = vld [vmem:[%s3090_s1 + $0xc0] sm:$0xff]  ;;  %v2106_v0 = vld [vmem:[%s2648_s7 + $0x190] sm:$0xf]  ;;  %v2046_v12 = vld [vmem:[%s2648_s7 + $0x118] sm:$0xf] }
  0x1f   : > { %v2418_v63 = vld [vmem:[%s2648_s7 + $0x100] sm:$0xf0]  ;;  %v2186_v2 = vld [vmem:[%s2648_s7 + $0x230] sm:$0xf]  ;;  %v2423_v13 = vld [vmem:[%s2648_s7 + $0x128] sm:$0xf0] }
  0x20   : > { %v2438_v1 = vld [vmem:[%s2648_s7 + $0x1a0] sm:$0xf0]  ;;  %v1946_v4 = vld [vmem:[%s2648_s7 + $0x50] sm:$0xf]  ;;  %v2027_v8 = vor.u32 %v2418_v63, %v2026_v60  ;;  %v2126_v14 = vld [vmem:[%s2648_s7 + $0x1b8] sm:$0xf] }
  0x21   : > { %2521 = vmatpush.bf16.msra.mxu1 %v2468_v5  ;;  %2522 = vmatpush.bf16.msra.mxu2 %v2468_v5  ;;  %v2458_v3 = vld [vmem:[%s2648_s7 + $0x240] sm:$0xf0]  ;;  %v2107_v9 = vor.u32 %v2438_v1, %v2106_v0  ;;  %v2443_v15 = vld [vmem:[%s2648_s7 + $0x1c8] sm:$0xf0]  ;;  %v1928_v37 = vld [vmem:[%s2648_s7 + $0x3c] sm:$0xf0] }
  0x22   : > { %2523 = vmatpush.bf16.msra.mxu3 %v2468_v5  ;;  %1172 = vmatpush.bf16.msra.mxu0 %v2468_v5  ;;  %v2398_v5 = vld [vmem:[%s2648_s7 + $0x60] sm:$0xf0]  ;;  %v2187_v10 = vor.u32 %v2458_v3, %v2186_v2  ;;  %v2391_v36 = vld [vmem:[%s2648_s7 + $0x2c] sm:$0xf]  ;;  %v1934_v38 = vld [vmem:[%s2648_s7 + $0x30] sm:$0xf] }
  0x23   : > { %v1947_v11 = vor.u32 %v2398_v5, %v1946_v4  ;;  %v2394_v39 = vld [vmem:[%s2648_s7 + $0x40] sm:$0xf0]  ;;  %v2392_v40 = vld [vmem:[%s2648_s7 + $0x34] sm:$0xf]  ;;  %v1936_v41 = vld [vmem:[%s2648_s7 + $0x44] sm:$0xf0] }
  0x24   : > { %v2401_v60 = vld [vmem:[%s2648_s7 + $0x7c] sm:$0xf]  ;;  %v2404_v63 = vld [vmem:[%s2648_s7 + $0x90] sm:$0xf0]  ;;  %v2402_v0 = vld [vmem:[%s2648_s7 + $0x84] sm:$0xf] }
  0x25   : > { %2524 = vmatpush.bf16.msra.mxu1 %v2467_v6  ;;  %2525 = vmatpush.bf16.msra.mxu2 %v2467_v6  ;;  %v1976_v1 = vld [vmem:[%s2648_s7 + $0x94] sm:$0xf0]  ;;  %v1982_v2 = vld [vmem:[%s2648_s7 + $0x88] sm:$0xf]  ;;  %v2405_v3 = vld [vmem:[%s2648_s7 + $0x98] sm:$0xf0] }
  0x26   : > { %2526 = vmatpush.bf16.msra.mxu3 %v2467_v6  ;;  %1173 = vmatpush.bf16.msra.mxu0 %v2467_v6  ;;  %v2474_v6 = vld [vmem:[%s3090_s1 + $0x40] sm:$0xff] }
  0x29   : > { %2527 = vmatpush.bf16.msra.mxu1 %v2466_v7  ;;  %2528 = vmatpush.bf16.msra.mxu2 %v2466_v7 }
  0x2a   : > { %2529 = vmatpush.bf16.msra.mxu3 %v2466_v7  ;;  %1174 = vmatpush.bf16.msra.mxu0 %v2466_v7  ;;  %v2498_v7 = vld [vmem:[%s3090_s1 + $0x100] sm:$0xff] }
  0x2c   : > { %1195 = vmatmul.bf16.vlgmr.msra.gmra.mxu1 %v1987_v18  ;;  %1215 = vmatmul.bf16.vlgmr.msra.gmra.mxu2 %v2067_v19  ;;  %v1966_v18 = vld [vmem:[%s2648_s7 + $0x78] sm:$0xf]  ;;  %v2403_v19 = vld [vmem:[%s2648_s7 + $0x88] sm:$0xf0] }
  0x2d   : > { %1345 = vmatpush.bf16.msrb.mxu2 %v2489_v16  ;;  %1235 = vmatmul.bf16.vlgmr.msra.gmra.mxu3 %v2147_v20  ;;  %v2206_v16 = vld [vmem:[%s2648_s7 + $0x258] sm:$0xf]  ;;  %v2047_v20 = vor.u32 %v2423_v13, %v2046_v12  ;;  %v2407_v12 = vld [vmem:[%s2648_s7 + $0xac] sm:$0xf]  ;;  %v1996_v13 = vld [vmem:[%s2648_s7 + $0xbc] sm:$0xf0] }
  0x2e   : > { %1434 = vmatpush.bf16.msrb.mxu3 %v2497_v17  ;;  %1175 = vmatmul.bf16.vlgmr.msra.gmra.mxu0 %v1907_v21  ;;  %v2463_v17 = vld [vmem:[%s2648_s7 + $0x268] sm:$0xf0]  ;;  %v2127_v21 = vor.u32 %v2443_v15, %v2126_v14  ;;  %v2002_v14 = vld [vmem:[%s2648_s7 + $0xb0] sm:$0xf]  ;;  %v2410_v15 = vld [vmem:[%s2648_s7 + $0xc0] sm:$0xf0] }
  0x2f   : > { %1256 = vmatpush.bf16.msrb.mxu1 %v2481_v22  ;;  %1523 = vmatpush.bf16.msrb.mxu0 %v2505_v23  ;;  %v2207_v22 = vor.u32 %v2463_v17, %v2206_v16  ;;  %v1967_v23 = vor.u32 %v2403_v19, %v1966_v18  ;;  %v1999_v19 = vor.u32 %v2407_v12, %v1996_v13 }
  0x31   : > { %1346 = vmatpush.bf16.msrb.mxu2 %v2488_v24  ;;  %v2386_v24 = vld [vmem:[%s2648_s7 + $0x4] sm:$0xf] }
  0x32   : > { %1435 = vmatpush.bf16.msrb.mxu3 %v2496_v25  ;;  %v1908_v25 = vld [vmem:[%s2648_s7 + $0x14] sm:$0xf0] }
  0x33   : > { %1257 = vmatpush.bf16.msrb.mxu1 %v2480_v26  ;;  %1524 = vmatpush.bf16.msrb.mxu0 %v2504_v27  ;;  %v1914_v26 = vld [vmem:[%s2648_s7 + $0x8] sm:$0xf]  ;;  %v2389_v27 = vld [vmem:[%s2648_s7 + $0x18] sm:$0xf0]  ;;  %v1911_v32 = vor.u32 %v2386_v24, %v1908_v25 }
  0x35   : > { %1347 = vmatpush.bf16.msrb.mxu2 %v2487_v28  ;;  %v2387_v28 = vld [vmem:[%s2648_s7 + $0xc] sm:$0xf] }
  0x36   : > { %1436 = vmatpush.bf16.msrb.mxu3 %v2495_v29  ;;  %v1916_v29 = vld [vmem:[%s2648_s7 + $0x1c] sm:$0xf0] }
  0x37   : > { %1258 = vmatpush.bf16.msrb.mxu1 %v2479_v30  ;;  %1525 = vmatpush.bf16.msrb.mxu0 %v2503_v31  ;;  %v1922_v30 = vld [vmem:[%s2648_s7 + $0x10] sm:$0xf]  ;;  %v2390_v31 = vld [vmem:[%s2648_s7 + $0x20] sm:$0xf0] }
  0x38   : > { %v1923_v35 = vor.u32 %v2390_v31, %v1922_v30  ;;  %v2412_v30 = vld [vmem:[%s2648_s7 + $0xd4] sm:$0xf]  ;;  %v2016_v31 = vld [vmem:[%s2648_s7 + $0xe4] sm:$0xf0] }
  0x39   : > { %1348 = vmatpush.bf16.msrb.mxu2 %v2486_v33  ;;  %v1915_v33 = vor.u32 %v2389_v27, %v1914_v26  ;;  %v2411_v26 = vld [vmem:[%s2648_s7 + $0xcc] sm:$0xf]  ;;  %v2008_v27 = vld [vmem:[%s2648_s7 + $0xdc] sm:$0xf0] }
  0x3a   : > { %1437 = vmatpush.bf16.msrb.mxu3 %v2494_v34  ;;  %v1919_v34 = vor.u32 %v2387_v28, %v1916_v29  ;;  %v2014_v28 = vld [vmem:[%s2648_s7 + $0xd0] sm:$0xf]  ;;  %v2414_v29 = vld [vmem:[%s2648_s7 + $0xe0] sm:$0xf0] }
  0x3b   : > { %1259 = vmatpush.bf16.msrb.mxu1 %v2478_v42  ;;  %1526 = vmatpush.bf16.msrb.mxu0 %v2502_v43  ;;  %v1942_v42 = vld [vmem:[%s2648_s7 + $0x38] sm:$0xf]  ;;  %v2395_v43 = vld [vmem:[%s2648_s7 + $0x48] sm:$0xf0] }
  0x3c   : > { %1200 = vmatmul.bf16.gmra.mxu1 %v2007_v46  ;;  %1220 = vmatmul.bf16.gmra.mxu2 %v2087_v47  ;;  %v1939_v46 = vor.u32 %v2392_v40, %v1936_v41  ;;  %v1943_v47 = vor.u32 %v2395_v43, %v1942_v42 }
  0x3d   : > { %1349 = vmatpush.bf16.msrb.mxu2 %v2485_v44  ;;  %1240 = vmatmul.bf16.gmra.mxu3 %v2167_v48  ;;  %v1931_v44 = vor.u32 %v2391_v36, %v1928_v37  ;;  %v2396_v48 = vld [vmem:[%s2648_s7 + $0x54] sm:$0xf]  ;;  %v2011_v36 = vor.u32 %v2411_v26, %v2008_v27  ;;  %v2015_v37 = vor.u32 %v2414_v29, %v2014_v28  ;;  %v2426_v28 = vld [vmem:[%s2648_s7 + $0x144] sm:$0xf]  ;;  %v2068_v29 = vld [vmem:[%s2648_s7 + $0x154] sm:$0xf0] }
  0x3e   : > { %1438 = vmatpush.bf16.msrb.mxu3 %v2493_v45  ;;  %1180 = vmatmul.bf16.gmra.mxu0 %v1927_v49  ;;  %v1935_v45 = vor.u32 %v2394_v39, %v1934_v38  ;;  %v1948_v49 = vld [vmem:[%s2648_s7 + $0x64] sm:$0xf0]  ;;  %v2019_v39 = vor.u32 %v2412_v30, %v2016_v31  ;;  %v2429_v31 = vld [vmem:[%s2648_s7 + $0x158] sm:$0xf0] }
  0x3f   : > { %1260 = vmatpush.bf16.msrb.mxu1 %v2477_v50  ;;  %1527 = vmatpush.bf16.msrb.mxu0 %v2501_v51  ;;  %v1954_v50 = vld [vmem:[%s2648_s7 + $0x58] sm:$0xf]  ;;  %v2399_v51 = vld [vmem:[%s2648_s7 + $0x68] sm:$0xf0]  ;;  %v2074_v30 = vld [vmem:[%s2648_s7 + $0x148] sm:$0xf] }
  0x41   : > { %1350 = vmatpush.bf16.msrb.mxu2 %v2484_v52  ;;  %v2397_v52 = vld [vmem:[%s2648_s7 + $0x5c] sm:$0xf] }
  0x42   : > { %1439 = vmatpush.bf16.msrb.mxu3 %v2492_v53  ;;  %v1956_v53 = vld [vmem:[%s2648_s7 + $0x6c] sm:$0xf0] }
  0x43   : > { %1261 = vmatpush.bf16.msrb.mxu1 %v2476_v54  ;;  %1528 = vmatpush.bf16.msrb.mxu0 %v2500_v55  ;;  %v1962_v54 = vld [vmem:[%s2648_s7 + $0x60] sm:$0xf]  ;;  %v2400_v55 = vld [vmem:[%s2648_s7 + $0x70] sm:$0xf0] }
  0x45   : > { %1351 = vmatpush.bf16.msrb.mxu2 %v2483_v56  ;;  %v1951_v56 = vor.u32 %v2396_v48, %v1948_v49  ;;  %v2034_v48 = vld [vmem:[%s2648_s7 + $0xf8] sm:$0xf]  ;;  %v2419_v49 = vld [vmem:[%s2648_s7 + $0x108] sm:$0xf0] }
  0x46   : > { %1440 = vmatpush.bf16.msrb.mxu3 %v2491_v57  ;;  %v1955_v57 = vor.u32 %v2399_v51, %v1954_v50  ;;  %v2417_v50 = vld [vmem:[%s2648_s7 + $0xfc] sm:$0xf]  ;;  %v2036_v51 = vld [vmem:[%s2648_s7 + $0x10c] sm:$0xf0] }
  0x47   : > { %1262 = vmatpush.bf16.msrb.mxu1 %v2475_v58  ;;  %1529 = vmatpush.bf16.msrb.mxu0 %v2499_v59  ;;  %v1959_v58 = vor.u32 %v2397_v52, %v1956_v53  ;;  %v1963_v59 = vor.u32 %v2400_v55, %v1962_v54  ;;  %v2042_v52 = vld [vmem:[%s2648_s7 + $0x100] sm:$0xf]  ;;  %v2420_v53 = vld [vmem:[%s2648_s7 + $0x110] sm:$0xf0] }
  0x49   : > { %1352 = vmatpush.bf16.msrb.mxu2 %v2482_v61  ;;  %v1968_v61 = vld [vmem:[%s2648_s7 + $0x8c] sm:$0xf0] }
  0x4a   : > { %1441 = vmatpush.bf16.msrb.mxu3 %v2490_v62  ;;  %v1974_v62 = vld [vmem:[%s2648_s7 + $0x80] sm:$0xf]  ;;  %v1971_v4 = vor.u32 %v2401_v60, %v1968_v61  ;;  %v2043_v60 = vor.u32 %v2420_v53, %v2042_v52 }
  0x4b   : > { %1263 = vmatpush.bf16.msrb.mxu1 %v2474_v6  ;;  %1530 = vmatpush.bf16.msrb.mxu0 %v2498_v7  ;;  %v1975_v5 = vor.u32 %v2404_v63, %v1974_v62  ;;  %v1979_v6 = vor.u32 %v2402_v0, %v1976_v1  ;;  %v1983_v7 = vor.u32 %v2405_v3, %v1982_v2  ;;  %v2421_v2 = vld [vmem:[%s2648_s7 + $0x11c] sm:$0xf]  ;;  %v2048_v3 = vld [vmem:[%s2648_s7 + $0x12c] sm:$0xf0] }
  0x4c   : > { %1205 = vmatmul.bf16.gmra.mxu1 %v2027_v8  ;;  %1225 = vmatmul.bf16.gmra.mxu2 %v2107_v9  ;;  %v2406_v8 = vld [vmem:[%s2648_s7 + $0xa4] sm:$0xf]  ;;  %v1988_v9 = vld [vmem:[%s2648_s7 + $0xb4] sm:$0xf0]  ;;  %v2051_v12 = vor.u32 %v2421_v2, %v2048_v3  ;;  %v2922_v2 = vld [vmem:[%s3091_s2] ss:$0 sm:$0xff] }
  0x4d   : > { %1245 = vmatmul.bf16.gmra.mxu3 %v2187_v10  ;;  %v1994_v10 = vld [vmem:[%s2648_s7 + $0xa8] sm:$0xf]  ;;  %v1991_v16 = vor.u32 %v2406_v8, %v1988_v9  ;;  %v2425_v9 = vld [vmem:[%s2648_s7 + $0x138] sm:$0xf0] }
  0x4e   : > { %1185 = vmatmul.bf16.gmra.mxu0 %v1947_v11  ;;  %v2409_v11 = vld [vmem:[%s2648_s7 + $0xb8] sm:$0xf0]  ;;  %v2062_v8 = vld [vmem:[%s2648_s7 + $0x128] sm:$0xf] }
  0x4f   : > { %v1995_v17 = vor.u32 %v2409_v11, %v1994_v10 }
  0x5c   : > { %1210 = vmatmul.bf16.gmra.mxu1 %v2047_v20  ;;  %1230 = vmatmul.bf16.gmra.mxu2 %v2127_v21  ;;  %v2003_v20 = vor.u32 %v2410_v15, %v2002_v14 }
  0x5d   : > { %1250 = vmatmul.bf16.gmra.mxu3 %v2207_v22 }
  0x5e   : > { %1190 = vmatmul.bf16.gmra.mxu0 %v1967_v23 }
  0x6c   : > { %1264 = vmatmul.bf16.vlgmr.msrb.gmra.mxu1 %v1911_v32  ;;  %1353 = vmatmul.bf16.vlgmr.msrb.gmra.mxu2 %v1915_v33  ;;  %v2022_v32 = vld [vmem:[%s2648_s7 + $0xd8] sm:$0xf]  ;;  %v2415_v33 = vld [vmem:[%s2648_s7 + $0xe8] sm:$0xf0] }
  0x6d   : > { %1442 = vmatmul.bf16.vlgmr.msrb.gmra.mxu3 %v1919_v34  ;;  %v2023_v40 = vor.u32 %v2415_v33, %v2022_v32  ;;  %v2427_v32 = vld [vmem:[%s2648_s7 + $0x14c] sm:$0xf]  ;;  %v2076_v33 = vld [vmem:[%s2648_s7 + $0x15c] sm:$0xf0] }
  0x6e   : > { %1531 = vmatmul.bf16.vlgmr.msrb.gmra.mxu0 %v1923_v35 }
  0x7c   : > { %1269 = vmatmul.bf16.gmra.mxu1 %v1931_v44  ;;  %1358 = vmatmul.bf16.gmra.mxu2 %v1935_v45 }
  0x7d   : > { %1447 = vmatmul.bf16.gmra.mxu3 %v1939_v46  ;;  %v2416_v46 = vld [vmem:[%s2648_s7 + $0xf4] sm:$0xf] }
  0x7e   : > { %1536 = vmatmul.bf16.gmra.mxu0 %v1943_v47  ;;  %v2028_v47 = vld [vmem:[%s2648_s7 + $0x104] sm:$0xf0] }
  0x8c   : > { %1274 = vmatmul.bf16.gmra.mxu1 %v1951_v56  ;;  %1363 = vmatmul.bf16.gmra.mxu2 %v1955_v57  ;;  %v2031_v56 = vor.u32 %v2416_v46, %v2028_v47  ;;  %v2035_v57 = vor.u32 %v2419_v49, %v2034_v48  ;;  %v2071_v46 = vor.u32 %v2426_v28, %v2068_v29 }
  0x8d   : > { %1452 = vmatmul.bf16.gmra.mxu3 %v1959_v58  ;;  %v2075_v47 = vor.u32 %v2429_v31, %v2074_v30  ;;  %v2079_v49 = vor.u32 %v2427_v32, %v2076_v33 }
  0x8e   : > { %1541 = vmatmul.bf16.gmra.mxu0 %v1963_v59  ;;  %v2039_v59 = vor.u32 %v2417_v50, %v2036_v51 }
  0x9c   : > { %1279 = vmatmul.bf16.gmra.mxu1 %v1971_v4  ;;  %1368 = vmatmul.bf16.gmra.mxu2 %v1975_v5  ;;  %v2054_v4 = vld [vmem:[%s2648_s7 + $0x120] sm:$0xf]  ;;  %v2424_v5 = vld [vmem:[%s2648_s7 + $0x130] sm:$0xf0] }
  0x9d   : > { %1457 = vmatmul.bf16.gmra.mxu3 %v1979_v6  ;;  %v2422_v6 = vld [vmem:[%s2648_s7 + $0x124] sm:$0xf]  ;;  %v2055_v13 = vor.u32 %v2424_v5, %v2054_v4  ;;  %v2431_v5 = vld [vmem:[%s2648_s7 + $0x16c] sm:$0xf] }
  0x9e   : > { %1546 = vmatmul.bf16.gmra.mxu0 %v1983_v7  ;;  %v2056_v7 = vld [vmem:[%s2648_s7 + $0x134] sm:$0xf0] }
  0x9f   : > { %v2059_v15 = vor.u32 %v2422_v6, %v2056_v7  ;;  %v2088_v6 = vld [vmem:[%s2648_s7 + $0x17c] sm:$0xf0]  ;;  %v2434_v7 = vld [vmem:[%s2648_s7 + $0x180] sm:$0xf0] }
  0xa0   : > { %v2091_v31 = vor.u32 %v2431_v5, %v2088_v6  ;;  %v2439_v5 = vld [vmem:[%s2648_s7 + $0x1a8] sm:$0xf0]  ;;  %v2437_v6 = vld [vmem:[%s2648_s7 + $0x19c] sm:$0xf] }
  0xa9   : > { %v2821_v18 = vpop.f32.mrf.mxu1 }
  0xab   : > { %v2823_v21 = vpop.f32.mrf.mxu0 }
  0xac   : > { %1284 = vmatmul.bf16.gmra.mxu1 %v1991_v16  ;;  %1373 = vmatmul.bf16.gmra.mxu2 %v1995_v17  ;;  %v2063_v16 = vor.u32 %v2425_v9, %v2062_v8  ;;  %v2432_v8 = vld [vmem:[%s2648_s7 + $0x174] sm:$0xf] }
  0xad   : > { %1462 = vmatmul.bf16.gmra.mxu3 %v1999_v19 }
  0xae   : > { %1551 = vmatmul.bf16.gmra.mxu0 %v2003_v20 }
  0xaf   : > { %v2825_v22 = vpop.f32.mrf.mxu2 }
  0xb0   : > { %v2827_v23 = vpop.f32.mrf.mxu3 }
  0xb1   : > { %v2829_v24 = vpop.f32.mrf.mxu1 }
  0xb3   : > { %v2831_v25 = vpop.f32.mrf.mxu0 }
  0xb7   : > { %v2841_v34 = vpop.f32.mrf.mxu2 }
  0xb8   : > { %v2843_v35 = vpop.f32.mrf.mxu3 }
  0xb9   : > { %v2845_v38 = vpop.f32.mrf.mxu1 }
  0xbb   : > { %v2847_v41 = vpop.f32.mrf.mxu0 }
  0xbc   : > { %1289 = vmatmul.bf16.gmra.mxu1 %v2011_v36  ;;  %1378 = vmatmul.bf16.gmra.mxu2 %v2015_v37  ;;  %v2082_v36 = vld [vmem:[%s2648_s7 + $0x150] sm:$0xf]  ;;  %v2430_v37 = vld [vmem:[%s2648_s7 + $0x160] sm:$0xf0] }
  0xbd   : > { %1467 = vmatmul.bf16.gmra.mxu3 %v2019_v39  ;;  %v2083_v50 = vor.u32 %v2430_v37, %v2082_v36 }
  0xbe   : > { %1556 = vmatmul.bf16.gmra.mxu0 %v2023_v40 }
  0xbf   : > { %v2849_v42 = vpop.f32.mrf.mxu2 }
  0xc0   : > { %v2851_v43 = vpop.f32.mrf.mxu3 }
  0xc1   : > { %v2853_v44 = vpop.f32.mrf.mxu1 }
  0xc3   : > { %v2855_v45 = vpop.f32.mrf.mxu0 }
  0xc7   : > { %v2865_v54 = vpop.f32.mrf.mxu2 }
  0xc8   : > { %v2867_v55 = vpop.f32.mrf.mxu3 }
  0xc9   : > { %v2869_v58 = vpop.f32.mrf.mxu1 }
  0xcb   : > { %v2871_v61 = vpop.f32.mrf.mxu0 }
  0xcc   : > { %1294 = vmatmul.bf16.gmra.mxu1 %v2031_v56  ;;  %1383 = vmatmul.bf16.gmra.mxu2 %v2035_v57 }
  0xcd   : > { %1472 = vmatmul.bf16.gmra.mxu3 %v2039_v59 }
  0xce   : > { %1561 = vmatmul.bf16.gmra.mxu0 %v2043_v60 }
  0xcf   : > { %v2873_v62 = vpop.f32.mrf.mxu2 }
  0xd0   : > { %v2875_v63 = vpop.f32.mrf.mxu3 }
  0xd1   : > { %v2877_v0 = vpop.f32.mrf.mxu1 }
  0xd3   : > { %v2879_v1 = vpop.f32.mrf.mxu0 }
  0xd7   : > { %v2889_v10 = vpop.f32.mrf.mxu2 }
  0xd8   : > { %v2891_v11 = vpop.f32.mrf.mxu3 }
  0xd9   : > { %v2893_v14 = vpop.f32.mrf.mxu1 }
  0xdb   : > { %v2895_v17 = vpop.f32.mrf.mxu0 }
  0xdc   : > { %1299 = vmatmul.bf16.gmra.mxu1 %v2051_v12  ;;  %1388 = vmatmul.bf16.gmra.mxu2 %v2055_v13  ;;  %v2096_v13 = vld [vmem:[%s2648_s7 + $0x184] sm:$0xf0] }
  0xdd   : > { %1477 = vmatmul.bf16.gmra.mxu3 %v2059_v15  ;;  %v2102_v15 = vld [vmem:[%s2648_s7 + $0x178] sm:$0xf]  ;;  %v2099_v36 = vor.u32 %v2432_v8, %v2096_v13  ;;  %v2122_v8 = vld [vmem:[%s2648_s7 + $0x1a0] sm:$0xf] }
  0xde   : > { %1566 = vmatmul.bf16.gmra.mxu0 %v2063_v16  ;;  %v2435_v16 = vld [vmem:[%s2648_s7 + $0x188] sm:$0xf0] }
  0xdf   : > { %v2897_v19 = vpop.f32.mrf.mxu2  ;;  %v2103_v37 = vor.u32 %v2435_v16, %v2102_v15 }
  0xe0   : > { %v2899_v20 = vpop.f32.mrf.mxu3 }
  0xe1   : > { %v2901_v26 = vpop.f32.mrf.mxu1 }
  0xe3   : > { %v2903_v27 = vpop.f32.mrf.mxu0 }
  0xe7   : > { %v2913_v39 = vpop.f32.mrf.mxu2 }
  0xe8   : > { %v2915_v40 = vpop.f32.mrf.mxu3 }
  0xe9   : > { %v1265_v48 = vpop.f32.mrf.mxu1 }
  0xea   : > { %v1266_v52 = vadd.f32 %v1265_v48, %v2823_v21  ;;  %v2094_v21 = vld [vmem:[%s2648_s7 + $0x170] sm:$0xf] }
  0xeb   : > { %v1532_v51 = vpop.f32.mrf.mxu0  ;;  %v2095_v32 = vor.u32 %v2434_v7, %v2094_v21  ;;  %v2116_v7 = vld [vmem:[%s2648_s7 + $0x1ac] sm:$0xf0] }
  0xec   : > { %1304 = vmatmul.bf16.gmra.mxu1 %v2071_v46  ;;  %1393 = vmatmul.bf16.gmra.mxu2 %v2075_v47 }
  0xed   : > { %1482 = vmatmul.bf16.gmra.mxu3 %v2079_v49 }
  0xee   : > { %1571 = vmatmul.bf16.gmra.mxu0 %v2083_v50 }
  0xef   : > { %v1354_v53 = vpop.f32.mrf.mxu2 }
  0xf0   : > { %v1355_v56 = vadd.f32 %v1354_v53, %v1266_v52  ;;  %v1443_v57 = vpop.f32.mrf.mxu3 }
  0xf1   : > { %v1267_v59 = vpop.f32.mrf.mxu1 }
  0xf2   : > { %v1444_v60 = vadd.f32 %v1443_v57, %v1355_v56  ;;  %v1268_v12 = vadd.f32 %v1267_v59, %v2831_v25 }
  0xf3   : > { %v1534_v3 = vpop.f32.mrf.mxu0 }
  0xf4   : > { %v1533_v4 = vadd.f32 %v1532_v51, %v1444_v60  ;;  %v2436_v60 = vld [vmem:[%s2648_s7 + $0x194] sm:$0xf] }
  0xf6   : > { %v1715_v9 = vadd.f32 %v2922_v2, %v1533_v4  ;;  %v2114_v4 = vld [vmem:[%s2648_s7 + $0x198] sm:$0xf] }
  0xf7   : > { %v1356_v28 = vpop.f32.mrf.mxu2 }
  0xf8   : > { %1747 = vst [vmem:[%s2929_s16] sm:$0xff] %v1715_v9  ;;  %v1357_v29 = vadd.f32 %v1356_v28, %v1268_v12  ;;  %v1445_v30 = vpop.f32.mrf.mxu3  ;;  %v2440_v9 = vld [vmem:[%s2648_s7 + $0x1b0] sm:$0xf0]  ;;  %v2115_v28 = vor.u32 %v2439_v5, %v2114_v4  ;;  %v2142_v4 = vld [vmem:[%s2648_s7 + $0x1c8] sm:$0xf]  ;;  %v2445_v5 = vld [vmem:[%s2648_s7 + $0x1d8] sm:$0xf0] }
  0xf9   : > { %v1270_v33 = vpop.f32.mrf.mxu1 }
  0xfa   : > { %v1446_v46 = vadd.f32 %v1445_v30, %v1357_v29  ;;  %v1271_v49 = vadd.f32 %v1270_v33, %v2847_v41  ;;  %v2119_v30 = vor.u32 %v2437_v6, %v2116_v7 }
  0xfb   : > { %v1537_v47 = vpop.f32.mrf.mxu0 }
  0xfc   : > { %v1535_v48 = vadd.f32 %v1534_v3, %v1446_v46  ;;  %1309 = vmatmul.bf16.gmra.mxu1 %v2091_v31  ;;  %1398 = vmatmul.bf16.gmra.mxu2 %v2095_v32  ;;  %v2108_v3 = vld [vmem:[%s2648_s7 + $0x1a4] sm:$0xf0]  ;;  %v2123_v31 = vor.u32 %v2440_v9, %v2122_v8 }
  0xfd   : > { %1487 = vmatmul.bf16.gmra.mxu3 %v2099_v36  ;;  %v2111_v16 = vor.u32 %v2436_v60, %v2108_v3  ;;  %v2136_v3 = vld [vmem:[%s2648_s7 + $0x1d4] sm:$0xf0] }
  0xfe   : > { %1576 = vmatmul.bf16.gmra.mxu0 %v2103_v37  ;;  %v1716_v25 = vadd.f32 %v2922_v2, %v1535_v48 }
  0xff   : > { %v1359_v50 = vpop.f32.mrf.mxu2 }
 0x100   : > { %1748 = vst [vmem:[%s2929_s16 + $0x8] sm:$0xff] %v1716_v25  ;;  %v1360_v51 = vadd.f32 %v1359_v50, %v1271_v49  ;;  %v1448_v52 = vpop.f32.mrf.mxu3 }
 0x101   : > { %v1272_v53 = vpop.f32.mrf.mxu1 }
 0x102   : > { %v1449_v56 = vadd.f32 %v1448_v52, %v1360_v51  ;;  %v1273_v41 = vadd.f32 %v1272_v53, %v2855_v45  ;;  %v2441_v52 = vld [vmem:[%s2648_s7 + $0x1bc] sm:$0xf]  ;;  %v2128_v53 = vld [vmem:[%s2648_s7 + $0x1cc] sm:$0xf0] }
 0x103   : > { %v1539_v57 = vpop.f32.mrf.mxu0  ;;  %v2131_v7 = vor.u32 %v2441_v52, %v2128_v53  ;;  %v2162_v52 = vld [vmem:[%s2648_s7 + $0x1f0] sm:$0xf]  ;;  %v2450_v53 = vld [vmem:[%s2648_s7 + $0x200] sm:$0xf0] }
 0x104   : > { %v1538_v59 = vadd.f32 %v1537_v47, %v1449_v56  ;;  %v2134_v56 = vld [vmem:[%s2648_s7 + $0x1c0] sm:$0xf] }
 0x106   : > { %v1717_v21 = vadd.f32 %v2922_v2, %v1538_v59  ;;  %v2442_v59 = vld [vmem:[%s2648_s7 + $0x1c4] sm:$0xf] }
 0x107   : > { %v1361_v12 = vpop.f32.mrf.mxu2 }
 0x108   : > { %1749 = vst [vmem:[%s2929_s16 + $0x10] sm:$0xff] %v1717_v21  ;;  %v1362_v13 = vadd.f32 %v1361_v12, %v1273_v41  ;;  %v1450_v15 = vpop.f32.mrf.mxu3  ;;  %v2139_v12 = vor.u32 %v2442_v59, %v2136_v3 }
 0x109   : > { %v1275_v29 = vpop.f32.mrf.mxu1 }
 0x10a   : > { %v1451_v32 = vadd.f32 %v1450_v15, %v1362_v13  ;;  %v1276_v37 = vadd.f32 %v1275_v29, %v2871_v61  ;;  %v2143_v13 = vor.u32 %v2445_v5, %v2142_v4  ;;  %v2163_v5 = vor.u32 %v2450_v53, %v2162_v52 }
 0x10b   : > { %v1542_v33 = vpop.f32.mrf.mxu0 }
 0x10c   : > { %v1540_v36 = vadd.f32 %v1539_v57, %v1451_v32  ;;  %1314 = vmatmul.bf16.gmra.mxu1 %v2111_v16  ;;  %1403 = vmatmul.bf16.gmra.mxu2 %v2115_v28  ;;  %v2444_v57 = vld [vmem:[%s2648_s7 + $0x1d0] sm:$0xf0] }
 0x10d   : > { %1492 = vmatmul.bf16.gmra.mxu3 %v2119_v30  ;;  %v2135_v8 = vor.u32 %v2444_v57, %v2134_v56 }
 0x10e   : > { %1581 = vmatmul.bf16.gmra.mxu0 %v2123_v31  ;;  %v1718_v45 = vadd.f32 %v2922_v2, %v1540_v36 }
 0x10f   : > { %v1364_v46 = vpop.f32.mrf.mxu2 }
 0x110   : > { %1750 = vst [vmem:[%s2929_s16 + $0x18] sm:$0xff] %v1718_v45  ;;  %v1365_v47 = vadd.f32 %v1364_v46, %v1276_v37  ;;  %v1453_v48 = vpop.f32.mrf.mxu3  ;;  %v2446_v46 = vld [vmem:[%s2648_s7 + $0x1e4] sm:$0xf] }
 0x111   : > { %v1277_v25 = vpop.f32.mrf.mxu1 }
 0x112   : > { %v1454_v49 = vadd.f32 %v1453_v48, %v1365_v47  ;;  %v1278_v61 = vadd.f32 %v1277_v25, %v2879_v1  ;;  %v2148_v47 = vld [vmem:[%s2648_s7 + $0x1f4] sm:$0xf0]  ;;  %v2154_v48 = vld [vmem:[%s2648_s7 + $0x1e8] sm:$0xf]  ;;  %v2449_v25 = vld [vmem:[%s2648_s7 + $0x1f8] sm:$0xf0] }
 0x113   : > { %v1544_v50 = vpop.f32.mrf.mxu0 }
 0x114   : > { %v1543_v51 = vadd.f32 %v1542_v33, %v1454_v49  ;;  %v2447_v49 = vld [vmem:[%s2648_s7 + $0x1ec] sm:$0xf] }
 0x116   : > { %v1719_v60 = vadd.f32 %v2922_v2, %v1543_v51  ;;  %v2156_v51 = vld [vmem:[%s2648_s7 + $0x1fc] sm:$0xf0] }
 0x117   : > { %v1366_v6 = vpop.f32.mrf.mxu2  ;;  %v2159_v4 = vor.u32 %v2447_v49, %v2156_v51 }
 0x118   : > { %1751 = vst [vmem:[%s2929_s16 + $0x20] sm:$0xff] %v1719_v60  ;;  %v1367_v21 = vadd.f32 %v1366_v6, %v1278_v61  ;;  %v1455_v41 = vpop.f32.mrf.mxu3  ;;  %v2151_v60 = vor.u32 %v2446_v46, %v2148_v47  ;;  %v2155_v61 = vor.u32 %v2449_v25, %v2154_v48 }
 0x119   : > { %v1280_v9 = vpop.f32.mrf.mxu1 }
 0x11a   : > { %v1456_v15 = vadd.f32 %v1455_v41, %v1367_v21  ;;  %v1281_v29 = vadd.f32 %v1280_v9, %v2895_v17 }
 0x11b   : > { %v1547_v16 = vpop.f32.mrf.mxu0 }
 0x11c   : > { %v1545_v28 = vadd.f32 %v1544_v50, %v1456_v15  ;;  %1319 = vmatmul.bf16.gmra.mxu1 %v2131_v7  ;;  %1408 = vmatmul.bf16.gmra.mxu2 %v2135_v8 }
 0x11d   : > { %1497 = vmatmul.bf16.gmra.mxu3 %v2139_v12 }
 0x11e   : > { %1586 = vmatmul.bf16.gmra.mxu0 %v2143_v13  ;;  %v1720_v1 = vadd.f32 %v2922_v2, %v1545_v28 }
 0x11f   : > { %v1369_v30 = vpop.f32.mrf.mxu2 }
 0x120   : > { %1752 = vst [vmem:[%s2929_s16 + $0x28] sm:$0xff] %v1720_v1  ;;  %v1370_v31 = vadd.f32 %v1369_v30, %v1281_v29  ;;  %v1458_v32 = vpop.f32.mrf.mxu3  ;;  %v2451_v1 = vld [vmem:[%s2648_s7 + $0x20c] sm:$0xf]  ;;  %v2168_v29 = vld [vmem:[%s2648_s7 + $0x21c] sm:$0xf0] }
 0x121   : > { %v1282_v33 = vpop.f32.mrf.mxu1  ;;  %v2174_v30 = vld [vmem:[%s2648_s7 + $0x210] sm:$0xf]  ;;  %v2171_v25 = vor.u32 %v2451_v1, %v2168_v29 }
 0x122   : > { %v1459_v36 = vadd.f32 %v1458_v32, %v1370_v31  ;;  %v1283_v17 = vadd.f32 %v1282_v33, %v2903_v27  ;;  %v2454_v31 = vld [vmem:[%s2648_s7 + $0x220] sm:$0xf0]  ;;  %v2452_v32 = vld [vmem:[%s2648_s7 + $0x214] sm:$0xf] }
 0x123   : > { %v1549_v45 = vpop.f32.mrf.mxu0  ;;  %v2175_v49 = vor.u32 %v2454_v31, %v2174_v30 }
 0x124   : > { %v1548_v37 = vadd.f32 %v1547_v16, %v1459_v36  ;;  %v2176_v36 = vld [vmem:[%s2648_s7 + $0x224] sm:$0xf0] }
 0x126   : > { %v1721_v50 = vadd.f32 %v2922_v2, %v1548_v37  ;;  %v2455_v37 = vld [vmem:[%s2648_s7 + $0x228] sm:$0xf0] }
 0x127   : > { %v1371_v56 = vpop.f32.mrf.mxu2 }
 0x128   : > { %1753 = vst [vmem:[%s2929_s16 + $0x30] sm:$0xff] %v1721_v50  ;;  %v1372_v57 = vadd.f32 %v1371_v56, %v1283_v17  ;;  %v1460_v59 = vpop.f32.mrf.mxu3  ;;  %v2179_v17 = vor.u32 %v2452_v32, %v2176_v36 }
 0x129   : > { %v1285_v3 = vpop.f32.mrf.mxu1 }
 0x12a   : > { %v1461_v6 = vadd.f32 %v1460_v59, %v1372_v57  ;;  %v1286_v7 = vadd.f32 %v1285_v3, %v2821_v18 }
 0x12b   : > { %v1552_v21 = vpop.f32.mrf.mxu0 }
 0x12c   : > { %v1550_v41 = vadd.f32 %v1549_v45, %v1461_v6  ;;  %1324 = vmatmul.bf16.gmra.mxu1 %v2151_v60  ;;  %1413 = vmatmul.bf16.gmra.mxu2 %v2155_v61  ;;  %v2182_v45 = vld [vmem:[%s2648_s7 + $0x218] sm:$0xf] }
 0x12d   : > { %1502 = vmatmul.bf16.gmra.mxu3 %v2159_v4  ;;  %v2183_v51 = vor.u32 %v2455_v37, %v2182_v45 }
 0x12e   : > { %1591 = vmatmul.bf16.gmra.mxu0 %v2163_v5  ;;  %v1722_v27 = vadd.f32 %v2922_v2, %v1550_v41  ;;  %v2188_v41 = vld [vmem:[%s2648_s7 + $0x244] sm:$0xf0] }
 0x12f   : > { %v1374_v8 = vpop.f32.mrf.mxu2 }
 0x130   : > { %1754 = vst [vmem:[%s2929_s16 + $0x38] sm:$0xff] %v1722_v27  ;;  %v1375_v9 = vadd.f32 %v1374_v8, %v1286_v7  ;;  %v1463_v12 = vpop.f32.mrf.mxu3  ;;  %v2194_v27 = vld [vmem:[%s2648_s7 + $0x238] sm:$0xf]  ;;  %v2459_v7 = vld [vmem:[%s2648_s7 + $0x248] sm:$0xf0] }
 0x131   : > { %v1287_v13 = vpop.f32.mrf.mxu1  ;;  %v2457_v8 = vld [vmem:[%s2648_s7 + $0x23c] sm:$0xf]  ;;  %v2195_v30 = vor.u32 %v2459_v7, %v2194_v27 }
 0x132   : > { %v1464_v15 = vadd.f32 %v1463_v12, %v1375_v9  ;;  %v1288_v18 = vadd.f32 %v1287_v13, %v2829_v24  ;;  %v2196_v12 = vld [vmem:[%s2648_s7 + $0x24c] sm:$0xf0]  ;;  %v2202_v13 = vld [vmem:[%s2648_s7 + $0x240] sm:$0xf] }
 0x133   : > { %v1554_v16 = vpop.f32.mrf.mxu0  ;;  %v2199_v32 = vor.u32 %v2457_v8, %v2196_v12 }
 0x134   : > { %v1553_v28 = vadd.f32 %v1552_v21, %v1464_v15  ;;  %v2456_v21 = vld [vmem:[%s2648_s7 + $0x234] sm:$0xf] }
 0x135   : > { %v2460_v15 = vld [vmem:[%s2648_s7 + $0x250] sm:$0xf0]  ;;  %v2191_v29 = vor.u32 %v2456_v21, %v2188_v41 }
 0x136   : > { %v1723_v33 = vadd.f32 %v2922_v2, %v1553_v28 }
 0x137   : > { %v1376_v46 = vpop.f32.mrf.mxu2 }
 0x138   : > { %1755 = vst [vmem:[%s2929_s16 + $0x40] sm:$0xff] %v1723_v33  ;;  %v1377_v47 = vadd.f32 %v1376_v46, %v1288_v18  ;;  %v1465_v48 = vpop.f32.mrf.mxu3  ;;  %v2203_v33 = vor.u32 %v2460_v15, %v2202_v13 }
 0x139   : > { %v1290_v50 = vpop.f32.mrf.mxu1 }
 0x13a   : > { %v1466_v52 = vadd.f32 %v1465_v48, %v1377_v47  ;;  %v1291_v57 = vadd.f32 %v1290_v50, %v2845_v38 }
 0x13b   : > { %v1557_v53 = vpop.f32.mrf.mxu0 }
 0x13c   : > { %v1555_v56 = vadd.f32 %v1554_v16, %v1466_v52  ;;  %1329 = vmatmul.bf16.gmra.mxu1 %v2171_v25  ;;  %1418 = vmatmul.bf16.gmra.mxu2 %v2175_v49  ;;  %v2208_v52 = vld [vmem:[%s2648_s7 + $0x26c] sm:$0xf0] }
 0x13d   : > { %1507 = vmatmul.bf16.gmra.mxu3 %v2179_v17 }
 0x13e   : > { %1596 = vmatmul.bf16.gmra.mxu0 %v2183_v51  ;;  %v1724_v24 = vadd.f32 %v2922_v2, %v1555_v56  ;;  %v2461_v51 = vld [vmem:[%s2648_s7 + $0x25c] sm:$0xf]  ;;  %v2464_v56 = vld [vmem:[%s2648_s7 + $0x270] sm:$0xf0] }
 0x13f   : > { %v1379_v59 = vpop.f32.mrf.mxu2 }
 0x140   : > { %1756 = vst [vmem:[%s2929_s16 + $0x48] sm:$0xff] %v1724_v24  ;;  %v1380_v60 = vadd.f32 %v1379_v59, %v1291_v57  ;;  %v1468_v61 = vpop.f32.mrf.mxu3  ;;  %v2462_v24 = vld [vmem:[%s2648_s7 + $0x264] sm:$0xf]  ;;  %v2216_v59 = vld [vmem:[%s2648_s7 + $0x274] sm:$0xf0] }
 0x141   : > { %v1292_v3 = vpop.f32.mrf.mxu1  ;;  %v2219_v27 = vor.u32 %v2462_v24, %v2216_v59 }
 0x142   : > { %v1469_v4 = vadd.f32 %v1468_v61, %v1380_v60  ;;  %v1293_v38 = vadd.f32 %v1292_v3, %v2853_v44  ;;  %v2222_v60 = vld [vmem:[%s2648_s7 + $0x268] sm:$0xf]  ;;  %v2465_v61 = vld [vmem:[%s2648_s7 + $0x278] sm:$0xf0] }
 0x143   : > { %v1559_v5 = vpop.f32.mrf.mxu0  ;;  %v2223_v7 = vor.u32 %v2465_v61, %v2222_v60 }
 0x144   : > { %v1558_v6 = vadd.f32 %v1557_v53, %v1469_v4  ;;  %v2214_v53 = vld [vmem:[%s2648_s7 + $0x260] sm:$0xf] }
 0x145   : > { %v2215_v21 = vor.u32 %v2464_v56, %v2214_v53 }
 0x146   : > { %v1725_v9 = vadd.f32 %v2922_v2, %v1558_v6  ;;  %v2211_v6 = vor.u32 %v2461_v51, %v2208_v52 }
 0x147   : > { %v1381_v16 = vpop.f32.mrf.mxu2 }
 0x148   : > { %1757 = vst [vmem:[%s2929_s16 + $0x50] sm:$0xff] %v1725_v9  ;;  %v1382_v28 = vadd.f32 %v1381_v16, %v1293_v38  ;;  %v1470_v1 = vpop.f32.mrf.mxu3 }
 0x149   : > { %v1295_v31 = vpop.f32.mrf.mxu1 }
 0x14a   : > { %v1471_v18 = vadd.f32 %v1470_v1, %v1382_v28  ;;  %v1296_v37 = vadd.f32 %v1295_v31, %v2869_v58 }
 0x14b   : > { %v1562_v36 = vpop.f32.mrf.mxu0 }
 0x14c   : > { %v1560_v45 = vadd.f32 %v1559_v5, %v1471_v18  ;;  %1334 = vmatmul.bf16.gmra.mxu1 %v2191_v29  ;;  %1423 = vmatmul.bf16.gmra.mxu2 %v2195_v30 }
 0x14d   : > { %1512 = vmatmul.bf16.gmra.mxu3 %v2199_v32 }
 0x14e   : > { %1601 = vmatmul.bf16.gmra.mxu0 %v2203_v33  ;;  %v1726_v44 = vadd.f32 %v2922_v2, %v1560_v45 }
 0x14f   : > { %v1384_v46 = vpop.f32.mrf.mxu2 }
 0x150   : > { %1758 = vst [vmem:[%s2929_s16 + $0x58] sm:$0xff] %v1726_v44  ;;  %v1385_v47 = vadd.f32 %v1384_v46, %v1296_v37  ;;  %v1473_v48 = vpop.f32.mrf.mxu3 }
 0x151   : > { %v1297_v25 = vpop.f32.mrf.mxu1 }
 0x152   : > { %v1474_v49 = vadd.f32 %v1473_v48, %v1385_v47  ;;  %v1298_v58 = vadd.f32 %v1297_v25, %v2877_v0 }
 0x153   : > { %v1564_v50 = vpop.f32.mrf.mxu0 }
 0x154   : > { %v1563_v17 = vadd.f32 %v1562_v36, %v1474_v49 }
 0x156   : > { %v1727_v57 = vadd.f32 %v2922_v2, %v1563_v17 }
 0x157   : > { %v1386_v3 = vpop.f32.mrf.mxu2 }
 0x158   : > { %1759 = vst [vmem:[%s2929_s16 + $0x60] sm:$0xff] %v1727_v57  ;;  %v1387_v4 = vadd.f32 %v1386_v3, %v1298_v58  ;;  %v1475_v5 = vpop.f32.mrf.mxu3 }
 0x159   : > { %v1300_v41 = vpop.f32.mrf.mxu1 }
 0x15a   : > { %v1476_v8 = vadd.f32 %v1475_v5, %v1387_v4  ;;  %v1301_v12 = vadd.f32 %v1300_v41, %v2893_v14 }
 0x15b   : > { %v1567_v9 = vpop.f32.mrf.mxu0 }
 0x15c   : > { %v1565_v38 = vadd.f32 %v1564_v50, %v1476_v8  ;;  %1339 = vmatmul.bf16.gmra.mxu1 %v2211_v6  ;;  %1428 = vmatmul.bf16.gmra.mxu2 %v2215_v21 }
 0x15d   : > { %1517 = vmatmul.bf16.gmra.mxu3 %v2219_v27 }
 0x15e   : > { %1606 = vmatmul.bf16.gmra.mxu0 %v2223_v7  ;;  %v1728_v0 = vadd.f32 %v2922_v2, %v1565_v38 }
 0x15f   : > { %v1389_v13 = vpop.f32.mrf.mxu2 }
 0x160   : > { %1760 = vst [vmem:[%s2929_s16 + $0x68] sm:$0xff] %v1728_v0  ;;  %v1390_v15 = vadd.f32 %v1389_v13, %v1301_v12  ;;  %v1478_v16 = vpop.f32.mrf.mxu3 }
 0x161   : > { %v1302_v28 = vpop.f32.mrf.mxu1 }
 0x162   : > { %v1479_v1 = vadd.f32 %v1478_v16, %v1390_v15  ;;  %v1303_v32 = vadd.f32 %v1302_v28, %v2901_v26 }
 0x163   : > { %v1569_v29 = vpop.f32.mrf.mxu0 }
 0x164   : > { %v1568_v30 = vadd.f32 %v1567_v9, %v1479_v1 }
 0x166   : > { %v1729_v31 = vadd.f32 %v2922_v2, %v1568_v30 }
 0x167   : > { %v1391_v33 = vpop.f32.mrf.mxu2 }
 0x168   : > { %1761 = vst [vmem:[%s2929_s16 + $0x70] sm:$0xff] %v1729_v31  ;;  %v1392_v18 = vadd.f32 %v1391_v33, %v1303_v32  ;;  %v1480_v36 = vpop.f32.mrf.mxu3 }
 0x169   : > { %v1305_v45 = vpop.f32.mrf.mxu1 }
 0x16a   : > { %v1481_v44 = vadd.f32 %v1480_v36, %v1392_v18  ;;  %v1306_v47 = vadd.f32 %v1305_v45, %v2825_v22 }
 0x16b   : > { %v1572_v14 = vpop.f32.mrf.mxu0 }
 0x16c   : > { %v1570_v37 = vadd.f32 %v1569_v29, %v1481_v44 }
 0x16e   : > { %v1730_v46 = vadd.f32 %v2922_v2, %v1570_v37 }
 0x16f   : > { %v1394_v48 = vpop.f32.mrf.mxu2 }
 0x170   : > { %1762 = vst [vmem:[%s2929_s16 + $0x78] sm:$0xff] %v1730_v46  ;;  %v1395_v25 = vadd.f32 %v1394_v48, %v1306_v47  ;;  %v1483_v49 = vpop.f32.mrf.mxu3 }
 0x171   : > { %v1307_v50 = vpop.f32.mrf.mxu1 }
 0x172   : > { %v1484_v17 = vadd.f32 %v1483_v49, %v1395_v25  ;;  %v1308_v53 = vadd.f32 %v1307_v50, %v2841_v34 }
 0x173   : > { %v1574_v26 = vpop.f32.mrf.mxu0 }
 0x174   : > { %v1573_v51 = vadd.f32 %v1572_v14, %v1484_v17 }
 0x176   : > { %v1731_v52 = vadd.f32 %v2922_v2, %v1573_v51 }
 0x177   : > { %v1396_v56 = vpop.f32.mrf.mxu2 }
 0x178   : > { %1763 = vst [vmem:[%s2929_s16 + $0x80] sm:$0xff] %v1731_v52  ;;  %v1397_v24 = vadd.f32 %v1396_v56, %v1308_v53  ;;  %v1485_v57 = vpop.f32.mrf.mxu3 }
 0x179   : > { %v1310_v58 = vpop.f32.mrf.mxu1 }
 0x17a   : > { %v1486_v59 = vadd.f32 %v1485_v57, %v1397_v24  ;;  %v1311_v3 = vadd.f32 %v1310_v58, %v2849_v42 }
 0x17b   : > { %v1577_v22 = vpop.f32.mrf.mxu0 }
 0x17c   : > { %v1575_v60 = vadd.f32 %v1574_v26, %v1486_v59 }
 0x17e   : > { %v1732_v61 = vadd.f32 %v2922_v2, %v1575_v60 }
 0x17f   : > { %v1399_v4 = vpop.f32.mrf.mxu2 }
 0x180   : > { %1764 = vst [vmem:[%s2929_s16 + $0x88] sm:$0xff] %v1732_v61  ;;  %v1400_v5 = vadd.f32 %v1399_v4, %v1311_v3  ;;  %v1488_v6 = vpop.f32.mrf.mxu3 }
 0x181   : > { %v1312_v21 = vpop.f32.mrf.mxu1 }
 0x182   : > { %v1489_v41 = vadd.f32 %v1488_v6, %v1400_v5  ;;  %v1313_v8 = vadd.f32 %v1312_v21, %v2865_v54 }
 0x183   : > { %v1579_v34 = vpop.f32.mrf.mxu0 }
 0x184   : > { %v1578_v27 = vadd.f32 %v1577_v22, %v1489_v41 }
 0x186   : > { %v1733_v7 = vadd.f32 %v2922_v2, %v1578_v27 }
 0x187   : > { %v1401_v9 = vpop.f32.mrf.mxu2 }
 0x188   : > { %1765 = vst [vmem:[%s2929_s16 + $0x90] sm:$0xff] %v1733_v7  ;;  %v1402_v38 = vadd.f32 %v1401_v9, %v1313_v8  ;;  %v1490_v0 = vpop.f32.mrf.mxu3 }
 0x189   : > { %v1315_v12 = vpop.f32.mrf.mxu1 }
 0x18a   : > { %v1491_v13 = vadd.f32 %v1490_v0, %v1402_v38  ;;  %v1316_v28 = vadd.f32 %v1315_v12, %v2873_v62 }
 0x18b   : > { %v1582_v42 = vpop.f32.mrf.mxu0 }
 0x18c   : > { %v1580_v15 = vadd.f32 %v1579_v34, %v1491_v13 }
 0x18e   : > { %v1734_v16 = vadd.f32 %v2922_v2, %v1580_v15 }
 0x18f   : > { %v1404_v1 = vpop.f32.mrf.mxu2 }
 0x190   : > { %1766 = vst [vmem:[%s2929_s16 + $0x98] sm:$0xff] %v1734_v16  ;;  %v1405_v29 = vadd.f32 %v1404_v1, %v1316_v28  ;;  %v1493_v30 = vpop.f32.mrf.mxu3 }
 0x191   : > { %v1317_v31 = vpop.f32.mrf.mxu1 }
 0x192   : > { %v1494_v32 = vadd.f32 %v1493_v30, %v1405_v29  ;;  %v1318_v36 = vadd.f32 %v1317_v31, %v2889_v10 }
 0x193   : > { %v1584_v54 = vpop.f32.mrf.mxu0 }
 0x194   : > { %v1583_v33 = vadd.f32 %v1582_v42, %v1494_v32 }
 0x196   : > { %v1735_v18 = vadd.f32 %v2922_v2, %v1583_v33 }
 0x197   : > { %v1406_v45 = vpop.f32.mrf.mxu2 }
 0x198   : > { %1767 = vst [vmem:[%s2929_s16 + $0xa0] sm:$0xff] %v1735_v18  ;;  %v1407_v44 = vadd.f32 %v1406_v45, %v1318_v36  ;;  %v1495_v14 = vpop.f32.mrf.mxu3 }
 0x199   : > { %v1320_v37 = vpop.f32.mrf.mxu1 }
 0x19a   : > { %v1496_v46 = vadd.f32 %v1495_v14, %v1407_v44  ;;  %v1321_v25 = vadd.f32 %v1320_v37, %v2897_v19 }
 0x19b   : > { %v1587_v62 = vpop.f32.mrf.mxu0 }
 0x19c   : > { %v1585_v47 = vadd.f32 %v1584_v54, %v1496_v46 }
 0x19e   : > { %v1736_v48 = vadd.f32 %v2922_v2, %v1585_v47 }
 0x19f   : > { %v1409_v49 = vpop.f32.mrf.mxu2 }
 0x1a0   : > { %1768 = vst [vmem:[%s2929_s16 + $0xa8] sm:$0xff] %v1736_v48  ;;  %v1410_v50 = vadd.f32 %v1409_v49, %v1321_v25  ;;  %v1498_v17 = vpop.f32.mrf.mxu3 }
 0x1a1   : > { %v1322_v26 = vpop.f32.mrf.mxu1 }
 0x1a2   : > { %v1499_v51 = vadd.f32 %v1498_v17, %v1410_v50  ;;  %v1323_v56 = vadd.f32 %v1322_v26, %v2913_v39 }
 0x1a3   : > { %v1589_v10 = vpop.f32.mrf.mxu0 }
 0x1a4   : > { %v1588_v52 = vadd.f32 %v1587_v62, %v1499_v51 }
 0x1a6   : > { %v1737_v53 = vadd.f32 %v2922_v2, %v1588_v52 }
 0x1a7   : > { %v1411_v24 = vpop.f32.mrf.mxu2 }
 0x1a8   : > { %1769 = vst [vmem:[%s2929_s16 + $0xb0] sm:$0xff] %v1737_v53  ;;  %v1412_v57 = vadd.f32 %v1411_v24, %v1323_v56  ;;  %v1500_v58 = vpop.f32.mrf.mxu3 }
 0x1a9   : > { %v1325_v59 = vpop.f32.mrf.mxu1 }
 0x1aa   : > { %v1501_v22 = vadd.f32 %v1500_v58, %v1412_v57  ;;  %v1326_v3 = vadd.f32 %v1325_v59, %v2827_v23 }
 0x1ab   : > { %v1592_v19 = vpop.f32.mrf.mxu0 }
 0x1ac   : > { %v1590_v60 = vadd.f32 %v1589_v10, %v1501_v22 }
 0x1ae   : > { %v1738_v61 = vadd.f32 %v2922_v2, %v1590_v60 }
 0x1af   : > { %v1414_v4 = vpop.f32.mrf.mxu2 }
 0x1b0   : > { %1770 = vst [vmem:[%s2929_s16 + $0xb8] sm:$0xff] %v1738_v61  ;;  %v1415_v5 = vadd.f32 %v1414_v4, %v1326_v3  ;;  %v1503_v6 = vpop.f32.mrf.mxu3 }
 0x1b1   : > { %v1327_v21 = vpop.f32.mrf.mxu1 }
 0x1b2   : > { %v1504_v41 = vadd.f32 %v1503_v6, %v1415_v5  ;;  %v1328_v7 = vadd.f32 %v1327_v21, %v2843_v35 }
 0x1b3   : > { %v1594_v39 = vpop.f32.mrf.mxu0 }
 0x1b4   : > { %v1593_v34 = vadd.f32 %v1592_v19, %v1504_v41 }
 0x1b6   : > { %v1739_v27 = vadd.f32 %v2922_v2, %v1593_v34 }
 0x1b7   : > { %v1416_v8 = vpop.f32.mrf.mxu2 }
 0x1b8   : > { %1771 = vst [vmem:[%s2929_s16 + $0xc0] sm:$0xff] %v1739_v27  ;;  %v1417_v9 = vadd.f32 %v1416_v8, %v1328_v7  ;;  %v1505_v38 = vpop.f32.mrf.mxu3 }
 0x1b9   : > { %v1330_v0 = vpop.f32.mrf.mxu1 }
 0x1ba   : > { %v1506_v12 = vadd.f32 %v1505_v38, %v1417_v9  ;;  %v1331_v15 = vadd.f32 %v1330_v0, %v2851_v43 }
 0x1bb   : > { %v1597_v23 = vpop.f32.mrf.mxu0 }
 0x1bc   : > { %v1595_v13 = vadd.f32 %v1594_v39, %v1506_v12 }
 0x1be   : > { %v1740_v42 = vadd.f32 %v2922_v2, %v1595_v13 }
 0x1bf   : > { %v1419_v16 = vpop.f32.mrf.mxu2 }
 0x1c0   : > { %1772 = vst [vmem:[%s2929_s16 + $0xc8] sm:$0xff] %v1740_v42  ;;  %v1420_v28 = vadd.f32 %v1419_v16, %v1331_v15  ;;  %v1508_v1 = vpop.f32.mrf.mxu3 }
 0x1c1   : > { %v1332_v29 = vpop.f32.mrf.mxu1 }
 0x1c2   : > { %v1509_v30 = vadd.f32 %v1508_v1, %v1420_v28  ;;  %v1333_v54 = vadd.f32 %v1332_v29, %v2867_v55 }
 0x1c3   : > { %v1599_v35 = vpop.f32.mrf.mxu0 }
 0x1c4   : > { %v1598_v31 = vadd.f32 %v1597_v23, %v1509_v30 }
 0x1c6   : > { %v1741_v32 = vadd.f32 %v2922_v2, %v1598_v31 }
 0x1c7   : > { %v1421_v33 = vpop.f32.mrf.mxu2 }
 0x1c8   : > { %1773 = vst [vmem:[%s2929_s16 + $0xd0] sm:$0xff] %v1741_v32  ;;  %v1422_v18 = vadd.f32 %v1421_v33, %v1333_v54  ;;  %v1510_v36 = vpop.f32.mrf.mxu3 }
 0x1c9   : > { %v1335_v45 = vpop.f32.mrf.mxu1 }
 0x1ca   : > { %v1511_v44 = vadd.f32 %v1510_v36, %v1422_v18  ;;  %v1336_v46 = vadd.f32 %v1335_v45, %v2875_v63 }
 0x1cb   : > { %v1602_v14 = vpop.f32.mrf.mxu0 }
 0x1cc   : > { %v1600_v43 = vadd.f32 %v1599_v35, %v1511_v44 }
 0x1ce   : > { %v1742_v37 = vadd.f32 %v2922_v2, %v1600_v43 }
 0x1cf   : > { %v1424_v62 = vpop.f32.mrf.mxu2 }
 0x1d0   : > { %1774 = vst [vmem:[%s2929_s16 + $0xd8] sm:$0xff] %v1742_v37  ;;  %v1425_v47 = vadd.f32 %v1424_v62, %v1336_v46  ;;  %v1513_v48 = vpop.f32.mrf.mxu3 }
 0x1d1   : > { %v1337_v25 = vpop.f32.mrf.mxu1 }
 0x1d2   : > { %v1514_v55 = vadd.f32 %v1513_v48, %v1425_v47  ;;  %v1338_v17 = vadd.f32 %v1337_v25, %v2891_v11 }
 0x1d3   : > { %v1604_v26 = vpop.f32.mrf.mxu0 }
 0x1d4   : > { %v1603_v49 = vadd.f32 %v1602_v14, %v1514_v55 }
 0x1d6   : > { %v1743_v50 = vadd.f32 %v2922_v2, %v1603_v49 }
 0x1d7   : > { %v1426_v51 = vpop.f32.mrf.mxu2 }
 0x1d8   : > { %1775 = vst [vmem:[%s2929_s16 + $0xe0] sm:$0xff] %v1743_v50  ;;  %v1427_v10 = vadd.f32 %v1426_v51, %v1338_v17  ;;  %v1515_v52 = vpop.f32.mrf.mxu3 }
 0x1d9   : > { %v1340_v53 = vpop.f32.mrf.mxu1 }
 0x1da   : > { %v1516_v63 = vadd.f32 %v1515_v52, %v1427_v10  ;;  %v1341_v57 = vadd.f32 %v1340_v53, %v2899_v20 }
 0x1db   : > { %v1607_v19 = vpop.f32.mrf.mxu0 }
 0x1dc   : > { %v1605_v56 = vadd.f32 %v1604_v26, %v1516_v63 }
 0x1de   : > { %v1744_v24 = vadd.f32 %v2922_v2, %v1605_v56 }
 0x1df   : > { %v1429_v58 = vpop.f32.mrf.mxu2 }
 0x1e0   : > { %1776 = vst [vmem:[%s2929_s16 + $0xe8] sm:$0xff] %v1744_v24  ;;  %v1430_v59 = vadd.f32 %v1429_v58, %v1341_v57  ;;  %v1518_v22 = vpop.f32.mrf.mxu3 }
 0x1e1   : > { %v1342_v60 = vpop.f32.mrf.mxu1 }
 0x1e2   : > { %v1519_v11 = vadd.f32 %v1518_v22, %v1430_v59  ;;  %v1343_v4 = vadd.f32 %v1342_v60, %v2915_v40 }
 0x1e3   : > { %v1609_v39 = vpop.f32.mrf.mxu0 }
 0x1e4   : > { %v1608_v61 = vadd.f32 %v1607_v19, %v1519_v11 }
 0x1e6   : > { %v1745_v3 = vadd.f32 %v2922_v2, %v1608_v61 }
 0x1e7   : > { %v1431_v5 = vpop.f32.mrf.mxu2 }
 0x1e8   : > { %1777 = vst [vmem:[%s2929_s16 + $0xf0] sm:$0xff] %v1745_v3  ;;  %v1432_v6 = vadd.f32 %v1431_v5, %v1343_v4  ;;  %v1520_v21 = vpop.f32.mrf.mxu3 }
 0x1ea   : > { %v1521_v41 = vadd.f32 %v1520_v21, %v1432_v6 }
 0x1ec   : > { %v1610_v20 = vadd.f32 %v1609_v39, %v1521_v41 }
 0x1ee   : > { %v1746_v34 = vadd.f32 %v2922_v2, %v1610_v20 }
 0x1f0   : > { %1778 = vst [vmem:[%s2929_s16 + $0xf8] sm:$0xff] %v1746_v34 }
 0x1f1 PF: > { %s13_s14 = sadd.s32 1, %s2578_s14   ;;  %s3093_s12 = smov %s2574_s13 }
 0x1f2   : > { %p10_p5 = scmp.ge.s32.totalorder %s13_s14, 4   ;;  %s3094_s13 = smov %s3096_s15 }
 0x1f4   :  { %12 = sbr.rel (!%p10_p5) target bundleno = 2 (0x2), region = 76 }

// kernel: forward.14
= control target key start
LH: loop header
LB: loop body
LE: loop exit
PB: predicated region body
PF: predicated region fallthrough
CT: control target
= control target key end

     0   :  { %s2731_s12 = smov 0   ;;  %s2733_s13 = smov 0   ;;  %s3243_s0 = inlined_call_operand.vmem [shape: bf16[128,2048], index: 0, kind: input, shape index: {}]   ;;  %s3244_s1 = inlined_call_operand.vmem [shape: bf16[2048,128], index: 1, kind: input, shape index: {}]   ;;  %s3245_s2 = inlined_call_operand.vmem [shape: f32[1,128], index: 2, kind: input, shape index: {}]   ;;  %s3246_s3 = inlined_call_operand.vmem [shape: f32[128,128], index: 3, kind: output, shape index: {}]  }
   0x1   :  { %s2735_s14 = smov 0   ;;  %s2737_s15 = smov 0  }
   0x2   :  { %s2739_s16 = smov 0  }
   0x3 LB: > { %s25_s17 = sadd.s32 1, %s2704_s15  ;;  %p48_p1 = scmp.ne.s32.totalorder %s2696_s13, %s2692_s12  ;;  %s2708_s16 = sphi %s2739_s16, %s13_s16   ;;  %s2704_s15 = sphi %s2737_s15, %s3250_s15   ;;  %s2700_s14 = sphi %s2735_s14, %s3249_s14   ;;  %s2696_s13 = sphi %s2733_s13, %s3248_s13   ;;  %s2692_s12 = sphi %s2731_s12, %s3247_s12  }
   0x4   : > { %p26_p0 = scmp.ge.s32.totalorder %s25_s17, 2  ;;  %p49_p2 = scmp.eq.s32.totalorder %s2708_s16, 0 }
   0x5   : > { %s41_s19 = sadd.s32 1, %s2696_s13  ;;  %p1973_p5 = scmp.ge.s32.totalorder %s2708_s16, 2 }
   0x6   : > { %s3252_s17 = smov (%p26_p0, %s25_s17), 0  ;;  %p50_p3 = por %p49_p2, %p48_p1 }
   0x7   : > { %s37_s18 = ssub.s32 %s2704_s15, %s3252_s17  ;;  %162 = sbr.rel (%p1973_p5) target bundleno = 80 (0x50), region = 20 }
   0x8   : > { %p39_p4 = scmp.eq.s32.totalorder %s37_s18, 0 }
   0xa   : > { %s2766_s20 = scalar_select %p39_p4, %s2696_s13, %s41_s19  }
   0xc   : > { %165 = sbr.rel (!%p50_p3) target bundleno = 80 (0x50), region = 24  ;;  %s167_s21 = sand.u32 (%p50_p3), 1, %s2696_s13  }
   0xd   : > { %s2499_s22 = sshll.u32 (%p50_p3), %s2704_s15, 5  ;;  %s1974_s23 = sshll.u32 (%p50_p3), %s167_s21, 9 }
   0xe   : > { %s2774_s26 = scalar_lea.vmem (%p50_p3), %s3243_s0, %s2499_s22  ;;  %s2779_s27 = scalar_lea.vmem (%p50_p3), [#allocation3], %s1974_s23 }
   0xf   : > { %v188_v0 = vld [vmem:[%s2774_s26] sm:$0xff] (%p50_p3)  ;;  %v190_v1 = vld [vmem:[%s2774_s26 + $0x8] sm:$0xff] (%p50_p3)  ;;  %v192_v2 = vld [vmem:[%s2774_s26 + $0x10] sm:$0xff] (%p50_p3) }
  0x10   : > { %189 = vst [vmem:[%s2779_s27] sm:$0xff] (%p50_p3), %v188_v0  ;;  %v194_v3 = vld [vmem:[%s2774_s26 + $0x18] sm:$0xff] (%p50_p3)  ;;  %v196_v4 = vld [vmem:[%s2774_s26 + $0x40] sm:$0xff] (%p50_p3)  ;;  %v198_v5 = vld [vmem:[%s2774_s26 + $0x48] sm:$0xff] (%p50_p3) }
  0x11   : > { %191 = vst [vmem:[%s2779_s27 + $0x8] sm:$0xff] %v190_v1  ;;  %v200_v6 = vld [vmem:[%s2774_s26 + $0x50] sm:$0xff]  ;;  %v202_v7 = vld [vmem:[%s2774_s26 + $0x58] sm:$0xff]  ;;  %v204_v8 = vld [vmem:[%s2774_s26 + $0x80] sm:$0xff] }
  0x12   : > { %193 = vst [vmem:[%s2779_s27 + $0x10] sm:$0xff] %v192_v2  ;;  %v206_v9 = vld [vmem:[%s2774_s26 + $0x88] sm:$0xff]  ;;  %v208_v10 = vld [vmem:[%s2774_s26 + $0x90] sm:$0xff]  ;;  %v210_v11 = vld [vmem:[%s2774_s26 + $0x98] sm:$0xff] }
  0x13   : > { %195 = vst [vmem:[%s2779_s27 + $0x18] sm:$0xff] %v194_v3  ;;  %v212_v12 = vld [vmem:[%s2774_s26 + $0xc0] sm:$0xff]  ;;  %v214_v13 = vld [vmem:[%s2774_s26 + $0xc8] sm:$0xff]  ;;  %v216_v14 = vld [vmem:[%s2774_s26 + $0xd0] sm:$0xff] }
  0x14   : > { %197 = vst [vmem:[%s2779_s27 + $0x20] sm:$0xff] %v196_v4  ;;  %v218_v15 = vld [vmem:[%s2774_s26 + $0xd8] sm:$0xff]  ;;  %v220_v16 = vld [vmem:[%s2774_s26 + $0x100] sm:$0xff]  ;;  %v222_v17 = vld [vmem:[%s2774_s26 + $0x108] sm:$0xff] }
  0x15   : > { %199 = vst [vmem:[%s2779_s27 + $0x28] sm:$0xff] %v198_v5  ;;  %v224_v18 = vld [vmem:[%s2774_s26 + $0x110] sm:$0xff]  ;;  %v226_v19 = vld [vmem:[%s2774_s26 + $0x118] sm:$0xff]  ;;  %v228_v20 = vld [vmem:[%s2774_s26 + $0x140] sm:$0xff] }
  0x16   : > { %201 = vst [vmem:[%s2779_s27 + $0x30] sm:$0xff] %v200_v6  ;;  %v230_v21 = vld [vmem:[%s2774_s26 + $0x148] sm:$0xff]  ;;  %v232_v22 = vld [vmem:[%s2774_s26 + $0x150] sm:$0xff]  ;;  %v234_v23 = vld [vmem:[%s2774_s26 + $0x158] sm:$0xff] }
  0x17   : > { %203 = vst [vmem:[%s2779_s27 + $0x38] sm:$0xff] %v202_v7  ;;  %v236_v24 = vld [vmem:[%s2774_s26 + $0x180] sm:$0xff]  ;;  %v238_v25 = vld [vmem:[%s2774_s26 + $0x188] sm:$0xff]  ;;  %v240_v26 = vld [vmem:[%s2774_s26 + $0x190] sm:$0xff] }
  0x18   : > { %205 = vst [vmem:[%s2779_s27 + $0x40] sm:$0xff] %v204_v8  ;;  %v242_v27 = vld [vmem:[%s2774_s26 + $0x198] sm:$0xff]  ;;  %v244_v28 = vld [vmem:[%s2774_s26 + $0x1c0] sm:$0xff]  ;;  %v246_v29 = vld [vmem:[%s2774_s26 + $0x1c8] sm:$0xff] }
  0x19   : > { %207 = vst [vmem:[%s2779_s27 + $0x48] sm:$0xff] %v206_v9  ;;  %v248_v30 = vld [vmem:[%s2774_s26 + $0x1d0] sm:$0xff]  ;;  %v250_v31 = vld [vmem:[%s2774_s26 + $0x1d8] sm:$0xff]  ;;  %v252_v32 = vld [vmem:[%s2774_s26 + $0x200] sm:$0xff] }
  0x1a   : > { %209 = vst [vmem:[%s2779_s27 + $0x50] sm:$0xff] %v208_v10  ;;  %v254_v33 = vld [vmem:[%s2774_s26 + $0x208] sm:$0xff]  ;;  %v256_v34 = vld [vmem:[%s2774_s26 + $0x210] sm:$0xff]  ;;  %v258_v35 = vld [vmem:[%s2774_s26 + $0x218] sm:$0xff] }
  0x1b   : > { %211 = vst [vmem:[%s2779_s27 + $0x58] sm:$0xff] %v210_v11  ;;  %v260_v36 = vld [vmem:[%s2774_s26 + $0x240] sm:$0xff]  ;;  %v262_v37 = vld [vmem:[%s2774_s26 + $0x248] sm:$0xff]  ;;  %v264_v38 = vld [vmem:[%s2774_s26 + $0x250] sm:$0xff] }
  0x1c   : > { %213 = vst [vmem:[%s2779_s27 + $0x60] sm:$0xff] %v212_v12  ;;  %v266_v39 = vld [vmem:[%s2774_s26 + $0x258] sm:$0xff]  ;;  %v268_v40 = vld [vmem:[%s2774_s26 + $0x280] sm:$0xff]  ;;  %v270_v41 = vld [vmem:[%s2774_s26 + $0x288] sm:$0xff] }
  0x1d   : > { %215 = vst [vmem:[%s2779_s27 + $0x68] sm:$0xff] %v214_v13  ;;  %v272_v42 = vld [vmem:[%s2774_s26 + $0x290] sm:$0xff]  ;;  %v274_v43 = vld [vmem:[%s2774_s26 + $0x298] sm:$0xff]  ;;  %v276_v44 = vld [vmem:[%s2774_s26 + $0x2c0] sm:$0xff] }
  0x1e   : > { %217 = vst [vmem:[%s2779_s27 + $0x70] sm:$0xff] %v216_v14  ;;  %v278_v45 = vld [vmem:[%s2774_s26 + $0x2c8] sm:$0xff]  ;;  %v280_v46 = vld [vmem:[%s2774_s26 + $0x2d0] sm:$0xff]  ;;  %v282_v47 = vld [vmem:[%s2774_s26 + $0x2d8] sm:$0xff] }
  0x1f   : > { %219 = vst [vmem:[%s2779_s27 + $0x78] sm:$0xff] %v218_v15  ;;  %v284_v48 = vld [vmem:[%s2774_s26 + $0x300] sm:$0xff]  ;;  %v286_v49 = vld [vmem:[%s2774_s26 + $0x308] sm:$0xff]  ;;  %v288_v50 = vld [vmem:[%s2774_s26 + $0x310] sm:$0xff] }
  0x20   : > { %221 = vst [vmem:[%s2779_s27 + $0x80] sm:$0xff] %v220_v16  ;;  %v290_v51 = vld [vmem:[%s2774_s26 + $0x318] sm:$0xff]  ;;  %v292_v52 = vld [vmem:[%s2774_s26 + $0x340] sm:$0xff]  ;;  %v294_v53 = vld [vmem:[%s2774_s26 + $0x348] sm:$0xff] }
  0x21   : > { %223 = vst [vmem:[%s2779_s27 + $0x88] sm:$0xff] %v222_v17  ;;  %v296_v54 = vld [vmem:[%s2774_s26 + $0x350] sm:$0xff]  ;;  %v298_v55 = vld [vmem:[%s2774_s26 + $0x358] sm:$0xff]  ;;  %v300_v56 = vld [vmem:[%s2774_s26 + $0x380] sm:$0xff] }
  0x22   : > { %225 = vst [vmem:[%s2779_s27 + $0x90] sm:$0xff] %v224_v18  ;;  %v302_v57 = vld [vmem:[%s2774_s26 + $0x388] sm:$0xff]  ;;  %v304_v58 = vld [vmem:[%s2774_s26 + $0x390] sm:$0xff]  ;;  %v306_v59 = vld [vmem:[%s2774_s26 + $0x398] sm:$0xff] }
  0x23   : > { %227 = vst [vmem:[%s2779_s27 + $0x98] sm:$0xff] %v226_v19  ;;  %v308_v60 = vld [vmem:[%s2774_s26 + $0x3c0] sm:$0xff]  ;;  %v310_v61 = vld [vmem:[%s2774_s26 + $0x3c8] sm:$0xff]  ;;  %v312_v62 = vld [vmem:[%s2774_s26 + $0x3d0] sm:$0xff] }
  0x24   : > { %229 = vst [vmem:[%s2779_s27 + $0xa0] sm:$0xff] %v228_v20  ;;  %v314_v63 = vld [vmem:[%s2774_s26 + $0x3d8] sm:$0xff] }
  0x25   : > { %231 = vst [vmem:[%s2779_s27 + $0xa8] sm:$0xff] %v230_v21 }
  0x26   : > { %233 = vst [vmem:[%s2779_s27 + $0xb0] sm:$0xff] %v232_v22 }
  0x27   : > { %235 = vst [vmem:[%s2779_s27 + $0xb8] sm:$0xff] %v234_v23 }
  0x28   : > { %237 = vst [vmem:[%s2779_s27 + $0xc0] sm:$0xff] %v236_v24 }
  0x29   : > { %239 = vst [vmem:[%s2779_s27 + $0xc8] sm:$0xff] %v238_v25 }
  0x2a   : > { %241 = vst [vmem:[%s2779_s27 + $0xd0] sm:$0xff] %v240_v26 }
  0x2b   : > { %243 = vst [vmem:[%s2779_s27 + $0xd8] sm:$0xff] %v242_v27 }
  0x2c   : > { %245 = vst [vmem:[%s2779_s27 + $0xe0] sm:$0xff] %v244_v28 }
  0x2d   : > { %247 = vst [vmem:[%s2779_s27 + $0xe8] sm:$0xff] %v246_v29 }
  0x2e   : > { %249 = vst [vmem:[%s2779_s27 + $0xf0] sm:$0xff] %v248_v30 }
  0x2f   : > { %251 = vst [vmem:[%s2779_s27 + $0xf8] sm:$0xff] %v250_v31 }
  0x30   : > { %253 = vst [vmem:[%s2779_s27 + $0x100] sm:$0xff] %v252_v32 }
  0x31   : > { %255 = vst [vmem:[%s2779_s27 + $0x108] sm:$0xff] %v254_v33 }
  0x32   : > { %257 = vst [vmem:[%s2779_s27 + $0x110] sm:$0xff] %v256_v34 }
  0x33   : > { %259 = vst [vmem:[%s2779_s27 + $0x118] sm:$0xff] %v258_v35 }
  0x34   : > { %261 = vst [vmem:[%s2779_s27 + $0x120] sm:$0xff] %v260_v36 }
  0x35   : > { %263 = vst [vmem:[%s2779_s27 + $0x128] sm:$0xff] %v262_v37 }
  0x36   : > { %265 = vst [vmem:[%s2779_s27 + $0x130] sm:$0xff] %v264_v38 }
  0x37   : > { %267 = vst [vmem:[%s2779_s27 + $0x138] sm:$0xff] %v266_v39 }
  0x38   : > { %269 = vst [vmem:[%s2779_s27 + $0x140] sm:$0xff] %v268_v40 }
  0x39   : > { %271 = vst [vmem:[%s2779_s27 + $0x148] sm:$0xff] %v270_v41 }
  0x3a   : > { %273 = vst [vmem:[%s2779_s27 + $0x150] sm:$0xff] %v272_v42 }
  0x3b   : > { %275 = vst [vmem:[%s2779_s27 + $0x158] sm:$0xff] %v274_v43 }
  0x3c   : > { %277 = vst [vmem:[%s2779_s27 + $0x160] sm:$0xff] %v276_v44 }
  0x3d   : > { %279 = vst [vmem:[%s2779_s27 + $0x168] sm:$0xff] %v278_v45 }
  0x3e   : > { %281 = vst [vmem:[%s2779_s27 + $0x170] sm:$0xff] %v280_v46 }
  0x3f   : > { %283 = vst [vmem:[%s2779_s27 + $0x178] sm:$0xff] %v282_v47 }
  0x40   : > { %285 = vst [vmem:[%s2779_s27 + $0x180] sm:$0xff] %v284_v48 }
  0x41   : > { %287 = vst [vmem:[%s2779_s27 + $0x188] sm:$0xff] %v286_v49 }
  0x42   : > { %289 = vst [vmem:[%s2779_s27 + $0x190] sm:$0xff] %v288_v50 }
  0x43   : > { %291 = vst [vmem:[%s2779_s27 + $0x198] sm:$0xff] %v290_v51 }
  0x44   : > { %293 = vst [vmem:[%s2779_s27 + $0x1a0] sm:$0xff] %v292_v52 }
  0x45   : > { %295 = vst [vmem:[%s2779_s27 + $0x1a8] sm:$0xff] %v294_v53 }
  0x46   : > { %297 = vst [vmem:[%s2779_s27 + $0x1b0] sm:$0xff] %v296_v54 }
  0x47   : > { %299 = vst [vmem:[%s2779_s27 + $0x1b8] sm:$0xff] %v298_v55 }
  0x48   : > { %301 = vst [vmem:[%s2779_s27 + $0x1c0] sm:$0xff] %v300_v56 }
  0x49   : > { %303 = vst [vmem:[%s2779_s27 + $0x1c8] sm:$0xff] %v302_v57 }
  0x4a   : > { %305 = vst [vmem:[%s2779_s27 + $0x1d0] sm:$0xff] %v304_v58 }
  0x4b   : > { %307 = vst [vmem:[%s2779_s27 + $0x1d8] sm:$0xff] %v306_v59 }
  0x4c   : > { %309 = vst [vmem:[%s2779_s27 + $0x1e0] sm:$0xff] %v308_v60 }
  0x4d   : > { %311 = vst [vmem:[%s2779_s27 + $0x1e8] sm:$0xff] %v310_v61 }
  0x4e   : > { %313 = vst [vmem:[%s2779_s27 + $0x1f0] sm:$0xff] %v312_v62 }
  0x4f   : > { %315 = vst [vmem:[%s2779_s27 + $0x1f8] sm:$0xff] %v314_v63 }
  0x50 PF: > { %p1977_p6 = scmp.ge.s32.totalorder %s2708_s16, 1  ;;  %p332_p7 = scmp.lt.s32.totalorder %s2708_s16, 3 }
  0x52   : > { %p333_p8 = pnand %p1977_p6, %p332_p7 }
  0x53   : > { %s339_s28 = sand.u32 (!%p333_p8), 1, %s2692_s12   ;;  %s1979_s29 = sshll.u32 (!%p333_p8), %s2700_s14, 7 }
  0x54   : > { %336 = sbr.rel (%p333_p8) target bundleno = 554 (0x22a), region = 51  ;;  %s1978_s30 = sshll.u32 (!%p333_p8), %s339_s28, 9 }
  0x55   : > { %p379_p9 = scmp.lt.s32.totalorder (!%p333_p8), %s1979_s29, 255  ;;  %s2915_s8 = scalar_lea.vmem (!%p333_p8), [#allocation3], %s1978_s30 }
  0x56   : > { %p1981_p10 = scmp.ne.s32.totalorder (!%p333_p8), %s2700_s14, 0 }
  0x59   : > { %s3254_s29 = smov (!%p379_p9, %s1979_s29), 255  ;;  %402 = sbr.rel (%p1981_p10) target bundleno = 111 (0x6f), region = 59 }
  0x5a   : > { %s1980_s4 = sshll.u32 %s3254_s29, 2 }
  0x5b   : > { %s2913_s7 = scalar_lea.vmem %s3244_s1, %s1980_s4 }
  0x5e   : > { %v2710_v0 = vmov 0.0  }
  0x5f   : > { %403 = vst [vmem:[#allocation2 + $0x30] sm:$0xff] %v2710_v0 }
  0x60   : > { %404 = vst [vmem:[#allocation2] sm:$0xff] %v2710_v0 }
  0x61   : > { %405 = vst [vmem:[#allocation2 + $0x58] sm:$0xff] %v2710_v0 }
  0x62   : > { %406 = vst [vmem:[#allocation2 + $0x18] sm:$0xff] %v2710_v0 }
  0x63   : > { %407 = vst [vmem:[#allocation2 + $0x50] sm:$0xff] %v2710_v0 }
  0x64   : > { %408 = vst [vmem:[#allocation2 + $0x68] sm:$0xff] %v2710_v0 }
  0x65   : > { %409 = vst [vmem:[#allocation2 + $0x8] sm:$0xff] %v2710_v0 }
  0x66   : > { %410 = vst [vmem:[#allocation2 + $0x48] sm:$0xff] %v2710_v0 }
  0x67   : > { %411 = vst [vmem:[#allocation2 + $0x40] sm:$0xff] %v2710_v0 }
  0x68   : > { %412 = vst [vmem:[#allocation2 + $0x20] sm:$0xff] %v2710_v0 }
  0x69   : > { %413 = vst [vmem:[#allocation2 + $0x10] sm:$0xff] %v2710_v0 }
  0x6a   : > { %414 = vst [vmem:[#allocation2 + $0x38] sm:$0xff] %v2710_v0 }
  0x6b   : > { %415 = vst [vmem:[#allocation2 + $0x60] sm:$0xff] %v2710_v0 }
  0x6c   : > { %416 = vst [vmem:[#allocation2 + $0x70] sm:$0xff] %v2710_v0 }
  0x6d   : > { %417 = vst [vmem:[#allocation2 + $0x78] sm:$0xff] %v2710_v0 }
  0x6e   : > { %418 = vst [vmem:[#allocation2 + $0x28] sm:$0xff] %v2710_v0 }
  0x6f PF: > { %v2571_v1 = vld [vmem:[%s2913_s7 + $0x38] sm:$0xff]  ;;  %v2570_v5 = vld [vmem:[%s2913_s7 + $0x30] sm:$0xff]  ;;  %v2569_v9 = vld [vmem:[%s2913_s7 + $0x28] sm:$0xff]  ;;  %p2494_p11 = scmp.ne.s32.totalorder %s2700_s14, 1 }
  0x70   : > { %v2579_v2 = vld [vmem:[%s2913_s7 + $0x78] sm:$0xff]  ;;  %1331 = vmatpush.bf16.msra.mxu0 %v2571_v1  ;;  %v2578_v6 = vld [vmem:[%s2913_s7 + $0x70] sm:$0xff]  ;;  %v2577_v10 = vld [vmem:[%s2913_s7 + $0x68] sm:$0xff] }
  0x71   : > { %v2587_v3 = vld [vmem:[%s2913_s7 + $0xb8] sm:$0xff]  ;;  %1380 = vmatpush.bf16.msra.mxu1 %v2579_v2  ;;  %v2586_v7 = vld [vmem:[%s2913_s7 + $0xb0] sm:$0xff]  ;;  %v2585_v11 = vld [vmem:[%s2913_s7 + $0xa8] sm:$0xff] }
  0x72   : > { %v2595_v4 = vld [vmem:[%s2913_s7 + $0xf8] sm:$0xff]  ;;  %1429 = vmatpush.bf16.msra.mxu2 %v2587_v3  ;;  %v2594_v8 = vld [vmem:[%s2913_s7 + $0xf0] sm:$0xff]  ;;  %v2593_v12 = vld [vmem:[%s2913_s7 + $0xe8] sm:$0xff] }
  0x73   : > { %1478 = vmatpush.bf16.msra.mxu3 %v2595_v4  ;;  %v2568_v13 = vld [vmem:[%s2913_s7 + $0x20] sm:$0xff]  ;;  %v2567_v17 = vld [vmem:[%s2913_s7 + $0x18] sm:$0xff]  ;;  %v2566_v21 = vld [vmem:[%s2913_s7 + $0x10] sm:$0xff] }
  0x74   : > { %1332 = vmatpush.bf16.msra.mxu0 %v2570_v5  ;;  %v2576_v14 = vld [vmem:[%s2913_s7 + $0x60] sm:$0xff]  ;;  %v2575_v18 = vld [vmem:[%s2913_s7 + $0x58] sm:$0xff]  ;;  %v2574_v22 = vld [vmem:[%s2913_s7 + $0x50] sm:$0xff] }
  0x75   : > { %1381 = vmatpush.bf16.msra.mxu1 %v2578_v6  ;;  %v2584_v15 = vld [vmem:[%s2913_s7 + $0xa0] sm:$0xff]  ;;  %v2583_v19 = vld [vmem:[%s2913_s7 + $0x98] sm:$0xff]  ;;  %v2582_v23 = vld [vmem:[%s2913_s7 + $0x90] sm:$0xff] }
  0x76   : > { %1430 = vmatpush.bf16.msra.mxu2 %v2586_v7  ;;  %v2592_v16 = vld [vmem:[%s2913_s7 + $0xe0] sm:$0xff]  ;;  %v2591_v20 = vld [vmem:[%s2913_s7 + $0xd8] sm:$0xff]  ;;  %v2590_v24 = vld [vmem:[%s2913_s7 + $0xd0] sm:$0xff] }
  0x77   : > { %1479 = vmatpush.bf16.msra.mxu3 %v2594_v8  ;;  %v2565_v25 = vld [vmem:[%s2913_s7 + $0x8] sm:$0xff]  ;;  %v2564_v29 = vld [vmem:[%s2913_s7] sm:$0xff]  ;;  %v2619_v41 = vld [vmem:[%s2913_s7 + $0x1b8] sm:$0xff] }
  0x78   : > { %1333 = vmatpush.bf16.msra.mxu0 %v2569_v9  ;;  %v2573_v26 = vld [vmem:[%s2913_s7 + $0x48] sm:$0xff]  ;;  %v2572_v30 = vld [vmem:[%s2913_s7 + $0x40] sm:$0xff]  ;;  %v2603_v42 = vld [vmem:[%s2913_s7 + $0x138] sm:$0xff] }
  0x79   : > { %1382 = vmatpush.bf16.msra.mxu1 %v2577_v10  ;;  %v2581_v27 = vld [vmem:[%s2913_s7 + $0x88] sm:$0xff]  ;;  %v2580_v31 = vld [vmem:[%s2913_s7 + $0x80] sm:$0xff]  ;;  %v2627_v47 = vld [vmem:[%s2913_s7 + $0x1f8] sm:$0xff] }
  0x7a   : > { %1431 = vmatpush.bf16.msra.mxu2 %v2585_v11  ;;  %v2589_v28 = vld [vmem:[%s2913_s7 + $0xc8] sm:$0xff]  ;;  %v2588_v32 = vld [vmem:[%s2913_s7 + $0xc0] sm:$0xff]  ;;  %v2611_v48 = vld [vmem:[%s2913_s7 + $0x178] sm:$0xff] }
  0x7b   : > { %1480 = vmatpush.bf16.msra.mxu3 %v2593_v12  ;;  %v1984_v33 = vld [vmem:[%s2915_s8] sm:$0xf]  ;;  %v2500_v35 = vld [vmem:[%s2915_s8 + $0x4] sm:$0xf]  ;;  %v1992_v37 = vld [vmem:[%s2915_s8 + $0x8] sm:$0xf] }
  0x7c   : > { %1334 = vmatpush.bf16.msra.mxu0 %v2568_v13  ;;  %v2504_v34 = vld [vmem:[%s2915_s8 + $0x1c] sm:$0xf0]  ;;  %v1986_v36 = vld [vmem:[%s2915_s8 + $0x20] sm:$0xf0]  ;;  %v2505_v38 = vld [vmem:[%s2915_s8 + $0x24] sm:$0xf0] }
  0x7d   : > { %1383 = vmatpush.bf16.msra.mxu1 %v2576_v14  ;;  %v2501_v39 = vld [vmem:[%s2915_s8 + $0xc] sm:$0xf]  ;;  %v1985_v43 = vor.u32 %v2504_v34, %v1984_v33  ;;  %v1989_v44 = vor.u32 %v2500_v35, %v1986_v36  ;;  %v1993_v45 = vor.u32 %v2505_v38, %v1992_v37  ;;  %v2618_v49 = vld [vmem:[%s2913_s7 + $0x1b0] sm:$0xff]  ;;  %v2016_v57 = vld [vmem:[%s2915_s8 + $0x40] sm:$0xf] }
  0x7e   : > { %1432 = vmatpush.bf16.msra.mxu2 %v2584_v15  ;;  %v1994_v40 = vld [vmem:[%s2915_s8 + $0x28] sm:$0xf0]  ;;  %v2602_v50 = vld [vmem:[%s2913_s7 + $0x130] sm:$0xff]  ;;  %v2512_v58 = vld [vmem:[%s2915_s8 + $0x5c] sm:$0xf0] }
  0x7f   : > { %1481 = vmatpush.bf16.msra.mxu3 %v2592_v16  ;;  %v1997_v46 = vor.u32 %v2501_v39, %v1994_v40  ;;  %v2626_v51 = vld [vmem:[%s2913_s7 + $0x1f0] sm:$0xff]  ;;  %v2617_v53 = vld [vmem:[%s2913_s7 + $0x1a8] sm:$0xff]  ;;  %v2508_v59 = vld [vmem:[%s2915_s8 + $0x44] sm:$0xf]  ;;  %v2017_v1 = vor.u32 %v2512_v58, %v2016_v57 }
  0x80   : > { %1335 = vmatpush.bf16.msra.mxu0 %v2567_v17  ;;  %v2610_v52 = vld [vmem:[%s2913_s7 + $0x170] sm:$0xff]  ;;  %v2601_v54 = vld [vmem:[%s2913_s7 + $0x128] sm:$0xff]  ;;  %v2018_v60 = vld [vmem:[%s2915_s8 + $0x60] sm:$0xf0] }
  0x81   : > { %1384 = vmatpush.bf16.msra.mxu1 %v2575_v18  ;;  %v2625_v55 = vld [vmem:[%s2913_s7 + $0x1e8] sm:$0xff]  ;;  %v2021_v2 = vor.u32 %v2508_v59, %v2018_v60  ;;  %v2616_v5 = vld [vmem:[%s2913_s7 + $0x1a0] sm:$0xff]  ;;  %v2614_v37 = vld [vmem:[%s2913_s7 + $0x190] sm:$0xff] }
  0x82   : > { %1433 = vmatpush.bf16.msra.mxu2 %v2583_v19  ;;  %v2609_v56 = vld [vmem:[%s2913_s7 + $0x168] sm:$0xff]  ;;  %v2600_v6 = vld [vmem:[%s2913_s7 + $0x120] sm:$0xff]  ;;  %v2598_v38 = vld [vmem:[%s2913_s7 + $0x110] sm:$0xff] }
  0x83   : > { %1482 = vmatpush.bf16.msra.mxu3 %v2591_v20  ;;  %v2024_v61 = vld [vmem:[%s2915_s8 + $0x48] sm:$0xf]  ;;  %v2509_v63 = vld [vmem:[%s2915_s8 + $0x4c] sm:$0xf]  ;;  %v2624_v7 = vld [vmem:[%s2913_s7 + $0x1e0] sm:$0xff] }
  0x84   : > { %1336 = vmatpush.bf16.msra.mxu0 %v2566_v21  ;;  %v2513_v62 = vld [vmem:[%s2915_s8 + $0x64] sm:$0xf0]  ;;  %v2026_v0 = vld [vmem:[%s2915_s8 + $0x68] sm:$0xf0]  ;;  %v2608_v8 = vld [vmem:[%s2913_s7 + $0x160] sm:$0xff] }
  0x85   : > { %1385 = vmatpush.bf16.msra.mxu1 %v2574_v22  ;;  %v2025_v3 = vor.u32 %v2513_v62, %v2024_v61  ;;  %v2029_v4 = vor.u32 %v2509_v63, %v2026_v0  ;;  %v2048_v9 = vld [vmem:[%s2915_s8 + $0x80] sm:$0xf]  ;;  %v2516_v11 = vld [vmem:[%s2915_s8 + $0x84] sm:$0xf]  ;;  %v2056_v13 = vld [vmem:[%s2915_s8 + $0x88] sm:$0xf] }
  0x86   : > { %1434 = vmatpush.bf16.msra.mxu2 %v2582_v23  ;;  %v2520_v10 = vld [vmem:[%s2915_s8 + $0x9c] sm:$0xf0]  ;;  %v2050_v12 = vld [vmem:[%s2915_s8 + $0xa0] sm:$0xf0]  ;;  %v2521_v14 = vld [vmem:[%s2915_s8 + $0xa4] sm:$0xf0] }
  0x87   : > { %1483 = vmatpush.bf16.msra.mxu3 %v2590_v24  ;;  %v2517_v15 = vld [vmem:[%s2915_s8 + $0x8c] sm:$0xf]  ;;  %v2049_v17 = vor.u32 %v2520_v10, %v2048_v9  ;;  %v2053_v18 = vor.u32 %v2516_v11, %v2050_v12  ;;  %v2057_v19 = vor.u32 %v2521_v14, %v2056_v13  ;;  %v2615_v21 = vld [vmem:[%s2913_s7 + $0x198] sm:$0xff]  ;;  %v2622_v39 = vld [vmem:[%s2913_s7 + $0x1d0] sm:$0xff] }
  0x88   : > { %1337 = vmatpush.bf16.msra.mxu0 %v2565_v25  ;;  %v2058_v16 = vld [vmem:[%s2915_s8 + $0xa8] sm:$0xf0]  ;;  %v2599_v22 = vld [vmem:[%s2913_s7 + $0x118] sm:$0xff]  ;;  %v2080_v25 = vld [vmem:[%s2915_s8 + $0xc0] sm:$0xf] }
  0x89   : > { %1386 = vmatpush.bf16.msra.mxu1 %v2573_v26  ;;  %v2061_v20 = vor.u32 %v2517_v15, %v2058_v16  ;;  %v2623_v23 = vld [vmem:[%s2913_s7 + $0x1d8] sm:$0xff]  ;;  %v2528_v26 = vld [vmem:[%s2915_s8 + $0xdc] sm:$0xf0]  ;;  %v2606_v40 = vld [vmem:[%s2913_s7 + $0x150] sm:$0xff] }
  0x8a   : > { %1435 = vmatpush.bf16.msra.mxu2 %v2581_v27  ;;  %v2607_v24 = vld [vmem:[%s2913_s7 + $0x158] sm:$0xff]  ;;  %v2524_v27 = vld [vmem:[%s2915_s8 + $0xc4] sm:$0xf]  ;;  %v2081_v33 = vor.u32 %v2528_v26, %v2080_v25  ;;  %v2144_v57 = vld [vmem:[%s2915_s8 + $0x140] sm:$0xf] }
  0x8b   : > { %1484 = vmatpush.bf16.msra.mxu3 %v2589_v28  ;;  %v2082_v28 = vld [vmem:[%s2915_s8 + $0xe0] sm:$0xf0]  ;;  %v2544_v58 = vld [vmem:[%s2915_s8 + $0x15c] sm:$0xf0]  ;;  %v2152_v61 = vld [vmem:[%s2915_s8 + $0x148] sm:$0xf] }
  0x8c   : > { %1338 = vmatpush.bf16.msra.mxu0 %v2564_v29  ;;  %v2088_v29 = vld [vmem:[%s2915_s8 + $0xc8] sm:$0xf]  ;;  %v2085_v34 = vor.u32 %v2524_v27, %v2082_v28  ;;  %v2540_v59 = vld [vmem:[%s2915_s8 + $0x144] sm:$0xf]  ;;  %v2541_v63 = vld [vmem:[%s2915_s8 + $0x14c] sm:$0xf] }
  0x8d   : > { %1387 = vmatpush.bf16.msra.mxu1 %v2572_v30  ;;  %v2529_v30 = vld [vmem:[%s2915_s8 + $0xe4] sm:$0xf0]  ;;  %v2146_v60 = vld [vmem:[%s2915_s8 + $0x160] sm:$0xf0]  ;;  %v2154_v0 = vld [vmem:[%s2915_s8 + $0x168] sm:$0xf0] }
  0x8e   : > { %1436 = vmatpush.bf16.msra.mxu2 %v2580_v31  ;;  %v2525_v31 = vld [vmem:[%s2915_s8 + $0xcc] sm:$0xf]  ;;  %v2089_v35 = vor.u32 %v2529_v30, %v2088_v29  ;;  %v2545_v62 = vld [vmem:[%s2915_s8 + $0x164] sm:$0xf0]  ;;  %v2176_v9 = vld [vmem:[%s2915_s8 + $0x180] sm:$0xf] }
  0x8f   : > { %1485 = vmatpush.bf16.msra.mxu3 %v2588_v32  ;;  %1339 = vmatmul.bf16.vlgmr.msra.gmra.mxu0 %v1985_v43  ;;  %v2090_v32 = vld [vmem:[%s2915_s8 + $0xe8] sm:$0xf0]  ;;  %v2532_v43 = vld [vmem:[%s2915_s8 + $0x104] sm:$0xf]  ;;  %v2552_v10 = vld [vmem:[%s2915_s8 + $0x19c] sm:$0xf0] }
  0x90   : > { %1527 = vmatpush.bf16.msrb.mxu0 %v2603_v42  ;;  %1388 = vmatmul.bf16.vlgmr.msra.gmra.mxu1 %v1989_v44  ;;  %v2093_v36 = vor.u32 %v2525_v31, %v2090_v32  ;;  %v2536_v42 = vld [vmem:[%s2915_s8 + $0x11c] sm:$0xf0]  ;;  %v2114_v44 = vld [vmem:[%s2915_s8 + $0x120] sm:$0xf0]  ;;  %v2184_v13 = vld [vmem:[%s2915_s8 + $0x188] sm:$0xf] }
  0x91   : > { %1437 = vmatmul.bf16.vlgmr.msra.gmra.mxu2 %v1993_v45  ;;  %1576 = vmatpush.bf16.msrb.mxu1 %v2611_v48  ;;  %v2120_v45 = vld [vmem:[%s2915_s8 + $0x108] sm:$0xf]  ;;  %v2122_v48 = vld [vmem:[%s2915_s8 + $0x128] sm:$0xf0]  ;;  %v2548_v11 = vld [vmem:[%s2915_s8 + $0x184] sm:$0xf] }
  0x92   : > { %1625 = vmatpush.bf16.msrb.mxu2 %v2619_v41  ;;  %1486 = vmatmul.bf16.vlgmr.msra.gmra.mxu3 %v1997_v46  ;;  %v2112_v41 = vld [vmem:[%s2915_s8 + $0x100] sm:$0xf]  ;;  %v2537_v46 = vld [vmem:[%s2915_s8 + $0x124] sm:$0xf0]  ;;  %v2178_v12 = vld [vmem:[%s2915_s8 + $0x1a0] sm:$0xf0] }
  0x93   : > { %1674 = vmatpush.bf16.msrb.mxu3 %v2627_v47  ;;  %v2533_v47 = vld [vmem:[%s2915_s8 + $0x10c] sm:$0xf]  ;;  %v2553_v14 = vld [vmem:[%s2915_s8 + $0x1a4] sm:$0xf0] }
  0x94   : > { %1528 = vmatpush.bf16.msrb.mxu0 %v2602_v50  ;;  %v2117_v50 = vor.u32 %v2532_v43, %v2114_v44  ;;  %v2549_v15 = vld [vmem:[%s2915_s8 + $0x18c] sm:$0xf]  ;;  %v2216_v25 = vld [vmem:[%s2915_s8 + $0x1c8] sm:$0xf] }
  0x95   : > { %1577 = vmatpush.bf16.msrb.mxu1 %v2610_v52  ;;  %v2125_v52 = vor.u32 %v2533_v47, %v2122_v48  ;;  %v2186_v16 = vld [vmem:[%s2915_s8 + $0x1a8] sm:$0xf0]  ;;  %v2561_v26 = vld [vmem:[%s2915_s8 + $0x1e4] sm:$0xf0] }
  0x96   : > { %1626 = vmatpush.bf16.msrb.mxu2 %v2618_v49  ;;  %v2113_v49 = vor.u32 %v2536_v42, %v2112_v41  ;;  %v2557_v27 = vld [vmem:[%s2915_s8 + $0x1cc] sm:$0xf]  ;;  %v2217_v31 = vor.u32 %v2561_v26, %v2216_v25 }
  0x97   : > { %1675 = vmatpush.bf16.msrb.mxu3 %v2626_v51  ;;  %v2121_v51 = vor.u32 %v2537_v46, %v2120_v45  ;;  %v2218_v28 = vld [vmem:[%s2915_s8 + $0x1e8] sm:$0xf0] }
  0x98   : > { %1529 = vmatpush.bf16.msrb.mxu0 %v2601_v54  ;;  %v2597_v54 = vld [vmem:[%s2913_s7 + $0x108] sm:$0xff]  ;;  %v2221_v32 = vor.u32 %v2557_v27, %v2218_v28 }
  0x99   : > { %1578 = vmatpush.bf16.msrb.mxu1 %v2609_v56  ;;  %v2605_v56 = vld [vmem:[%s2913_s7 + $0x148] sm:$0xff] }
  0x9a   : > { %1627 = vmatpush.bf16.msrb.mxu2 %v2617_v53  ;;  %v2613_v53 = vld [vmem:[%s2913_s7 + $0x188] sm:$0xff] }
  0x9b   : > { %1676 = vmatpush.bf16.msrb.mxu3 %v2625_v55  ;;  %v2621_v55 = vld [vmem:[%s2913_s7 + $0x1c8] sm:$0xff] }
  0x9c   : > { %1530 = vmatpush.bf16.msrb.mxu0 %v2600_v6  ;;  %v2596_v6 = vld [vmem:[%s2913_s7 + $0x100] sm:$0xff] }
  0x9d   : > { %1579 = vmatpush.bf16.msrb.mxu1 %v2608_v8  ;;  %v2604_v8 = vld [vmem:[%s2913_s7 + $0x140] sm:$0xff] }
  0x9e   : > { %1628 = vmatpush.bf16.msrb.mxu2 %v2616_v5  ;;  %v2612_v5 = vld [vmem:[%s2913_s7 + $0x180] sm:$0xff] }
  0x9f   : > { %1344 = vmatmul.bf16.gmra.mxu0 %v2017_v1  ;;  %1677 = vmatpush.bf16.msrb.mxu3 %v2624_v7  ;;  %v2145_v1 = vor.u32 %v2544_v58, %v2144_v57  ;;  %v2620_v7 = vld [vmem:[%s2913_s7 + $0x1c0] sm:$0xff]  ;;  %v2510_v57 = vld [vmem:[%s2915_s8 + $0x54] sm:$0xf] }
  0xa0   : > { %1393 = vmatmul.bf16.gmra.mxu1 %v2021_v2  ;;  %1531 = vmatpush.bf16.msrb.mxu0 %v2599_v22  ;;  %v2149_v2 = vor.u32 %v2540_v59, %v2146_v60  ;;  %v2560_v22 = vld [vmem:[%s2915_s8 + $0x1dc] sm:$0xf0]  ;;  %v2034_v58 = vld [vmem:[%s2915_s8 + $0x70] sm:$0xf0]  ;;  %v2040_v59 = vld [vmem:[%s2915_s8 + $0x58] sm:$0xf] }
  0xa1   : > { %1442 = vmatmul.bf16.gmra.mxu2 %v2025_v3  ;;  %1580 = vmatpush.bf16.msrb.mxu1 %v2607_v24  ;;  %v2153_v3 = vor.u32 %v2545_v62, %v2152_v61  ;;  %v2210_v24 = vld [vmem:[%s2915_s8 + $0x1e0] sm:$0xf0]  ;;  %v2515_v60 = vld [vmem:[%s2915_s8 + $0x74] sm:$0xf0]  ;;  %v2511_v61 = vld [vmem:[%s2915_s8 + $0x5c] sm:$0xf] }
  0xa2   : > { %1491 = vmatmul.bf16.gmra.mxu3 %v2029_v4  ;;  %1629 = vmatpush.bf16.msrb.mxu2 %v2615_v21  ;;  %v2157_v4 = vor.u32 %v2541_v63, %v2154_v0  ;;  %v2208_v21 = vld [vmem:[%s2915_s8 + $0x1c0] sm:$0xf]  ;;  %v2042_v62 = vld [vmem:[%s2915_s8 + $0x78] sm:$0xf0] }
  0xa3   : > { %1678 = vmatpush.bf16.msrb.mxu3 %v2623_v23  ;;  %v2556_v23 = vld [vmem:[%s2915_s8 + $0x1c4] sm:$0xf]  ;;  %v2209_v29 = vor.u32 %v2560_v22, %v2208_v21  ;;  %v2072_v21 = vld [vmem:[%s2915_s8 + $0x98] sm:$0xf] }
  0xa4   : > { %1532 = vmatpush.bf16.msrb.mxu0 %v2598_v38  ;;  %v2213_v30 = vor.u32 %v2556_v23, %v2210_v24  ;;  %v2507_v38 = vld [vmem:[%s2915_s8 + $0x34] sm:$0xf0]  ;;  %v2519_v23 = vld [vmem:[%s2915_s8 + $0x9c] sm:$0xf] }
  0xa5   : > { %1581 = vmatpush.bf16.msrb.mxu1 %v2606_v40  ;;  %v2010_v40 = vld [vmem:[%s2915_s8 + $0x38] sm:$0xf0]  ;;  %v2523_v22 = vld [vmem:[%s2915_s8 + $0xb4] sm:$0xf0] }
  0xa6   : > { %1630 = vmatpush.bf16.msrb.mxu2 %v2614_v37  ;;  %v2008_v37 = vld [vmem:[%s2915_s8 + $0x18] sm:$0xf]  ;;  %v2074_v24 = vld [vmem:[%s2915_s8 + $0xb8] sm:$0xf0] }
  0xa7   : > { %1679 = vmatpush.bf16.msrb.mxu3 %v2622_v39  ;;  %v2503_v39 = vld [vmem:[%s2915_s8 + $0x1c] sm:$0xf]  ;;  %v2009_v45 = vor.u32 %v2507_v38, %v2008_v37 }
  0xa8   : > { %1533 = vmatpush.bf16.msrb.mxu0 %v2597_v54  ;;  %v2013_v46 = vor.u32 %v2503_v39, %v2010_v40 }
  0xa9   : > { %1582 = vmatpush.bf16.msrb.mxu1 %v2605_v56  ;;  %v2514_v56 = vld [vmem:[%s2915_s8 + $0x6c] sm:$0xf0] }
  0xaa   : > { %1631 = vmatpush.bf16.msrb.mxu2 %v2613_v53 }
  0xab   : > { %1680 = vmatpush.bf16.msrb.mxu3 %v2621_v55  ;;  %v2032_v55 = vld [vmem:[%s2915_s8 + $0x50] sm:$0xf] }
  0xac   : > { %1534 = vmatpush.bf16.msrb.mxu0 %v2596_v6  ;;  %v2041_v6 = vor.u32 %v2515_v60, %v2040_v59 }
  0xad   : > { %1583 = vmatpush.bf16.msrb.mxu1 %v2604_v8 }
  0xae   : > { %1632 = vmatpush.bf16.msrb.mxu2 %v2612_v5 }
  0xaf   : > { %1349 = vmatmul.bf16.gmra.mxu0 %v2049_v17  ;;  %1681 = vmatpush.bf16.msrb.mxu3 %v2620_v7  ;;  %v2177_v17 = vor.u32 %v2552_v10, %v2176_v9  ;;  %v2045_v7 = vor.u32 %v2511_v61, %v2042_v62 }
  0xb0   : > { %1398 = vmatmul.bf16.gmra.mxu1 %v2053_v18  ;;  %v2181_v18 = vor.u32 %v2548_v11, %v2178_v12 }
  0xb1   : > { %1447 = vmatmul.bf16.gmra.mxu2 %v2057_v19  ;;  %v2185_v19 = vor.u32 %v2553_v14, %v2184_v13 }
  0xb2   : > { %1496 = vmatmul.bf16.gmra.mxu3 %v2061_v20  ;;  %v2189_v20 = vor.u32 %v2549_v15, %v2186_v16 }
  0xbf   : > { %1354 = vmatmul.bf16.gmra.mxu0 %v2081_v33  ;;  %v2000_v33 = vld [vmem:[%s2915_s8 + $0x10] sm:$0xf] }
  0xc0   : > { %1403 = vmatmul.bf16.gmra.mxu1 %v2085_v34  ;;  %v2506_v34 = vld [vmem:[%s2915_s8 + $0x2c] sm:$0xf0] }
  0xc1   : > { %1452 = vmatmul.bf16.gmra.mxu2 %v2089_v35  ;;  %v2502_v35 = vld [vmem:[%s2915_s8 + $0x14] sm:$0xf]  ;;  %v2001_v41 = vor.u32 %v2506_v34, %v2000_v33  ;;  %v2077_v33 = vor.u32 %v2519_v23, %v2074_v24 }
  0xc2   : > { %1501 = vmatmul.bf16.gmra.mxu3 %v2093_v36  ;;  %v2002_v36 = vld [vmem:[%s2915_s8 + $0x30] sm:$0xf0] }
  0xc3   : > { %v2005_v42 = vor.u32 %v2502_v35, %v2002_v36 }
  0xcf   : > { %1359 = vmatmul.bf16.gmra.mxu0 %v2113_v49 }
  0xd0   : > { %1408 = vmatmul.bf16.gmra.mxu1 %v2117_v50 }
  0xd1   : > { %1457 = vmatmul.bf16.gmra.mxu2 %v2121_v51 }
  0xd2   : > { %1506 = vmatmul.bf16.gmra.mxu3 %v2125_v52 }
  0xdf   : > { %1364 = vmatmul.bf16.gmra.mxu0 %v2145_v1  ;;  %v2033_v1 = vor.u32 %v2514_v56, %v2032_v55 }
  0xe0   : > { %1413 = vmatmul.bf16.gmra.mxu1 %v2149_v2  ;;  %v2037_v2 = vor.u32 %v2510_v57, %v2034_v58 }
  0xe1   : > { %1462 = vmatmul.bf16.gmra.mxu2 %v2153_v3 }
  0xe2   : > { %1511 = vmatmul.bf16.gmra.mxu3 %v2157_v4 }
  0xef   : > { %1369 = vmatmul.bf16.gmra.mxu0 %v2177_v17  ;;  %v2064_v17 = vld [vmem:[%s2915_s8 + $0x90] sm:$0xf] }
  0xf0   : > { %1418 = vmatmul.bf16.gmra.mxu1 %v2181_v18  ;;  %v2522_v18 = vld [vmem:[%s2915_s8 + $0xac] sm:$0xf0] }
  0xf1   : > { %1467 = vmatmul.bf16.gmra.mxu2 %v2185_v19  ;;  %v2518_v19 = vld [vmem:[%s2915_s8 + $0x94] sm:$0xf]  ;;  %v2065_v27 = vor.u32 %v2522_v18, %v2064_v17 }
  0xf2   : > { %1516 = vmatmul.bf16.gmra.mxu3 %v2189_v20  ;;  %v2066_v20 = vld [vmem:[%s2915_s8 + $0xb0] sm:$0xf0] }
  0xf3   : > { %v2069_v28 = vor.u32 %v2518_v19, %v2066_v20 }
  0xff   : > { %1374 = vmatmul.bf16.gmra.mxu0 %v2209_v29 }
 0x100   : > { %1423 = vmatmul.bf16.gmra.mxu1 %v2213_v30 }
 0x101   : > { %1472 = vmatmul.bf16.gmra.mxu2 %v2217_v31 }
 0x102   : > { %1521 = vmatmul.bf16.gmra.mxu3 %v2221_v32  ;;  %v2073_v32 = vor.u32 %v2523_v22, %v2072_v21 }
 0x10c   : > { %v1340_v43 = vpop.f32.mrf.mxu0 }
 0x10d   : > { %v1389_v44 = vpop.f32.mrf.mxu1 }
 0x10e   : > { %v1390_v47 = vadd.f32 %v1389_v44, %v1340_v43  ;;  %v2096_v43 = vld [vmem:[%s2915_s8 + $0xd0] sm:$0xf] }
 0x10f   : > { %1535 = vmatmul.bf16.vlgmr.msrb.gmra.mxu0 %v2001_v41  ;;  %v2530_v44 = vld [vmem:[%s2915_s8 + $0xec] sm:$0xf0] }
 0x110   : > { %1584 = vmatmul.bf16.vlgmr.msrb.gmra.mxu1 %v2005_v42 }
 0x111   : > { %1633 = vmatmul.bf16.vlgmr.msrb.gmra.mxu2 %v2009_v45  ;;  %v2526_v45 = vld [vmem:[%s2915_s8 + $0xd4] sm:$0xf] }
 0x112   : > { %1682 = vmatmul.bf16.vlgmr.msrb.gmra.mxu3 %v2013_v46  ;;  %v2098_v46 = vld [vmem:[%s2915_s8 + $0xf0] sm:$0xf0] }
 0x113   : > { %v2101_v55 = vor.u32 %v2526_v45, %v2098_v46 }
 0x114   : > { %v1438_v48 = vpop.f32.mrf.mxu2  ;;  %v1342_v51 = vpop.f32.mrf.mxu0 }
 0x115   : > { %v1487_v49 = vpop.f32.mrf.mxu3  ;;  %v1439_v50 = vadd.f32 %v1438_v48, %v1390_v47  ;;  %v1391_v52 = vpop.f32.mrf.mxu1  ;;  %v2104_v47 = vld [vmem:[%s2915_s8 + $0xd8] sm:$0xf] }
 0x116   : > { %v1392_v53 = vadd.f32 %v1391_v52, %v1342_v51  ;;  %v2531_v48 = vld [vmem:[%s2915_s8 + $0xf4] sm:$0xf0] }
 0x117   : > { %v3054_v54 = vadd.f32 %v1487_v49, %v1439_v50  ;;  %v2527_v49 = vld [vmem:[%s2915_s8 + $0xdc] sm:$0xf]  ;;  %v2105_v59 = vor.u32 %v2531_v48, %v2104_v47 }
 0x118   : > { %v2106_v50 = vld [vmem:[%s2915_s8 + $0xf8] sm:$0xf0] }
 0x119   : > { %v2109_v60 = vor.u32 %v2527_v49, %v2106_v50 }
 0x11c   : > { %v1440_v63 = vpop.f32.mrf.mxu2  ;;  %v1345_v4 = vpop.f32.mrf.mxu0 }
 0x11d   : > { %v1489_v0 = vpop.f32.mrf.mxu3  ;;  %v1441_v3 = vadd.f32 %v1440_v63, %v1392_v53  ;;  %v1394_v5 = vpop.f32.mrf.mxu1  ;;  %v2097_v53 = vor.u32 %v2530_v44, %v2096_v43  ;;  %v2170_v43 = vld [vmem:[%s2915_s8 + $0x178] sm:$0xf0] }
 0x11e   : > { %v1395_v8 = vadd.f32 %v1394_v5, %v1345_v4 }
 0x11f   : > { %v3064_v9 = vadd.f32 %v1489_v0, %v1441_v3  ;;  %1540 = vmatmul.bf16.gmra.mxu0 %v2033_v1 }
 0x120   : > { %1589 = vmatmul.bf16.gmra.mxu1 %v2037_v2 }
 0x121   : > { %1638 = vmatmul.bf16.gmra.mxu2 %v2041_v6  ;;  %v2128_v6 = vld [vmem:[%s2915_s8 + $0x110] sm:$0xf] }
 0x122   : > { %1687 = vmatmul.bf16.gmra.mxu3 %v2045_v7  ;;  %v2538_v7 = vld [vmem:[%s2915_s8 + $0x12c] sm:$0xf0] }
 0x123   : > { %v2129_v18 = vor.u32 %v2538_v7, %v2128_v6  ;;  %v2555_v6 = vld [vmem:[%s2915_s8 + $0x1b4] sm:$0xf0]  ;;  %v2551_v7 = vld [vmem:[%s2915_s8 + $0x19c] sm:$0xf] }
 0x124   : > { %v1443_v10 = vpop.f32.mrf.mxu2  ;;  %v1347_v13 = vpop.f32.mrf.mxu0 }
 0x125   : > { %v1492_v11 = vpop.f32.mrf.mxu3  ;;  %v1444_v12 = vadd.f32 %v1443_v10, %v1395_v8  ;;  %v1396_v14 = vpop.f32.mrf.mxu1  ;;  %v2534_v8 = vld [vmem:[%s2915_s8 + $0x114] sm:$0xf] }
 0x126   : > { %v1397_v15 = vadd.f32 %v1396_v14, %v1347_v13  ;;  %v2130_v10 = vld [vmem:[%s2915_s8 + $0x130] sm:$0xf0]  ;;  %v2535_v13 = vld [vmem:[%s2915_s8 + $0x11c] sm:$0xf] }
 0x127   : > { %v3066_v16 = vadd.f32 %v1492_v11, %v1444_v12  ;;  %v2136_v11 = vld [vmem:[%s2915_s8 + $0x118] sm:$0xf]  ;;  %v2138_v14 = vld [vmem:[%s2915_s8 + $0x138] sm:$0xf0]  ;;  %v2133_v19 = vor.u32 %v2534_v8, %v2130_v10 }
 0x128   : > { %v2539_v12 = vld [vmem:[%s2915_s8 + $0x134] sm:$0xf0]  ;;  %v2141_v24 = vor.u32 %v2535_v13, %v2138_v14  ;;  %v2202_v8 = vld [vmem:[%s2915_s8 + $0x1b8] sm:$0xf0] }
 0x129   : > { %v2137_v23 = vor.u32 %v2539_v12, %v2136_v11 }
 0x12c   : > { %v1445_v25 = vpop.f32.mrf.mxu2  ;;  %v1350_v30 = vpop.f32.mrf.mxu0 }
 0x12d   : > { %v1494_v26 = vpop.f32.mrf.mxu3  ;;  %v1446_v29 = vadd.f32 %v1445_v25, %v1397_v15  ;;  %v1399_v31 = vpop.f32.mrf.mxu1 }
 0x12e   : > { %v1400_v34 = vadd.f32 %v1399_v31, %v1350_v30 }
 0x12f   : > { %v3076_v35 = vadd.f32 %v1494_v26, %v1446_v29  ;;  %1545 = vmatmul.bf16.gmra.mxu0 %v2065_v27 }
 0x130   : > { %1594 = vmatmul.bf16.gmra.mxu1 %v2069_v28 }
 0x131   : > { %1643 = vmatmul.bf16.gmra.mxu2 %v2073_v32 }
 0x132   : > { %1692 = vmatmul.bf16.gmra.mxu3 %v2077_v33 }
 0x134   : > { %v1448_v36 = vpop.f32.mrf.mxu2  ;;  %v1352_v39 = vpop.f32.mrf.mxu0 }
 0x135   : > { %v1497_v37 = vpop.f32.mrf.mxu3  ;;  %v1449_v38 = vadd.f32 %v1448_v36, %v1400_v34  ;;  %v1401_v40 = vpop.f32.mrf.mxu1  ;;  %v2160_v34 = vld [vmem:[%s2915_s8 + $0x150] sm:$0xf] }
 0x136   : > { %v1402_v41 = vadd.f32 %v1401_v40, %v1352_v39  ;;  %v2546_v36 = vld [vmem:[%s2915_s8 + $0x16c] sm:$0xf0]  ;;  %v2168_v39 = vld [vmem:[%s2915_s8 + $0x158] sm:$0xf] }
 0x137   : > { %v3078_v42 = vadd.f32 %v1497_v37, %v1449_v38  ;;  %v2542_v37 = vld [vmem:[%s2915_s8 + $0x154] sm:$0xf]  ;;  %v2547_v40 = vld [vmem:[%s2915_s8 + $0x174] sm:$0xf0]  ;;  %v2161_v46 = vor.u32 %v2546_v36, %v2160_v34 }
 0x138   : > { %v2162_v38 = vld [vmem:[%s2915_s8 + $0x170] sm:$0xf0]  ;;  %v2232_v36 = vld [vmem:[%s2915_s8 + $0x1d8] sm:$0xf] }
 0x139   : > { %v2165_v47 = vor.u32 %v2542_v37, %v2162_v38  ;;  %v2226_v34 = vld [vmem:[%s2915_s8 + $0x1f0] sm:$0xf0]  ;;  %v2563_v37 = vld [vmem:[%s2915_s8 + $0x1f4] sm:$0xf0]  ;;  %v2559_v38 = vld [vmem:[%s2915_s8 + $0x1dc] sm:$0xf] }
 0x13c   : > { %v1450_v51 = vpop.f32.mrf.mxu2  ;;  %v1355_v57 = vpop.f32.mrf.mxu0 }
 0x13d   : > { %v1499_v52 = vpop.f32.mrf.mxu3  ;;  %v1451_v56 = vadd.f32 %v1450_v51, %v1402_v41  ;;  %v1404_v58 = vpop.f32.mrf.mxu1  ;;  %v2543_v41 = vld [vmem:[%s2915_s8 + $0x15c] sm:$0xf]  ;;  %v2169_v51 = vor.u32 %v2547_v40, %v2168_v39 }
 0x13e   : > { %v1405_v61 = vadd.f32 %v1404_v58, %v1355_v57  ;;  %v2234_v39 = vld [vmem:[%s2915_s8 + $0x1f8] sm:$0xf0] }
 0x13f   : > { %v3088_v62 = vadd.f32 %v1499_v52, %v1451_v56  ;;  %1550 = vmatmul.bf16.gmra.mxu0 %v2097_v53  ;;  %v2173_v52 = vor.u32 %v2543_v41, %v2170_v43 }
 0x140   : > { %1599 = vmatmul.bf16.gmra.mxu1 %v2101_v55 }
 0x141   : > { %1648 = vmatmul.bf16.gmra.mxu2 %v2105_v59 }
 0x142   : > { %1697 = vmatmul.bf16.gmra.mxu3 %v2109_v60 }
 0x144   : > { %v1453_v63 = vpop.f32.mrf.mxu2  ;;  %v1357_v2 = vpop.f32.mrf.mxu0 }
 0x145   : > { %v1502_v0 = vpop.f32.mrf.mxu3  ;;  %v1454_v1 = vadd.f32 %v1453_v63, %v1405_v61  ;;  %v1406_v3 = vpop.f32.mrf.mxu1 }
 0x146   : > { %v1407_v4 = vadd.f32 %v1406_v3, %v1357_v2  ;;  %v2550_v2 = vld [vmem:[%s2915_s8 + $0x194] sm:$0xf] }
 0x147   : > { %v3090_v5 = vadd.f32 %v1502_v0, %v1454_v1  ;;  %v2192_v0 = vld [vmem:[%s2915_s8 + $0x190] sm:$0xf]  ;;  %v2194_v3 = vld [vmem:[%s2915_s8 + $0x1b0] sm:$0xf0] }
 0x148   : > { %v2554_v1 = vld [vmem:[%s2915_s8 + $0x1ac] sm:$0xf0]  ;;  %v2197_v13 = vor.u32 %v2550_v2, %v2194_v3 }
 0x149   : > { %v2193_v12 = vor.u32 %v2554_v1, %v2192_v0 }
 0x14c   : > { %v1455_v15 = vpop.f32.mrf.mxu2  ;;  %v1360_v21 = vpop.f32.mrf.mxu0 }
 0x14d   : > { %v1504_v17 = vpop.f32.mrf.mxu3  ;;  %v1456_v20 = vadd.f32 %v1455_v15, %v1407_v4  ;;  %v1409_v22 = vpop.f32.mrf.mxu1  ;;  %v2200_v4 = vld [vmem:[%s2915_s8 + $0x198] sm:$0xf] }
 0x14e   : > { %v1410_v25 = vadd.f32 %v1409_v22, %v1360_v21 }
 0x14f   : > { %v3100_v26 = vadd.f32 %v1504_v17, %v1456_v20  ;;  %1555 = vmatmul.bf16.gmra.mxu0 %v2129_v18  ;;  %v2201_v18 = vor.u32 %v2555_v6, %v2200_v4 }
 0x150   : > { %1604 = vmatmul.bf16.gmra.mxu1 %v2133_v19  ;;  %v2205_v19 = vor.u32 %v2551_v7, %v2202_v8 }
 0x151   : > { %1653 = vmatmul.bf16.gmra.mxu2 %v2137_v23 }
 0x152   : > { %1702 = vmatmul.bf16.gmra.mxu3 %v2141_v24 }
 0x154   : > { %v1458_v27 = vpop.f32.mrf.mxu2  ;;  %v1362_v30 = vpop.f32.mrf.mxu0 }
 0x155   : > { %v1507_v28 = vpop.f32.mrf.mxu3  ;;  %v1459_v29 = vadd.f32 %v1458_v27, %v1410_v25  ;;  %v1411_v31 = vpop.f32.mrf.mxu1 }
 0x156   : > { %v1412_v32 = vadd.f32 %v1411_v31, %v1362_v30  ;;  %v2224_v30 = vld [vmem:[%s2915_s8 + $0x1d0] sm:$0xf] }
 0x157   : > { %v3102_v33 = vadd.f32 %v1507_v28, %v1459_v29  ;;  %v2562_v31 = vld [vmem:[%s2915_s8 + $0x1ec] sm:$0xf0] }
 0x158   : > { %v2225_v43 = vor.u32 %v2562_v31, %v2224_v30 }
 0x15c   : > { %v1460_v44 = vpop.f32.mrf.mxu2  ;;  %v1365_v49 = vpop.f32.mrf.mxu0 }
 0x15d   : > { %v1509_v45 = vpop.f32.mrf.mxu3  ;;  %v1461_v48 = vadd.f32 %v1460_v44, %v1412_v32  ;;  %v1414_v50 = vpop.f32.mrf.mxu1  ;;  %v2558_v32 = vld [vmem:[%s2915_s8 + $0x1d4] sm:$0xf] }
 0x15e   : > { %v1415_v53 = vadd.f32 %v1414_v50, %v1365_v49  ;;  %v2229_v44 = vor.u32 %v2558_v32, %v2226_v34  ;;  %v2237_v49 = vor.u32 %v2559_v38, %v2234_v39  ;;  %v421_v38 = vld [vmem:[#allocation2 + $0x58] sm:$0xff] }
 0x15f   : > { %v3112_v55 = vadd.f32 %v1509_v45, %v1461_v48  ;;  %1560 = vmatmul.bf16.gmra.mxu0 %v2161_v46  ;;  %v2233_v48 = vor.u32 %v2563_v37, %v2232_v36 }
 0x160   : > { %1609 = vmatmul.bf16.gmra.mxu1 %v2165_v47 }
 0x161   : > { %1658 = vmatmul.bf16.gmra.mxu2 %v2169_v51 }
 0x162   : > { %1707 = vmatmul.bf16.gmra.mxu3 %v2173_v52 }
 0x164   : > { %v1463_v56 = vpop.f32.mrf.mxu2  ;;  %v1367_v59 = vpop.f32.mrf.mxu0 }
 0x165   : > { %v1512_v57 = vpop.f32.mrf.mxu3  ;;  %v1464_v58 = vadd.f32 %v1463_v56, %v1415_v53  ;;  %v1416_v60 = vpop.f32.mrf.mxu1 }
 0x166   : > { %v1417_v61 = vadd.f32 %v1416_v60, %v1367_v59 }
 0x167   : > { %v3114_v63 = vadd.f32 %v1512_v57, %v1464_v58 }
 0x16c   : > { %v1465_v10 = vpop.f32.mrf.mxu2  ;;  %v1370_v15 = vpop.f32.mrf.mxu0 }
 0x16d   : > { %v1514_v11 = vpop.f32.mrf.mxu3  ;;  %v1466_v14 = vadd.f32 %v1465_v10, %v1417_v61  ;;  %v1419_v17 = vpop.f32.mrf.mxu1 }
 0x16e   : > { %v1420_v20 = vadd.f32 %v1419_v17, %v1370_v15 }
 0x16f   : > { %v3124_v21 = vadd.f32 %v1514_v11, %v1466_v14  ;;  %1565 = vmatmul.bf16.gmra.mxu0 %v2193_v12  ;;  %v419_v14 = vld [vmem:[#allocation2 + $0x30] sm:$0xff] }
 0x170   : > { %1614 = vmatmul.bf16.gmra.mxu1 %v2197_v13 }
 0x171   : > { %1663 = vmatmul.bf16.gmra.mxu2 %v2201_v18 }
 0x172   : > { %1712 = vmatmul.bf16.gmra.mxu3 %v2205_v19 }
 0x174   : > { %v1468_v22 = vpop.f32.mrf.mxu2  ;;  %v1372_v25 = vpop.f32.mrf.mxu0 }
 0x175   : > { %v1517_v23 = vpop.f32.mrf.mxu3  ;;  %v1469_v24 = vadd.f32 %v1468_v22, %v1420_v20  ;;  %v1421_v27 = vpop.f32.mrf.mxu1 }
 0x176   : > { %v1422_v28 = vadd.f32 %v1421_v27, %v1372_v25  ;;  %v420_v27 = vld [vmem:[#allocation2] sm:$0xff] }
 0x177   : > { %v3126_v29 = vadd.f32 %v1517_v23, %v1469_v24 }
 0x17c   : > { %v1470_v40 = vpop.f32.mrf.mxu2  ;;  %v1375_v46 = vpop.f32.mrf.mxu0 }
 0x17d   : > { %v1519_v41 = vpop.f32.mrf.mxu3  ;;  %v1471_v45 = vadd.f32 %v1470_v40, %v1422_v28  ;;  %v1424_v47 = vpop.f32.mrf.mxu1 }
 0x17e   : > { %v1425_v50 = vadd.f32 %v1424_v47, %v1375_v46 }
 0x17f   : > { %v3136_v51 = vadd.f32 %v1519_v41, %v1471_v45  ;;  %1570 = vmatmul.bf16.gmra.mxu0 %v2225_v43 }
 0x180   : > { %1619 = vmatmul.bf16.gmra.mxu1 %v2229_v44 }
 0x181   : > { %1668 = vmatmul.bf16.gmra.mxu2 %v2233_v48  ;;  %v422_v48 = vld [vmem:[#allocation2 + $0x18] sm:$0xff] }
 0x182   : > { %1717 = vmatmul.bf16.gmra.mxu3 %v2237_v49 }
 0x184   : > { %v1473_v52 = vpop.f32.mrf.mxu2  ;;  %v1377_v57 = vpop.f32.mrf.mxu0 }
 0x185   : > { %v1522_v53 = vpop.f32.mrf.mxu3  ;;  %v1474_v56 = vadd.f32 %v1473_v52, %v1425_v50  ;;  %v1426_v58 = vpop.f32.mrf.mxu1 }
 0x186   : > { %v1427_v59 = vadd.f32 %v1426_v58, %v1377_v57 }
 0x187   : > { %v3138_v60 = vadd.f32 %v1522_v53, %v1474_v56 }
 0x18c   : > { %v1475_v61 = vpop.f32.mrf.mxu2  ;;  %v1536_v2 = vpop.f32.mrf.mxu0 }
 0x18d   : > { %v1524_v0 = vpop.f32.mrf.mxu3  ;;  %v1476_v1 = vadd.f32 %v1475_v61, %v1427_v59  ;;  %v1585_v3 = vpop.f32.mrf.mxu1  ;;  %v1537_v6 = vadd.f32 %v1536_v2, %v3054_v54  ;;  %v423_v61 = vld [vmem:[#allocation2 + $0x50] sm:$0xff] }
 0x18f   : > { %v3140_v4 = vadd.f32 %v1524_v0, %v1476_v1  ;;  %v1586_v7 = vadd.f32 %v1585_v3, %v1537_v6 }
 0x194   : > { %v1634_v8 = vpop.f32.mrf.mxu2  ;;  %v1538_v12 = vpop.f32.mrf.mxu0 }
 0x195   : > { %v1683_v10 = vpop.f32.mrf.mxu3  ;;  %v1635_v11 = vadd.f32 %v1634_v8, %v1586_v7  ;;  %v1587_v13 = vpop.f32.mrf.mxu1  ;;  %v1539_v17 = vadd.f32 %v1538_v12, %v3064_v9 }
 0x197   : > { %v1684_v15 = vadd.f32 %v1683_v10, %v1635_v11  ;;  %v1588_v19 = vadd.f32 %v1587_v13, %v1539_v17  ;;  %v424_v11 = vld [vmem:[#allocation2 + $0x68] sm:$0xff] }
 0x199   : > { %v1723_v18 = vadd.f32 %v1684_v15, %v419_v14 }
 0x19b   : > { %1739 = vst [vmem:[#allocation2 + $0x30] sm:$0xff] %v1723_v18 }
 0x19c   : > { %v1636_v20 = vpop.f32.mrf.mxu2  ;;  %v1541_v24 = vpop.f32.mrf.mxu0 }
 0x19d   : > { %v1685_v22 = vpop.f32.mrf.mxu3  ;;  %v1637_v23 = vadd.f32 %v1636_v20, %v1588_v19  ;;  %v1590_v25 = vpop.f32.mrf.mxu1  ;;  %v1542_v28 = vadd.f32 %v1541_v24, %v3066_v16 }
 0x19f   : > { %v1686_v54 = vadd.f32 %v1685_v22, %v1637_v23  ;;  %v1591_v31 = vadd.f32 %v1590_v25, %v1542_v28  ;;  %v425_v22 = vld [vmem:[#allocation2 + $0x8] sm:$0xff] }
 0x1a1   : > { %v1724_v30 = vadd.f32 %v1686_v54, %v420_v27 }
 0x1a3   : > { %1740 = vst [vmem:[#allocation2] sm:$0xff] %v1724_v30 }
 0x1a4   : > { %v1639_v32 = vpop.f32.mrf.mxu2  ;;  %v1543_v37 = vpop.f32.mrf.mxu0 }
 0x1a5   : > { %v1688_v34 = vpop.f32.mrf.mxu3  ;;  %v1640_v36 = vadd.f32 %v1639_v32, %v1591_v31  ;;  %v1592_v9 = vpop.f32.mrf.mxu1  ;;  %v1544_v40 = vadd.f32 %v1543_v37, %v3076_v35  ;;  %v426_v32 = vld [vmem:[#allocation2 + $0x48] sm:$0xff] }
 0x1a7   : > { %v1689_v39 = vadd.f32 %v1688_v34, %v1640_v36  ;;  %v1593_v43 = vadd.f32 %v1592_v9, %v1544_v40 }
 0x1a9   : > { %v1725_v41 = vadd.f32 %v1689_v39, %v421_v38 }
 0x1ab   : > { %1741 = vst [vmem:[#allocation2 + $0x58] sm:$0xff] %v1725_v41 }
 0x1ac   : > { %v1641_v44 = vpop.f32.mrf.mxu2  ;;  %v1546_v47 = vpop.f32.mrf.mxu0 }
 0x1ad   : > { %v1690_v45 = vpop.f32.mrf.mxu3  ;;  %v1642_v46 = vadd.f32 %v1641_v44, %v1593_v43  ;;  %v1595_v16 = vpop.f32.mrf.mxu1  ;;  %v1547_v50 = vadd.f32 %v1546_v47, %v3078_v42  ;;  %v427_v43 = vld [vmem:[#allocation2 + $0x40] sm:$0xff] }
 0x1af   : > { %v1691_v49 = vadd.f32 %v1690_v45, %v1642_v46  ;;  %v1596_v53 = vadd.f32 %v1595_v16, %v1547_v50 }
 0x1b1   : > { %v1726_v52 = vadd.f32 %v1691_v49, %v422_v48 }
 0x1b3   : > { %1742 = vst [vmem:[#allocation2 + $0x18] sm:$0xff] %v1726_v52  ;;  %v428_v52 = vld [vmem:[#allocation2 + $0x20] sm:$0xff] }
 0x1b4   : > { %v1644_v56 = vpop.f32.mrf.mxu2  ;;  %v1548_v59 = vpop.f32.mrf.mxu0 }
 0x1b5   : > { %v1693_v57 = vpop.f32.mrf.mxu3  ;;  %v1645_v58 = vadd.f32 %v1644_v56, %v1596_v53  ;;  %v1597_v35 = vpop.f32.mrf.mxu1  ;;  %v1549_v1 = vadd.f32 %v1548_v59, %v3088_v62 }
 0x1b7   : > { %v1694_v0 = vadd.f32 %v1693_v57, %v1645_v58  ;;  %v1598_v3 = vadd.f32 %v1597_v35, %v1549_v1  ;;  %v429_v1 = vld [vmem:[#allocation2 + $0x10] sm:$0xff] }
 0x1b9   : > { %v1727_v2 = vadd.f32 %v1694_v0, %v423_v61 }
 0x1bb   : > { %1743 = vst [vmem:[#allocation2 + $0x50] sm:$0xff] %v1727_v2 }
 0x1bc   : > { %v1646_v6 = vpop.f32.mrf.mxu2  ;;  %v1551_v10 = vpop.f32.mrf.mxu0 }
 0x1bd   : > { %v1695_v7 = vpop.f32.mrf.mxu3  ;;  %v1647_v8 = vadd.f32 %v1646_v6, %v1598_v3  ;;  %v1600_v42 = vpop.f32.mrf.mxu1  ;;  %v1552_v13 = vadd.f32 %v1551_v10, %v3090_v5 }
 0x1bf   : > { %v1696_v12 = vadd.f32 %v1695_v7, %v1647_v8  ;;  %v1601_v15 = vadd.f32 %v1600_v42, %v1552_v13 }
 0x1c1   : > { %v1728_v14 = vadd.f32 %v1696_v12, %v424_v11  ;;  %v430_v12 = vld [vmem:[#allocation2 + $0x38] sm:$0xff] }
 0x1c3   : > { %1744 = vst [vmem:[#allocation2 + $0x68] sm:$0xff] %v1728_v14 }
 0x1c4   : > { %v1649_v17 = vpop.f32.mrf.mxu2  ;;  %v1553_v20 = vpop.f32.mrf.mxu0 }
 0x1c5   : > { %v1698_v18 = vpop.f32.mrf.mxu3  ;;  %v1650_v19 = vadd.f32 %v1649_v17, %v1601_v15  ;;  %v1602_v62 = vpop.f32.mrf.mxu1  ;;  %v1554_v24 = vadd.f32 %v1553_v20, %v3100_v26 }
 0x1c7   : > { %v1699_v23 = vadd.f32 %v1698_v18, %v1650_v19  ;;  %v1603_v27 = vadd.f32 %v1602_v62, %v1554_v24 }
 0x1c9   : > { %v1729_v25 = vadd.f32 %v1699_v23, %v425_v22 }
 0x1cb   : > { %1745 = vst [vmem:[#allocation2 + $0x8] sm:$0xff] %v1729_v25 }
 0x1cc   : > { %v1651_v54 = vpop.f32.mrf.mxu2  ;;  %v1556_v31 = vpop.f32.mrf.mxu0 }
 0x1cd   : > { %v1700_v28 = vpop.f32.mrf.mxu3  ;;  %v1652_v30 = vadd.f32 %v1651_v54, %v1603_v27  ;;  %v1605_v5 = vpop.f32.mrf.mxu1  ;;  %v1557_v36 = vadd.f32 %v1556_v31, %v3102_v33 }
 0x1cf   : > { %v1701_v34 = vadd.f32 %v1700_v28, %v1652_v30  ;;  %v1606_v9 = vadd.f32 %v1605_v5, %v1557_v36 }
 0x1d1   : > { %v1730_v37 = vadd.f32 %v1701_v34, %v426_v32 }
 0x1d3   : > { %1746 = vst [vmem:[#allocation2 + $0x48] sm:$0xff] %v1730_v37 }
 0x1d4   : > { %v1654_v38 = vpop.f32.mrf.mxu2  ;;  %v1558_v41 = vpop.f32.mrf.mxu0 }
 0x1d5   : > { %v1703_v39 = vpop.f32.mrf.mxu3  ;;  %v1655_v40 = vadd.f32 %v1654_v38, %v1606_v9  ;;  %v1607_v26 = vpop.f32.mrf.mxu1  ;;  %v1559_v45 = vadd.f32 %v1558_v41, %v3112_v55 }
 0x1d7   : > { %v1704_v44 = vadd.f32 %v1703_v39, %v1655_v40  ;;  %v1608_v47 = vadd.f32 %v1607_v26, %v1559_v45 }
 0x1d9   : > { %v1731_v46 = vadd.f32 %v1704_v44, %v427_v43 }
 0x1db   : > { %1747 = vst [vmem:[#allocation2 + $0x40] sm:$0xff] %v1731_v46 }
 0x1dc   : > { %v1656_v16 = vpop.f32.mrf.mxu2  ;;  %v1561_v50 = vpop.f32.mrf.mxu0 }
 0x1dd   : > { %v1705_v48 = vpop.f32.mrf.mxu3  ;;  %v1657_v49 = vadd.f32 %v1656_v16, %v1608_v47  ;;  %v1610_v33 = vpop.f32.mrf.mxu1  ;;  %v1562_v56 = vadd.f32 %v1561_v50, %v3114_v63  ;;  %v434_v16 = vld [vmem:[#allocation2 + $0x28] sm:$0xff] }
 0x1df   : > { %v1706_v53 = vadd.f32 %v1705_v48, %v1657_v49  ;;  %v1611_v58 = vadd.f32 %v1610_v33, %v1562_v56 }
 0x1e1   : > { %v1732_v57 = vadd.f32 %v1706_v53, %v428_v52 }
 0x1e3   : > { %1748 = vst [vmem:[#allocation2 + $0x20] sm:$0xff] %v1732_v57 }
 0x1e4   : > { %v1659_v59 = vpop.f32.mrf.mxu2  ;;  %v1563_v0 = vpop.f32.mrf.mxu0 }
 0x1e5   : > { %v1708_v35 = vpop.f32.mrf.mxu3  ;;  %v1660_v61 = vadd.f32 %v1659_v59, %v1611_v58  ;;  %v1612_v55 = vpop.f32.mrf.mxu1  ;;  %v1564_v3 = vadd.f32 %v1563_v0, %v3124_v21  ;;  %v431_v21 = vld [vmem:[#allocation2 + $0x60] sm:$0xff] }
 0x1e7   : > { %v1709_v2 = vadd.f32 %v1708_v35, %v1660_v61  ;;  %v1613_v7 = vadd.f32 %v1612_v55, %v1564_v3 }
 0x1e9   : > { %v1733_v6 = vadd.f32 %v1709_v2, %v429_v1 }
 0x1eb   : > { %1749 = vst [vmem:[#allocation2 + $0x10] sm:$0xff] %v1733_v6 }
 0x1ec   : > { %v1661_v8 = vpop.f32.mrf.mxu2  ;;  %v1566_v11 = vpop.f32.mrf.mxu0 }
 0x1ed   : > { %v1710_v10 = vpop.f32.mrf.mxu3  ;;  %v1662_v42 = vadd.f32 %v1661_v8, %v1613_v7  ;;  %v1615_v63 = vpop.f32.mrf.mxu1  ;;  %v1567_v14 = vadd.f32 %v1566_v11, %v3126_v29  ;;  %v432_v29 = vld [vmem:[#allocation2 + $0x70] sm:$0xff] }
 0x1ef   : > { %v1711_v13 = vadd.f32 %v1710_v10, %v1662_v42  ;;  %v1616_v17 = vadd.f32 %v1615_v63, %v1567_v14 }
 0x1f1   : > { %v1734_v15 = vadd.f32 %v1711_v13, %v430_v12 }
 0x1f3   : > { %1750 = vst [vmem:[#allocation2 + $0x38] sm:$0xff] %v1734_v15 }
 0x1f4   : > { %v1664_v18 = vpop.f32.mrf.mxu2  ;;  %v1568_v62 = vpop.f32.mrf.mxu0 }
 0x1f5   : > { %v1713_v19 = vpop.f32.mrf.mxu3  ;;  %v1665_v20 = vadd.f32 %v1664_v18, %v1616_v17  ;;  %v1617_v22 = vpop.f32.mrf.mxu1  ;;  %v1569_v24 = vadd.f32 %v1568_v62, %v3136_v51  ;;  %v433_v51 = vld [vmem:[#allocation2 + $0x78] sm:$0xff] }
 0x1f7   : > { %v1714_v23 = vadd.f32 %v1713_v19, %v1665_v20  ;;  %v1618_v27 = vadd.f32 %v1617_v22, %v1569_v24 }
 0x1f9   : > { %v1735_v25 = vadd.f32 %v1714_v23, %v431_v21 }
 0x1fb   : > { %1751 = vst [vmem:[#allocation2 + $0x60] sm:$0xff] %v1735_v25 }
 0x1fc   : > { %v1666_v54 = vpop.f32.mrf.mxu2  ;;  %v1571_v31 = vpop.f32.mrf.mxu0 }
 0x1fd   : > { %v1715_v28 = vpop.f32.mrf.mxu3  ;;  %v1667_v30 = vadd.f32 %v1666_v54, %v1618_v27  ;;  %v1572_v32 = vadd.f32 %v1571_v31, %v3138_v60  ;;  %v1620_v34 = vpop.f32.mrf.mxu1 }
 0x1ff   : > { %v1716_v5 = vadd.f32 %v1715_v28, %v1667_v30  ;;  %v1621_v37 = vadd.f32 %v1620_v34, %v1572_v32 }
 0x201   : > { %v1736_v36 = vadd.f32 %v1716_v5, %v432_v29 }
 0x203   : > { %1752 = vst [vmem:[#allocation2 + $0x70] sm:$0xff] %v1736_v36 }
 0x204   : > { %v1669_v9 = vpop.f32.mrf.mxu2  ;;  %v1573_v40 = vpop.f32.mrf.mxu0 }
 0x205   : > { %v1718_v38 = vpop.f32.mrf.mxu3  ;;  %v1670_v39 = vadd.f32 %v1669_v9, %v1621_v37  ;;  %v1574_v26 = vadd.f32 %v1573_v40, %v3140_v4  ;;  %v1622_v44 = vpop.f32.mrf.mxu1 }
 0x207   : > { %v1719_v41 = vadd.f32 %v1718_v38, %v1670_v39  ;;  %v1623_v45 = vadd.f32 %v1622_v44, %v1574_v26 }
 0x209   : > { %v1737_v43 = vadd.f32 %v1719_v41, %v433_v51 }
 0x20b   : > { %1753 = vst [vmem:[#allocation2 + $0x78] sm:$0xff] %v1737_v43 }
 0x20c   : > { %v1671_v46 = vpop.f32.mrf.mxu2 }
 0x20d   : > { %v1672_v47 = vadd.f32 %v1671_v46, %v1623_v45  ;;  %v1720_v60 = vpop.f32.mrf.mxu3 }
 0x20f   : > { %v1721_v48 = vadd.f32 %v1720_v60, %v1672_v47  ;;  %1758 = sbr.rel (%p2494_p11) target bundleno = 554 (0x22a), region = 63 }
 0x211   : > { %v1738_v49 = vadd.f32 %v1721_v48, %v434_v16 }
 0x213   : > { %1754 = vst [vmem:[#allocation2 + $0x28] sm:$0xff] %v1738_v49 }
 0x214   : > { %v1759_v50 = vld [vmem:[#allocation2 + $0x30] sm:$0xff]  ;;  %v3162_v33 = vld [vmem:[%s3245_s2] ss:$0 sm:$0xff]  ;;  %v1761_v52 = vld [vmem:[#allocation2 + $0x58] sm:$0xff] }
 0x215   : > { %v1760_v4 = vld [vmem:[#allocation2] sm:$0xff]  ;;  %v1762_v53 = vld [vmem:[#allocation2 + $0x18] sm:$0xff]  ;;  %v1779_v56 = vadd.f32 %v3162_v33, %v1759_v50  ;;  %v1781_v58 = vadd.f32 %v3162_v33, %v1761_v52  ;;  %v1763_v35 = vld [vmem:[#allocation2 + $0x50] sm:$0xff] }
 0x216   : > { %v1780_v57 = vadd.f32 %v3162_v33, %v1760_v4  ;;  %v1782_v59 = vadd.f32 %v3162_v33, %v1762_v53  ;;  %v1764_v61 = vld [vmem:[#allocation2 + $0x68] sm:$0xff]  ;;  %v1783_v55 = vadd.f32 %v3162_v33, %v1763_v35  ;;  %v1767_v12 = vld [vmem:[#allocation2 + $0x40] sm:$0xff]  ;;  %v1769_v14 = vld [vmem:[#allocation2 + $0x10] sm:$0xff] }
 0x217   : > { %v1765_v0 = vld [vmem:[#allocation2 + $0x8] sm:$0xff]  ;;  %v1784_v1 = vadd.f32 %v3162_v33, %v1764_v61  ;;  %vm1795_vm0 = vcmp.ge.f32.partialorder %v1779_v56, 0.0  ;;  %v1811_v6 = vmul.f32 0.01, %v1779_v56  ;;  %vm1797_vm2 = vcmp.ge.f32.partialorder %v1781_v58, 0.0  ;;  %v1768_v13 = vld [vmem:[#allocation2 + $0x20] sm:$0xff] }
 0x218   : > { %v1785_v2 = vadd.f32 %v3162_v33, %v1765_v0  ;;  %v1766_v3 = vld [vmem:[#allocation2 + $0x48] sm:$0xff]  ;;  %vm1796_vm1 = vcmp.ge.f32.partialorder %v1780_v57, 0.0  ;;  %v1812_v7 = vmul.f32 0.01, %v1780_v57  ;;  %v1813_v8 = vmul.f32 0.01, %v1781_v58 }
 0x219   : > { %vm1798_vm3 = vcmp.ge.f32.partialorder %v1782_v59, 0.0  ;;  %v1814_v10 = vmul.f32 0.01, %v1782_v59  ;;  %v1827_v42 = vsel %vm1795_vm0, %v1779_v56, %v1811_v6  ;;  %vm1799_vm4 = vcmp.ge.f32.partialorder %v1783_v55, 0.0  ;;  %v1770_v19 = vld [vmem:[#allocation2 + $0x38] sm:$0xff]  ;;  %v1771_v27 = vld [vmem:[#allocation2 + $0x60] sm:$0xff] }
 0x21a   : > { %v1828_v11 = vsel %vm1796_vm1, %v1780_v57, %v1812_v7  ;;  %v1815_v63 = vmul.f32 0.01, %v1783_v55  ;;  %1843 = vst [vmem:[%s3246_s3] sm:$0xff] %v1827_v42  ;;  %v1829_v15 = vsel %vm1797_vm2, %v1781_v58, %v1813_v8  ;;  %vm1800_vm5 = vcmp.ge.f32.partialorder %v1784_v1, 0.0  ;;  %v1772_v54 = vld [vmem:[#allocation2 + $0x70] sm:$0xff]  ;;  %v1773_v29 = vld [vmem:[#allocation2 + $0x78] sm:$0xff]  ;;  %v1774_v5 = vld [vmem:[#allocation2 + $0x28] sm:$0xff] }
 0x21b   : > { %v1830_v17 = vsel %vm1798_vm3, %v1782_v59, %v1814_v10  ;;  %v1816_v18 = vmul.f32 0.01, %v1784_v1  ;;  %1844 = vst [vmem:[%s3246_s3 + $0x8] sm:$0xff] %v1828_v11  ;;  %vm1801_vm6 = vcmp.ge.f32.partialorder %v1785_v2, 0.0  ;;  %v1817_v62 = vmul.f32 0.01, %v1785_v2 }
 0x21c   : > { %v1831_v20 = vsel %vm1799_vm4, %v1783_v55, %v1815_v63  ;;  %v1786_v21 = vadd.f32 %v3162_v33, %v1766_v3  ;;  %1845 = vst [vmem:[%s3246_s3 + $0x10] sm:$0xff] %v1829_v15  ;;  %v1787_v23 = vadd.f32 %v3162_v33, %v1767_v12  ;;  %v1788_v24 = vadd.f32 %v3162_v33, %v1768_v13 }
 0x21d   : > { %v1832_v22 = vsel %vm1800_vm5, %v1784_v1, %v1816_v18  ;;  %v1789_v25 = vadd.f32 %v3162_v33, %v1769_v14  ;;  %1846 = vst [vmem:[%s3246_s3 + $0x18] sm:$0xff] %v1830_v17  ;;  %v1833_v28 = vsel %vm1801_vm6, %v1785_v2, %v1817_v62  ;;  %v1790_v31 = vadd.f32 %v3162_v33, %v1770_v19 }
 0x21e   : > { %vm1802_vm7 = vcmp.ge.f32.partialorder %v1786_v21, 0.0  ;;  %v1818_v30 = vmul.f32 0.01, %v1786_v21  ;;  %1847 = vst [vmem:[%s3246_s3 + $0x20] sm:$0xff] %v1831_v20  ;;  %vm1803_vm8 = vcmp.ge.f32.partialorder %v1787_v23, 0.0  ;;  %vm1804_vm9 = vcmp.ge.f32.partialorder %v1788_v24, 0.0 }
 0x21f   : > { %v1819_v32 = vmul.f32 0.01, %v1787_v23  ;;  %vm1805_vm10 = vcmp.ge.f32.partialorder %v1789_v25, 0.0  ;;  %1848 = vst [vmem:[%s3246_s3 + $0x28] sm:$0xff] %v1832_v22  ;;  %v1820_v36 = vmul.f32 0.01, %v1788_v24  ;;  %v1791_v39 = vadd.f32 %v3162_v33, %v1771_v27 }
 0x220   : > { %v1834_v34 = vsel %vm1802_vm7, %v1786_v21, %v1818_v30  ;;  %v1821_v37 = vmul.f32 0.01, %v1789_v25  ;;  %vm1806_vm11 = vcmp.ge.f32.partialorder %v1790_v31, 0.0  ;;  %1849 = vst [vmem:[%s3246_s3 + $0x30] sm:$0xff] %v1833_v28  ;;  %v1822_v38 = vmul.f32 0.01, %v1790_v31 }
 0x221   : > { %v1835_v9 = vsel %vm1803_vm8, %v1787_v23, %v1819_v32  ;;  %v1792_v40 = vadd.f32 %v3162_v33, %v1772_v54  ;;  %1850 = vst [vmem:[%s3246_s3 + $0x38] sm:$0xff] %v1834_v34  ;;  %v1836_v51 = vsel %vm1804_vm9, %v1788_v24, %v1820_v36  ;;  %v1793_v26 = vadd.f32 %v3162_v33, %v1773_v29 }
 0x222   : > { %v1837_v41 = vsel %vm1805_vm10, %v1789_v25, %v1821_v37  ;;  %v1794_v43 = vadd.f32 %v3162_v33, %v1774_v5  ;;  %1851 = vst [vmem:[%s3246_s3 + $0x40] sm:$0xff] %v1835_v9  ;;  %v1838_v44 = vsel %vm1806_vm11, %v1790_v31, %v1822_v38  ;;  %vm1807_vm12 = vcmp.ge.f32.partialorder %v1791_v39, 0.0 }
 0x223   : > { %v1823_v45 = vmul.f32 0.01, %v1791_v39  ;;  %vm1808_vm13 = vcmp.ge.f32.partialorder %v1792_v40, 0.0  ;;  %1852 = vst [vmem:[%s3246_s3 + $0x48] sm:$0xff] %v1836_v51  ;;  %v1824_v46 = vmul.f32 0.01, %v1792_v40 }
 0x224   : > { %vm1809_vm14 = vcmp.ge.f32.partialorder %v1793_v26, 0.0  ;;  %v1825_v47 = vmul.f32 0.01, %v1793_v26  ;;  %1853 = vst [vmem:[%s3246_s3 + $0x50] sm:$0xff] %v1837_v41  ;;  %vm1810_vm15 = vcmp.ge.f32.partialorder %v1794_v43, 0.0 }
 0x225   : > { %v1839_v16 = vsel %vm1807_vm12, %v1791_v39, %v1823_v45  ;;  %v1826_v60 = vmul.f32 0.01, %v1794_v43  ;;  %1854 = vst [vmem:[%s3246_s3 + $0x58] sm:$0xff] %v1838_v44  ;;  %v1840_v48 = vsel %vm1808_vm13, %v1792_v40, %v1824_v46 }
 0x226   : > { %v1841_v49 = vsel %vm1809_vm14, %v1793_v26, %v1825_v47  ;;  %1855 = vst [vmem:[%s3246_s3 + $0x60] sm:$0xff] %v1839_v16 }
 0x227   : > { %v1842_v50 = vsel %vm1810_vm15, %v1794_v43, %v1826_v60  ;;  %1856 = vst [vmem:[%s3246_s3 + $0x68] sm:$0xff] %v1840_v48 }
 0x228   : > { %1857 = vst [vmem:[%s3246_s3 + $0x70] sm:$0xff] %v1841_v49 }
 0x229   : > { %1858 = vst [vmem:[%s3246_s3 + $0x78] sm:$0xff] %v1842_v50 }
 0x22a PF: > { %s13_s16 = sadd.s32 1, %s2708_s16   ;;  %s3247_s12 = smov %s2696_s13 }
 0x22b   : > { %p10_p12 = scmp.ge.s32.totalorder %s13_s16, 4   ;;  %s3248_s13 = smov %s2766_s20 }
 0x22c   : > { %s3249_s14 = smov %s2704_s15  ;;  %s3250_s15 = smov %s3252_s17 }
 0x22d   :  { %12 = sbr.rel (!%p10_p12) target bundleno = 3 (0x3), region = 104 }

// kernel: forward.15
= control target key start
LH: loop header
LB: loop body
LE: loop exit
PB: predicated region body
PF: predicated region fallthrough
CT: control target
= control target key end

     0   :  { %s1998_s12 = smov 0   ;;  %s2000_s13 = smov 0   ;;  %s2536_s0 = inlined_call_operand.vmem [shape: bf16[128,1152], index: 0, kind: input, shape index: {}]   ;;  %s2537_s1 = inlined_call_operand.vmem [shape: bf16[1152,256], index: 1, kind: input, shape index: {}]   ;;  %s2538_s2 = inlined_call_operand.vmem [shape: f32[1,256], index: 2, kind: input, shape index: {}]   ;;  %s2539_s3 = inlined_call_operand.vmem [shape: f32[128,256], index: 3, kind: output, shape index: {}]  }
   0x1   :  { %s2002_s14 = smov 0   ;;  %s2004_s15 = smov 0  }
   0x2   :  { %s2006_s16 = smov 0  }
   0x3 LB: > { %s25_s17 = sadd.s32 1, %s1971_s15  ;;  %p48_p1 = scmp.ne.s32.totalorder %s1963_s13, %s1959_s12  ;;  %s1975_s16 = sphi %s2006_s16, %s13_s16   ;;  %s1971_s15 = sphi %s2004_s15, %s2543_s15   ;;  %s1967_s14 = sphi %s2002_s14, %s2542_s14   ;;  %s1963_s13 = sphi %s2000_s13, %s2541_s13   ;;  %s1959_s12 = sphi %s1998_s12, %s2540_s12  }
   0x4   : > { %p26_p0 = scmp.ge.s32.totalorder %s25_s17, 3  ;;  %p49_p2 = scmp.eq.s32.totalorder %s1975_s16, 0 }
   0x5   : > { %s41_s19 = sadd.s32 1, %s1963_s13  ;;  %p1473_p5 = scmp.ge.s32.totalorder %s1975_s16, 3 }
   0x6   : > { %s2545_s17 = smov (%p26_p0, %s25_s17), 0  ;;  %p50_p3 = por %p49_p2, %p48_p1 }
   0x7   : > { %s37_s18 = ssub.s32 %s1971_s15, %s2545_s17  ;;  %164 = sbr.rel (%p1473_p5) target bundleno = 49 (0x31), region = 20 }
   0x8   : > { %p39_p4 = scmp.eq.s32.totalorder %s37_s18, 0 }
   0xa   : > { %s2033_s20 = scalar_select %p39_p4, %s1963_s13, %s41_s19  }
   0xc   : > { %167 = sbr.rel (!%p50_p3) target bundleno = 49 (0x31), region = 24  ;;  %s169_s21 = sand.u32 (%p50_p3), 1, %s1963_s13  }
   0xd   : > { %s1804_s22 = smul.u32 (%p50_p3), 12, %s1971_s15 }
   0xe   : > { %s1894_s23 = smul.u32 (%p50_p3), 192, %s169_s21 }
   0xf   : > { %s2041_s26 = scalar_lea.vmem (%p50_p3), %s2536_s0, %s1804_s22 }
  0x10   : > { %v192_v0 = vld [vmem:[%s2041_s26] sm:$0xff] (%p50_p3)  ;;  %v196_v2 = vld [vmem:[%s2041_s26 + $0x48] sm:$0xff] (%p50_p3)  ;;  %s2046_s27 = scalar_lea.vmem (%p50_p3), [#allocation3], %s1894_s23  ;;  %v200_v4 = vld [vmem:[%s2041_s26 + $0x90] sm:$0xff] (%p50_p3) }
  0x11   : > { %v194_v1 = vld [vmem:[%s2041_s26 + $0x24] sm:$0xff]  ;;  %193 = vst [vmem:[%s2046_s27] sm:$0xff] %v192_v0  ;;  %v198_v3 = vld [vmem:[%s2041_s26 + $0x6c] sm:$0xff]  ;;  %v202_v5 = vld [vmem:[%s2041_s26 + $0xb4] sm:$0xff] }
  0x12   : > { %195 = vst [vmem:[%s2046_s27 + $0xc] sm:$0xff] %v194_v1  ;;  %v204_v6 = vld [vmem:[%s2041_s26 + $0xd8] sm:$0xff]  ;;  %v208_v8 = vld [vmem:[%s2041_s26 + $0x120] sm:$0xff]  ;;  %v212_v10 = vld [vmem:[%s2041_s26 + $0x168] sm:$0xff] }
  0x13   : > { %197 = vst [vmem:[%s2046_s27 + $0x18] sm:$0xff] %v196_v2  ;;  %v206_v7 = vld [vmem:[%s2041_s26 + $0xfc] sm:$0xff]  ;;  %v210_v9 = vld [vmem:[%s2041_s26 + $0x144] sm:$0xff]  ;;  %v214_v11 = vld [vmem:[%s2041_s26 + $0x18c] sm:$0xff] }
  0x14   : > { %199 = vst [vmem:[%s2046_s27 + $0x24] sm:$0xff] %v198_v3  ;;  %v216_v12 = vld [vmem:[%s2041_s26 + $0x1b0] sm:$0xff]  ;;  %v220_v14 = vld [vmem:[%s2041_s26 + $0x1f8] sm:$0xff]  ;;  %v1475_v16 = vld [vmem:[%s2041_s26 + $0x8] sm:$0xf] }
  0x15   : > { %201 = vst [vmem:[%s2046_s27 + $0x30] sm:$0xff] %v200_v4  ;;  %v218_v13 = vld [vmem:[%s2041_s26 + $0x1d4] sm:$0xff]  ;;  %v222_v15 = vld [vmem:[%s2041_s26 + $0x21c] sm:$0xff]  ;;  %v1477_v17 = vld [vmem:[%s2041_s26 + $0x2c] sm:$0xf] }
  0x16   : > { %203 = vst [vmem:[%s2046_s27 + $0x3c] sm:$0xff] %v202_v5  ;;  %v1479_v18 = vld [vmem:[%s2041_s26 + $0x50] sm:$0xf]  ;;  %v1481_v19 = vld [vmem:[%s2041_s26 + $0x74] sm:$0xf] }
  0x17   : > { %205 = vst [vmem:[%s2046_s27 + $0x48] sm:$0xff] %v204_v6  ;;  %v1483_v20 = vld [vmem:[%s2041_s26 + $0x98] sm:$0xf]  ;;  %v1485_v21 = vld [vmem:[%s2041_s26 + $0xbc] sm:$0xf] }
  0x18   : > { %207 = vst [vmem:[%s2046_s27 + $0x54] sm:$0xff] %v206_v7  ;;  %v1487_v22 = vld [vmem:[%s2041_s26 + $0xe0] sm:$0xf]  ;;  %v1489_v23 = vld [vmem:[%s2041_s26 + $0x104] sm:$0xf] }
  0x19   : > { %209 = vst [vmem:[%s2046_s27 + $0x60] sm:$0xff] %v208_v8  ;;  %v1491_v24 = vld [vmem:[%s2041_s26 + $0x128] sm:$0xf]  ;;  %v1493_v25 = vld [vmem:[%s2041_s26 + $0x14c] sm:$0xf] }
  0x1a   : > { %211 = vst [vmem:[%s2046_s27 + $0x6c] sm:$0xff] %v210_v9  ;;  %v1495_v26 = vld [vmem:[%s2041_s26 + $0x170] sm:$0xf]  ;;  %v1497_v27 = vld [vmem:[%s2041_s26 + $0x194] sm:$0xf] }
  0x1b   : > { %213 = vst [vmem:[%s2046_s27 + $0x78] sm:$0xff] %v212_v10  ;;  %v1499_v28 = vld [vmem:[%s2041_s26 + $0x1b8] sm:$0xf]  ;;  %v1501_v29 = vld [vmem:[%s2041_s26 + $0x1dc] sm:$0xf] }
  0x1c   : > { %215 = vst [vmem:[%s2046_s27 + $0x84] sm:$0xff] %v214_v11  ;;  %v1503_v30 = vld [vmem:[%s2041_s26 + $0x200] sm:$0xf]  ;;  %v1505_v31 = vld [vmem:[%s2041_s26 + $0x224] sm:$0xf] }
  0x1d   : > { %217 = vst [vmem:[%s2046_s27 + $0x90] sm:$0xff] %v216_v12 }
  0x1e   : > { %219 = vst [vmem:[%s2046_s27 + $0x9c] sm:$0xff] %v218_v13 }
  0x1f   : > { %221 = vst [vmem:[%s2046_s27 + $0xa8] sm:$0xff] %v220_v14 }
  0x20   : > { %223 = vst [vmem:[%s2046_s27 + $0xb4] sm:$0xff] %v222_v15 }
  0x21   : > { %1476 = vst [vmem:[%s2046_s27 + $0x8] sm:$0xf] %v1475_v16 }
  0x22   : > { %1478 = vst [vmem:[%s2046_s27 + $0x14] sm:$0xf] %v1477_v17 }
  0x23   : > { %1480 = vst [vmem:[%s2046_s27 + $0x20] sm:$0xf] %v1479_v18 }
  0x24   : > { %1482 = vst [vmem:[%s2046_s27 + $0x2c] sm:$0xf] %v1481_v19 }
  0x25   : > { %1484 = vst [vmem:[%s2046_s27 + $0x38] sm:$0xf] %v1483_v20 }
  0x26   : > { %1486 = vst [vmem:[%s2046_s27 + $0x44] sm:$0xf] %v1485_v21 }
  0x27   : > { %1488 = vst [vmem:[%s2046_s27 + $0x50] sm:$0xf] %v1487_v22 }
  0x28   : > { %1490 = vst [vmem:[%s2046_s27 + $0x5c] sm:$0xf] %v1489_v23 }
  0x29   : > { %1492 = vst [vmem:[%s2046_s27 + $0x68] sm:$0xf] %v1491_v24 }
  0x2a   : > { %1494 = vst [vmem:[%s2046_s27 + $0x74] sm:$0xf] %v1493_v25 }
  0x2b   : > { %1496 = vst [vmem:[%s2046_s27 + $0x80] sm:$0xf] %v1495_v26 }
  0x2c   : > { %1498 = vst [vmem:[%s2046_s27 + $0x8c] sm:$0xf] %v1497_v27 }
  0x2d   : > { %1500 = vst [vmem:[%s2046_s27 + $0x98] sm:$0xf] %v1499_v28 }
  0x2e   : > { %1502 = vst [vmem:[%s2046_s27 + $0xa4] sm:$0xf] %v1501_v29 }
  0x2f   : > { %1504 = vst [vmem:[%s2046_s27 + $0xb0] sm:$0xf] %v1503_v30 }
  0x30   : > { %1506 = vst [vmem:[%s2046_s27 + $0xbc] sm:$0xf] %v1505_v31 }
  0x31 PF: > { %p1507_p6 = scmp.ge.s32.totalorder %s1975_s16, 1  ;;  %p283_p7 = scmp.lt.s32.totalorder %s1975_s16, 4 }
  0x33   : > { %p284_p8 = pnand %p1507_p6, %p283_p7 }
  0x34   : > { %s290_s28 = sand.u32 (!%p284_p8), 1, %s1959_s12   ;;  %s334_s29 = smul.u32 (!%p284_p8), 48, %s1967_s14 }
  0x35   : > { %287 = sbr.rel (%p284_p8) target bundleno = 493 (0x1ed), region = 54  ;;  %p1510_p10 = scmp.ne.s32.totalorder (!%p284_p8), %s1967_s14, 0 }
  0x36   : > { %s1895_s30 = smul.u32 (!%p284_p8), 192, %s290_s28  ;;  %p336_p9 = scmp.lt.s32.totalorder (!%p284_p8), %s334_s29, 143 }
  0x38   : > { %s2118_s8 = scalar_lea.vmem (!%p284_p8), [#allocation3], %s1895_s30 }
  0x3a   : > { %s2547_s29 = smov (!%p336_p9, %s334_s29), 143  ;;  %366 = sbr.rel (%p1510_p10) target bundleno = 96 (0x60), region = 62 }
  0x3b   : > { %s1805_s4 = sshll.u32 %s2547_s29, 3 }
  0x3c   : > { %s2116_s7 = scalar_lea.vmem %s2537_s1, %s1805_s4 }
  0x3f   : > { %v1977_v32 = vmov 0.0  }
  0x40   : > { %367 = vst [vmem:[#allocation2 + $0xb0] sm:$0xff] %v1977_v32 }
  0x41   : > { %368 = vst [vmem:[#allocation2] sm:$0xff] %v1977_v32 }
  0x42   : > { %369 = vst [vmem:[#allocation2 + $0xd8] sm:$0xff] %v1977_v32 }
  0x43   : > { %370 = vst [vmem:[#allocation2 + $0x18] sm:$0xff] %v1977_v32 }
  0x44   : > { %371 = vst [vmem:[#allocation2 + $0x50] sm:$0xff] %v1977_v32 }
  0x45   : > { %372 = vst [vmem:[#allocation2 + $0x68] sm:$0xff] %v1977_v32 }
  0x46   : > { %373 = vst [vmem:[#allocation2 + $0x30] sm:$0xff] %v1977_v32 }
  0x47   : > { %374 = vst [vmem:[#allocation2 + $0x48] sm:$0xff] %v1977_v32 }
  0x48   : > { %375 = vst [vmem:[#allocation2 + $0x80] sm:$0xff] %v1977_v32 }
  0x49   : > { %376 = vst [vmem:[#allocation2 + $0x88] sm:$0xff] %v1977_v32 }
  0x4a   : > { %377 = vst [vmem:[#allocation2 + $0xe8] sm:$0xff] %v1977_v32 }
  0x4b   : > { %378 = vst [vmem:[#allocation2 + $0xb8] sm:$0xff] %v1977_v32 }
  0x4c   : > { %379 = vst [vmem:[#allocation2 + $0x60] sm:$0xff] %v1977_v32 }
  0x4d   : > { %380 = vst [vmem:[#allocation2 + $0xf0] sm:$0xff] %v1977_v32 }
  0x4e   : > { %381 = vst [vmem:[#allocation2 + $0x8] sm:$0xff] %v1977_v32 }
  0x4f   : > { %382 = vst [vmem:[#allocation2 + $0x78] sm:$0xff] %v1977_v32 }
  0x50   : > { %383 = vst [vmem:[#allocation2 + $0x38] sm:$0xff] %v1977_v32 }
  0x51   : > { %384 = vst [vmem:[#allocation2 + $0x58] sm:$0xff] %v1977_v32 }
  0x52   : > { %385 = vst [vmem:[#allocation2 + $0x40] sm:$0xff] %v1977_v32 }
  0x53   : > { %386 = vst [vmem:[#allocation2 + $0xc8] sm:$0xff] %v1977_v32 }
  0x54   : > { %387 = vst [vmem:[#allocation2 + $0xe0] sm:$0xff] %v1977_v32 }
  0x55   : > { %388 = vst [vmem:[#allocation2 + $0x90] sm:$0xff] %v1977_v32 }
  0x56   : > { %389 = vst [vmem:[#allocation2 + $0x70] sm:$0xff] %v1977_v32 }
  0x57   : > { %390 = vst [vmem:[#allocation2 + $0xc0] sm:$0xff] %v1977_v32 }
  0x58   : > { %391 = vst [vmem:[#allocation2 + $0xa8] sm:$0xff] %v1977_v32 }
  0x59   : > { %392 = vst [vmem:[#allocation2 + $0xd0] sm:$0xff] %v1977_v32 }
  0x5a   : > { %393 = vst [vmem:[#allocation2 + $0x10] sm:$0xff] %v1977_v32 }
  0x5b   : > { %394 = vst [vmem:[#allocation2 + $0x28] sm:$0xff] %v1977_v32 }
  0x5c   : > { %395 = vst [vmem:[#allocation2 + $0xa0] sm:$0xff] %v1977_v32 }
  0x5d   : > { %396 = vst [vmem:[#allocation2 + $0xf8] sm:$0xff] %v1977_v32 }
  0x5e   : > { %397 = vst [vmem:[#allocation2 + $0x20] sm:$0xff] %v1977_v32 }
  0x5f   : > { %398 = vst [vmem:[#allocation2 + $0x98] sm:$0xff] %v1977_v32 }
  0x60 PF: > { %v1665_v33 = vld [vmem:[%s2116_s7 + $0x70] sm:$0xf]  ;;  %v1845_v34 = vld [vmem:[%s2116_s7 + $0x74] sm:$0xf0]  ;;  %v1657_v38 = vld [vmem:[%s2116_s7 + $0x60] sm:$0xf] }
  0x61   : > { %v1729_v35 = vld [vmem:[%s2116_s7 + $0xf0] sm:$0xf]  ;;  %v1666_v36 = vor.u32 %v1845_v34, %v1665_v33  ;;  %v1861_v37 = vld [vmem:[%s2116_s7 + $0xf4] sm:$0xf0]  ;;  %v1843_v39 = vld [vmem:[%s2116_s7 + $0x64] sm:$0xf0] }
  0x62   : > { %v1730_v40 = vor.u32 %v1861_v37, %v1729_v35  ;;  %v1721_v41 = vld [vmem:[%s2116_s7 + $0xe0] sm:$0xf]  ;;  %v1859_v42 = vld [vmem:[%s2116_s7 + $0xe4] sm:$0xf0]  ;;  %v1658_v43 = vor.u32 %v1843_v39, %v1657_v38  ;;  %v1649_v45 = vld [vmem:[%s2116_s7 + $0x50] sm:$0xf] }
  0x63   : > { %879 = vmatpush.bf16.msra.mxu0 %v1666_v36  ;;  %1878 = vmatpush.bf16.msra.mxu2 %v1666_v36  ;;  %v1722_v44 = vor.u32 %v1859_v42, %v1721_v41  ;;  %v1841_v46 = vld [vmem:[%s2116_s7 + $0x54] sm:$0xf0]  ;;  %v1713_v47 = vld [vmem:[%s2116_s7 + $0xd0] sm:$0xf]  ;;  %v1641_v51 = vld [vmem:[%s2116_s7 + $0x40] sm:$0xf] }
  0x64   : > { %928 = vmatpush.bf16.msra.mxu1 %v1730_v40  ;;  %1886 = vmatpush.bf16.msra.mxu3 %v1730_v40  ;;  %v1857_v48 = vld [vmem:[%s2116_s7 + $0xd4] sm:$0xf0]  ;;  %v1650_v49 = vor.u32 %v1841_v46, %v1649_v45  ;;  %v1839_v52 = vld [vmem:[%s2116_s7 + $0x44] sm:$0xf0]  ;;  %v1705_v53 = vld [vmem:[%s2116_s7 + $0xc0] sm:$0xf] }
  0x65   : > { %v1714_v50 = vor.u32 %v1857_v48, %v1713_v47  ;;  %v1855_v54 = vld [vmem:[%s2116_s7 + $0xc4] sm:$0xf0]  ;;  %v1642_v55 = vor.u32 %v1839_v52, %v1641_v51  ;;  %v1633_v57 = vld [vmem:[%s2116_s7 + $0x30] sm:$0xf]  ;;  %v1837_v58 = vld [vmem:[%s2116_s7 + $0x34] sm:$0xf0] }
  0x66   : > { %v1706_v56 = vor.u32 %v1855_v54, %v1705_v53  ;;  %v1697_v59 = vld [vmem:[%s2116_s7 + $0xb0] sm:$0xf]  ;;  %v1853_v60 = vld [vmem:[%s2116_s7 + $0xb4] sm:$0xf0]  ;;  %v1634_v61 = vor.u32 %v1837_v58, %v1633_v57  ;;  %v1625_v63 = vld [vmem:[%s2116_s7 + $0x20] sm:$0xf] }
  0x67   : > { %880 = vmatpush.bf16.msra.mxu0 %v1658_v43  ;;  %1879 = vmatpush.bf16.msra.mxu2 %v1658_v43  ;;  %v1698_v62 = vor.u32 %v1853_v60, %v1697_v59  ;;  %v1835_v0 = vld [vmem:[%s2116_s7 + $0x24] sm:$0xf0]  ;;  %v1689_v1 = vld [vmem:[%s2116_s7 + $0xa0] sm:$0xf]  ;;  %v1617_v5 = vld [vmem:[%s2116_s7 + $0x10] sm:$0xf] }
  0x68   : > { %929 = vmatpush.bf16.msra.mxu1 %v1722_v44  ;;  %1887 = vmatpush.bf16.msra.mxu3 %v1722_v44  ;;  %v1851_v2 = vld [vmem:[%s2116_s7 + $0xa4] sm:$0xf0]  ;;  %v1626_v3 = vor.u32 %v1835_v0, %v1625_v63  ;;  %v1833_v6 = vld [vmem:[%s2116_s7 + $0x14] sm:$0xf0]  ;;  %v1681_v7 = vld [vmem:[%s2116_s7 + $0x90] sm:$0xf] }
  0x69   : > { %v1690_v4 = vor.u32 %v1851_v2, %v1689_v1  ;;  %v1849_v8 = vld [vmem:[%s2116_s7 + $0x94] sm:$0xf0]  ;;  %v1618_v9 = vor.u32 %v1833_v6, %v1617_v5  ;;  %v1609_v10 = vld [vmem:[%s2116_s7] sm:$0xf]  ;;  %v1831_v12 = vld [vmem:[%s2116_s7 + $0x4] sm:$0xf0] }
  0x6a   : > { %v1682_v11 = vor.u32 %v1849_v8, %v1681_v7  ;;  %v1673_v13 = vld [vmem:[%s2116_s7 + $0x80] sm:$0xf]  ;;  %v1847_v14 = vld [vmem:[%s2116_s7 + $0x84] sm:$0xf0]  ;;  %v1807_v16 = vld [vmem:[%s2118_s8 + $0x8] sm:$0xf0]  ;;  %v1610_v23 = vor.u32 %v1831_v12, %v1609_v10 }
  0x6b   : > { %881 = vmatpush.bf16.msra.mxu0 %v1650_v49  ;;  %1880 = vmatpush.bf16.msra.mxu2 %v1650_v49  ;;  %v1513_v15 = vld [vmem:[%s2118_s8] sm:$0xf]  ;;  %v1819_v18 = vld [vmem:[%s2118_s8 + $0x68] sm:$0xf0]  ;;  %v1844_v19 = vld [vmem:[%s2116_s7 + $0x74] sm:$0xf]  ;;  %v1674_v27 = vor.u32 %v1847_v14, %v1673_v13 }
  0x6c   : > { %930 = vmatpush.bf16.msra.mxu1 %v1714_v50  ;;  %1888 = vmatpush.bf16.msra.mxu3 %v1714_v50  ;;  %v1561_v17 = vld [vmem:[%s2118_s8 + $0x60] sm:$0xf]  ;;  %v1667_v20 = vld [vmem:[%s2116_s7 + $0x78] sm:$0xf0]  ;;  %v1793_v21 = vld [vmem:[%s2116_s7 + $0x170] sm:$0xf]  ;;  %v2170_v36 = vor.u32 %v1807_v16, %v1513_v15 }
  0x6d   : > { %v1877_v22 = vld [vmem:[%s2116_s7 + $0x174] sm:$0xf0]  ;;  %v1806_v24 = vld [vmem:[%s2118_s8 + $0x4] sm:$0xf]  ;;  %v1515_v25 = vld [vmem:[%s2118_s8 + $0xc] sm:$0xf0]  ;;  %v1670_v31 = vor.u32 %v1844_v19, %v1667_v20  ;;  %v2172_v37 = vor.u32 %v1819_v18, %v1561_v17 }
  0x6e   : > { %v1818_v26 = vld [vmem:[%s2118_s8 + $0x64] sm:$0xf]  ;;  %v1563_v28 = vld [vmem:[%s2118_s8 + $0x6c] sm:$0xf0]  ;;  %v1860_v29 = vld [vmem:[%s2116_s7 + $0xf4] sm:$0xf]  ;;  %v1794_v32 = vor.u32 %v1877_v22, %v1793_v21  ;;  %v2177_v41 = vor.u32 %v1806_v24, %v1515_v25 }
  0x6f   : > { %882 = vmatpush.bf16.msra.mxu0 %v1642_v55  ;;  %1881 = vmatpush.bf16.msra.mxu2 %v1642_v55  ;;  %v1731_v30 = vld [vmem:[%s2116_s7 + $0xf8] sm:$0xf0]  ;;  %v1842_v33 = vld [vmem:[%s2116_s7 + $0x64] sm:$0xf]  ;;  %v1876_v34 = vld [vmem:[%s2116_s7 + $0x174] sm:$0xf]  ;;  %v2179_v42 = vor.u32 %v1818_v26, %v1563_v28 }
  0x70   : > { %931 = vmatpush.bf16.msra.mxu1 %v1706_v56  ;;  %1889 = vmatpush.bf16.msra.mxu3 %v1706_v56  ;;  %v1795_v35 = vld [vmem:[%s2116_s7 + $0x178] sm:$0xf0]  ;;  %v1659_v38 = vld [vmem:[%s2116_s7 + $0x68] sm:$0xf0]  ;;  %v1785_v39 = vld [vmem:[%s2116_s7 + $0x160] sm:$0xf]  ;;  %v1734_v43 = vor.u32 %v1860_v29, %v1731_v30 }
  0x71   : > { %v1875_v40 = vld [vmem:[%s2116_s7 + $0x164] sm:$0xf0]  ;;  %v1798_v44 = vor.u32 %v1876_v34, %v1795_v35  ;;  %v1858_v45 = vld [vmem:[%s2116_s7 + $0xe4] sm:$0xf]  ;;  %v1723_v46 = vld [vmem:[%s2116_s7 + $0xe8] sm:$0xf0]  ;;  %v1662_v47 = vor.u32 %v1842_v33, %v1659_v38 }
  0x72   : > { %v1786_v48 = vor.u32 %v1875_v40, %v1785_v39  ;;  %v1840_v49 = vld [vmem:[%s2116_s7 + $0x54] sm:$0xf]  ;;  %v1874_v50 = vld [vmem:[%s2116_s7 + $0x164] sm:$0xf]  ;;  %v1787_v51 = vld [vmem:[%s2116_s7 + $0x168] sm:$0xf0]  ;;  %v1726_v55 = vor.u32 %v1858_v45, %v1723_v46 }
  0x73   : > { %883 = vmatpush.bf16.msra.mxu0 %v1634_v61  ;;  %1882 = vmatpush.bf16.msra.mxu2 %v1634_v61  ;;  %v1651_v52 = vld [vmem:[%s2116_s7 + $0x58] sm:$0xf0]  ;;  %v1777_v53 = vld [vmem:[%s2116_s7 + $0x150] sm:$0xf]  ;;  %v1873_v54 = vld [vmem:[%s2116_s7 + $0x154] sm:$0xf0]  ;;  %v1790_v56 = vor.u32 %v1874_v50, %v1787_v51 }
  0x74   : > { %932 = vmatpush.bf16.msra.mxu1 %v1698_v62  ;;  %1890 = vmatpush.bf16.msra.mxu3 %v1698_v62  ;;  %v1856_v57 = vld [vmem:[%s2116_s7 + $0xd4] sm:$0xf]  ;;  %v1715_v58 = vld [vmem:[%s2116_s7 + $0xd8] sm:$0xf0]  ;;  %v1654_v59 = vor.u32 %v1840_v49, %v1651_v52  ;;  %v1778_v60 = vor.u32 %v1873_v54, %v1777_v53  ;;  %v1838_v61 = vld [vmem:[%s2116_s7 + $0x44] sm:$0xf] }
  0x75   : > { %v1872_v62 = vld [vmem:[%s2116_s7 + $0x154] sm:$0xf]  ;;  %v1779_v63 = vld [vmem:[%s2116_s7 + $0x158] sm:$0xf0]  ;;  %v1643_v0 = vld [vmem:[%s2116_s7 + $0x48] sm:$0xf0] }
  0x76   : > { %v1769_v1 = vld [vmem:[%s2116_s7 + $0x140] sm:$0xf]  ;;  %v1871_v2 = vld [vmem:[%s2116_s7 + $0x144] sm:$0xf0]  ;;  %v1854_v5 = vld [vmem:[%s2116_s7 + $0xc4] sm:$0xf] }
  0x77   : > { %884 = vmatpush.bf16.msra.mxu0 %v1626_v3  ;;  %1883 = vmatpush.bf16.msra.mxu2 %v1626_v3  ;;  %v1718_v3 = vor.u32 %v1856_v57, %v1715_v58  ;;  %v1707_v6 = vld [vmem:[%s2116_s7 + $0xc8] sm:$0xf0]  ;;  %v1525_v7 = vld [vmem:[%s2118_s8 + $0x18] sm:$0xf]  ;;  %v1810_v8 = vld [vmem:[%s2118_s8 + $0x20] sm:$0xf0]  ;;  %v1770_v12 = vor.u32 %v1871_v2, %v1769_v1 }
  0x78   : > { %933 = vmatpush.bf16.msra.mxu1 %v1690_v4  ;;  %1891 = vmatpush.bf16.msra.mxu3 %v1690_v4  ;;  %v1782_v4 = vor.u32 %v1872_v62, %v1779_v63  ;;  %v1822_v10 = vld [vmem:[%s2118_s8 + $0x80] sm:$0xf0]  ;;  %v1836_v13 = vld [vmem:[%s2116_s7 + $0x34] sm:$0xf]  ;;  %v1771_v15 = vld [vmem:[%s2116_s7 + $0x148] sm:$0xf0] }
  0x79   : > { %v1870_v14 = vld [vmem:[%s2116_s7 + $0x144] sm:$0xf]  ;;  %v1635_v16 = vld [vmem:[%s2116_s7 + $0x38] sm:$0xf0]  ;;  %v1761_v17 = vld [vmem:[%s2116_s7 + $0x130] sm:$0xf] }
  0x7a   : > { %v1869_v18 = vld [vmem:[%s2116_s7 + $0x134] sm:$0xf0]  ;;  %v1809_v19 = vld [vmem:[%s2118_s8 + $0x1c] sm:$0xf]  ;;  %v1527_v20 = vld [vmem:[%s2118_s8 + $0x24] sm:$0xf0]  ;;  %v1774_v24 = vor.u32 %v1870_v14, %v1771_v15 }
  0x7b   : > { %885 = vmatpush.bf16.msra.mxu0 %v1618_v9  ;;  %1884 = vmatpush.bf16.msra.mxu2 %v1618_v9  ;;  %v1573_v9 = vld [vmem:[%s2118_s8 + $0x78] sm:$0xf]  ;;  %v1821_v21 = vld [vmem:[%s2118_s8 + $0x7c] sm:$0xf]  ;;  %v1575_v22 = vld [vmem:[%s2118_s8 + $0x84] sm:$0xf0]  ;;  %v1762_v28 = vor.u32 %v1869_v18, %v1761_v17  ;;  %v2229_v39 = vor.u32 %v1809_v19, %v1527_v20 }
  0x7c   : > { %934 = vmatpush.bf16.msra.mxu1 %v1682_v11  ;;  %1892 = vmatpush.bf16.msra.mxu3 %v1682_v11  ;;  %v1646_v11 = vor.u32 %v1838_v61, %v1643_v0  ;;  %v1852_v25 = vld [vmem:[%s2116_s7 + $0xb4] sm:$0xf]  ;;  %v1699_v26 = vld [vmem:[%s2116_s7 + $0xb8] sm:$0xf0]  ;;  %v1834_v29 = vld [vmem:[%s2116_s7 + $0x24] sm:$0xf]  ;;  %v2224_v33 = vor.u32 %v1822_v10, %v1573_v9  ;;  %v2231_v40 = vor.u32 %v1821_v21, %v1575_v22 }
  0x7d   : > { %v1868_v30 = vld [vmem:[%s2116_s7 + $0x134] sm:$0xf]  ;;  %v1627_v34 = vld [vmem:[%s2116_s7 + $0x28] sm:$0xf0]  ;;  %v1753_v35 = vld [vmem:[%s2116_s7 + $0x120] sm:$0xf] }
  0x7e   : > { %v1867_v38 = vld [vmem:[%s2116_s7 + $0x124] sm:$0xf0]  ;;  %v1630_v45 = vor.u32 %v1834_v29, %v1627_v34  ;;  %v1832_v49 = vld [vmem:[%s2116_s7 + $0x14] sm:$0xf]  ;;  %v1619_v50 = vld [vmem:[%s2116_s7 + $0x18] sm:$0xf0] }
  0x7f   : > { %886 = vmatpush.bf16.msra.mxu0 %v1610_v23  ;;  %1885 = vmatpush.bf16.msra.mxu2 %v1610_v23  ;;  %v1710_v23 = vor.u32 %v1854_v5, %v1707_v6  ;;  %v1754_v46 = vor.u32 %v1867_v38, %v1753_v35  ;;  %v1866_v51 = vld [vmem:[%s2116_s7 + $0x124] sm:$0xf]  ;;  %v1755_v53 = vld [vmem:[%s2116_s7 + $0x128] sm:$0xf0]  ;;  %v1745_v54 = vld [vmem:[%s2116_s7 + $0x110] sm:$0xf] }
  0x80   : > { %935 = vmatpush.bf16.msra.mxu1 %v1674_v27  ;;  %1893 = vmatpush.bf16.msra.mxu3 %v1674_v27  ;;  %v1638_v27 = vor.u32 %v1836_v13, %v1635_v16  ;;  %v1758_v57 = vor.u32 %v1866_v51, %v1755_v53  ;;  %v1830_v61 = vld [vmem:[%s2116_s7 + $0x4] sm:$0xf]  ;;  %v1611_v62 = vld [vmem:[%s2116_s7 + $0x8] sm:$0xf0]  ;;  %v1864_v63 = vld [vmem:[%s2116_s7 + $0x114] sm:$0xf] }
  0x81   : > { %v1747_v0 = vld [vmem:[%s2116_s7 + $0x118] sm:$0xf0]  ;;  %v1737_v1 = vld [vmem:[%s2116_s7 + $0x100] sm:$0xf]  ;;  %v1863_v2 = vld [vmem:[%s2116_s7 + $0x104] sm:$0xf0]  ;;  %v1614_v6 = vor.u32 %v1830_v61, %v1611_v62 }
  0x82   : > { %887 = vmatmul.bf16.vlgmr.msra.gmra.mxu0 %v2170_v36  ;;  %907 = vmatmul.bf16.vlgmr.msra.gmra.mxu2 %v2172_v37  ;;  %v1846_v5 = vld [vmem:[%s2116_s7 + $0x84] sm:$0xf]  ;;  %v1739_v10 = vld [vmem:[%s2116_s7 + $0x108] sm:$0xf0]  ;;  %v1585_v13 = vld [vmem:[%s2118_s8 + $0x90] sm:$0xf] }
  0x83   : > { %977 = vmatpush.bf16.msrb.mxu2 %v1794_v32  ;;  %936 = vmatmul.bf16.vlgmr.msra.gmra.mxu1 %v2177_v41  ;;  %v2222_v32 = vor.u32 %v1810_v8, %v1525_v7  ;;  %v1738_v7 = vor.u32 %v1863_v2, %v1737_v1  ;;  %v1675_v8 = vld [vmem:[%s2116_s7 + $0x88] sm:$0xf0]  ;;  %v1862_v9 = vld [vmem:[%s2116_s7 + $0x104] sm:$0xf]  ;;  %v1825_v14 = vld [vmem:[%s2118_s8 + $0x98] sm:$0xf0] }
  0x84   : > { %1026 = vmatpush.bf16.msrb.mxu3 %v1670_v31  ;;  %1075 = vmatpush.bf16.msrb.mxu0 %v1734_v43  ;;  %v1763_v31 = vld [vmem:[%s2116_s7 + $0x138] sm:$0xf0]  ;;  %v1702_v43 = vor.u32 %v1852_v25, %v1699_v26  ;;  %v1812_v15 = vld [vmem:[%s2118_s8 + $0x34] sm:$0xf]  ;;  %v1539_v16 = vld [vmem:[%s2118_s8 + $0x3c] sm:$0xf0]  ;;  %v1678_v19 = vor.u32 %v1846_v5, %v1675_v8  ;;  %v1742_v20 = vor.u32 %v1862_v9, %v1739_v10 }
  0x85   : > { %956 = vmatmul.bf16.vlgmr.msra.gmra.mxu3 %v2179_v42  ;;  %1124 = vmatpush.bf16.msrb.mxu1 %v1798_v44  ;;  %v1766_v44 = vor.u32 %v1868_v30, %v1763_v31  ;;  %v1824_v17 = vld [vmem:[%s2118_s8 + $0x94] sm:$0xf]  ;;  %v1587_v18 = vld [vmem:[%s2118_s8 + $0x9c] sm:$0xf0]  ;;  %v2265_v22 = vor.u32 %v1825_v14, %v1585_v13  ;;  %v1549_v25 = vld [vmem:[%s2118_s8 + $0x48] sm:$0xf] }
  0x86   : > { %v1816_v26 = vld [vmem:[%s2118_s8 + $0x50] sm:$0xf0]  ;;  %v1815_v29 = vld [vmem:[%s2118_s8 + $0x4c] sm:$0xf]  ;;  %v1551_v30 = vld [vmem:[%s2118_s8 + $0x54] sm:$0xf0] }
  0x87   : > { %978 = vmatpush.bf16.msrb.mxu2 %v1786_v48  ;;  %v1691_v48 = vld [vmem:[%s2116_s7 + $0xa8] sm:$0xf0]  ;;  %v1599_v34 = vld [vmem:[%s2118_s8 + $0xb4] sm:$0xf0]  ;;  %v1550_v35 = vor.u32 %v1816_v26, %v1549_v25  ;;  %p1799_p11 = scmp.ne.s32.totalorder %s1967_s14, 2 }
  0x88   : > { %1027 = vmatpush.bf16.msrb.mxu3 %v1662_v47  ;;  %1076 = vmatpush.bf16.msrb.mxu0 %v1726_v55  ;;  %v1850_v47 = vld [vmem:[%s2116_s7 + $0xa4] sm:$0xf]  ;;  %v1865_v55 = vld [vmem:[%s2116_s7 + $0x114] sm:$0xf0]  ;;  %v1827_v31 = vld [vmem:[%s2118_s8 + $0xac] sm:$0xf] }
  0x89   : > { %1125 = vmatpush.bf16.msrb.mxu1 %v1790_v56  ;;  %v1694_v52 = vor.u32 %v1850_v47, %v1691_v48  ;;  %v1622_v56 = vor.u32 %v1832_v49, %v1619_v50  ;;  %v1746_v58 = vor.u32 %v1865_v55, %v1745_v54  ;;  %v1533_v48 = vld [vmem:[%s2118_s8 + $0x20] sm:$0xf]  ;;  %v1811_v49 = vld [vmem:[%s2118_s8 + $0x28] sm:$0xf0]  ;;  %v1545_v51 = vld [vmem:[%s2118_s8 + $0x38] sm:$0xf] }
  0x8a   : > { %v1534_v50 = vor.u32 %v1811_v49, %v1533_v48  ;;  %v1593_v10 = vld [vmem:[%s2118_s8 + $0x98] sm:$0xf]  ;;  %v399_v49 = vld [vmem:[#allocation2 + $0xb0] sm:$0xff] }
  0x8b   : > { %979 = vmatpush.bf16.msrb.mxu2 %v1778_v60  ;;  %v1683_v60 = vld [vmem:[%s2116_s7 + $0x98] sm:$0xf0] }
  0x8c   : > { %1028 = vmatpush.bf16.msrb.mxu3 %v1654_v59  ;;  %1077 = vmatpush.bf16.msrb.mxu0 %v1718_v3  ;;  %v1848_v59 = vld [vmem:[%s2116_s7 + $0x94] sm:$0xf] }
  0x8d   : > { %1126 = vmatpush.bf16.msrb.mxu1 %v1782_v4  ;;  %v1686_v3 = vor.u32 %v1848_v59, %v1683_v60  ;;  %v1750_v4 = vor.u32 %v1864_v63, %v1747_v0  ;;  %v1581_v63 = vld [vmem:[%s2118_s8 + $0x80] sm:$0xf]  ;;  %v1823_v0 = vld [vmem:[%s2118_s8 + $0x88] sm:$0xf0] }
  0x8f   : > { %980 = vmatpush.bf16.msrb.mxu2 %v1770_v12  ;;  %v1813_v12 = vld [vmem:[%s2118_s8 + $0x38] sm:$0xf0] }
  0x90   : > { %1029 = vmatpush.bf16.msrb.mxu3 %v1646_v11  ;;  %1078 = vmatpush.bf16.msrb.mxu0 %v1710_v23  ;;  %v1537_v11 = vld [vmem:[%s2118_s8 + $0x30] sm:$0xf]  ;;  %v1542_v23 = vor.u32 %v1812_v15, %v1539_v16 }
  0x91   : > { %1127 = vmatpush.bf16.msrb.mxu1 %v1774_v24  ;;  %v1538_v21 = vor.u32 %v1813_v12, %v1537_v11  ;;  %v2267_v24 = vor.u32 %v1824_v17, %v1587_v18  ;;  %v1826_v11 = vld [vmem:[%s2118_s8 + $0xa0] sm:$0xf0] }
  0x92   : > { %892 = vmatmul.bf16.gmra.mxu0 %v2222_v32  ;;  %912 = vmatmul.bf16.gmra.mxu2 %v2224_v33  ;;  %v1594_v14 = vor.u32 %v1826_v11, %v1593_v10  ;;  %v403_v11 = vld [vmem:[#allocation2 + $0x50] sm:$0xff] }
  0x93   : > { %981 = vmatpush.bf16.msrb.mxu2 %v1762_v28  ;;  %941 = vmatmul.bf16.gmra.mxu1 %v2229_v39  ;;  %v1828_v28 = vld [vmem:[%s2118_s8 + $0xb0] sm:$0xf0] }
  0x94   : > { %1030 = vmatpush.bf16.msrb.mxu3 %v1638_v27  ;;  %1079 = vmatpush.bf16.msrb.mxu0 %v1702_v43  ;;  %v1597_v27 = vld [vmem:[%s2118_s8 + $0xa8] sm:$0xf]  ;;  %v1554_v43 = vor.u32 %v1815_v29, %v1551_v30 }
  0x95   : > { %961 = vmatmul.bf16.gmra.mxu3 %v2231_v40  ;;  %1128 = vmatpush.bf16.msrb.mxu1 %v1766_v44  ;;  %v2279_v38 = vor.u32 %v1828_v28, %v1597_v27  ;;  %v2281_v44 = vor.u32 %v1827_v31, %v1599_v34 }
  0x97   : > { %982 = vmatpush.bf16.msrb.mxu2 %v1754_v46  ;;  %v1808_v46 = vld [vmem:[%s2118_s8 + $0x10] sm:$0xf0] }
  0x98   : > { %1031 = vmatpush.bf16.msrb.mxu3 %v1630_v45  ;;  %1080 = vmatpush.bf16.msrb.mxu0 %v1694_v52  ;;  %v1521_v45 = vld [vmem:[%s2118_s8 + $0x8] sm:$0xf]  ;;  %v1814_v52 = vld [vmem:[%s2118_s8 + $0x40] sm:$0xf0] }
  0x99   : > { %1129 = vmatpush.bf16.msrb.mxu1 %v1758_v57  ;;  %v1522_v47 = vor.u32 %v1808_v46, %v1521_v45  ;;  %v1546_v53 = vor.u32 %v1814_v52, %v1545_v51 }
  0x9b   : > { %983 = vmatpush.bf16.msrb.mxu2 %v1746_v58 }
  0x9c   : > { %1032 = vmatpush.bf16.msrb.mxu3 %v1622_v56  ;;  %1081 = vmatpush.bf16.msrb.mxu0 %v1686_v3  ;;  %v1582_v3 = vor.u32 %v1823_v0, %v1581_v63 }
  0x9d   : > { %1130 = vmatpush.bf16.msrb.mxu1 %v1750_v4 }
  0x9f   : > { %984 = vmatpush.bf16.msrb.mxu2 %v1738_v7 }
  0xa0   : > { %1033 = vmatpush.bf16.msrb.mxu3 %v1614_v6  ;;  %1082 = vmatpush.bf16.msrb.mxu0 %v1678_v19 }
  0xa1   : > { %1131 = vmatpush.bf16.msrb.mxu1 %v1742_v20 }
  0xa2   : > { %897 = vmatmul.bf16.gmra.mxu0 %v1538_v21  ;;  %917 = vmatmul.bf16.gmra.mxu2 %v2265_v22 }
  0xa3   : > { %946 = vmatmul.bf16.gmra.mxu1 %v1542_v23 }
  0xa5   : > { %966 = vmatmul.bf16.gmra.mxu3 %v2267_v24 }
  0xb2   : > { %902 = vmatmul.bf16.gmra.mxu0 %v1550_v35  ;;  %922 = vmatmul.bf16.gmra.mxu2 %v2279_v38 }
  0xb3   : > { %951 = vmatmul.bf16.gmra.mxu1 %v1554_v43 }
  0xb5   : > { %971 = vmatmul.bf16.gmra.mxu3 %v2281_v44 }
  0xc2   : > { %985 = vmatmul.bf16.vlgmr.msrb.gmra.mxu2 %v1522_v47  ;;  %1083 = vmatmul.bf16.vlgmr.msrb.gmra.mxu0 %v2177_v41  ;;  %v1817_v41 = vld [vmem:[%s2118_s8 + $0x58] sm:$0xf0] }
  0xc3   : > { %1132 = vmatmul.bf16.vlgmr.msrb.gmra.mxu1 %v1522_v47 }
  0xc5   : > { %1034 = vmatmul.bf16.vlgmr.msrb.gmra.mxu3 %v2170_v36  ;;  %v1557_v36 = vld [vmem:[%s2118_s8 + $0x50] sm:$0xf] }
  0xc6   : > { %v1558_v54 = vor.u32 %v1817_v41, %v1557_v36  ;;  %v400_v41 = vld [vmem:[#allocation2] sm:$0xff] }
  0xd2   : > { %990 = vmatmul.bf16.gmra.mxu2 %v1534_v50  ;;  %1088 = vmatmul.bf16.gmra.mxu0 %v2229_v39  ;;  %v1820_v39 = vld [vmem:[%s2118_s8 + $0x70] sm:$0xf0] }
  0xd3   : > { %1137 = vmatmul.bf16.gmra.mxu1 %v1534_v50 }
  0xd5   : > { %1039 = vmatmul.bf16.gmra.mxu3 %v2222_v32  ;;  %v1569_v32 = vld [vmem:[%s2118_s8 + $0x68] sm:$0xf] }
  0xd6   : > { %v1570_v55 = vor.u32 %v1820_v39, %v1569_v32 }
  0xe2   : > { %995 = vmatmul.bf16.gmra.mxu2 %v1546_v53  ;;  %1093 = vmatmul.bf16.gmra.mxu0 %v1542_v23  ;;  %v1829_v23 = vld [vmem:[%s2118_s8 + $0xb8] sm:$0xf0] }
  0xe3   : > { %1142 = vmatmul.bf16.gmra.mxu1 %v1546_v53 }
  0xe5   : > { %1044 = vmatmul.bf16.gmra.mxu3 %v1538_v21  ;;  %v1605_v21 = vld [vmem:[%s2118_s8 + $0xb0] sm:$0xf] }
  0xe6   : > { %v1606_v27 = vor.u32 %v1829_v23, %v1605_v21 }
  0xf2   : > { %1000 = vmatmul.bf16.gmra.mxu2 %v1558_v54  ;;  %1098 = vmatmul.bf16.gmra.mxu0 %v1554_v43 }
  0xf3   : > { %1147 = vmatmul.bf16.gmra.mxu1 %v1558_v54 }
  0xf5   : > { %1049 = vmatmul.bf16.gmra.mxu3 %v1550_v35 }
  0xff   : > { %v2299_v56 = vpop.f32.mrf.mxu0 }
 0x100   : > { %v2301_v57 = vpop.f32.mrf.mxu1 }
 0x102   : > { %1005 = vmatmul.bf16.gmra.mxu2 %v1570_v55  ;;  %1103 = vmatmul.bf16.gmra.mxu0 %v2179_v42 }
 0x103   : > { %1152 = vmatmul.bf16.gmra.mxu1 %v1570_v55 }
 0x105   : > { %1054 = vmatmul.bf16.gmra.mxu3 %v2172_v37  ;;  %v908_v58 = vpop.f32.mrf.mxu2 }
 0x107   : > { %v2307_v61 = vpop.f32.mrf.mxu0 }
 0x108   : > { %v957_v59 = vpop.f32.mrf.mxu3  ;;  %v2309_v62 = vpop.f32.mrf.mxu1 }
 0x109   : > { %v2305_v60 = vadd.f32 %v957_v59, %v908_v58  ;;  %v940_v55 = vadd.f32 %v2309_v62, %v2307_v61  ;;  %v401_v58 = vld [vmem:[#allocation2 + $0xd8] sm:$0xff] }
 0x10d   : > { %v910_v1 = vpop.f32.mrf.mxu2 }
 0x10f   : > { %v2315_v42 = vpop.f32.mrf.mxu0 }
 0x110   : > { %v959_v2 = vpop.f32.mrf.mxu3  ;;  %v2317_v37 = vpop.f32.mrf.mxu1 }
 0x111   : > { %v2313_v4 = vadd.f32 %v959_v2, %v910_v1  ;;  %v402_v2 = vld [vmem:[#allocation2 + $0x18] sm:$0xff]  ;;  %v943_v10 = vadd.f32 %v2317_v37, %v2315_v42 }
 0x112   : > { %1010 = vmatmul.bf16.gmra.mxu2 %v1582_v3  ;;  %1108 = vmatmul.bf16.gmra.mxu0 %v2231_v40 }
 0x113   : > { %1157 = vmatmul.bf16.gmra.mxu1 %v1582_v3 }
 0x115   : > { %1059 = vmatmul.bf16.gmra.mxu3 %v2224_v33  ;;  %v913_v5 = vpop.f32.mrf.mxu2 }
 0x117   : > { %v2323_v8 = vpop.f32.mrf.mxu0 }
 0x118   : > { %v962_v6 = vpop.f32.mrf.mxu3  ;;  %v2325_v9 = vpop.f32.mrf.mxu1 }
 0x119   : > { %v2321_v7 = vadd.f32 %v962_v6, %v913_v5 }
 0x11d   : > { %v915_v12 = vpop.f32.mrf.mxu2 }
 0x11f   : > { %v2331_v40 = vpop.f32.mrf.mxu0 }
 0x120   : > { %v964_v13 = vpop.f32.mrf.mxu3  ;;  %v2333_v33 = vpop.f32.mrf.mxu1 }
 0x121   : > { %v2329_v15 = vadd.f32 %v964_v13, %v915_v12 }
 0x122   : > { %1015 = vmatmul.bf16.gmra.mxu2 %v1594_v14  ;;  %1113 = vmatmul.bf16.gmra.mxu0 %v2267_v24 }
 0x123   : > { %1162 = vmatmul.bf16.gmra.mxu1 %v1594_v14 }
 0x125   : > { %1064 = vmatmul.bf16.gmra.mxu3 %v2265_v22  ;;  %v918_v16 = vpop.f32.mrf.mxu2 }
 0x127   : > { %v2339_v19 = vpop.f32.mrf.mxu0 }
 0x128   : > { %v967_v17 = vpop.f32.mrf.mxu3  ;;  %v2341_v20 = vpop.f32.mrf.mxu1 }
 0x129   : > { %v2337_v18 = vadd.f32 %v967_v17, %v918_v16  ;;  %v404_v17 = vld [vmem:[#allocation2 + $0x68] sm:$0xff] }
 0x12d   : > { %v920_v25 = vpop.f32.mrf.mxu2 }
 0x12f   : > { %v2347_v29 = vpop.f32.mrf.mxu0 }
 0x130   : > { %v969_v26 = vpop.f32.mrf.mxu3  ;;  %v2349_v24 = vpop.f32.mrf.mxu1 }
 0x131   : > { %v2345_v28 = vadd.f32 %v969_v26, %v920_v25  ;;  %v945_v26 = vadd.f32 %v2325_v9, %v2323_v8 }
 0x132   : > { %1020 = vmatmul.bf16.gmra.mxu2 %v1606_v27  ;;  %1118 = vmatmul.bf16.gmra.mxu0 %v2281_v44  ;;  %v938_v44 = vadd.f32 %v2301_v57, %v2299_v56 }
 0x133   : > { %1167 = vmatmul.bf16.gmra.mxu1 %v1606_v27  ;;  %v405_v27 = vld [vmem:[#allocation2 + $0x30] sm:$0xff] }
 0x135   : > { %1069 = vmatmul.bf16.gmra.mxu3 %v2279_v38  ;;  %v923_v22 = vpop.f32.mrf.mxu2 }
 0x137   : > { %v2355_v34 = vpop.f32.mrf.mxu0 }
 0x138   : > { %v972_v30 = vpop.f32.mrf.mxu3  ;;  %v2357_v35 = vpop.f32.mrf.mxu1 }
 0x139   : > { %v2353_v31 = vadd.f32 %v972_v30, %v923_v22 }
 0x13d   : > { %v925_v43 = vpop.f32.mrf.mxu2 }
 0x13f   : > { %v1084_v47 = vpop.f32.mrf.mxu0 }
 0x140   : > { %v974_v45 = vpop.f32.mrf.mxu3  ;;  %v1133_v48 = vpop.f32.mrf.mxu1 }
 0x141   : > { %v2359_v46 = vadd.f32 %v974_v45, %v925_v43 }
 0x145   : > { %v986_v38 = vpop.f32.mrf.mxu2 }
 0x146   : > { %v987_v50 = vadd.f32 %v986_v38, %v938_v44  ;;  %v948_v38 = vadd.f32 %v2333_v33, %v2331_v40 }
 0x147   : > { %v1086_v53 = vpop.f32.mrf.mxu0 }
 0x148   : > { %v1035_v51 = vpop.f32.mrf.mxu3  ;;  %v1173_v36 = vadd.f32 %v987_v50, %v399_v49  ;;  %v1135_v54 = vpop.f32.mrf.mxu1  ;;  %v407_v50 = vld [vmem:[#allocation2 + $0x80] sm:$0xff] }
 0x149   : > { %v1085_v52 = vadd.f32 %v1084_v47, %v1035_v51  ;;  %v406_v47 = vld [vmem:[#allocation2 + $0x48] sm:$0xff] }
 0x14a   : > { %1205 = vst [vmem:[#allocation2 + $0xb0] sm:$0xff] %v1173_v36 }
 0x14b   : > { %v1134_v32 = vadd.f32 %v1133_v48, %v1085_v52 }
 0x14d   : > { %v1174_v39 = vadd.f32 %v1134_v32, %v400_v41  ;;  %v988_v59 = vpop.f32.mrf.mxu2  ;;  %v408_v41 = vld [vmem:[#allocation2 + $0x88] sm:$0xff] }
 0x14e   : > { %v989_v63 = vadd.f32 %v988_v59, %v940_v55  ;;  %v950_v55 = vadd.f32 %v2341_v20, %v2339_v19 }
 0x14f   : > { %1206 = vst [vmem:[#allocation2] sm:$0xff] %v1174_v39  ;;  %v1089_v0 = vpop.f32.mrf.mxu0 }
 0x150   : > { %v1037_v56 = vpop.f32.mrf.mxu3  ;;  %v1175_v1 = vadd.f32 %v989_v63, %v401_v58  ;;  %v1138_v3 = vpop.f32.mrf.mxu1  ;;  %v409_v58 = vld [vmem:[#allocation2 + $0xe8] sm:$0xff] }
 0x151   : > { %v1087_v57 = vadd.f32 %v1086_v53, %v1037_v56 }
 0x152   : > { %1207 = vst [vmem:[#allocation2 + $0xd8] sm:$0xff] %v1175_v1 }
 0x153   : > { %v1136_v5 = vadd.f32 %v1135_v54, %v1087_v57 }
 0x155   : > { %v1176_v6 = vadd.f32 %v1136_v5, %v402_v2  ;;  %v991_v12 = vpop.f32.mrf.mxu2  ;;  %v953_v5 = vadd.f32 %v2349_v24, %v2347_v29 }
 0x156   : > { %v992_v61 = vadd.f32 %v991_v12, %v943_v10 }
 0x157   : > { %1208 = vst [vmem:[#allocation2 + $0x18] sm:$0xff] %v1176_v6  ;;  %v1091_v14 = vpop.f32.mrf.mxu0  ;;  %v411_v6 = vld [vmem:[#allocation2 + $0x60] sm:$0xff] }
 0x158   : > { %v1040_v62 = vpop.f32.mrf.mxu3  ;;  %v1177_v16 = vadd.f32 %v992_v61, %v403_v11  ;;  %v1140_v21 = vpop.f32.mrf.mxu1 }
 0x159   : > { %v1090_v13 = vadd.f32 %v1089_v0, %v1040_v62  ;;  %v410_v0 = vld [vmem:[#allocation2 + $0xb8] sm:$0xff]  ;;  %v412_v62 = vld [vmem:[#allocation2 + $0xf0] sm:$0xff] }
 0x15a   : > { %1209 = vst [vmem:[#allocation2 + $0x50] sm:$0xff] %v1177_v16 }
 0x15b   : > { %v1139_v23 = vadd.f32 %v1138_v3, %v1090_v13 }
 0x15d   : > { %v1178_v25 = vadd.f32 %v1139_v23, %v404_v17  ;;  %v993_v22 = vpop.f32.mrf.mxu2  ;;  %v955_v17 = vadd.f32 %v2357_v35, %v2355_v34 }
 0x15e   : > { %v994_v42 = vadd.f32 %v993_v22, %v945_v26  ;;  %v414_v22 = vld [vmem:[#allocation2 + $0x78] sm:$0xff] }
 0x15f   : > { %1210 = vst [vmem:[#allocation2 + $0x68] sm:$0xff] %v1178_v25  ;;  %v1094_v43 = vpop.f32.mrf.mxu0 }
 0x160   : > { %v1042_v37 = vpop.f32.mrf.mxu3  ;;  %v1179_v45 = vadd.f32 %v994_v42, %v405_v27  ;;  %v1143_v48 = vpop.f32.mrf.mxu1 }
 0x161   : > { %v1092_v30 = vadd.f32 %v1091_v14, %v1042_v37 }
 0x162   : > { %1211 = vst [vmem:[#allocation2 + $0x30] sm:$0xff] %v1179_v45 }
 0x163   : > { %v1141_v44 = vadd.f32 %v1140_v21, %v1092_v30  ;;  %v413_v21 = vld [vmem:[#allocation2 + $0x8] sm:$0xff] }
 0x165   : > { %v1180_v49 = vadd.f32 %v1141_v44, %v406_v47  ;;  %v996_v51 = vpop.f32.mrf.mxu2 }
 0x166   : > { %v997_v8 = vadd.f32 %v996_v51, %v948_v38 }
 0x167   : > { %1212 = vst [vmem:[#allocation2 + $0x48] sm:$0xff] %v1180_v49  ;;  %v1096_v53 = vpop.f32.mrf.mxu0  ;;  %v416_v49 = vld [vmem:[#allocation2 + $0x58] sm:$0xff] }
 0x168   : > { %v1045_v9 = vpop.f32.mrf.mxu3  ;;  %v1181_v36 = vadd.f32 %v997_v8, %v407_v50  ;;  %v1145_v54 = vpop.f32.mrf.mxu1  ;;  %v417_v8 = vld [vmem:[#allocation2 + $0x40] sm:$0xff] }
 0x169   : > { %v1095_v52 = vadd.f32 %v1094_v43, %v1045_v9  ;;  %v415_v43 = vld [vmem:[#allocation2 + $0x38] sm:$0xff] }
 0x16a   : > { %1213 = vst [vmem:[#allocation2 + $0x80] sm:$0xff] %v1181_v36 }
 0x16b   : > { %v1144_v32 = vadd.f32 %v1143_v48, %v1095_v52 }
 0x16d   : > { %v1182_v39 = vadd.f32 %v1144_v32, %v408_v41  ;;  %v998_v59 = vpop.f32.mrf.mxu2  ;;  %v418_v32 = vld [vmem:[#allocation2 + $0xc8] sm:$0xff] }
 0x16e   : > { %v999_v40 = vadd.f32 %v998_v59, %v950_v55 }
 0x16f   : > { %1214 = vst [vmem:[#allocation2 + $0x88] sm:$0xff] %v1182_v39  ;;  %v1099_v56 = vpop.f32.mrf.mxu0 }
 0x170   : > { %v1047_v33 = vpop.f32.mrf.mxu3  ;;  %v1183_v57 = vadd.f32 %v999_v40, %v409_v58  ;;  %v1148_v1 = vpop.f32.mrf.mxu1  ;;  %v419_v58 = vld [vmem:[#allocation2 + $0xe0] sm:$0xff] }
 0x171   : > { %v1097_v63 = vadd.f32 %v1096_v53, %v1047_v33 }
 0x172   : > { %1215 = vst [vmem:[#allocation2 + $0xe8] sm:$0xff] %v1183_v57 }
 0x173   : > { %v1146_v2 = vadd.f32 %v1145_v54, %v1097_v63 }
 0x175   : > { %v1184_v3 = vadd.f32 %v1146_v2, %v410_v0  ;;  %v1001_v10 = vpop.f32.mrf.mxu2  ;;  %v420_v0 = vld [vmem:[#allocation2 + $0x90] sm:$0xff] }
 0x176   : > { %v1002_v19 = vadd.f32 %v1001_v10, %v953_v5 }
 0x177   : > { %1216 = vst [vmem:[#allocation2 + $0xb8] sm:$0xff] %v1184_v3  ;;  %v1101_v12 = vpop.f32.mrf.mxu0  ;;  %v421_v3 = vld [vmem:[#allocation2 + $0x70] sm:$0xff] }
 0x178   : > { %v1050_v20 = vpop.f32.mrf.mxu3  ;;  %v1185_v61 = vadd.f32 %v1002_v19, %v411_v6  ;;  %v1150_v13 = vpop.f32.mrf.mxu1 }
 0x179   : > { %v1100_v11 = vadd.f32 %v1099_v56, %v1050_v20 }
 0x17a   : > { %1217 = vst [vmem:[#allocation2 + $0x60] sm:$0xff] %v1185_v61 }
 0x17b   : > { %v1149_v14 = vadd.f32 %v1148_v1, %v1100_v11  ;;  %v422_v11 = vld [vmem:[#allocation2 + $0xc0] sm:$0xff] }
 0x17d   : > { %v1186_v16 = vadd.f32 %v1149_v14, %v412_v62  ;;  %v1003_v23 = vpop.f32.mrf.mxu2 }
 0x17e   : > { %v1004_v29 = vadd.f32 %v1003_v23, %v955_v17 }
 0x17f   : > { %1218 = vst [vmem:[#allocation2 + $0xf0] sm:$0xff] %v1186_v16  ;;  %v1104_v26 = vpop.f32.mrf.mxu0 }
 0x180   : > { %v1052_v24 = vpop.f32.mrf.mxu3  ;;  %v1187_v27 = vadd.f32 %v1004_v29, %v413_v21  ;;  %v1153_v42 = vpop.f32.mrf.mxu1  ;;  %v424_v29 = vld [vmem:[#allocation2 + $0xd0] sm:$0xff] }
 0x181   : > { %v1102_v25 = vadd.f32 %v1101_v12, %v1052_v24 }
 0x182   : > { %1219 = vst [vmem:[#allocation2 + $0x8] sm:$0xff] %v1187_v27  ;;  %v425_v27 = vld [vmem:[#allocation2 + $0x10] sm:$0xff] }
 0x183   : > { %v1151_v37 = vadd.f32 %v1150_v13, %v1102_v25  ;;  %v423_v13 = vld [vmem:[#allocation2 + $0xa8] sm:$0xff] }
 0x185   : > { %v1188_v30 = vadd.f32 %v1151_v37, %v414_v22  ;;  %v1006_v45 = vpop.f32.mrf.mxu2 }
 0x186   : > { %v1007_v47 = vadd.f32 %v1006_v45, %v2305_v60  ;;  %v426_v45 = vld [vmem:[#allocation2 + $0x28] sm:$0xff] }
 0x187   : > { %1220 = vst [vmem:[#allocation2 + $0x78] sm:$0xff] %v1188_v30  ;;  %v1106_v35 = vpop.f32.mrf.mxu0 }
 0x188   : > { %v1055_v48 = vpop.f32.mrf.mxu3  ;;  %v1189_v44 = vadd.f32 %v1007_v47, %v415_v43  ;;  %v1155_v38 = vpop.f32.mrf.mxu1 }
 0x189   : > { %v1105_v34 = vadd.f32 %v1104_v26, %v1055_v48 }
 0x18a   : > { %1221 = vst [vmem:[#allocation2 + $0x38] sm:$0xff] %v1189_v44 }
 0x18b   : > { %v1154_v50 = vadd.f32 %v1153_v42, %v1105_v34  ;;  %v427_v34 = vld [vmem:[#allocation2 + $0xa0] sm:$0xff] }
 0x18d   : > { %v1190_v51 = vadd.f32 %v1154_v50, %v416_v49  ;;  %v1008_v9 = vpop.f32.mrf.mxu2 }
 0x18e   : > { %v1009_v52 = vadd.f32 %v1008_v9, %v2313_v4 }
 0x18f   : > { %1222 = vst [vmem:[#allocation2 + $0x58] sm:$0xff] %v1190_v51  ;;  %v1109_v41 = vpop.f32.mrf.mxu0 }
 0x190   : > { %v1057_v53 = vpop.f32.mrf.mxu3  ;;  %v1191_v54 = vadd.f32 %v1009_v52, %v417_v8  ;;  %v1158_v60 = vpop.f32.mrf.mxu1  ;;  %v428_v8 = vld [vmem:[#allocation2 + $0xf8] sm:$0xff]  ;;  %v429_v52 = vld [vmem:[#allocation2 + $0x20] sm:$0xff] }
 0x191   : > { %v1107_v36 = vadd.f32 %v1106_v35, %v1057_v53 }
 0x192   : > { %1223 = vst [vmem:[#allocation2 + $0x40] sm:$0xff] %v1191_v54 }
 0x193   : > { %v1156_v39 = vadd.f32 %v1155_v38, %v1107_v36 }
 0x195   : > { %v1192_v55 = vadd.f32 %v1156_v39, %v418_v32  ;;  %v1011_v59 = vpop.f32.mrf.mxu2 }
 0x196   : > { %v1012_v40 = vadd.f32 %v1011_v59, %v2321_v7 }
 0x197   : > { %1224 = vst [vmem:[#allocation2 + $0xc8] sm:$0xff] %v1192_v55  ;;  %v1111_v56 = vpop.f32.mrf.mxu0  ;;  %v430_v55 = vld [vmem:[#allocation2 + $0x98] sm:$0xff] }
 0x198   : > { %v1060_v33 = vpop.f32.mrf.mxu3  ;;  %v1193_v57 = vadd.f32 %v1012_v40, %v419_v58  ;;  %v1160_v4 = vpop.f32.mrf.mxu1 }
 0x199   : > { %v1110_v63 = vadd.f32 %v1109_v41, %v1060_v33 }
 0x19a   : > { %1225 = vst [vmem:[#allocation2 + $0xe0] sm:$0xff] %v1193_v57 }
 0x19b   : > { %v1159_v1 = vadd.f32 %v1158_v60, %v1110_v63 }
 0x19d   : > { %v1194_v2 = vadd.f32 %v1159_v1, %v420_v0  ;;  %v1013_v5 = vpop.f32.mrf.mxu2 }
 0x19e   : > { %v1014_v6 = vadd.f32 %v1013_v5, %v2329_v15 }
 0x19f   : > { %1226 = vst [vmem:[#allocation2 + $0x90] sm:$0xff] %v1194_v2  ;;  %v1114_v12 = vpop.f32.mrf.mxu0 }
 0x1a0   : > { %v1062_v10 = vpop.f32.mrf.mxu3  ;;  %v1195_v20 = vadd.f32 %v1014_v6, %v421_v3  ;;  %v1163_v61 = vpop.f32.mrf.mxu1 }
 0x1a1   : > { %v1112_v19 = vadd.f32 %v1111_v56, %v1062_v10 }
 0x1a2   : > { %1227 = vst [vmem:[#allocation2 + $0x70] sm:$0xff] %v1195_v20 }
 0x1a3   : > { %v1161_v7 = vadd.f32 %v1160_v4, %v1112_v19 }
 0x1a5   : > { %v1196_v62 = vadd.f32 %v1161_v7, %v422_v11  ;;  %v1016_v14 = vpop.f32.mrf.mxu2 }
 0x1a6   : > { %v1017_v16 = vadd.f32 %v1016_v14, %v2337_v18 }
 0x1a7   : > { %1228 = vst [vmem:[#allocation2 + $0xc0] sm:$0xff] %v1196_v62  ;;  %v1116_v15 = vpop.f32.mrf.mxu0 }
 0x1a8   : > { %v1065_v17 = vpop.f32.mrf.mxu3  ;;  %v1197_v23 = vadd.f32 %v1017_v16, %v423_v13  ;;  %v1165_v26 = vpop.f32.mrf.mxu1 }
 0x1a9   : > { %v1115_v21 = vadd.f32 %v1114_v12, %v1065_v17 }
 0x1aa   : > { %1229 = vst [vmem:[#allocation2 + $0xa8] sm:$0xff] %v1197_v23 }
 0x1ab   : > { %v1164_v24 = vadd.f32 %v1163_v61, %v1115_v21 }
 0x1ad   : > { %v1198_v25 = vadd.f32 %v1164_v24, %v424_v29  ;;  %v1018_v22 = vpop.f32.mrf.mxu2 }
 0x1ae   : > { %v1019_v42 = vadd.f32 %v1018_v22, %v2345_v28 }
 0x1af   : > { %1230 = vst [vmem:[#allocation2 + $0xd0] sm:$0xff] %v1198_v25  ;;  %v1119_v48 = vpop.f32.mrf.mxu0 }
 0x1b0   : > { %v1067_v37 = vpop.f32.mrf.mxu3  ;;  %v1199_v43 = vadd.f32 %v1019_v42, %v425_v27  ;;  %v1168_v44 = vpop.f32.mrf.mxu1 }
 0x1b1   : > { %v1117_v30 = vadd.f32 %v1116_v15, %v1067_v37 }
 0x1b2   : > { %1231 = vst [vmem:[#allocation2 + $0x10] sm:$0xff] %v1199_v43 }
 0x1b3   : > { %v1166_v47 = vadd.f32 %v1165_v26, %v1117_v30 }
 0x1b5   : > { %v1200_v18 = vadd.f32 %v1166_v47, %v426_v45  ;;  %v1021_v35 = vpop.f32.mrf.mxu2 }
 0x1b6   : > { %v1022_v49 = vadd.f32 %v1021_v35, %v2353_v31 }
 0x1b7   : > { %1232 = vst [vmem:[#allocation2 + $0x28] sm:$0xff] %v1200_v18  ;;  %v1121_v36 = vpop.f32.mrf.mxu0 }
 0x1b8   : > { %v1070_v38 = vpop.f32.mrf.mxu3  ;;  %v1201_v51 = vadd.f32 %v1022_v49, %v427_v34  ;;  %v1170_v60 = vpop.f32.mrf.mxu1 }
 0x1b9   : > { %v1120_v50 = vadd.f32 %v1119_v48, %v1070_v38 }
 0x1ba   : > { %1233 = vst [vmem:[#allocation2 + $0xa0] sm:$0xff] %v1201_v51 }
 0x1bb   : > { %v1169_v9 = vadd.f32 %v1168_v44, %v1120_v50 }
 0x1bd   : > { %v1202_v28 = vadd.f32 %v1169_v9, %v428_v8  ;;  %v1023_v53 = vpop.f32.mrf.mxu2 }
 0x1be   : > { %v1024_v41 = vadd.f32 %v1023_v53, %v2359_v46 }
 0x1bf   : > { %1234 = vst [vmem:[#allocation2 + $0xf8] sm:$0xff] %v1202_v28 }
 0x1c0   : > { %v1072_v54 = vpop.f32.mrf.mxu3  ;;  %v1203_v39 = vadd.f32 %v1024_v41, %v429_v52 }
 0x1c1   : > { %v1122_v32 = vadd.f32 %v1121_v36, %v1072_v54 }
 0x1c2   : > { %1235 = vst [vmem:[#allocation2 + $0x20] sm:$0xff] %v1203_v39 }
 0x1c3   : > { %v1171_v58 = vadd.f32 %v1170_v60, %v1122_v32  ;;  %1240 = sbr.rel (%p1799_p11) target bundleno = 493 (0x1ed), region = 66 }
 0x1c5   : > { %v1204_v31 = vadd.f32 %v1171_v58, %v430_v55 }
 0x1c7   : > { %1236 = vst [vmem:[#allocation2 + $0x98] sm:$0xff] %v1204_v31 }
 0x1c8   : > { %v1241_v59 = vld [vmem:[#allocation2 + $0xb0] sm:$0xff]  ;;  %v1273_v40 = vld [vmem:[%s2538_s2] sm:$0x3]  ;;  %v1243_v56 = vld [vmem:[#allocation2 + $0xd8] sm:$0xff] }
 0x1c9   : > { %v1242_v33 = vld [vmem:[#allocation2] sm:$0xff]  ;;  %v2389_v63 = vperm.slane %v1273_v40, 0  ;;  %v2391_v46 = vperm.slane %v1273_v40, 1  ;;  %v1244_v57 = vld [vmem:[#allocation2 + $0x18] sm:$0xff]  ;;  %v1245_v0 = vld [vmem:[#allocation2 + $0x50] sm:$0xff] }
 0x1ca   : > { %v1246_v3 = vld [vmem:[#allocation2 + $0x68] sm:$0xff]  ;;  %v1247_v6 = vld [vmem:[#allocation2 + $0x30] sm:$0xff]  ;;  %v1249_v11 = vld [vmem:[#allocation2 + $0x80] sm:$0xff] }
 0x1cb   : > { %v1279_v4 = vadd.f32 %v2389_v63, %v1241_v59  ;;  %v1280_v1 = vadd.f32 %v2391_v46, %v1242_v33  ;;  %v1281_v2 = vadd.f32 %v2389_v63, %v1243_v56  ;;  %v1282_v5 = vadd.f32 %v2391_v46, %v1244_v57  ;;  %v1248_v19 = vld [vmem:[#allocation2 + $0x48] sm:$0xff]  ;;  %v1252_v14 = vld [vmem:[#allocation2 + $0xb8] sm:$0xff]  ;;  %v1253_v17 = vld [vmem:[#allocation2 + $0x60] sm:$0xff] }
 0x1cc   : > { %v1283_v10 = vadd.f32 %v2389_v63, %v1245_v0  ;;  %v1284_v20 = vadd.f32 %v2391_v46, %v1246_v3  ;;  %v1285_v12 = vadd.f32 %v2389_v63, %v1247_v6  ;;  %v1250_v7 = vld [vmem:[#allocation2 + $0x88] sm:$0xff]  ;;  %v1286_v61 = vadd.f32 %v2391_v46, %v1248_v19  ;;  %v1254_v23 = vld [vmem:[#allocation2 + $0xf0] sm:$0xff]  ;;  %v1256_v25 = vld [vmem:[#allocation2 + $0x78] sm:$0xff] }
 0x1cd   : > { %1311 = vst [vmem:[%s2539_s3] sm:$0xff] %v1279_v4  ;;  %v1251_v62 = vld [vmem:[#allocation2 + $0xe8] sm:$0xff]  ;;  %v1287_v13 = vadd.f32 %v2389_v63, %v1249_v11  ;;  %v1288_v16 = vadd.f32 %v2391_v46, %v1250_v7  ;;  %v1290_v29 = vadd.f32 %v2391_v46, %v1252_v14  ;;  %v1291_v15 = vadd.f32 %v2389_v63, %v1253_v17  ;;  %v1257_v27 = vld [vmem:[#allocation2 + $0x38] sm:$0xff]  ;;  %v1259_v30 = vld [vmem:[#allocation2 + $0x40] sm:$0xff] }
 0x1ce   : > { %1312 = vst [vmem:[%s2539_s3 + $0x8] sm:$0xff] %v1280_v1  ;;  %v1289_v21 = vadd.f32 %v2389_v63, %v1251_v62  ;;  %v1255_v24 = vld [vmem:[#allocation2 + $0x8] sm:$0xff]  ;;  %v1292_v26 = vadd.f32 %v2391_v46, %v1254_v23  ;;  %v1258_v42 = vld [vmem:[#allocation2 + $0x58] sm:$0xff]  ;;  %v1294_v37 = vadd.f32 %v2391_v46, %v1256_v25  ;;  %v1295_v43 = vadd.f32 %v2389_v63, %v1257_v27  ;;  %v1261_v18 = vld [vmem:[#allocation2 + $0xe0] sm:$0xff] }
 0x1cf   : > { %1313 = vst [vmem:[%s2539_s3 + $0x10] sm:$0xff] %v1281_v2  ;;  %v1293_v22 = vadd.f32 %v2389_v63, %v1255_v24  ;;  %v1260_v45 = vld [vmem:[#allocation2 + $0xc8] sm:$0xff]  ;;  %v1296_v47 = vadd.f32 %v2391_v46, %v1258_v42  ;;  %v1297_v48 = vadd.f32 %v2389_v63, %v1259_v30  ;;  %v1262_v34 = vld [vmem:[#allocation2 + $0x90] sm:$0xff]  ;;  %v1299_v49 = vadd.f32 %v2389_v63, %v1261_v18  ;;  %v1264_v38 = vld [vmem:[#allocation2 + $0xc0] sm:$0xff] }
 0x1d0   : > { %1314 = vst [vmem:[%s2539_s3 + $0x18] sm:$0xff] %v1282_v5  ;;  %v1298_v35 = vadd.f32 %v2391_v46, %v1260_v45  ;;  %v1263_v44 = vld [vmem:[#allocation2 + $0x70] sm:$0xff]  ;;  %v1300_v50 = vadd.f32 %v2391_v46, %v1262_v34  ;;  %v1265_v51 = vld [vmem:[#allocation2 + $0xa8] sm:$0xff]  ;;  %v1302_v28 = vadd.f32 %v2391_v46, %v1264_v38  ;;  %v1269_v54 = vld [vmem:[#allocation2 + $0xa0] sm:$0xff] }
 0x1d1   : > { %1315 = vst [vmem:[%s2539_s3 + $0x20] sm:$0xff] %v1283_v10  ;;  %v1301_v8 = vadd.f32 %v2389_v63, %v1263_v44  ;;  %v1266_v9 = vld [vmem:[#allocation2 + $0xd0] sm:$0xff]  ;;  %v1303_v53 = vadd.f32 %v2389_v63, %v1265_v51  ;;  %v1268_v36 = vld [vmem:[#allocation2 + $0x28] sm:$0xff]  ;;  %v1270_v60 = vld [vmem:[#allocation2 + $0xf8] sm:$0xff]  ;;  %v1307_v58 = vadd.f32 %v2389_v63, %v1269_v54 }
 0x1d2   : > { %1316 = vst [vmem:[%s2539_s3 + $0x28] sm:$0xff] %v1284_v20  ;;  %v1267_v52 = vld [vmem:[#allocation2 + $0x10] sm:$0xff]  ;;  %v1304_v41 = vadd.f32 %v2391_v46, %v1266_v9  ;;  %v1306_v39 = vadd.f32 %v2391_v46, %v1268_v36  ;;  %v1271_v55 = vld [vmem:[#allocation2 + $0x20] sm:$0xff]  ;;  %v1272_v31 = vld [vmem:[#allocation2 + $0x98] sm:$0xff]  ;;  %v1308_v59 = vadd.f32 %v2391_v46, %v1270_v60 }
 0x1d3   : > { %1317 = vst [vmem:[%s2539_s3 + $0x30] sm:$0xff] %v1285_v12  ;;  %v1305_v32 = vadd.f32 %v2389_v63, %v1267_v52  ;;  %v1309_v40 = vadd.f32 %v2389_v63, %v1271_v55  ;;  %v1310_v33 = vadd.f32 %v2391_v46, %v1272_v31 }
 0x1d4   : > { %1318 = vst [vmem:[%s2539_s3 + $0x38] sm:$0xff] %v1286_v61 }
 0x1d5   : > { %1319 = vst [vmem:[%s2539_s3 + $0x40] sm:$0xff] %v1287_v13 }
 0x1d6   : > { %1320 = vst [vmem:[%s2539_s3 + $0x48] sm:$0xff] %v1288_v16 }
 0x1d7   : > { %1321 = vst [vmem:[%s2539_s3 + $0x50] sm:$0xff] %v1289_v21 }
 0x1d8   : > { %1322 = vst [vmem:[%s2539_s3 + $0x58] sm:$0xff] %v1290_v29 }
 0x1d9   : > { %1323 = vst [vmem:[%s2539_s3 + $0x60] sm:$0xff] %v1291_v15 }
 0x1da   : > { %1324 = vst [vmem:[%s2539_s3 + $0x68] sm:$0xff] %v1292_v26 }
 0x1db   : > { %1325 = vst [vmem:[%s2539_s3 + $0x70] sm:$0xff] %v1293_v22 }
 0x1dc   : > { %1326 = vst [vmem:[%s2539_s3 + $0x78] sm:$0xff] %v1294_v37 }
 0x1dd   : > { %1327 = vst [vmem:[%s2539_s3 + $0x80] sm:$0xff] %v1295_v43 }
 0x1de   : > { %1328 = vst [vmem:[%s2539_s3 + $0x88] sm:$0xff] %v1296_v47 }
 0x1df   : > { %1329 = vst [vmem:[%s2539_s3 + $0x90] sm:$0xff] %v1297_v48 }
 0x1e0   : > { %1330 = vst [vmem:[%s2539_s3 + $0x98] sm:$0xff] %v1298_v35 }
 0x1e1   : > { %1331 = vst [vmem:[%s2539_s3 + $0xa0] sm:$0xff] %v1299_v49 }
 0x1e2   : > { %1332 = vst [vmem:[%s2539_s3 + $0xa8] sm:$0xff] %v1300_v50 }
 0x1e3   : > { %1333 = vst [vmem:[%s2539_s3 + $0xb0] sm:$0xff] %v1301_v8 }
 0x1e4   : > { %1334 = vst [vmem:[%s2539_s3 + $0xb8] sm:$0xff] %v1302_v28 }
 0x1e5   : > { %1335 = vst [vmem:[%s2539_s3 + $0xc0] sm:$0xff] %v1303_v53 }
 0x1e6   : > { %1336 = vst [vmem:[%s2539_s3 + $0xc8] sm:$0xff] %v1304_v41 }
 0x1e7   : > { %1337 = vst [vmem:[%s2539_s3 + $0xd0] sm:$0xff] %v1305_v32 }
 0x1e8   : > { %1338 = vst [vmem:[%s2539_s3 + $0xd8] sm:$0xff] %v1306_v39 }
 0x1e9   : > { %1339 = vst [vmem:[%s2539_s3 + $0xe0] sm:$0xff] %v1307_v58 }
 0x1ea   : > { %1340 = vst [vmem:[%s2539_s3 + $0xe8] sm:$0xff] %v1308_v59 }
 0x1eb   : > { %1341 = vst [vmem:[%s2539_s3 + $0xf0] sm:$0xff] %v1309_v40 }
 0x1ec   : > { %1342 = vst [vmem:[%s2539_s3 + $0xf8] sm:$0xff] %v1310_v33 }
 0x1ed PF: > { %s13_s16 = sadd.s32 1, %s1975_s16   ;;  %s2540_s12 = smov %s1963_s13 }
 0x1ee   : > { %p10_p12 = scmp.ge.s32.totalorder %s13_s16, 5   ;;  %s2541_s13 = smov %s2033_s20 }
 0x1ef   : > { %s2542_s14 = smov %s1971_s15  ;;  %s2543_s15 = smov %s2545_s17 }
 0x1f0   :  { %12 = sbr.rel (!%p10_p12) target bundleno = 3 (0x3), region = 113 }

// kernel: forward.16
= control target key start
LH: loop header
LB: loop body
LE: loop exit
PB: predicated region body
PF: predicated region fallthrough
CT: control target
= control target key end

     0   :  { %s481_s6 = smov 0   ;;  %s483_s7 = smov 0   ;;  %s581_s0 = inlined_call_operand.vmem [shape: f32[8,16,256], index: 0, kind: input, shape index: {}]   ;;  %s582_s1 = inlined_call_operand.vmem [shape: f32[8,16,256], index: 1, kind: output, shape index: {}]  }
   0x1   :  { %s485_s8 = smov 0   ;;  %s487_s9 = smov 0  }
   0x2   :  { %s489_s10 = smov 0   ;;  %s491_s11 = smov 0  }
   0x3   :  { %s493_s12 = smov 0  }
   0x4 LB: > { %s20_s13 = sadd.s32 1, %s460_s10  ;;  %s23_s14 = sadd.s32 1, %s464_s11  ;;  %s468_s12 = sphi %s493_s12, %s11_s12   ;;  %s464_s11 = sphi %s491_s11, %s589_s11   ;;  %s460_s10 = sphi %s489_s10, %s588_s10   ;;  %s456_s9 = sphi %s487_s9, %s587_s9   ;;  %s452_s8 = sphi %s485_s8, %s586_s8   ;;  %s448_s7 = sphi %s483_s7, %s585_s7   ;;  %s444_s6 = sphi %s481_s6, %s584_s6  }
   0x5   : > { %p21_p0 = scmp.ge.s32.totalorder %s20_s13, 2  ;;  %s338_s15 = sadd.s32 4294967295, %s468_s12  }
   0x6   : > { %p39_p1 = scmp.ne.s32.totalorder %s448_s7, %s444_s6  ;;  %p40_p2 = scmp.eq.s32.totalorder %s468_s12, 0 }
   0x7   : > { %s591_s13 = smov (%p21_p0, %s20_s13), 0  ;;  %s593_s14 = smov (!%p21_p0, %s23_s14), %s464_s11 }
   0x8   : > { %p25_p3 = scmp.ge.s32.totalorder %s593_s14, 8  ;;  %p71_p4 = scmp.eq.s32.totalorder %s338_s15, 15 }
   0x9   : > { %s28_s16 = ssub.s32 %s460_s10, %s591_s13  ;;  %p41_p5 = por %p40_p2, %p39_p1 }
   0xa   : > { %s595_s14 = smov (%p25_p3, %s593_s14), 0  ;;  %p529_p6 = por %p71_p4, %p39_p1 }
   0xb   : > { %s27_s18 = ssub.s32 %s464_s11, %s595_s14  ;;  %s32_s20 = sadd.s32 1, %s448_s7 }
   0xc   : > { %s29_s19 = sor.u32 %s28_s16, %s27_s18  ;;  %p341_p8 = scmp.ge.s32.totalorder %s468_s12, 16 }
   0xd   : > { %p30_p7 = scmp.eq.s32.totalorder %s29_s19, 0 }
   0xe   : > { %93 = sbr.rel (%p341_p8) target bundleno = 27 (0x1b), region = 16 }
   0xf   : > { %s537_s21 = scalar_select %p30_p7, %s448_s7, %s32_s20  }
  0x13   : > { %96 = sbr.rel (!%p41_p5) target bundleno = 27 (0x1b), region = 20  ;;  %s98_s22 = sand.u32 (%p41_p5), 1, %s448_s7  }
  0x14   : > { %s343_s23 = sshll.u32 (%p41_p5), %s464_s11, 2  ;;  %s342_s24 = sshll.u32 (%p41_p5), %s98_s22, 4 }
  0x15   : > { %s102_s25 = sadd.s32 (%p41_p5), %s460_s10, %s343_s23  ;;  %s100_s30 = scalar_lea.vmem (%p41_p5), [#allocation2], %s342_s24 }
  0x16   : > { %s344_s26 = sshll.u32 (%p41_p5), %s102_s25, 3 }
  0x17   : > { %s104_s29 = scalar_lea.vmem (%p41_p5), %s581_s0, %s344_s26 }
  0x18   : > { %v135_v0 = vld [vmem:[%s104_s29] sm:$0xff]  ;;  %v137_v1 = vld [vmem:[%s104_s29 + $0x10] sm:$0xff] }
  0x19   : > { %136 = vst [vmem:[%s100_s30] sm:$0xff] %v135_v0 }
  0x1a   : > { %138 = vst [vmem:[%s100_s30 + $0x8] sm:$0xff] %v137_v1 }
  0x1b PF: > { %p345_p9 = scmp.ge.s32.totalorder %s468_s12, 1  ;;  %p143_p10 = scmp.lt.s32.totalorder %s468_s12, 17 }
  0x1d   : > { %p144_p11 = pnand %p345_p9, %p143_p10 }
  0x1e   : > { %s150_s2 = sand.u32 (!%p144_p11), 1, %s444_s6  }
  0x1f   : > { %147 = sbr.rel (%p144_p11) target bundleno = 110 (0x6e), region = 58  ;;  %s549_s3 = sshll.u32 (!%p144_p11), %s150_s2, 4 }
  0x20   : > { %s152_s4 = scalar_lea.vmem (!%p144_p11), [#allocation2], %s549_s3  ;;  %s167_s5 = scalar_lea.vmem (!%p144_p11), [#allocation3], %s549_s3 }
  0x24   : > { %v470_v2 = vmov 16.0   ;;  %v168_v3 = vld [vmem:[%s152_s4] sm:$0xff]  ;;  %v169_v4 = vld [vmem:[%s152_s4 + $0x8] sm:$0xff]  ;;  %s349_s6 = sshll.u32 (%p529_p6), %s456_s9, 2 }
  0x25   : > { %410 = vrcp.f32 %v470_v2  ;;  %v170_v5 = vadd.f32 %v169_v4, %v168_v3  ;;  %s226_s15 = sadd.s32 (%p529_p6), %s452_s8, %s349_s6 }
  0x26   : > { %s350_s16 = sshll.u32 (%p529_p6), %s226_s15, 3 }
  0x27   : > { %v171_v6 = vrot.slane %v170_v5, 4  ;;  %s228_s20 = scalar_lea.vmem (%p529_p6), %s582_s1, %s350_s16 }
  0x29   : > { %v172_v8 = vadd.f32 %v171_v6, %v170_v5 }
  0x2b   : > { %v411_v7 = vpop.eup %410  ;;  %v173_v10 = vrot.slane %v172_v8, 2 }
  0x2c   : > { %v178_v9 = vmul.f32 16.0, %v411_v7  ;;  %vm182_vm0 = vweird.f32 %v411_v7 }
  0x2d   : > { %v174_v12 = vadd.f32 %v173_v10, %v172_v8 }
  0x2e   : > { %v179_v11 = vsub.f32 1.0, %v178_v9 }
  0x2f   : > { %v175_v14 = vrot.slane %v174_v12, 1 }
  0x30   : > { %v180_v13 = vmul.f32 %v411_v7, %v179_v11 }
  0x31   : > { %v176_v16 = vadd.f32 %v175_v14, %v174_v12 }
  0x32   : > { %v181_v15 = vadd.f32 %v411_v7, %v180_v13 }
  0x34   : > { %v183_v17 = vsel %vm182_vm0, %v411_v7, %v181_v15 }
  0x35   : > { %v184_v18 = vmul.f32 %v183_v17, %v176_v16 }
  0x37   : > { %v185_v19 = vsub.f32 %v168_v3, %v184_v18  ;;  %v186_v20 = vsub.f32 %v169_v4, %v184_v18 }
  0x39   : > { %v187_v21 = vmul.f32 %v185_v19, %v185_v19  ;;  %v188_v22 = vmul.f32 %v186_v20, %v186_v20 }
  0x3b   : > { %v189_v23 = vadd.f32 %v188_v22, %v187_v21 }
  0x3d   : > { %v190_v24 = vrot.slane %v189_v23, 4 }
  0x3f   : > { %v191_v25 = vadd.f32 %v190_v24, %v189_v23 }
  0x41   : > { %v192_v26 = vrot.slane %v191_v25, 2 }
  0x43   : > { %v193_v27 = vadd.f32 %v192_v26, %v191_v25 }
  0x45   : > { %v194_v28 = vrot.slane %v193_v27, 1 }
  0x47   : > { %v195_v29 = vadd.f32 %v194_v28, %v193_v27 }
  0x49   : > { %v196_v30 = vmul.f32 %v195_v29, %v183_v17 }
  0x4b   : > { %v197_v31 = vadd.f32 1e-05, %v196_v30 }
  0x4d   : > { %412 = vrsqrt.f32 %v197_v31  ;;  %vm204_vm1 = vweird.f32 %v197_v31 }
  0x53   : > { %v413_v32 = vpop.eup %412 }
  0x54   : > { %v199_v33 = vmul.f32 %v413_v32, %v197_v31  ;;  %vm205_vm2 = vweird.f32 %v413_v32 }
  0x55   : > { %vm206_vm3 = vmor %vm204_vm1, %vm205_vm2 }
  0x56   : > { %v200_v34 = vmul.f32 %v413_v32, %v199_v33 }
  0x58   : > { %v201_v35 = vmul.f32 0.5, %v200_v34 }
  0x5a   : > { %v202_v36 = vsub.f32 1.5, %v201_v35 }
  0x5c   : > { %v203_v37 = vmul.f32 %v413_v32, %v202_v36 }
  0x5e   : > { %v207_v38 = vsel %vm206_vm3, %v413_v32, %v203_v37 }
  0x5f   : > { %v208_v39 = vmul.f32 %v207_v38, %v185_v19  ;;  %v209_v40 = vmul.f32 %v207_v38, %v186_v20 }
  0x61   : > { %vm210_vm4 = vcmp.ge.f32.partialorder %v208_v39, 0.0  ;;  %v212_v41 = vmul.f32 0.01, %v208_v39  ;;  %vm211_vm5 = vcmp.ge.f32.partialorder %v209_v40, 0.0  ;;  %v213_v42 = vmul.f32 0.01, %v209_v40 }
  0x62   : > { %224 = sbr.rel (!%p529_p6) target bundleno = 110 (0x6e), region = 66 }
  0x63   : > { %v214_v43 = vsel %vm210_vm4, %v208_v39, %v212_v41  ;;  %v215_v44 = vsel %vm211_vm5, %v209_v40, %v213_v42 }
  0x64   : > { %216 = vst [vmem:[%s167_s5] sm:$0xff] %v214_v43 }
  0x65   : > { %217 = vst [vmem:[%s167_s5 + $0x8] sm:$0xff] %v215_v44 }
  0x6b   : > { %v259_v45 = vld [vmem:[%s167_s5] sm:$0xff] }
  0x6c   : > { %v261_v46 = vld [vmem:[%s167_s5 + $0x8] sm:$0xff]  ;;  %260 = vst [vmem:[%s228_s20] sm:$0xff] %v259_v45 }
  0x6d   : > { %262 = vst [vmem:[%s228_s20 + $0x10] sm:$0xff] %v261_v46 }
  0x6e PF: > { %s11_s12 = sadd.s32 1, %s468_s12   ;;  %s584_s6 = smov %s448_s7 }
  0x6f   : > { %p8_p12 = scmp.ge.s32.totalorder %s11_s12, 18   ;;  %s585_s7 = smov %s537_s21 }
  0x70   : > { %s586_s8 = smov %s460_s10  ;;  %s587_s9 = smov %s464_s11 }
  0x71   : > { %s588_s10 = smov %s591_s13  ;;  %s589_s11 = smov %s595_s14 }
  0x72   :  { %10 = sbr.rel (!%p8_p12) target bundleno = 4 (0x4), region = 135 }

// kernel: squeeze.5
= control target key start
LH: loop header
LB: loop body
LE: loop exit
PB: predicated region body
PF: predicated region fallthrough
CT: control target
= control target key end

     0   :  { %s72_s8 = smov 116   ;;  %s73_s9 = smov 108   ;;  %vm7_vm0 = vcmask 31744   ;;  %s105_s0 = inlined_call_operand.vmem [shape: f32[32], index: 0, kind: input, shape index: {}]   ;;  %s106_s1 = inlined_call_operand.vmem [shape: f32[2,4,4], index: 1, kind: output, shape index: {}]  }
   0x1   :  { %v4_v0 = vld [vmem:[%s105_s0] sm:$0x1]  ;;  %s71_s0 = smov 124   ;;  %s74_s10 = smov 120  }
   0x2   :  { %5 = vst [vmem:[#allocation1] sm:$0x1] %v4_v0  ;;  %s75_s11 = smov 112   ;;  %s76_s12 = smov 104  }
   0x3   :  { %s77_s13 = smov 100  }
   0x9   :  { %v9_v1 = vld [vmem:[#allocation1] sm:$0x1]  }
   0xa   :  { %v21_v2 = vld [vmem:[#allocation1] sm:$0x1]   ;;  %10 = vrot.lane.b32.xlu0 %v9_v1, %s71_s0 }
   0xb   :  { %22 = vrot.lane.b32.xlu1 %v21_v2, %s72_s8  ;;  %v33_v3 = vld [vmem:[#allocation1] sm:$0x1]  }
   0xc   :  { %34 = vrot.lane.b32.xlu2 %v33_v3, %s73_s9  ;;  %v15_v4 = vld [vmem:[#allocation1] sm:$0x1]  }
   0xd   :  { %v27_v5 = vld [vmem:[#allocation1] sm:$0x1]  }
   0xe   :  { %v39_v6 = vld [vmem:[#allocation1] sm:$0x1]  }
   0xf   :  { %v45_v7 = vld [vmem:[#allocation1] sm:$0x1]  }
  0x10   :  { %v6_v8 = vld [vmem:[#allocation1] sm:$0x1]  }
  0x11   :  { %8 = vst.msk [vmem:[#allocation0] sm:$0x1] %vm7_vm0, %v6_v8  }
  0x12   :  { %16 = vrot.lane.b32.xlu0 %v15_v4, %s74_s10 }
  0x13   :  { %28 = vrot.lane.b32.xlu1 %v27_v5, %s75_s11 }
  0x14   :  { %40 = vrot.lane.b32.xlu2 %v39_v6, %s76_s12 }
  0x1a   :  { %46 = vrot.lane.b32.xlu0 %v45_v7, %s77_s13 }
  0x66   :  { %v35_v9 = vpop.permute.xlu2 %34  }
  0x67   :  { %38 = vst.msk [vmem:[#allocation0 + $0x9] sm:$0x1] %vm7_vm0, %v35_v9  }
  0x6e   :  { %v41_v10 = vpop.permute.xlu2 %40  }
  0x6f   :  { %44 = vst.msk [vmem:[#allocation0 + $0xa] sm:$0x1] %vm7_vm0, %v41_v10  }
  0x7c   :  { %v11_v11 = vpop.permute.xlu0 %10  }
  0x7d   :  { %v23_v12 = vpop.permute.xlu1 %22   ;;  %14 = vst.msk [vmem:[#allocation0 + $0x1] sm:$0x1] %vm7_vm0, %v11_v11  }
  0x7e   :  { %26 = vst.msk [vmem:[#allocation0 + $0x3] sm:$0x1] %vm7_vm0, %v23_v12  }
  0x84   :  { %v17_v13 = vpop.permute.xlu0 %16  }
  0x85   :  { %v29_v14 = vpop.permute.xlu1 %28   ;;  %20 = vst.msk [vmem:[#allocation0 + $0x2] sm:$0x1] %vm7_vm0, %v17_v13  }
  0x86   :  { %32 = vst.msk [vmem:[#allocation0 + $0x8] sm:$0x1] %vm7_vm0, %v29_v14  }
  0x8c   :  { %v53_v15 = vld [vmem:[#allocation0] sm:$0xf]  ;;  %v47_v16 = vpop.permute.xlu0 %46  }
  0x8d   :  { %56 = vst [vmem:[%s106_s1] sm:$0xf] %v53_v15 }
  0x8e   :  { %50 = vst.msk [vmem:[#allocation0 + $0xb] sm:$0x1] %vm7_vm0, %v47_v16  }
  0x95   :  { %v58_v17 = vld [vmem:[#allocation0 + $0x8] sm:$0xf] }
  0x96   :  { %63 = vst [vmem:[%s106_s1 + $0x4] sm:$0xf] %v58_v17 }

// kernel: forward.19
= control target key start
LH: loop header
LB: loop body
LE: loop exit
PB: predicated region body
PF: predicated region fallthrough
CT: control target
= control target key end

     0   :  { %s2183_s12 = smov 0   ;;  %s2185_s13 = smov 0   ;;  %s2621_s0 = inlined_call_operand.vmem [shape: bf16[128,2304], index: 0, kind: input, shape index: {}]   ;;  %s2622_s1 = inlined_call_operand.vmem [shape: bf16[2304,128], index: 1, kind: input, shape index: {}]   ;;  %s2623_s2 = inlined_call_operand.vmem [shape: f32[1,128], index: 2, kind: input, shape index: {}]   ;;  %s2624_s3 = inlined_call_operand.vmem [shape: f32[128,128], index: 3, kind: output, shape index: {}]  }
   0x1   :  { %s2187_s14 = smov 0   ;;  %s2189_s15 = smov 0  }
   0x2   :  { %s2191_s16 = smov 0  }
   0x3 LB: > { %s25_s17 = sadd.s32 1, %s2156_s15  ;;  %p48_p1 = scmp.ne.s32.totalorder %s2148_s13, %s2144_s12  ;;  %s2160_s16 = sphi %s2191_s16, %s13_s16   ;;  %s2156_s15 = sphi %s2189_s15, %s2628_s15   ;;  %s2152_s14 = sphi %s2187_s14, %s2627_s14   ;;  %s2148_s13 = sphi %s2185_s13, %s2626_s13   ;;  %s2144_s12 = sphi %s2183_s12, %s2625_s12  }
   0x4   : > { %p26_p0 = scmp.ge.s32.totalorder %s25_s17, 3  ;;  %p49_p2 = scmp.eq.s32.totalorder %s2160_s16, 0 }
   0x5   : > { %s41_s19 = sadd.s32 1, %s2148_s13  ;;  %p1571_p5 = scmp.ge.s32.totalorder %s2160_s16, 3 }
   0x6   : > { %s2630_s17 = smov (%p26_p0, %s25_s17), 0  ;;  %p50_p3 = por %p49_p2, %p48_p1 }
   0x7   : > { %s37_s18 = ssub.s32 %s2156_s15, %s2630_s17  ;;  %162 = sbr.rel (%p1571_p5) target bundleno = 65 (0x41), region = 20 }
   0x8   : > { %p39_p4 = scmp.eq.s32.totalorder %s37_s18, 0 }
   0xa   : > { %s2218_s20 = scalar_select %p39_p4, %s2148_s13, %s41_s19  }
   0xc   : > { %165 = sbr.rel (!%p50_p3) target bundleno = 65 (0x41), region = 24  ;;  %s167_s21 = sand.u32 (%p50_p3), 1, %s2148_s13  }
   0xd   : > { %s1965_s22 = smul.u32 (%p50_p3), 24, %s2156_s15 }
   0xe   : > { %s2078_s23 = smul.u32 (%p50_p3), 384, %s167_s21 }
   0xf   : > { %s2226_s26 = scalar_lea.vmem (%p50_p3), %s2621_s0, %s1965_s22 }
  0x10   : > { %v188_v0 = vld [vmem:[%s2226_s26] sm:$0xff] (%p50_p3)  ;;  %v190_v1 = vld [vmem:[%s2226_s26 + $0x8] sm:$0xff] (%p50_p3)  ;;  %v192_v2 = vld [vmem:[%s2226_s26 + $0x10] sm:$0xff] (%p50_p3)  ;;  %s2231_s27 = scalar_lea.vmem (%p50_p3), [#allocation3], %s2078_s23 }
  0x11   : > { %189 = vst [vmem:[%s2231_s27] sm:$0xff] %v188_v0  ;;  %v194_v3 = vld [vmem:[%s2226_s26 + $0x48] sm:$0xff]  ;;  %v196_v4 = vld [vmem:[%s2226_s26 + $0x50] sm:$0xff]  ;;  %v198_v5 = vld [vmem:[%s2226_s26 + $0x58] sm:$0xff] }
  0x12   : > { %191 = vst [vmem:[%s2231_s27 + $0x8] sm:$0xff] %v190_v1  ;;  %v200_v6 = vld [vmem:[%s2226_s26 + $0x90] sm:$0xff]  ;;  %v202_v7 = vld [vmem:[%s2226_s26 + $0x98] sm:$0xff]  ;;  %v204_v8 = vld [vmem:[%s2226_s26 + $0xa0] sm:$0xff] }
  0x13   : > { %193 = vst [vmem:[%s2231_s27 + $0x10] sm:$0xff] %v192_v2  ;;  %v206_v9 = vld [vmem:[%s2226_s26 + $0xd8] sm:$0xff]  ;;  %v208_v10 = vld [vmem:[%s2226_s26 + $0xe0] sm:$0xff]  ;;  %v210_v11 = vld [vmem:[%s2226_s26 + $0xe8] sm:$0xff] }
  0x14   : > { %195 = vst [vmem:[%s2231_s27 + $0x18] sm:$0xff] %v194_v3  ;;  %v212_v12 = vld [vmem:[%s2226_s26 + $0x120] sm:$0xff]  ;;  %v214_v13 = vld [vmem:[%s2226_s26 + $0x128] sm:$0xff]  ;;  %v216_v14 = vld [vmem:[%s2226_s26 + $0x130] sm:$0xff] }
  0x15   : > { %197 = vst [vmem:[%s2231_s27 + $0x20] sm:$0xff] %v196_v4  ;;  %v218_v15 = vld [vmem:[%s2226_s26 + $0x168] sm:$0xff]  ;;  %v220_v16 = vld [vmem:[%s2226_s26 + $0x170] sm:$0xff]  ;;  %v222_v17 = vld [vmem:[%s2226_s26 + $0x178] sm:$0xff] }
  0x16   : > { %199 = vst [vmem:[%s2231_s27 + $0x28] sm:$0xff] %v198_v5  ;;  %v224_v18 = vld [vmem:[%s2226_s26 + $0x1b0] sm:$0xff]  ;;  %v226_v19 = vld [vmem:[%s2226_s26 + $0x1b8] sm:$0xff]  ;;  %v228_v20 = vld [vmem:[%s2226_s26 + $0x1c0] sm:$0xff] }
  0x17   : > { %201 = vst [vmem:[%s2231_s27 + $0x30] sm:$0xff] %v200_v6  ;;  %v230_v21 = vld [vmem:[%s2226_s26 + $0x1f8] sm:$0xff]  ;;  %v232_v22 = vld [vmem:[%s2226_s26 + $0x200] sm:$0xff]  ;;  %v234_v23 = vld [vmem:[%s2226_s26 + $0x208] sm:$0xff] }
  0x18   : > { %203 = vst [vmem:[%s2231_s27 + $0x38] sm:$0xff] %v202_v7  ;;  %v236_v24 = vld [vmem:[%s2226_s26 + $0x240] sm:$0xff]  ;;  %v238_v25 = vld [vmem:[%s2226_s26 + $0x248] sm:$0xff]  ;;  %v240_v26 = vld [vmem:[%s2226_s26 + $0x250] sm:$0xff] }
  0x19   : > { %205 = vst [vmem:[%s2231_s27 + $0x40] sm:$0xff] %v204_v8  ;;  %v242_v27 = vld [vmem:[%s2226_s26 + $0x288] sm:$0xff]  ;;  %v244_v28 = vld [vmem:[%s2226_s26 + $0x290] sm:$0xff]  ;;  %v246_v29 = vld [vmem:[%s2226_s26 + $0x298] sm:$0xff] }
  0x1a   : > { %207 = vst [vmem:[%s2231_s27 + $0x48] sm:$0xff] %v206_v9  ;;  %v248_v30 = vld [vmem:[%s2226_s26 + $0x2d0] sm:$0xff]  ;;  %v250_v31 = vld [vmem:[%s2226_s26 + $0x2d8] sm:$0xff]  ;;  %v252_v32 = vld [vmem:[%s2226_s26 + $0x2e0] sm:$0xff] }
  0x1b   : > { %209 = vst [vmem:[%s2231_s27 + $0x50] sm:$0xff] %v208_v10  ;;  %v254_v33 = vld [vmem:[%s2226_s26 + $0x318] sm:$0xff]  ;;  %v256_v34 = vld [vmem:[%s2226_s26 + $0x320] sm:$0xff]  ;;  %v258_v35 = vld [vmem:[%s2226_s26 + $0x328] sm:$0xff] }
  0x1c   : > { %211 = vst [vmem:[%s2231_s27 + $0x58] sm:$0xff] %v210_v11  ;;  %v260_v36 = vld [vmem:[%s2226_s26 + $0x360] sm:$0xff]  ;;  %v262_v37 = vld [vmem:[%s2226_s26 + $0x368] sm:$0xff]  ;;  %v264_v38 = vld [vmem:[%s2226_s26 + $0x370] sm:$0xff] }
  0x1d   : > { %213 = vst [vmem:[%s2231_s27 + $0x60] sm:$0xff] %v212_v12  ;;  %v266_v39 = vld [vmem:[%s2226_s26 + $0x3a8] sm:$0xff]  ;;  %v268_v40 = vld [vmem:[%s2226_s26 + $0x3b0] sm:$0xff]  ;;  %v270_v41 = vld [vmem:[%s2226_s26 + $0x3b8] sm:$0xff] }
  0x1e   : > { %215 = vst [vmem:[%s2231_s27 + $0x68] sm:$0xff] %v214_v13  ;;  %v272_v42 = vld [vmem:[%s2226_s26 + $0x3f0] sm:$0xff]  ;;  %v274_v43 = vld [vmem:[%s2226_s26 + $0x3f8] sm:$0xff]  ;;  %v276_v44 = vld [vmem:[%s2226_s26 + $0x400] sm:$0xff] }
  0x1f   : > { %217 = vst [vmem:[%s2231_s27 + $0x70] sm:$0xff] %v216_v14  ;;  %v278_v45 = vld [vmem:[%s2226_s26 + $0x438] sm:$0xff]  ;;  %v280_v46 = vld [vmem:[%s2226_s26 + $0x440] sm:$0xff]  ;;  %v282_v47 = vld [vmem:[%s2226_s26 + $0x448] sm:$0xff] }
  0x20   : > { %219 = vst [vmem:[%s2231_s27 + $0x78] sm:$0xff] %v218_v15 }
  0x21   : > { %221 = vst [vmem:[%s2231_s27 + $0x80] sm:$0xff] %v220_v16 }
  0x22   : > { %223 = vst [vmem:[%s2231_s27 + $0x88] sm:$0xff] %v222_v17 }
  0x23   : > { %225 = vst [vmem:[%s2231_s27 + $0x90] sm:$0xff] %v224_v18 }
  0x24   : > { %227 = vst [vmem:[%s2231_s27 + $0x98] sm:$0xff] %v226_v19 }
  0x25   : > { %229 = vst [vmem:[%s2231_s27 + $0xa0] sm:$0xff] %v228_v20 }
  0x26   : > { %231 = vst [vmem:[%s2231_s27 + $0xa8] sm:$0xff] %v230_v21 }
  0x27   : > { %233 = vst [vmem:[%s2231_s27 + $0xb0] sm:$0xff] %v232_v22 }
  0x28   : > { %235 = vst [vmem:[%s2231_s27 + $0xb8] sm:$0xff] %v234_v23 }
  0x29   : > { %237 = vst [vmem:[%s2231_s27 + $0xc0] sm:$0xff] %v236_v24 }
  0x2a   : > { %239 = vst [vmem:[%s2231_s27 + $0xc8] sm:$0xff] %v238_v25 }
  0x2b   : > { %241 = vst [vmem:[%s2231_s27 + $0xd0] sm:$0xff] %v240_v26 }
  0x2c   : > { %243 = vst [vmem:[%s2231_s27 + $0xd8] sm:$0xff] %v242_v27 }
  0x2d   : > { %245 = vst [vmem:[%s2231_s27 + $0xe0] sm:$0xff] %v244_v28 }
  0x2e   : > { %247 = vst [vmem:[%s2231_s27 + $0xe8] sm:$0xff] %v246_v29 }
  0x2f   : > { %249 = vst [vmem:[%s2231_s27 + $0xf0] sm:$0xff] %v248_v30 }
  0x30   : > { %251 = vst [vmem:[%s2231_s27 + $0xf8] sm:$0xff] %v250_v31 }
  0x31   : > { %253 = vst [vmem:[%s2231_s27 + $0x100] sm:$0xff] %v252_v32 }
  0x32   : > { %255 = vst [vmem:[%s2231_s27 + $0x108] sm:$0xff] %v254_v33 }
  0x33   : > { %257 = vst [vmem:[%s2231_s27 + $0x110] sm:$0xff] %v256_v34 }
  0x34   : > { %259 = vst [vmem:[%s2231_s27 + $0x118] sm:$0xff] %v258_v35 }
  0x35   : > { %261 = vst [vmem:[%s2231_s27 + $0x120] sm:$0xff] %v260_v36 }
  0x36   : > { %263 = vst [vmem:[%s2231_s27 + $0x128] sm:$0xff] %v262_v37 }
  0x37   : > { %265 = vst [vmem:[%s2231_s27 + $0x130] sm:$0xff] %v264_v38 }
  0x38   : > { %267 = vst [vmem:[%s2231_s27 + $0x138] sm:$0xff] %v266_v39 }
  0x39   : > { %269 = vst [vmem:[%s2231_s27 + $0x140] sm:$0xff] %v268_v40 }
  0x3a   : > { %271 = vst [vmem:[%s2231_s27 + $0x148] sm:$0xff] %v270_v41 }
  0x3b   : > { %273 = vst [vmem:[%s2231_s27 + $0x150] sm:$0xff] %v272_v42 }
  0x3c   : > { %275 = vst [vmem:[%s2231_s27 + $0x158] sm:$0xff] %v274_v43 }
  0x3d   : > { %277 = vst [vmem:[%s2231_s27 + $0x160] sm:$0xff] %v276_v44 }
  0x3e   : > { %279 = vst [vmem:[%s2231_s27 + $0x168] sm:$0xff] %v278_v45 }
  0x3f   : > { %281 = vst [vmem:[%s2231_s27 + $0x170] sm:$0xff] %v280_v46 }
  0x40   : > { %283 = vst [vmem:[%s2231_s27 + $0x178] sm:$0xff] %v282_v47 }
  0x41 PF: > { %p1573_p6 = scmp.ge.s32.totalorder %s2160_s16, 1  ;;  %p300_p7 = scmp.lt.s32.totalorder %s2160_s16, 4 }
  0x43   : > { %p301_p8 = pnand %p1573_p6, %p300_p7 }
  0x44   : > { %s307_s28 = sand.u32 (!%p301_p8), 1, %s2144_s12   ;;  %s346_s29 = smul.u32 (!%p301_p8), 96, %s2152_s14 }
  0x45   : > { %304 = sbr.rel (%p301_p8) target bundleno = 474 (0x1da), region = 51  ;;  %p1575_p10 = scmp.ne.s32.totalorder (!%p301_p8), %s2152_s14, 0 }
  0x46   : > { %s2079_s30 = smul.u32 (!%p301_p8), 384, %s307_s28  ;;  %p347_p9 = scmp.lt.s32.totalorder (!%p301_p8), %s346_s29, 287 }
  0x48   : > { %s2335_s8 = scalar_lea.vmem (!%p301_p8), [#allocation3], %s2079_s30 }
  0x4a   : > { %s2632_s29 = smov (!%p347_p9, %s346_s29), 287  ;;  %370 = sbr.rel (%p1575_p10) target bundleno = 96 (0x60), region = 59 }
  0x4b   : > { %s1574_s4 = sshll.u32 %s2632_s29, 2 }
  0x4c   : > { %s2333_s7 = scalar_lea.vmem %s2622_s1, %s1574_s4 }
  0x4f   : > { %v2162_v48 = vmov 0.0  }
  0x50   : > { %371 = vst [vmem:[#allocation2 + $0x30] sm:$0xff] %v2162_v48 }
  0x51   : > { %372 = vst [vmem:[#allocation2] sm:$0xff] %v2162_v48 }
  0x52   : > { %373 = vst [vmem:[#allocation2 + $0x58] sm:$0xff] %v2162_v48 }
  0x53   : > { %374 = vst [vmem:[#allocation2 + $0x18] sm:$0xff] %v2162_v48 }
  0x54   : > { %375 = vst [vmem:[#allocation2 + $0x50] sm:$0xff] %v2162_v48 }
  0x55   : > { %376 = vst [vmem:[#allocation2 + $0x68] sm:$0xff] %v2162_v48 }
  0x56   : > { %377 = vst [vmem:[#allocation2 + $0x8] sm:$0xff] %v2162_v48 }
  0x57   : > { %378 = vst [vmem:[#allocation2 + $0x48] sm:$0xff] %v2162_v48 }
  0x58   : > { %379 = vst [vmem:[#allocation2 + $0x40] sm:$0xff] %v2162_v48 }
  0x59   : > { %380 = vst [vmem:[#allocation2 + $0x20] sm:$0xff] %v2162_v48 }
  0x5a   : > { %381 = vst [vmem:[#allocation2 + $0x10] sm:$0xff] %v2162_v48 }
  0x5b   : > { %382 = vst [vmem:[#allocation2 + $0x38] sm:$0xff] %v2162_v48 }
  0x5c   : > { %383 = vst [vmem:[#allocation2 + $0x60] sm:$0xff] %v2162_v48 }
  0x5d   : > { %384 = vst [vmem:[#allocation2 + $0x70] sm:$0xff] %v2162_v48 }
  0x5e   : > { %385 = vst [vmem:[#allocation2 + $0x78] sm:$0xff] %v2162_v48 }
  0x5f   : > { %386 = vst [vmem:[#allocation2 + $0x28] sm:$0xff] %v2162_v48 }
  0x60 PF: > { %v2021_v49 = vld [vmem:[%s2333_s7 + $0x38] sm:$0xff]  ;;  %v2020_v51 = vld [vmem:[%s2333_s7 + $0x30] sm:$0xff]  ;;  %v2019_v53 = vld [vmem:[%s2333_s7 + $0x28] sm:$0xff]  ;;  %p1960_p11 = scmp.ne.s32.totalorder %s2152_s14, 2 }
  0x61   : > { %v2029_v50 = vld [vmem:[%s2333_s7 + $0x78] sm:$0xff]  ;;  %2062 = vmatpush.bf16.msra.mxu2 %v2021_v49  ;;  %v2028_v52 = vld [vmem:[%s2333_s7 + $0x70] sm:$0xff]  ;;  %1075 = vmatpush.bf16.msra.mxu0 %v2021_v49  ;;  %v2027_v54 = vld [vmem:[%s2333_s7 + $0x68] sm:$0xff] }
  0x62   : > { %2070 = vmatpush.bf16.msra.mxu3 %v2029_v50  ;;  %1124 = vmatpush.bf16.msra.mxu1 %v2029_v50  ;;  %v2018_v55 = vld [vmem:[%s2333_s7 + $0x20] sm:$0xff]  ;;  %v2017_v57 = vld [vmem:[%s2333_s7 + $0x18] sm:$0xff]  ;;  %v2016_v59 = vld [vmem:[%s2333_s7 + $0x10] sm:$0xff] }
  0x63   : > { %v2026_v56 = vld [vmem:[%s2333_s7 + $0x60] sm:$0xff]  ;;  %v2025_v58 = vld [vmem:[%s2333_s7 + $0x58] sm:$0xff]  ;;  %v2024_v60 = vld [vmem:[%s2333_s7 + $0x50] sm:$0xff] }
  0x64   : > { %v2015_v61 = vld [vmem:[%s2333_s7 + $0x8] sm:$0xff]  ;;  %v2014_v63 = vld [vmem:[%s2333_s7] sm:$0xff]  ;;  %v1993_v2 = vld [vmem:[%s2335_s8 + $0xd4] sm:$0xf0] }
  0x65   : > { %2063 = vmatpush.bf16.msra.mxu2 %v2020_v51  ;;  %1076 = vmatpush.bf16.msra.mxu0 %v2020_v51  ;;  %v2023_v62 = vld [vmem:[%s2333_s7 + $0x48] sm:$0xff]  ;;  %v2022_v0 = vld [vmem:[%s2333_s7 + $0x40] sm:$0xff]  ;;  %v1676_v4 = vld [vmem:[%s2335_s8 + $0xd8] sm:$0xf0] }
  0x66   : > { %2071 = vmatpush.bf16.msra.mxu3 %v2028_v52  ;;  %1125 = vmatpush.bf16.msra.mxu1 %v2028_v52  ;;  %v1674_v1 = vld [vmem:[%s2335_s8 + $0xc0] sm:$0xf]  ;;  %v1990_v3 = vld [vmem:[%s2335_s8 + $0xc4] sm:$0xf]  ;;  %v1969_v6 = vld [vmem:[%s2335_s8 + $0x14] sm:$0xf0] }
  0x67   : > { %v1578_v5 = vld [vmem:[%s2335_s8] sm:$0xf]  ;;  %v1966_v7 = vld [vmem:[%s2335_s8 + $0x4] sm:$0xf]  ;;  %v1580_v8 = vld [vmem:[%s2335_s8 + $0x18] sm:$0xf0]  ;;  %v1675_v11 = vor.u32 %v1993_v2, %v1674_v1  ;;  %v1679_v12 = vor.u32 %v1990_v3, %v1676_v4 }
  0x68   : > { %v2037_v9 = vld [vmem:[%s2333_s7 + $0xb8] sm:$0xff]  ;;  %v1579_v13 = vor.u32 %v1969_v6, %v1578_v5  ;;  %v1583_v14 = vor.u32 %v1966_v7, %v1580_v8  ;;  %v2036_v17 = vld [vmem:[%s2333_s7 + $0xb0] sm:$0xff]  ;;  %v2035_v21 = vld [vmem:[%s2333_s7 + $0xa8] sm:$0xff] }
  0x69   : > { %2064 = vmatpush.bf16.msra.mxu2 %v2019_v53  ;;  %1077 = vmatpush.bf16.msra.mxu0 %v2019_v53  ;;  %v2045_v10 = vld [vmem:[%s2333_s7 + $0xf8] sm:$0xff]  ;;  %v2044_v18 = vld [vmem:[%s2333_s7 + $0xf0] sm:$0xff]  ;;  %v2043_v22 = vld [vmem:[%s2333_s7 + $0xe8] sm:$0xff] }
  0x6a   : > { %2072 = vmatpush.bf16.msra.mxu3 %v2027_v54  ;;  %1126 = vmatpush.bf16.msra.mxu1 %v2027_v54  ;;  %v2053_v15 = vld [vmem:[%s2333_s7 + $0x138] sm:$0xff]  ;;  %v2052_v19 = vld [vmem:[%s2333_s7 + $0x130] sm:$0xff]  ;;  %v2051_v23 = vld [vmem:[%s2333_s7 + $0x128] sm:$0xff] }
  0x6b   : > { %v2061_v16 = vld [vmem:[%s2333_s7 + $0x178] sm:$0xff]  ;;  %v2060_v20 = vld [vmem:[%s2333_s7 + $0x170] sm:$0xff]  ;;  %v2059_v24 = vld [vmem:[%s2333_s7 + $0x168] sm:$0xff] }
  0x6c   : > { %v1698_v25 = vld [vmem:[%s2335_s8 + $0xf0] sm:$0xf]  ;;  %v2034_v26 = vld [vmem:[%s2333_s7 + $0xa0] sm:$0xff]  ;;  %v1999_v28 = vld [vmem:[%s2335_s8 + $0x104] sm:$0xf0] }
  0x6d   : > { %2065 = vmatpush.bf16.msra.mxu2 %v2018_v55  ;;  %1078 = vmatpush.bf16.msra.mxu0 %v2018_v55  ;;  %v2042_v27 = vld [vmem:[%s2333_s7 + $0xe0] sm:$0xff]  ;;  %v1996_v29 = vld [vmem:[%s2335_s8 + $0xf4] sm:$0xf]  ;;  %v1700_v30 = vld [vmem:[%s2335_s8 + $0x108] sm:$0xf0]  ;;  %v1699_v39 = vor.u32 %v1999_v28, %v1698_v25 }
  0x6e   : > { %2073 = vmatpush.bf16.msra.mxu3 %v2026_v56  ;;  %1127 = vmatpush.bf16.msra.mxu1 %v2026_v56  ;;  %v1602_v31 = vld [vmem:[%s2335_s8 + $0x30] sm:$0xf]  ;;  %v1975_v32 = vld [vmem:[%s2335_s8 + $0x44] sm:$0xf0]  ;;  %v1972_v33 = vld [vmem:[%s2335_s8 + $0x34] sm:$0xf]  ;;  %v1703_v40 = vor.u32 %v1996_v29, %v1700_v30 }
  0x6f   : > { %v1604_v34 = vld [vmem:[%s2335_s8 + $0x48] sm:$0xf0]  ;;  %v2050_v35 = vld [vmem:[%s2333_s7 + $0x120] sm:$0xff]  ;;  %v2033_v37 = vld [vmem:[%s2333_s7 + $0x98] sm:$0xff]  ;;  %v1603_v41 = vor.u32 %v1975_v32, %v1602_v31 }
  0x70   : > { %v2058_v36 = vld [vmem:[%s2333_s7 + $0x160] sm:$0xff]  ;;  %v2041_v38 = vld [vmem:[%s2333_s7 + $0xd8] sm:$0xff]  ;;  %v1607_v42 = vor.u32 %v1972_v33, %v1604_v34  ;;  %v2032_v45 = vld [vmem:[%s2333_s7 + $0x90] sm:$0xff] }
  0x71   : > { %2066 = vmatpush.bf16.msra.mxu2 %v2017_v57  ;;  %1079 = vmatpush.bf16.msra.mxu0 %v2017_v57  ;;  %v2049_v43 = vld [vmem:[%s2333_s7 + $0x118] sm:$0xff]  ;;  %v2040_v46 = vld [vmem:[%s2333_s7 + $0xd0] sm:$0xff]  ;;  %v2031_v49 = vld [vmem:[%s2333_s7 + $0x88] sm:$0xff] }
  0x72   : > { %2074 = vmatpush.bf16.msra.mxu3 %v2025_v58  ;;  %1128 = vmatpush.bf16.msra.mxu1 %v2025_v58  ;;  %v2057_v44 = vld [vmem:[%s2333_s7 + $0x158] sm:$0xff]  ;;  %v2048_v47 = vld [vmem:[%s2333_s7 + $0x110] sm:$0xff]  ;;  %v2039_v50 = vld [vmem:[%s2333_s7 + $0xc8] sm:$0xff] }
  0x73   : > { %v2056_v48 = vld [vmem:[%s2333_s7 + $0x150] sm:$0xff]  ;;  %v2047_v51 = vld [vmem:[%s2333_s7 + $0x108] sm:$0xff]  ;;  %v2030_v53 = vld [vmem:[%s2333_s7 + $0x80] sm:$0xff] }
  0x74   : > { %v2055_v52 = vld [vmem:[%s2333_s7 + $0x148] sm:$0xff]  ;;  %v2038_v54 = vld [vmem:[%s2333_s7 + $0xc0] sm:$0xff]  ;;  %v2005_v56 = vld [vmem:[%s2335_s8 + $0x134] sm:$0xf0] }
  0x75   : > { %2067 = vmatpush.bf16.msra.mxu2 %v2016_v59  ;;  %1080 = vmatpush.bf16.msra.mxu0 %v2016_v59  ;;  %v1722_v55 = vld [vmem:[%s2335_s8 + $0x120] sm:$0xf]  ;;  %v2002_v57 = vld [vmem:[%s2335_s8 + $0x124] sm:$0xf]  ;;  %v1724_v58 = vld [vmem:[%s2335_s8 + $0x138] sm:$0xf0] }
  0x76   : > { %2075 = vmatpush.bf16.msra.mxu3 %v2024_v60  ;;  %1129 = vmatpush.bf16.msra.mxu1 %v2024_v60  ;;  %v1626_v59 = vld [vmem:[%s2335_s8 + $0x60] sm:$0xf]  ;;  %v1981_v60 = vld [vmem:[%s2335_s8 + $0x74] sm:$0xf0]  ;;  %v1727_v1 = vor.u32 %v2002_v57, %v1724_v58  ;;  %v1746_v5 = vld [vmem:[%s2335_s8 + $0x150] sm:$0xf] }
  0x77   : > { %v1627_v2 = vor.u32 %v1981_v60, %v1626_v59  ;;  %v2054_v4 = vld [vmem:[%s2333_s7 + $0x140] sm:$0xff]  ;;  %v2011_v6 = vld [vmem:[%s2335_s8 + $0x164] sm:$0xf0]  ;;  %v2008_v7 = vld [vmem:[%s2335_s8 + $0x154] sm:$0xf] }
  0x78   : > { %v1748_v8 = vld [vmem:[%s2335_s8 + $0x168] sm:$0xf0]  ;;  %v1610_v29 = vld [vmem:[%s2335_s8 + $0x38] sm:$0xf]  ;;  %v1976_v30 = vld [vmem:[%s2335_s8 + $0x4c] sm:$0xf0] }
  0x79   : > { %2068 = vmatpush.bf16.msra.mxu2 %v2015_v61  ;;  %1081 = vmatpush.bf16.msra.mxu0 %v2015_v61  ;;  %v1978_v61 = vld [vmem:[%s2335_s8 + $0x64] sm:$0xf]  ;;  %v1973_v31 = vld [vmem:[%s2335_s8 + $0x3c] sm:$0xf]  ;;  %v1612_v32 = vld [vmem:[%s2335_s8 + $0x50] sm:$0xf0] }
  0x7a   : > { %2076 = vmatpush.bf16.msra.mxu3 %v2023_v62  ;;  %1130 = vmatpush.bf16.msra.mxu1 %v2023_v62  ;;  %v1628_v62 = vld [vmem:[%s2335_s8 + $0x78] sm:$0xf0]  ;;  %v1618_v33 = vld [vmem:[%s2335_s8 + $0x40] sm:$0xf]  ;;  %v1977_v34 = vld [vmem:[%s2335_s8 + $0x54] sm:$0xf0] }
  0x7b   : > { %v1631_v3 = vor.u32 %v1978_v61, %v1628_v62  ;;  %v1666_v57 = vld [vmem:[%s2335_s8 + $0xa0] sm:$0xf]  ;;  %v1989_v58 = vld [vmem:[%s2335_s8 + $0xb4] sm:$0xf0]  ;;  %v1986_v59 = vld [vmem:[%s2335_s8 + $0xa4] sm:$0xf] }
  0x7c   : > { %v1668_v60 = vld [vmem:[%s2335_s8 + $0xb8] sm:$0xf0] }
  0x7d   : > { %2069 = vmatpush.bf16.msra.mxu2 %v2014_v63  ;;  %1082 = vmatpush.bf16.msra.mxu0 %v2014_v63  ;;  %v2046_v63 = vld [vmem:[%s2333_s7 + $0x100] sm:$0xff] }
  0x7e   : > { %2077 = vmatpush.bf16.msra.mxu3 %v2022_v0  ;;  %1131 = vmatpush.bf16.msra.mxu1 %v2022_v0  ;;  %v1723_v0 = vor.u32 %v2005_v56, %v1722_v55  ;;  %v1985_v55 = vld [vmem:[%s2335_s8 + $0x9c] sm:$0xf]  ;;  %v1660_v56 = vld [vmem:[%s2335_s8 + $0xb0] sm:$0xf0] }
  0x7f   : > { %v1663_v62 = vor.u32 %v1985_v55, %v1660_v56 }
  0x80   : > { %1103 = vmatmul.bf16.vlgmr.msra.gmra.mxu2 %v1675_v11  ;;  %1083 = vmatmul.bf16.vlgmr.msra.gmra.mxu0 %v1579_v13  ;;  %v1984_v11 = vld [vmem:[%s2335_s8 + $0x94] sm:$0xf]  ;;  %v1747_v13 = vor.u32 %v2011_v6, %v1746_v5  ;;  %v1690_v5 = vld [vmem:[%s2335_s8 + $0xd0] sm:$0xf]  ;;  %v1995_v6 = vld [vmem:[%s2335_s8 + $0xe4] sm:$0xf0] }
  0x81   : > { %1173 = vmatpush.bf16.msrb.mxu2 %v2037_v9  ;;  %1152 = vmatmul.bf16.vlgmr.msra.gmra.mxu3 %v1679_v12  ;;  %v1650_v9 = vld [vmem:[%s2335_s8 + $0x90] sm:$0xf]  ;;  %v1652_v12 = vld [vmem:[%s2335_s8 + $0xa8] sm:$0xf0] }
  0x82   : > { %1222 = vmatpush.bf16.msrb.mxu3 %v2045_v10  ;;  %1132 = vmatmul.bf16.vlgmr.msra.gmra.mxu1 %v1583_v14  ;;  %v1987_v10 = vld [vmem:[%s2335_s8 + $0xa4] sm:$0xf0]  ;;  %v1751_v14 = vor.u32 %v2008_v7, %v1748_v8  ;;  %v1992_v7 = vld [vmem:[%s2335_s8 + $0xd4] sm:$0xf]  ;;  %v1692_v8 = vld [vmem:[%s2335_s8 + $0xe8] sm:$0xf0] }
  0x83   : > { %1271 = vmatpush.bf16.msrb.mxu0 %v2053_v15  ;;  %1320 = vmatpush.bf16.msrb.mxu1 %v2061_v16  ;;  %v1651_v15 = vor.u32 %v1987_v10, %v1650_v9  ;;  %v1655_v16 = vor.u32 %v1984_v11, %v1652_v12  ;;  %v1691_v11 = vor.u32 %v1995_v6, %v1690_v5  ;;  %v2013_v5 = vld [vmem:[%s2335_s8 + $0x174] sm:$0xf0]  ;;  %v2010_v6 = vld [vmem:[%s2335_s8 + $0x164] sm:$0xf] }
  0x84   : > { %v1695_v12 = vor.u32 %v1992_v7, %v1692_v8  ;;  %v1764_v7 = vld [vmem:[%s2335_s8 + $0x178] sm:$0xf0] }
  0x85   : > { %1174 = vmatpush.bf16.msrb.mxu2 %v2036_v17  ;;  %v1586_v17 = vld [vmem:[%s2335_s8 + $0x8] sm:$0xf] }
  0x86   : > { %1223 = vmatpush.bf16.msrb.mxu3 %v2044_v18  ;;  %v1970_v18 = vld [vmem:[%s2335_s8 + $0x1c] sm:$0xf0] }
  0x87   : > { %1272 = vmatpush.bf16.msrb.mxu0 %v2052_v19  ;;  %1321 = vmatpush.bf16.msrb.mxu1 %v2060_v20  ;;  %v1967_v19 = vld [vmem:[%s2335_s8 + $0xc] sm:$0xf]  ;;  %v1588_v20 = vld [vmem:[%s2335_s8 + $0x20] sm:$0xf0]  ;;  %v1587_v25 = vor.u32 %v1970_v18, %v1586_v17 }
  0x89   : > { %1175 = vmatpush.bf16.msrb.mxu2 %v2035_v21  ;;  %v1594_v21 = vld [vmem:[%s2335_s8 + $0x10] sm:$0xf] }
  0x8a   : > { %1224 = vmatpush.bf16.msrb.mxu3 %v2043_v22  ;;  %v1971_v22 = vld [vmem:[%s2335_s8 + $0x24] sm:$0xf0] }
  0x8b   : > { %1273 = vmatpush.bf16.msrb.mxu0 %v2051_v23  ;;  %1322 = vmatpush.bf16.msrb.mxu1 %v2059_v24  ;;  %v1968_v23 = vld [vmem:[%s2335_s8 + $0x14] sm:$0xf]  ;;  %v1596_v24 = vld [vmem:[%s2335_s8 + $0x28] sm:$0xf0] }
  0x8c   : > { %v1599_v28 = vor.u32 %v1968_v23, %v1596_v24  ;;  %v1708_v23 = vld [vmem:[%s2335_s8 + $0x110] sm:$0xf0]  ;;  %v1714_v24 = vld [vmem:[%s2335_s8 + $0x100] sm:$0xf] }
  0x8d   : > { %1176 = vmatpush.bf16.msrb.mxu2 %v2034_v26  ;;  %v1591_v26 = vor.u32 %v1967_v19, %v1588_v20  ;;  %v1706_v20 = vld [vmem:[%s2335_s8 + $0xf8] sm:$0xf] }
  0x8e   : > { %1225 = vmatpush.bf16.msrb.mxu3 %v2042_v27  ;;  %v1595_v27 = vor.u32 %v1971_v22, %v1594_v21  ;;  %v2000_v21 = vld [vmem:[%s2335_s8 + $0x10c] sm:$0xf0]  ;;  %v1997_v22 = vld [vmem:[%s2335_s8 + $0xfc] sm:$0xf] }
  0x8f   : > { %1274 = vmatpush.bf16.msrb.mxu0 %v2050_v35  ;;  %1323 = vmatpush.bf16.msrb.mxu1 %v2058_v36  ;;  %v1974_v35 = vld [vmem:[%s2335_s8 + $0x44] sm:$0xf]  ;;  %v1620_v36 = vld [vmem:[%s2335_s8 + $0x58] sm:$0xf0] }
  0x90   : > { %1108 = vmatmul.bf16.gmra.mxu2 %v1699_v39  ;;  %1088 = vmatmul.bf16.gmra.mxu0 %v1603_v41  ;;  %v1619_v39 = vor.u32 %v1977_v34, %v1618_v33  ;;  %v1634_v41 = vld [vmem:[%s2335_s8 + $0x68] sm:$0xf] }
  0x91   : > { %1177 = vmatpush.bf16.msrb.mxu2 %v2033_v37  ;;  %1157 = vmatmul.bf16.gmra.mxu3 %v1703_v40  ;;  %v1611_v37 = vor.u32 %v1976_v30, %v1610_v29  ;;  %v1623_v40 = vor.u32 %v1974_v35, %v1620_v36 }
  0x92   : > { %1226 = vmatpush.bf16.msrb.mxu3 %v2041_v38  ;;  %1137 = vmatmul.bf16.gmra.mxu1 %v1607_v42  ;;  %v1615_v38 = vor.u32 %v1973_v31, %v1612_v32  ;;  %v1982_v42 = vld [vmem:[%s2335_s8 + $0x7c] sm:$0xf0]  ;;  %v1707_v31 = vor.u32 %v2000_v21, %v1706_v20  ;;  %v1711_v32 = vor.u32 %v1997_v22, %v1708_v23 }
  0x93   : > { %1275 = vmatpush.bf16.msrb.mxu0 %v2049_v43  ;;  %1324 = vmatpush.bf16.msrb.mxu1 %v2057_v44  ;;  %v1979_v43 = vld [vmem:[%s2335_s8 + $0x6c] sm:$0xf]  ;;  %v1636_v44 = vld [vmem:[%s2335_s8 + $0x80] sm:$0xf0] }
  0x95   : > { %1178 = vmatpush.bf16.msrb.mxu2 %v2032_v45  ;;  %v1642_v45 = vld [vmem:[%s2335_s8 + $0x70] sm:$0xf] }
  0x96   : > { %1227 = vmatpush.bf16.msrb.mxu3 %v2040_v46  ;;  %v1983_v46 = vld [vmem:[%s2335_s8 + $0x84] sm:$0xf0] }
  0x97   : > { %1276 = vmatpush.bf16.msrb.mxu0 %v2048_v47  ;;  %1325 = vmatpush.bf16.msrb.mxu1 %v2056_v48  ;;  %v1980_v47 = vld [vmem:[%s2335_s8 + $0x74] sm:$0xf]  ;;  %v1644_v48 = vld [vmem:[%s2335_s8 + $0x88] sm:$0xf0] }
  0x99   : > { %1179 = vmatpush.bf16.msrb.mxu2 %v2031_v49  ;;  %v1635_v49 = vor.u32 %v1982_v42, %v1634_v41  ;;  %v1730_v42 = vld [vmem:[%s2335_s8 + $0x128] sm:$0xf] }
  0x9a   : > { %1228 = vmatpush.bf16.msrb.mxu3 %v2039_v50  ;;  %v1639_v50 = vor.u32 %v1979_v43, %v1636_v44  ;;  %v2006_v43 = vld [vmem:[%s2335_s8 + $0x13c] sm:$0xf0]  ;;  %v2003_v44 = vld [vmem:[%s2335_s8 + $0x12c] sm:$0xf] }
  0x9b   : > { %1277 = vmatpush.bf16.msrb.mxu0 %v2047_v51  ;;  %1326 = vmatpush.bf16.msrb.mxu1 %v2055_v52  ;;  %v1643_v51 = vor.u32 %v1983_v46, %v1642_v45  ;;  %v1647_v52 = vor.u32 %v1980_v47, %v1644_v48  ;;  %v1732_v45 = vld [vmem:[%s2335_s8 + $0x140] sm:$0xf0]  ;;  %v1738_v46 = vld [vmem:[%s2335_s8 + $0x130] sm:$0xf]  ;;  %v2007_v47 = vld [vmem:[%s2335_s8 + $0x144] sm:$0xf0] }
  0x9c   : > { %v2004_v48 = vld [vmem:[%s2335_s8 + $0x134] sm:$0xf]  ;;  %v1739_v55 = vor.u32 %v2007_v47, %v1738_v46 }
  0x9d   : > { %1180 = vmatpush.bf16.msrb.mxu2 %v2030_v53  ;;  %v1658_v53 = vld [vmem:[%s2335_s8 + $0x98] sm:$0xf]  ;;  %v387_v46 = vld [vmem:[#allocation2 + $0x30] sm:$0xff] }
  0x9e   : > { %1229 = vmatpush.bf16.msrb.mxu3 %v2038_v54  ;;  %v1988_v54 = vld [vmem:[%s2335_s8 + $0xac] sm:$0xf0] }
  0x9f   : > { %1278 = vmatpush.bf16.msrb.mxu0 %v2046_v63  ;;  %1327 = vmatpush.bf16.msrb.mxu1 %v2054_v4  ;;  %v1659_v61 = vor.u32 %v1988_v54, %v1658_v53  ;;  %v1667_v63 = vor.u32 %v1989_v58, %v1666_v57  ;;  %v1684_v4 = vld [vmem:[%s2335_s8 + $0xe0] sm:$0xf0]  ;;  %v1731_v53 = vor.u32 %v2006_v43, %v1730_v42 }
  0xa0   : > { %1113 = vmatmul.bf16.gmra.mxu2 %v1723_v0  ;;  %1093 = vmatmul.bf16.gmra.mxu0 %v1627_v2  ;;  %v1671_v0 = vor.u32 %v1986_v59, %v1668_v60  ;;  %v1994_v2 = vld [vmem:[%s2335_s8 + $0xdc] sm:$0xf0]  ;;  %v1735_v54 = vor.u32 %v2003_v44, %v1732_v45 }
  0xa1   : > { %1162 = vmatmul.bf16.gmra.mxu3 %v1727_v1  ;;  %v1682_v1 = vld [vmem:[%s2335_s8 + $0xc8] sm:$0xf] }
  0xa2   : > { %1142 = vmatmul.bf16.gmra.mxu1 %v1631_v3  ;;  %v1991_v3 = vld [vmem:[%s2335_s8 + $0xcc] sm:$0xf]  ;;  %v1683_v9 = vor.u32 %v1994_v2, %v1682_v1  ;;  %v2012_v1 = vld [vmem:[%s2335_s8 + $0x16c] sm:$0xf0]  ;;  %v2009_v2 = vld [vmem:[%s2335_s8 + $0x15c] sm:$0xf] }
  0xa3   : > { %v1687_v10 = vor.u32 %v1991_v3, %v1684_v4  ;;  %v1756_v3 = vld [vmem:[%s2335_s8 + $0x170] sm:$0xf0]  ;;  %v1762_v4 = vld [vmem:[%s2335_s8 + $0x160] sm:$0xf] }
  0xb0   : > { %1118 = vmatmul.bf16.gmra.mxu2 %v1747_v13  ;;  %1098 = vmatmul.bf16.gmra.mxu0 %v1651_v15 }
  0xb1   : > { %1167 = vmatmul.bf16.gmra.mxu3 %v1751_v14 }
  0xb2   : > { %1147 = vmatmul.bf16.gmra.mxu1 %v1655_v16 }
  0xc0   : > { %1181 = vmatmul.bf16.vlgmr.msrb.gmra.mxu2 %v1587_v25  ;;  %1279 = vmatmul.bf16.vlgmr.msrb.gmra.mxu0 %v1595_v27  ;;  %v2001_v25 = vld [vmem:[%s2335_s8 + $0x114] sm:$0xf0]  ;;  %v1716_v27 = vld [vmem:[%s2335_s8 + $0x118] sm:$0xf0] }
  0xc1   : > { %1230 = vmatmul.bf16.vlgmr.msrb.gmra.mxu3 %v1591_v26  ;;  %v1998_v26 = vld [vmem:[%s2335_s8 + $0x104] sm:$0xf]  ;;  %v1715_v33 = vor.u32 %v2001_v25, %v1714_v24 }
  0xc2   : > { %1328 = vmatmul.bf16.vlgmr.msrb.gmra.mxu1 %v1599_v28  ;;  %v1719_v34 = vor.u32 %v1998_v26, %v1716_v27 }
  0xd0   : > { %1186 = vmatmul.bf16.gmra.mxu2 %v1611_v37  ;;  %1284 = vmatmul.bf16.gmra.mxu0 %v1619_v39 }
  0xd1   : > { %1235 = vmatmul.bf16.gmra.mxu3 %v1615_v38 }
  0xd2   : > { %1333 = vmatmul.bf16.gmra.mxu1 %v1623_v40 }
  0xe0   : > { %1191 = vmatmul.bf16.gmra.mxu2 %v1635_v49  ;;  %1289 = vmatmul.bf16.gmra.mxu0 %v1643_v51  ;;  %v1740_v49 = vld [vmem:[%s2335_s8 + $0x148] sm:$0xf0] }
  0xe1   : > { %1240 = vmatmul.bf16.gmra.mxu3 %v1639_v50  ;;  %v1743_v56 = vor.u32 %v2004_v48, %v1740_v49 }
  0xe2   : > { %1338 = vmatmul.bf16.gmra.mxu1 %v1647_v52 }
  0xf0   : > { %1196 = vmatmul.bf16.gmra.mxu2 %v1659_v61  ;;  %1294 = vmatmul.bf16.gmra.mxu0 %v1667_v63 }
  0xf1   : > { %1245 = vmatmul.bf16.gmra.mxu3 %v1663_v62 }
  0xf2   : > { %1343 = vmatmul.bf16.gmra.mxu1 %v1671_v0  ;;  %v1754_v0 = vld [vmem:[%s2335_s8 + $0x158] sm:$0xf] }
  0xfd   : > { %v2458_v13 = vpop.f32.mrf.mxu0 }
  0xff   : > { %v2460_v14 = vpop.f32.mrf.mxu1 }
 0x100   : > { %1201 = vmatmul.bf16.gmra.mxu2 %v1683_v9  ;;  %1299 = vmatmul.bf16.gmra.mxu0 %v1691_v11  ;;  %v1755_v11 = vor.u32 %v2012_v1, %v1754_v0 }
 0x101   : > { %1250 = vmatmul.bf16.gmra.mxu3 %v1687_v10 }
 0x102   : > { %1348 = vmatmul.bf16.gmra.mxu1 %v1695_v12  ;;  %v1759_v12 = vor.u32 %v2009_v2, %v1756_v3 }
 0x103   : > { %v1104_v15 = vpop.f32.mrf.mxu2 }
 0x104   : > { %v1153_v16 = vpop.f32.mrf.mxu3 }
 0x105   : > { %v2462_v17 = vadd.f32 %v1153_v16, %v1104_v15  ;;  %v2464_v18 = vpop.f32.mrf.mxu0  ;;  %v1763_v15 = vor.u32 %v2013_v5, %v1762_v4  ;;  %v1767_v16 = vor.u32 %v2010_v6, %v1764_v7  ;;  %v389_v6 = vld [vmem:[#allocation2 + $0x58] sm:$0xff] }
 0x107   : > { %v2466_v19 = vpop.f32.mrf.mxu1 }
 0x108   : > { %v1136_v47 = vadd.f32 %v2466_v19, %v2464_v18 }
 0x10b   : > { %v1106_v28 = vpop.f32.mrf.mxu2 }
 0x10c   : > { %v1155_v29 = vpop.f32.mrf.mxu3 }
 0x10d   : > { %v2476_v30 = vadd.f32 %v1155_v29, %v1106_v28  ;;  %v2478_v35 = vpop.f32.mrf.mxu0 }
 0x10f   : > { %v2480_v36 = vpop.f32.mrf.mxu1 }
 0x110   : > { %1206 = vmatmul.bf16.gmra.mxu2 %v1707_v31  ;;  %1304 = vmatmul.bf16.gmra.mxu0 %v1715_v33  ;;  %v1134_v33 = vadd.f32 %v2460_v14, %v2458_v13 }
 0x111   : > { %1255 = vmatmul.bf16.gmra.mxu3 %v1711_v32 }
 0x112   : > { %1353 = vmatmul.bf16.gmra.mxu1 %v1719_v34 }
 0x113   : > { %v1109_v37 = vpop.f32.mrf.mxu2 }
 0x114   : > { %v1158_v38 = vpop.f32.mrf.mxu3 }
 0x115   : > { %v2482_v39 = vadd.f32 %v1158_v38, %v1109_v37  ;;  %v2484_v40 = vpop.f32.mrf.mxu0 }
 0x117   : > { %v2486_v41 = vpop.f32.mrf.mxu1 }
 0x118   : > { %v1141_v7 = vadd.f32 %v2486_v41, %v2484_v40 }
 0x11b   : > { %v1111_v50 = vpop.f32.mrf.mxu2 }
 0x11c   : > { %v1160_v51 = vpop.f32.mrf.mxu3 }
 0x11d   : > { %v2496_v52 = vadd.f32 %v1160_v51, %v1111_v50  ;;  %v2498_v57 = vpop.f32.mrf.mxu0 }
 0x11f   : > { %v2500_v58 = vpop.f32.mrf.mxu1 }
 0x120   : > { %1211 = vmatmul.bf16.gmra.mxu2 %v1731_v53  ;;  %1309 = vmatmul.bf16.gmra.mxu0 %v1739_v55 }
 0x121   : > { %1260 = vmatmul.bf16.gmra.mxu3 %v1735_v54 }
 0x122   : > { %1358 = vmatmul.bf16.gmra.mxu1 %v1743_v56  ;;  %v388_v56 = vld [vmem:[#allocation2] sm:$0xff] }
 0x123   : > { %v1114_v59 = vpop.f32.mrf.mxu2 }
 0x124   : > { %v1163_v60 = vpop.f32.mrf.mxu3 }
 0x125   : > { %v2502_v61 = vadd.f32 %v1163_v60, %v1114_v59  ;;  %v2504_v62 = vpop.f32.mrf.mxu0  ;;  %v1139_v59 = vadd.f32 %v2480_v36, %v2478_v35 }
 0x127   : > { %v2506_v63 = vpop.f32.mrf.mxu1 }
 0x12b   : > { %v1116_v8 = vpop.f32.mrf.mxu2 }
 0x12c   : > { %v1165_v9 = vpop.f32.mrf.mxu3 }
 0x12d   : > { %v2516_v10 = vadd.f32 %v1165_v9, %v1116_v8  ;;  %v2518_v20 = vpop.f32.mrf.mxu0 }
 0x12f   : > { %v2520_v21 = vpop.f32.mrf.mxu1 }
 0x130   : > { %1216 = vmatmul.bf16.gmra.mxu2 %v1755_v11  ;;  %1314 = vmatmul.bf16.gmra.mxu0 %v1763_v15 }
 0x131   : > { %1265 = vmatmul.bf16.gmra.mxu3 %v1759_v12 }
 0x132   : > { %1363 = vmatmul.bf16.gmra.mxu1 %v1767_v16 }
 0x133   : > { %v1119_v22 = vpop.f32.mrf.mxu2 }
 0x134   : > { %v1168_v23 = vpop.f32.mrf.mxu3 }
 0x135   : > { %v2522_v24 = vadd.f32 %v1168_v23, %v1119_v22  ;;  %v2524_v25 = vpop.f32.mrf.mxu0  ;;  %v390_v23 = vld [vmem:[#allocation2 + $0x18] sm:$0xff] }
 0x137   : > { %v2526_v26 = vpop.f32.mrf.mxu1 }
 0x13b   : > { %v1121_v27 = vpop.f32.mrf.mxu2 }
 0x13c   : > { %v1170_v28 = vpop.f32.mrf.mxu3 }
 0x13d   : > { %v2528_v29 = vadd.f32 %v1170_v28, %v1121_v27  ;;  %v1280_v31 = vpop.f32.mrf.mxu0  ;;  %v1144_v27 = vadd.f32 %v2500_v58, %v2498_v57 }
 0x13f   : > { %v1329_v32 = vpop.f32.mrf.mxu1 }
 0x143   : > { %v1182_v34 = vpop.f32.mrf.mxu2 }
 0x144   : > { %v1231_v37 = vpop.f32.mrf.mxu3  ;;  %v1183_v38 = vadd.f32 %v1182_v34, %v1134_v33 }
 0x145   : > { %v1282_v43 = vpop.f32.mrf.mxu0 }
 0x146   : > { %v1232_v42 = vadd.f32 %v1231_v37, %v1183_v38 }
 0x147   : > { %v1331_v44 = vpop.f32.mrf.mxu1 }
 0x148   : > { %v1281_v45 = vadd.f32 %v1280_v31, %v1232_v42  ;;  %v391_v42 = vld [vmem:[#allocation2 + $0x50] sm:$0xff] }
 0x14a   : > { %v1330_v48 = vadd.f32 %v1329_v32, %v1281_v45 }
 0x14b   : > { %v1184_v49 = vpop.f32.mrf.mxu2 }
 0x14c   : > { %v1233_v50 = vpop.f32.mrf.mxu3  ;;  %v1369_v51 = vadd.f32 %v1330_v48, %v387_v46  ;;  %v1185_v53 = vadd.f32 %v1184_v49, %v1136_v47 }
 0x14d   : > { %v1285_v55 = vpop.f32.mrf.mxu0 }
 0x14e   : > { %1385 = vst [vmem:[#allocation2 + $0x30] sm:$0xff] %v1369_v51  ;;  %v1234_v54 = vadd.f32 %v1233_v50, %v1185_v53  ;;  %v392_v51 = vld [vmem:[#allocation2 + $0x68] sm:$0xff]  ;;  %v1149_v53 = vadd.f32 %v2520_v21, %v2518_v20 }
 0x14f   : > { %v1334_v13 = vpop.f32.mrf.mxu1 }
 0x150   : > { %v1283_v14 = vadd.f32 %v1282_v43, %v1234_v54  ;;  %v1146_v43 = vadd.f32 %v2506_v63, %v2504_v62 }
 0x152   : > { %v1332_v60 = vadd.f32 %v1331_v44, %v1283_v14 }
 0x153   : > { %v1187_v0 = vpop.f32.mrf.mxu2 }
 0x154   : > { %v1236_v1 = vpop.f32.mrf.mxu3  ;;  %v1370_v2 = vadd.f32 %v1332_v60, %v388_v56  ;;  %v1188_v3 = vadd.f32 %v1187_v0, %v1139_v59  ;;  %v393_v0 = vld [vmem:[#allocation2 + $0x8] sm:$0xff] }
 0x155   : > { %v1287_v19 = vpop.f32.mrf.mxu0 }
 0x156   : > { %1386 = vst [vmem:[#allocation2] sm:$0xff] %v1370_v2  ;;  %v1237_v18 = vadd.f32 %v1236_v1, %v1188_v3  ;;  %v1151_v1 = vadd.f32 %v2526_v26, %v2524_v25 }
 0x157   : > { %v1336_v4 = vpop.f32.mrf.mxu1 }
 0x158   : > { %v1286_v5 = vadd.f32 %v1285_v55, %v1237_v18 }
 0x15a   : > { %v1335_v8 = vadd.f32 %v1334_v13, %v1286_v5 }
 0x15b   : > { %v1189_v9 = vpop.f32.mrf.mxu2 }
 0x15c   : > { %v1238_v11 = vpop.f32.mrf.mxu3  ;;  %v1371_v12 = vadd.f32 %v1335_v8, %v389_v6  ;;  %v1190_v15 = vadd.f32 %v1189_v9, %v1141_v7  ;;  %v394_v7 = vld [vmem:[#allocation2 + $0x48] sm:$0xff] }
 0x15d   : > { %v1290_v36 = vpop.f32.mrf.mxu0 }
 0x15e   : > { %1387 = vst [vmem:[#allocation2 + $0x58] sm:$0xff] %v1371_v12  ;;  %v1239_v35 = vadd.f32 %v1238_v11, %v1190_v15 }
 0x15f   : > { %v1339_v16 = vpop.f32.mrf.mxu1 }
 0x160   : > { %v1288_v22 = vadd.f32 %v1287_v19, %v1239_v35 }
 0x162   : > { %v1337_v28 = vadd.f32 %v1336_v4, %v1288_v22 }
 0x163   : > { %v1192_v31 = vpop.f32.mrf.mxu2 }
 0x164   : > { %v1241_v32 = vpop.f32.mrf.mxu3  ;;  %v1372_v33 = vadd.f32 %v1337_v28, %v390_v23  ;;  %v1193_v34 = vadd.f32 %v1192_v31, %v1144_v27 }
 0x165   : > { %v1292_v41 = vpop.f32.mrf.mxu0 }
 0x166   : > { %1388 = vst [vmem:[#allocation2 + $0x18] sm:$0xff] %v1372_v33  ;;  %v1242_v40 = vadd.f32 %v1241_v32, %v1193_v34 }
 0x167   : > { %v1341_v37 = vpop.f32.mrf.mxu1 }
 0x168   : > { %v1291_v38 = vadd.f32 %v1290_v36, %v1242_v40 }
 0x16a   : > { %v1340_v44 = vadd.f32 %v1339_v16, %v1291_v38  ;;  %v395_v16 = vld [vmem:[#allocation2 + $0x40] sm:$0xff] }
 0x16b   : > { %v1194_v45 = vpop.f32.mrf.mxu2 }
 0x16c   : > { %v1243_v46 = vpop.f32.mrf.mxu3  ;;  %v1373_v47 = vadd.f32 %v1340_v44, %v391_v42  ;;  %v1195_v48 = vadd.f32 %v1194_v45, %v1146_v43 }
 0x16d   : > { %v1295_v58 = vpop.f32.mrf.mxu0 }
 0x16e   : > { %1389 = vst [vmem:[#allocation2 + $0x50] sm:$0xff] %v1373_v47  ;;  %v1244_v57 = vadd.f32 %v1243_v46, %v1195_v48  ;;  %v397_v48 = vld [vmem:[#allocation2 + $0x10] sm:$0xff] }
 0x16f   : > { %v1344_v49 = vpop.f32.mrf.mxu1 }
 0x170   : > { %v1293_v50 = vadd.f32 %v1292_v41, %v1244_v57  ;;  %v396_v41 = vld [vmem:[#allocation2 + $0x20] sm:$0xff] }
 0x172   : > { %v1342_v54 = vadd.f32 %v1341_v37, %v1293_v50 }
 0x173   : > { %v1197_v55 = vpop.f32.mrf.mxu2 }
 0x174   : > { %v1246_v13 = vpop.f32.mrf.mxu3  ;;  %v1374_v14 = vadd.f32 %v1342_v54, %v392_v51  ;;  %v1198_v56 = vadd.f32 %v1197_v55, %v1149_v53  ;;  %v398_v55 = vld [vmem:[#allocation2 + $0x38] sm:$0xff] }
 0x175   : > { %v1297_v63 = vpop.f32.mrf.mxu0 }
 0x176   : > { %1390 = vst [vmem:[#allocation2 + $0x68] sm:$0xff] %v1374_v14  ;;  %v1247_v62 = vadd.f32 %v1246_v13, %v1198_v56 }
 0x177   : > { %v1346_v59 = vpop.f32.mrf.mxu1 }
 0x178   : > { %v1296_v60 = vadd.f32 %v1295_v58, %v1247_v62 }
 0x17a   : > { %v1345_v2 = vadd.f32 %v1344_v49, %v1296_v60 }
 0x17b   : > { %v1199_v3 = vpop.f32.mrf.mxu2 }
 0x17c   : > { %v1248_v18 = vpop.f32.mrf.mxu3  ;;  %v1375_v19 = vadd.f32 %v1345_v2, %v393_v0  ;;  %v1200_v4 = vadd.f32 %v1199_v3, %v1151_v1  ;;  %v399_v0 = vld [vmem:[#allocation2 + $0x60] sm:$0xff] }
 0x17d   : > { %v1300_v21 = vpop.f32.mrf.mxu0 }
 0x17e   : > { %1391 = vst [vmem:[#allocation2 + $0x8] sm:$0xff] %v1375_v19  ;;  %v1249_v20 = vadd.f32 %v1248_v18, %v1200_v4 }
 0x17f   : > { %v1349_v5 = vpop.f32.mrf.mxu1 }
 0x180   : > { %v1298_v6 = vadd.f32 %v1297_v63, %v1249_v20 }
 0x182   : > { %v1347_v8 = vadd.f32 %v1346_v59, %v1298_v6 }
 0x183   : > { %v1202_v9 = vpop.f32.mrf.mxu2 }
 0x184   : > { %v1251_v11 = vpop.f32.mrf.mxu3  ;;  %v1376_v12 = vadd.f32 %v1347_v8, %v394_v7  ;;  %v1203_v15 = vadd.f32 %v1202_v9, %v2462_v17 }
 0x185   : > { %v1302_v25 = vpop.f32.mrf.mxu0 }
 0x186   : > { %1392 = vst [vmem:[#allocation2 + $0x48] sm:$0xff] %v1376_v12  ;;  %v1252_v35 = vadd.f32 %v1251_v11, %v1203_v15 }
 0x187   : > { %v1351_v26 = vpop.f32.mrf.mxu1 }
 0x188   : > { %v1301_v36 = vadd.f32 %v1300_v21, %v1252_v35 }
 0x18a   : > { %v1350_v22 = vadd.f32 %v1349_v5, %v1301_v36  ;;  %v400_v5 = vld [vmem:[#allocation2 + $0x70] sm:$0xff] }
 0x18b   : > { %v1204_v23 = vpop.f32.mrf.mxu2 }
 0x18c   : > { %v1253_v27 = vpop.f32.mrf.mxu3  ;;  %v1377_v28 = vadd.f32 %v1350_v22, %v395_v16  ;;  %v1205_v31 = vadd.f32 %v1204_v23, %v2476_v30 }
 0x18d   : > { %v1305_v33 = vpop.f32.mrf.mxu0 }
 0x18e   : > { %1393 = vst [vmem:[#allocation2 + $0x40] sm:$0xff] %v1377_v28  ;;  %v1254_v32 = vadd.f32 %v1253_v27, %v1205_v31 }
 0x18f   : > { %v1354_v34 = vpop.f32.mrf.mxu1 }
 0x190   : > { %v1303_v40 = vadd.f32 %v1302_v25, %v1254_v32  ;;  %v401_v25 = vld [vmem:[#allocation2 + $0x78] sm:$0xff]  ;;  %v402_v32 = vld [vmem:[#allocation2 + $0x28] sm:$0xff] }
 0x192   : > { %v1352_v37 = vadd.f32 %v1351_v26, %v1303_v40 }
 0x193   : > { %v1207_v17 = vpop.f32.mrf.mxu2 }
 0x194   : > { %v1256_v38 = vpop.f32.mrf.mxu3  ;;  %v1378_v42 = vadd.f32 %v1352_v37, %v396_v41  ;;  %v1208_v43 = vadd.f32 %v1207_v17, %v2482_v39 }
 0x195   : > { %v1307_v45 = vpop.f32.mrf.mxu0 }
 0x196   : > { %1394 = vst [vmem:[#allocation2 + $0x20] sm:$0xff] %v1378_v42  ;;  %v1257_v44 = vadd.f32 %v1256_v38, %v1208_v43 }
 0x197   : > { %v1356_v47 = vpop.f32.mrf.mxu1 }
 0x198   : > { %v1306_v46 = vadd.f32 %v1305_v33, %v1257_v44 }
 0x19a   : > { %v1355_v57 = vadd.f32 %v1354_v34, %v1306_v46 }
 0x19b   : > { %v1209_v30 = vpop.f32.mrf.mxu2 }
 0x19c   : > { %v1258_v58 = vpop.f32.mrf.mxu3  ;;  %v1379_v49 = vadd.f32 %v1355_v57, %v397_v48  ;;  %v1210_v50 = vadd.f32 %v1209_v30, %v2496_v52 }
 0x19d   : > { %v1310_v54 = vpop.f32.mrf.mxu0 }
 0x19e   : > { %1395 = vst [vmem:[#allocation2 + $0x10] sm:$0xff] %v1379_v49  ;;  %v1259_v51 = vadd.f32 %v1258_v58, %v1210_v50 }
 0x19f   : > { %v1359_v14 = vpop.f32.mrf.mxu1 }
 0x1a0   : > { %v1308_v53 = vadd.f32 %v1307_v45, %v1259_v51 }
 0x1a2   : > { %v1357_v13 = vadd.f32 %v1356_v47, %v1308_v53 }
 0x1a3   : > { %v1212_v39 = vpop.f32.mrf.mxu2 }
 0x1a4   : > { %v1261_v56 = vpop.f32.mrf.mxu3  ;;  %v1380_v62 = vadd.f32 %v1357_v13, %v398_v55  ;;  %v1213_v63 = vadd.f32 %v1212_v39, %v2502_v61 }
 0x1a5   : > { %v1312_v2 = vpop.f32.mrf.mxu0 }
 0x1a6   : > { %1396 = vst [vmem:[#allocation2 + $0x38] sm:$0xff] %v1380_v62  ;;  %v1262_v59 = vadd.f32 %v1261_v56, %v1213_v63 }
 0x1a7   : > { %v1361_v4 = vpop.f32.mrf.mxu1 }
 0x1a8   : > { %v1311_v60 = vadd.f32 %v1310_v54, %v1262_v59 }
 0x1aa   : > { %v1360_v1 = vadd.f32 %v1359_v14, %v1311_v60 }
 0x1ab   : > { %v1214_v3 = vpop.f32.mrf.mxu2 }
 0x1ac   : > { %v1263_v52 = vpop.f32.mrf.mxu3  ;;  %v1381_v18 = vadd.f32 %v1360_v1, %v399_v0  ;;  %v1215_v19 = vadd.f32 %v1214_v3, %v2516_v10 }
 0x1ad   : > { %v1315_v11 = vpop.f32.mrf.mxu0 }
 0x1ae   : > { %1397 = vst [vmem:[#allocation2 + $0x60] sm:$0xff] %v1381_v18  ;;  %v1264_v20 = vadd.f32 %v1263_v52, %v1215_v19 }
 0x1af   : > { %v1364_v15 = vpop.f32.mrf.mxu1 }
 0x1b0   : > { %v1313_v21 = vadd.f32 %v1312_v2, %v1264_v20 }
 0x1b2   : > { %v1362_v6 = vadd.f32 %v1361_v4, %v1313_v21 }
 0x1b3   : > { %v1217_v7 = vpop.f32.mrf.mxu2 }
 0x1b4   : > { %v1266_v8 = vpop.f32.mrf.mxu3  ;;  %v1382_v61 = vadd.f32 %v1362_v6, %v400_v5  ;;  %v1218_v9 = vadd.f32 %v1217_v7, %v2522_v24 }
 0x1b5   : > { %v1317_v27 = vpop.f32.mrf.mxu0 }
 0x1b6   : > { %1398 = vst [vmem:[#allocation2 + $0x70] sm:$0xff] %v1382_v61  ;;  %v1267_v12 = vadd.f32 %v1266_v8, %v1218_v9 }
 0x1b7   : > { %v1366_v31 = vpop.f32.mrf.mxu1 }
 0x1b8   : > { %v1316_v35 = vadd.f32 %v1315_v11, %v1267_v12 }
 0x1ba   : > { %v1365_v26 = vadd.f32 %v1364_v15, %v1316_v35 }
 0x1bb   : > { %v1219_v36 = vpop.f32.mrf.mxu2 }
 0x1bc   : > { %v1383_v10 = vadd.f32 %v1365_v26, %v401_v25  ;;  %v1220_v16 = vadd.f32 %v1219_v36, %v2528_v29  ;;  %v1268_v22 = vpop.f32.mrf.mxu3 }
 0x1be   : > { %1399 = vst [vmem:[#allocation2 + $0x78] sm:$0xff] %v1383_v10  ;;  %v1269_v23 = vadd.f32 %v1268_v22, %v1220_v16 }
 0x1c0   : > { %v1318_v28 = vadd.f32 %v1317_v27, %v1269_v23 }
 0x1c2   : > { %v1367_v33 = vadd.f32 %v1366_v31, %v1318_v28  ;;  %1404 = sbr.rel (%p1960_p11) target bundleno = 474 (0x1da), region = 63 }
 0x1c4   : > { %v1384_v24 = vadd.f32 %v1367_v33, %v402_v32 }
 0x1c6   : > { %1400 = vst [vmem:[#allocation2 + $0x28] sm:$0xff] %v1384_v24 }
 0x1c7   : > { %v1405_v34 = vld [vmem:[#allocation2 + $0x30] sm:$0xff]  ;;  %v2121_v40 = vld [vmem:[%s2623_s2] ss:$0 sm:$0xff]  ;;  %v1407_v29 = vld [vmem:[#allocation2 + $0x58] sm:$0xff] }
 0x1c8   : > { %v1406_v41 = vld [vmem:[#allocation2] sm:$0xff]  ;;  %v1408_v37 = vld [vmem:[#allocation2 + $0x18] sm:$0xff]  ;;  %v1425_v17 = vadd.f32 %v2121_v40, %v1405_v34  ;;  %v1427_v42 = vadd.f32 %v2121_v40, %v1407_v29  ;;  %v1409_v43 = vld [vmem:[#allocation2 + $0x50] sm:$0xff] }
 0x1c9   : > { %v1426_v38 = vadd.f32 %v2121_v40, %v1406_v41  ;;  %v1410_v44 = vld [vmem:[#allocation2 + $0x68] sm:$0xff]  ;;  %v1428_v45 = vadd.f32 %v2121_v40, %v1408_v37  ;;  %v1429_v47 = vadd.f32 %v2121_v40, %v1409_v43  ;;  %v1413_v30 = vld [vmem:[#allocation2 + $0x40] sm:$0xff]  ;;  %v1415_v51 = vld [vmem:[#allocation2 + $0x10] sm:$0xff] }
 0x1ca   : > { %v1411_v46 = vld [vmem:[#allocation2 + $0x8] sm:$0xff]  ;;  %1441 = vst [vmem:[%s2624_s3] sm:$0xff] %v1425_v17  ;;  %v1430_v57 = vadd.f32 %v2121_v40, %v1410_v44  ;;  %v1414_v49 = vld [vmem:[#allocation2 + $0x20] sm:$0xff]  ;;  %v1433_v53 = vadd.f32 %v2121_v40, %v1413_v30  ;;  %v1416_v54 = vld [vmem:[#allocation2 + $0x38] sm:$0xff]  ;;  %v1435_v14 = vadd.f32 %v2121_v40, %v1415_v51 }
 0x1cb   : > { %v1412_v48 = vld [vmem:[#allocation2 + $0x48] sm:$0xff]  ;;  %1442 = vst [vmem:[%s2624_s3 + $0x8] sm:$0xff] %v1426_v38  ;;  %v1431_v58 = vadd.f32 %v2121_v40, %v1411_v46  ;;  %v1434_v55 = vadd.f32 %v2121_v40, %v1414_v49  ;;  %v1417_v13 = vld [vmem:[#allocation2 + $0x60] sm:$0xff]  ;;  %v1418_v39 = vld [vmem:[#allocation2 + $0x70] sm:$0xff]  ;;  %v1436_v56 = vadd.f32 %v2121_v40, %v1416_v54 }
 0x1cc   : > { %1443 = vst [vmem:[%s2624_s3 + $0x10] sm:$0xff] %v1427_v42  ;;  %v1432_v50 = vadd.f32 %v2121_v40, %v1412_v48  ;;  %v1419_v62 = vld [vmem:[#allocation2 + $0x78] sm:$0xff]  ;;  %v1437_v63 = vadd.f32 %v2121_v40, %v1417_v13  ;;  %v1438_v60 = vadd.f32 %v2121_v40, %v1418_v39 }
 0x1cd   : > { %1444 = vst [vmem:[%s2624_s3 + $0x18] sm:$0xff] %v1428_v45  ;;  %v1420_v59 = vld [vmem:[#allocation2 + $0x28] sm:$0xff]  ;;  %v1439_v0 = vadd.f32 %v2121_v40, %v1419_v62 }
 0x1ce   : > { %1445 = vst [vmem:[%s2624_s3 + $0x20] sm:$0xff] %v1429_v47  ;;  %v1440_v1 = vadd.f32 %v2121_v40, %v1420_v59 }
 0x1cf   : > { %1446 = vst [vmem:[%s2624_s3 + $0x28] sm:$0xff] %v1430_v57 }
 0x1d0   : > { %1447 = vst [vmem:[%s2624_s3 + $0x30] sm:$0xff] %v1431_v58 }
 0x1d1   : > { %1448 = vst [vmem:[%s2624_s3 + $0x38] sm:$0xff] %v1432_v50 }
 0x1d2   : > { %1449 = vst [vmem:[%s2624_s3 + $0x40] sm:$0xff] %v1433_v53 }
 0x1d3   : > { %1450 = vst [vmem:[%s2624_s3 + $0x48] sm:$0xff] %v1434_v55 }
 0x1d4   : > { %1451 = vst [vmem:[%s2624_s3 + $0x50] sm:$0xff] %v1435_v14 }
 0x1d5   : > { %1452 = vst [vmem:[%s2624_s3 + $0x58] sm:$0xff] %v1436_v56 }
 0x1d6   : > { %1453 = vst [vmem:[%s2624_s3 + $0x60] sm:$0xff] %v1437_v63 }
 0x1d7   : > { %1454 = vst [vmem:[%s2624_s3 + $0x68] sm:$0xff] %v1438_v60 }
 0x1d8   : > { %1455 = vst [vmem:[%s2624_s3 + $0x70] sm:$0xff] %v1439_v0 }
 0x1d9   : > { %1456 = vst [vmem:[%s2624_s3 + $0x78] sm:$0xff] %v1440_v1 }
 0x1da PF: > { %s13_s16 = sadd.s32 1, %s2160_s16   ;;  %s2625_s12 = smov %s2148_s13 }
 0x1db   : > { %p10_p12 = scmp.ge.s32.totalorder %s13_s16, 5   ;;  %s2626_s13 = smov %s2218_s20 }
 0x1dc   : > { %s2627_s14 = smov %s2156_s15  ;;  %s2628_s15 = smov %s2630_s17 }
 0x1dd   :  { %12 = sbr.rel (!%p10_p12) target bundleno = 3 (0x3), region = 104 }

// kernel: forward.17
= control target key start
LH: loop header
LB: loop body
LE: loop exit
PB: predicated region body
PF: predicated region fallthrough
CT: control target
= control target key end

     0   :  { %s3038_s12 = smov 0   ;;  %s3040_s13 = smov 0   ;;  %s3920_s0 = inlined_call_operand.vmem [shape: bf16[128,2304], index: 0, kind: input, shape index: {}]   ;;  %s3921_s1 = inlined_call_operand.vmem [shape: bf16[2304,256], index: 1, kind: input, shape index: {}]   ;;  %s3922_s2 = inlined_call_operand.vmem [shape: f32[1,256], index: 2, kind: input, shape index: {}]   ;;  %s3923_s3 = inlined_call_operand.vmem [shape: f32[128,256], index: 3, kind: output, shape index: {}]  }
   0x1   :  { %s3042_s14 = smov 0   ;;  %s3044_s15 = smov 0  }
   0x2   :  { %s3046_s16 = smov 0  }
   0x3 LB: > { %s25_s17 = sadd.s32 1, %s3011_s15  ;;  %p48_p1 = scmp.ne.s32.totalorder %s3003_s13, %s2999_s12  ;;  %s3015_s16 = sphi %s3046_s16, %s13_s16   ;;  %s3011_s15 = sphi %s3044_s15, %s3927_s15   ;;  %s3007_s14 = sphi %s3042_s14, %s3926_s14   ;;  %s3003_s13 = sphi %s3040_s13, %s3925_s13   ;;  %s2999_s12 = sphi %s3038_s12, %s3924_s12  }
   0x4   : > { %p26_p0 = scmp.ge.s32.totalorder %s25_s17, 3  ;;  %p49_p2 = scmp.eq.s32.totalorder %s3015_s16, 0 }
   0x5   : > { %s41_s19 = sadd.s32 1, %s3003_s13  ;;  %p2201_p5 = scmp.ge.s32.totalorder %s3015_s16, 3 }
   0x6   : > { %s3929_s17 = smov (%p26_p0, %s25_s17), 0  ;;  %p50_p3 = por %p49_p2, %p48_p1 }
   0x7   : > { %s37_s18 = ssub.s32 %s3011_s15, %s3929_s17  ;;  %164 = sbr.rel (%p2201_p5) target bundleno = 65 (0x41), region = 20 }
   0x8   : > { %p39_p4 = scmp.eq.s32.totalorder %s37_s18, 0 }
   0xa   : > { %s3073_s20 = scalar_select %p39_p4, %s3003_s13, %s41_s19  }
   0xc   : > { %167 = sbr.rel (!%p50_p3) target bundleno = 65 (0x41), region = 24  ;;  %s169_s21 = sand.u32 (%p50_p3), 1, %s3003_s13  }
   0xd   : > { %s2788_s22 = smul.u32 (%p50_p3), 24, %s3011_s15 }
   0xe   : > { %s2934_s23 = smul.u32 (%p50_p3), 384, %s169_s21 }
   0xf   : > { %s3081_s26 = scalar_lea.vmem (%p50_p3), %s3920_s0, %s2788_s22 }
  0x10   : > { %v190_v0 = vld [vmem:[%s3081_s26] sm:$0xff] (%p50_p3)  ;;  %v192_v1 = vld [vmem:[%s3081_s26 + $0x8] sm:$0xff] (%p50_p3)  ;;  %v194_v2 = vld [vmem:[%s3081_s26 + $0x10] sm:$0xff] (%p50_p3)  ;;  %s3086_s27 = scalar_lea.vmem (%p50_p3), [#allocation3], %s2934_s23 }
  0x11   : > { %191 = vst [vmem:[%s3086_s27] sm:$0xff] %v190_v0  ;;  %v196_v3 = vld [vmem:[%s3081_s26 + $0x48] sm:$0xff]  ;;  %v198_v4 = vld [vmem:[%s3081_s26 + $0x50] sm:$0xff]  ;;  %v200_v5 = vld [vmem:[%s3081_s26 + $0x58] sm:$0xff] }
  0x12   : > { %193 = vst [vmem:[%s3086_s27 + $0x8] sm:$0xff] %v192_v1  ;;  %v202_v6 = vld [vmem:[%s3081_s26 + $0x90] sm:$0xff]  ;;  %v204_v7 = vld [vmem:[%s3081_s26 + $0x98] sm:$0xff]  ;;  %v206_v8 = vld [vmem:[%s3081_s26 + $0xa0] sm:$0xff] }
  0x13   : > { %195 = vst [vmem:[%s3086_s27 + $0x10] sm:$0xff] %v194_v2  ;;  %v208_v9 = vld [vmem:[%s3081_s26 + $0xd8] sm:$0xff]  ;;  %v210_v10 = vld [vmem:[%s3081_s26 + $0xe0] sm:$0xff]  ;;  %v212_v11 = vld [vmem:[%s3081_s26 + $0xe8] sm:$0xff] }
  0x14   : > { %197 = vst [vmem:[%s3086_s27 + $0x18] sm:$0xff] %v196_v3  ;;  %v214_v12 = vld [vmem:[%s3081_s26 + $0x120] sm:$0xff]  ;;  %v216_v13 = vld [vmem:[%s3081_s26 + $0x128] sm:$0xff]  ;;  %v218_v14 = vld [vmem:[%s3081_s26 + $0x130] sm:$0xff] }
  0x15   : > { %199 = vst [vmem:[%s3086_s27 + $0x20] sm:$0xff] %v198_v4  ;;  %v220_v15 = vld [vmem:[%s3081_s26 + $0x168] sm:$0xff]  ;;  %v222_v16 = vld [vmem:[%s3081_s26 + $0x170] sm:$0xff]  ;;  %v224_v17 = vld [vmem:[%s3081_s26 + $0x178] sm:$0xff] }
  0x16   : > { %201 = vst [vmem:[%s3086_s27 + $0x28] sm:$0xff] %v200_v5  ;;  %v226_v18 = vld [vmem:[%s3081_s26 + $0x1b0] sm:$0xff]  ;;  %v228_v19 = vld [vmem:[%s3081_s26 + $0x1b8] sm:$0xff]  ;;  %v230_v20 = vld [vmem:[%s3081_s26 + $0x1c0] sm:$0xff] }
  0x17   : > { %203 = vst [vmem:[%s3086_s27 + $0x30] sm:$0xff] %v202_v6  ;;  %v232_v21 = vld [vmem:[%s3081_s26 + $0x1f8] sm:$0xff]  ;;  %v234_v22 = vld [vmem:[%s3081_s26 + $0x200] sm:$0xff]  ;;  %v236_v23 = vld [vmem:[%s3081_s26 + $0x208] sm:$0xff] }
  0x18   : > { %205 = vst [vmem:[%s3086_s27 + $0x38] sm:$0xff] %v204_v7  ;;  %v238_v24 = vld [vmem:[%s3081_s26 + $0x240] sm:$0xff]  ;;  %v240_v25 = vld [vmem:[%s3081_s26 + $0x248] sm:$0xff]  ;;  %v242_v26 = vld [vmem:[%s3081_s26 + $0x250] sm:$0xff] }
  0x19   : > { %207 = vst [vmem:[%s3086_s27 + $0x40] sm:$0xff] %v206_v8  ;;  %v244_v27 = vld [vmem:[%s3081_s26 + $0x288] sm:$0xff]  ;;  %v246_v28 = vld [vmem:[%s3081_s26 + $0x290] sm:$0xff]  ;;  %v248_v29 = vld [vmem:[%s3081_s26 + $0x298] sm:$0xff] }
  0x1a   : > { %209 = vst [vmem:[%s3086_s27 + $0x48] sm:$0xff] %v208_v9  ;;  %v250_v30 = vld [vmem:[%s3081_s26 + $0x2d0] sm:$0xff]  ;;  %v252_v31 = vld [vmem:[%s3081_s26 + $0x2d8] sm:$0xff]  ;;  %v254_v32 = vld [vmem:[%s3081_s26 + $0x2e0] sm:$0xff] }
  0x1b   : > { %211 = vst [vmem:[%s3086_s27 + $0x50] sm:$0xff] %v210_v10  ;;  %v256_v33 = vld [vmem:[%s3081_s26 + $0x318] sm:$0xff]  ;;  %v258_v34 = vld [vmem:[%s3081_s26 + $0x320] sm:$0xff]  ;;  %v260_v35 = vld [vmem:[%s3081_s26 + $0x328] sm:$0xff] }
  0x1c   : > { %213 = vst [vmem:[%s3086_s27 + $0x58] sm:$0xff] %v212_v11  ;;  %v262_v36 = vld [vmem:[%s3081_s26 + $0x360] sm:$0xff]  ;;  %v264_v37 = vld [vmem:[%s3081_s26 + $0x368] sm:$0xff]  ;;  %v266_v38 = vld [vmem:[%s3081_s26 + $0x370] sm:$0xff] }
  0x1d   : > { %215 = vst [vmem:[%s3086_s27 + $0x60] sm:$0xff] %v214_v12  ;;  %v268_v39 = vld [vmem:[%s3081_s26 + $0x3a8] sm:$0xff]  ;;  %v270_v40 = vld [vmem:[%s3081_s26 + $0x3b0] sm:$0xff]  ;;  %v272_v41 = vld [vmem:[%s3081_s26 + $0x3b8] sm:$0xff] }
  0x1e   : > { %217 = vst [vmem:[%s3086_s27 + $0x68] sm:$0xff] %v216_v13  ;;  %v274_v42 = vld [vmem:[%s3081_s26 + $0x3f0] sm:$0xff]  ;;  %v276_v43 = vld [vmem:[%s3081_s26 + $0x3f8] sm:$0xff]  ;;  %v278_v44 = vld [vmem:[%s3081_s26 + $0x400] sm:$0xff] }
  0x1f   : > { %219 = vst [vmem:[%s3086_s27 + $0x70] sm:$0xff] %v218_v14  ;;  %v280_v45 = vld [vmem:[%s3081_s26 + $0x438] sm:$0xff]  ;;  %v282_v46 = vld [vmem:[%s3081_s26 + $0x440] sm:$0xff]  ;;  %v284_v47 = vld [vmem:[%s3081_s26 + $0x448] sm:$0xff] }
  0x20   : > { %221 = vst [vmem:[%s3086_s27 + $0x78] sm:$0xff] %v220_v15 }
  0x21   : > { %223 = vst [vmem:[%s3086_s27 + $0x80] sm:$0xff] %v222_v16 }
  0x22   : > { %225 = vst [vmem:[%s3086_s27 + $0x88] sm:$0xff] %v224_v17 }
  0x23   : > { %227 = vst [vmem:[%s3086_s27 + $0x90] sm:$0xff] %v226_v18 }
  0x24   : > { %229 = vst [vmem:[%s3086_s27 + $0x98] sm:$0xff] %v228_v19 }
  0x25   : > { %231 = vst [vmem:[%s3086_s27 + $0xa0] sm:$0xff] %v230_v20 }
  0x26   : > { %233 = vst [vmem:[%s3086_s27 + $0xa8] sm:$0xff] %v232_v21 }
  0x27   : > { %235 = vst [vmem:[%s3086_s27 + $0xb0] sm:$0xff] %v234_v22 }
  0x28   : > { %237 = vst [vmem:[%s3086_s27 + $0xb8] sm:$0xff] %v236_v23 }
  0x29   : > { %239 = vst [vmem:[%s3086_s27 + $0xc0] sm:$0xff] %v238_v24 }
  0x2a   : > { %241 = vst [vmem:[%s3086_s27 + $0xc8] sm:$0xff] %v240_v25 }
  0x2b   : > { %243 = vst [vmem:[%s3086_s27 + $0xd0] sm:$0xff] %v242_v26 }
  0x2c   : > { %245 = vst [vmem:[%s3086_s27 + $0xd8] sm:$0xff] %v244_v27 }
  0x2d   : > { %247 = vst [vmem:[%s3086_s27 + $0xe0] sm:$0xff] %v246_v28 }
  0x2e   : > { %249 = vst [vmem:[%s3086_s27 + $0xe8] sm:$0xff] %v248_v29 }
  0x2f   : > { %251 = vst [vmem:[%s3086_s27 + $0xf0] sm:$0xff] %v250_v30 }
  0x30   : > { %253 = vst [vmem:[%s3086_s27 + $0xf8] sm:$0xff] %v252_v31 }
  0x31   : > { %255 = vst [vmem:[%s3086_s27 + $0x100] sm:$0xff] %v254_v32 }
  0x32   : > { %257 = vst [vmem:[%s3086_s27 + $0x108] sm:$0xff] %v256_v33 }
  0x33   : > { %259 = vst [vmem:[%s3086_s27 + $0x110] sm:$0xff] %v258_v34 }
  0x34   : > { %261 = vst [vmem:[%s3086_s27 + $0x118] sm:$0xff] %v260_v35 }
  0x35   : > { %263 = vst [vmem:[%s3086_s27 + $0x120] sm:$0xff] %v262_v36 }
  0x36   : > { %265 = vst [vmem:[%s3086_s27 + $0x128] sm:$0xff] %v264_v37 }
  0x37   : > { %267 = vst [vmem:[%s3086_s27 + $0x130] sm:$0xff] %v266_v38 }
  0x38   : > { %269 = vst [vmem:[%s3086_s27 + $0x138] sm:$0xff] %v268_v39 }
  0x39   : > { %271 = vst [vmem:[%s3086_s27 + $0x140] sm:$0xff] %v270_v40 }
  0x3a   : > { %273 = vst [vmem:[%s3086_s27 + $0x148] sm:$0xff] %v272_v41 }
  0x3b   : > { %275 = vst [vmem:[%s3086_s27 + $0x150] sm:$0xff] %v274_v42 }
  0x3c   : > { %277 = vst [vmem:[%s3086_s27 + $0x158] sm:$0xff] %v276_v43 }
  0x3d   : > { %279 = vst [vmem:[%s3086_s27 + $0x160] sm:$0xff] %v278_v44 }
  0x3e   : > { %281 = vst [vmem:[%s3086_s27 + $0x168] sm:$0xff] %v280_v45 }
  0x3f   : > { %283 = vst [vmem:[%s3086_s27 + $0x170] sm:$0xff] %v282_v46 }
  0x40   : > { %285 = vst [vmem:[%s3086_s27 + $0x178] sm:$0xff] %v284_v47 }
  0x41 PF: > { %p2203_p6 = scmp.ge.s32.totalorder %s3015_s16, 1  ;;  %p305_p7 = scmp.lt.s32.totalorder %s3015_s16, 4 }
  0x43   : > { %p306_p8 = pnand %p2203_p6, %p305_p7 }
  0x44   : > { %s312_s28 = sand.u32 (!%p306_p8), 1, %s2999_s12   ;;  %s356_s29 = smul.u32 (!%p306_p8), 96, %s3007_s14 }
  0x45   : > { %309 = sbr.rel (%p306_p8) target bundleno = 700 (0x2bc), region = 51  ;;  %p2206_p10 = scmp.ne.s32.totalorder (!%p306_p8), %s3007_s14, 0 }
  0x46   : > { %s2935_s30 = smul.u32 (!%p306_p8), 384, %s312_s28  ;;  %p358_p9 = scmp.lt.s32.totalorder (!%p306_p8), %s356_s29, 287 }
  0x48   : > { %s3190_s8 = scalar_lea.vmem (!%p306_p8), [#allocation3], %s2935_s30 }
  0x4a   : > { %s3931_s29 = smov (!%p358_p9, %s356_s29), 287  ;;  %388 = sbr.rel (%p2206_p10) target bundleno = 112 (0x70), region = 59 }
  0x4b   : > { %s2789_s4 = sshll.u32 %s3931_s29, 3 }
  0x4c   : > { %s3188_s7 = scalar_lea.vmem %s3921_s1, %s2789_s4 }
  0x4f   : > { %v3017_v48 = vmov 0.0  }
  0x50   : > { %389 = vst [vmem:[#allocation2 + $0xb0] sm:$0xff] %v3017_v48 }
  0x51   : > { %390 = vst [vmem:[#allocation2] sm:$0xff] %v3017_v48 }
  0x52   : > { %391 = vst [vmem:[#allocation2 + $0xd8] sm:$0xff] %v3017_v48 }
  0x53   : > { %392 = vst [vmem:[#allocation2 + $0x18] sm:$0xff] %v3017_v48 }
  0x54   : > { %393 = vst [vmem:[#allocation2 + $0x50] sm:$0xff] %v3017_v48 }
  0x55   : > { %394 = vst [vmem:[#allocation2 + $0x68] sm:$0xff] %v3017_v48 }
  0x56   : > { %395 = vst [vmem:[#allocation2 + $0x30] sm:$0xff] %v3017_v48 }
  0x57   : > { %396 = vst [vmem:[#allocation2 + $0x48] sm:$0xff] %v3017_v48 }
  0x58   : > { %397 = vst [vmem:[#allocation2 + $0x80] sm:$0xff] %v3017_v48 }
  0x59   : > { %398 = vst [vmem:[#allocation2 + $0x88] sm:$0xff] %v3017_v48 }
  0x5a   : > { %399 = vst [vmem:[#allocation2 + $0xe8] sm:$0xff] %v3017_v48 }
  0x5b   : > { %400 = vst [vmem:[#allocation2 + $0xb8] sm:$0xff] %v3017_v48 }
  0x5c   : > { %401 = vst [vmem:[#allocation2 + $0x60] sm:$0xff] %v3017_v48 }
  0x5d   : > { %402 = vst [vmem:[#allocation2 + $0xf0] sm:$0xff] %v3017_v48 }
  0x5e   : > { %403 = vst [vmem:[#allocation2 + $0x8] sm:$0xff] %v3017_v48 }
  0x5f   : > { %404 = vst [vmem:[#allocation2 + $0x78] sm:$0xff] %v3017_v48 }
  0x60   : > { %405 = vst [vmem:[#allocation2 + $0x38] sm:$0xff] %v3017_v48 }
  0x61   : > { %406 = vst [vmem:[#allocation2 + $0x58] sm:$0xff] %v3017_v48 }
  0x62   : > { %407 = vst [vmem:[#allocation2 + $0x40] sm:$0xff] %v3017_v48 }
  0x63   : > { %408 = vst [vmem:[#allocation2 + $0xc8] sm:$0xff] %v3017_v48 }
  0x64   : > { %409 = vst [vmem:[#allocation2 + $0xe0] sm:$0xff] %v3017_v48 }
  0x65   : > { %410 = vst [vmem:[#allocation2 + $0x90] sm:$0xff] %v3017_v48 }
  0x66   : > { %411 = vst [vmem:[#allocation2 + $0x70] sm:$0xff] %v3017_v48 }
  0x67   : > { %412 = vst [vmem:[#allocation2 + $0xc0] sm:$0xff] %v3017_v48 }
  0x68   : > { %413 = vst [vmem:[#allocation2 + $0xa8] sm:$0xff] %v3017_v48 }
  0x69   : > { %414 = vst [vmem:[#allocation2 + $0xd0] sm:$0xff] %v3017_v48 }
  0x6a   : > { %415 = vst [vmem:[#allocation2 + $0x10] sm:$0xff] %v3017_v48 }
  0x6b   : > { %416 = vst [vmem:[#allocation2 + $0x28] sm:$0xff] %v3017_v48 }
  0x6c   : > { %417 = vst [vmem:[#allocation2 + $0xa0] sm:$0xff] %v3017_v48 }
  0x6d   : > { %418 = vst [vmem:[#allocation2 + $0xf8] sm:$0xff] %v3017_v48 }
  0x6e   : > { %419 = vst [vmem:[#allocation2 + $0x20] sm:$0xff] %v3017_v48 }
  0x6f   : > { %420 = vst [vmem:[#allocation2 + $0x98] sm:$0xff] %v3017_v48 }
  0x70 PF: > { %v2457_v49 = vld [vmem:[%s3188_s7 + $0x70] sm:$0xf]  ;;  %v2853_v50 = vld [vmem:[%s3188_s7 + $0x74] sm:$0xf0]  ;;  %v2449_v60 = vld [vmem:[%s3188_s7 + $0x60] sm:$0xf] }
  0x71   : > { %v2521_v51 = vld [vmem:[%s3188_s7 + $0xf0] sm:$0xf]  ;;  %v2458_v52 = vor.u32 %v2853_v50, %v2457_v49  ;;  %v2869_v53 = vld [vmem:[%s3188_s7 + $0xf4] sm:$0xf0]  ;;  %v2851_v62 = vld [vmem:[%s3188_s7 + $0x64] sm:$0xf0] }
  0x72   : > { %v2585_v54 = vld [vmem:[%s3188_s7 + $0x170] sm:$0xf]  ;;  %v2885_v55 = vld [vmem:[%s3188_s7 + $0x174] sm:$0xf0]  ;;  %v2522_v56 = vor.u32 %v2869_v53, %v2521_v51  ;;  %v2513_v63 = vld [vmem:[%s3188_s7 + $0xe0] sm:$0xf]  ;;  %v2450_v1 = vor.u32 %v2851_v62, %v2449_v60 }
  0x73   : > { %v2586_v57 = vor.u32 %v2885_v55, %v2585_v54  ;;  %v2649_v58 = vld [vmem:[%s3188_s7 + $0x1f0] sm:$0xf]  ;;  %v2901_v59 = vld [vmem:[%s3188_s7 + $0x1f4] sm:$0xf0]  ;;  %1317 = vmatpush.bf16.msra.mxu0 %v2458_v52  ;;  %v2867_v0 = vld [vmem:[%s3188_s7 + $0xe4] sm:$0xf0] }
  0x74   : > { %v2650_v61 = vor.u32 %v2901_v59, %v2649_v58  ;;  %1366 = vmatpush.bf16.msra.mxu1 %v2522_v56  ;;  %v2514_v2 = vor.u32 %v2867_v0, %v2513_v63  ;;  %v2577_v3 = vld [vmem:[%s3188_s7 + $0x160] sm:$0xf]  ;;  %v2883_v4 = vld [vmem:[%s3188_s7 + $0x164] sm:$0xf0]  ;;  %v2441_v8 = vld [vmem:[%s3188_s7 + $0x50] sm:$0xf] }
  0x75   : > { %1415 = vmatpush.bf16.msra.mxu2 %v2586_v57  ;;  %v2641_v5 = vld [vmem:[%s3188_s7 + $0x1e0] sm:$0xf]  ;;  %v2578_v6 = vor.u32 %v2883_v4, %v2577_v3  ;;  %v2899_v7 = vld [vmem:[%s3188_s7 + $0x1e4] sm:$0xf0]  ;;  %v2849_v9 = vld [vmem:[%s3188_s7 + $0x54] sm:$0xf0] }
  0x76   : > { %1464 = vmatpush.bf16.msra.mxu3 %v2650_v61  ;;  %v2642_v10 = vor.u32 %v2899_v7, %v2641_v5  ;;  %v2505_v11 = vld [vmem:[%s3188_s7 + $0xd0] sm:$0xf]  ;;  %v2865_v12 = vld [vmem:[%s3188_s7 + $0xd4] sm:$0xf0]  ;;  %v2442_v14 = vor.u32 %v2849_v9, %v2441_v8  ;;  %v2433_v20 = vld [vmem:[%s3188_s7 + $0x40] sm:$0xf] }
  0x77   : > { %v2569_v13 = vld [vmem:[%s3188_s7 + $0x150] sm:$0xf]  ;;  %1318 = vmatpush.bf16.msra.mxu0 %v2450_v1  ;;  %v2881_v15 = vld [vmem:[%s3188_s7 + $0x154] sm:$0xf0]  ;;  %v2506_v18 = vor.u32 %v2865_v12, %v2505_v11  ;;  %v2847_v21 = vld [vmem:[%s3188_s7 + $0x44] sm:$0xf0] }
  0x78   : > { %v2633_v16 = vld [vmem:[%s3188_s7 + $0x1d0] sm:$0xf]  ;;  %v2897_v17 = vld [vmem:[%s3188_s7 + $0x1d4] sm:$0xf0]  ;;  %1367 = vmatpush.bf16.msra.mxu1 %v2514_v2  ;;  %v2570_v19 = vor.u32 %v2881_v15, %v2569_v13  ;;  %v2497_v22 = vld [vmem:[%s3188_s7 + $0xc0] sm:$0xf]  ;;  %v2434_v29 = vor.u32 %v2847_v21, %v2433_v20 }
  0x79   : > { %1416 = vmatpush.bf16.msra.mxu2 %v2578_v6  ;;  %v2634_v23 = vor.u32 %v2897_v17, %v2633_v16  ;;  %v2863_v24 = vld [vmem:[%s3188_s7 + $0xc4] sm:$0xf0]  ;;  %v2561_v25 = vld [vmem:[%s3188_s7 + $0x140] sm:$0xf]  ;;  %v2425_v32 = vld [vmem:[%s3188_s7 + $0x30] sm:$0xf] }
  0x7a   : > { %1465 = vmatpush.bf16.msra.mxu3 %v2642_v10  ;;  %v2879_v26 = vld [vmem:[%s3188_s7 + $0x144] sm:$0xf0]  ;;  %v2625_v27 = vld [vmem:[%s3188_s7 + $0x1c0] sm:$0xf]  ;;  %v2498_v30 = vor.u32 %v2863_v24, %v2497_v22  ;;  %v2845_v33 = vld [vmem:[%s3188_s7 + $0x34] sm:$0xf0] }
  0x7b   : > { %v2895_v28 = vld [vmem:[%s3188_s7 + $0x1c4] sm:$0xf0]  ;;  %1319 = vmatpush.bf16.msra.mxu0 %v2442_v14  ;;  %v2562_v31 = vor.u32 %v2879_v26, %v2561_v25  ;;  %v2489_v34 = vld [vmem:[%s3188_s7 + $0xb0] sm:$0xf]  ;;  %v2861_v36 = vld [vmem:[%s3188_s7 + $0xb4] sm:$0xf0]  ;;  %v2426_v41 = vor.u32 %v2845_v33, %v2425_v32 }
  0x7c   : > { %1368 = vmatpush.bf16.msra.mxu1 %v2506_v18  ;;  %v2626_v35 = vor.u32 %v2895_v28, %v2625_v27  ;;  %v2553_v37 = vld [vmem:[%s3188_s7 + $0x130] sm:$0xf]  ;;  %v2877_v38 = vld [vmem:[%s3188_s7 + $0x134] sm:$0xf0]  ;;  %v2490_v42 = vor.u32 %v2861_v36, %v2489_v34  ;;  %v2417_v44 = vld [vmem:[%s3188_s7 + $0x20] sm:$0xf] }
  0x7d   : > { %1417 = vmatpush.bf16.msra.mxu2 %v2570_v19  ;;  %v2617_v39 = vld [vmem:[%s3188_s7 + $0x1b0] sm:$0xf]  ;;  %v2893_v40 = vld [vmem:[%s3188_s7 + $0x1b4] sm:$0xf0]  ;;  %v2554_v43 = vor.u32 %v2877_v38, %v2553_v37  ;;  %v2843_v45 = vld [vmem:[%s3188_s7 + $0x24] sm:$0xf0] }
  0x7e   : > { %1466 = vmatpush.bf16.msra.mxu3 %v2634_v23  ;;  %v2481_v46 = vld [vmem:[%s3188_s7 + $0xa0] sm:$0xf]  ;;  %v2618_v47 = vor.u32 %v2893_v40, %v2617_v39  ;;  %v2859_v48 = vld [vmem:[%s3188_s7 + $0xa4] sm:$0xf0]  ;;  %v2418_v53 = vor.u32 %v2843_v45, %v2417_v44  ;;  %v2409_v56 = vld [vmem:[%s3188_s7 + $0x10] sm:$0xf] }
  0x7f   : > { %1320 = vmatpush.bf16.msra.mxu0 %v2434_v29  ;;  %v2545_v49 = vld [vmem:[%s3188_s7 + $0x120] sm:$0xf]  ;;  %v2875_v50 = vld [vmem:[%s3188_s7 + $0x124] sm:$0xf0]  ;;  %v2482_v54 = vor.u32 %v2859_v48, %v2481_v46  ;;  %v2841_v57 = vld [vmem:[%s3188_s7 + $0x14] sm:$0xf0] }
  0x80   : > { %1369 = vmatpush.bf16.msra.mxu1 %v2498_v30  ;;  %v2609_v51 = vld [vmem:[%s3188_s7 + $0x1a0] sm:$0xf]  ;;  %v2891_v52 = vld [vmem:[%s3188_s7 + $0x1a4] sm:$0xf0]  ;;  %v2546_v55 = vor.u32 %v2875_v50, %v2545_v49  ;;  %v2473_v58 = vld [vmem:[%s3188_s7 + $0x90] sm:$0xf]  ;;  %v2410_v2 = vor.u32 %v2841_v57, %v2409_v56 }
  0x81   : > { %1418 = vmatpush.bf16.msra.mxu2 %v2562_v31  ;;  %v2610_v59 = vor.u32 %v2891_v52, %v2609_v51  ;;  %v2857_v60 = vld [vmem:[%s3188_s7 + $0x94] sm:$0xf0]  ;;  %v2537_v61 = vld [vmem:[%s3188_s7 + $0x110] sm:$0xf]  ;;  %v2401_v1 = vld [vmem:[%s3188_s7] sm:$0xf] }
  0x82   : > { %1467 = vmatpush.bf16.msra.mxu3 %v2626_v35  ;;  %v2873_v62 = vld [vmem:[%s3188_s7 + $0x114] sm:$0xf0]  ;;  %v2601_v63 = vld [vmem:[%s3188_s7 + $0x190] sm:$0xf]  ;;  %v2839_v3 = vld [vmem:[%s3188_s7 + $0x4] sm:$0xf0]  ;;  %v2474_v6 = vor.u32 %v2857_v60, %v2473_v58 }
  0x83   : > { %1321 = vmatpush.bf16.msra.mxu0 %v2426_v41  ;;  %v2889_v0 = vld [vmem:[%s3188_s7 + $0x194] sm:$0xf0]  ;;  %v2465_v4 = vld [vmem:[%s3188_s7 + $0x80] sm:$0xf]  ;;  %v2855_v5 = vld [vmem:[%s3188_s7 + $0x84] sm:$0xf0]  ;;  %v2538_v7 = vor.u32 %v2873_v62, %v2537_v61  ;;  %v2402_v19 = vor.u32 %v2839_v3, %v2401_v1 }
  0x84   : > { %1370 = vmatpush.bf16.msra.mxu1 %v2490_v42  ;;  %v2529_v8 = vld [vmem:[%s3188_s7 + $0x100] sm:$0xf]  ;;  %v2871_v9 = vld [vmem:[%s3188_s7 + $0x104] sm:$0xf0]  ;;  %v2602_v11 = vor.u32 %v2889_v0, %v2601_v63  ;;  %v2793_v14 = vld [vmem:[%s3190_s8 + $0x14] sm:$0xf0]  ;;  %v2466_v23 = vor.u32 %v2855_v5, %v2465_v4 }
  0x85   : > { %1419 = vmatpush.bf16.msra.mxu2 %v2554_v43  ;;  %v2593_v10 = vld [vmem:[%s3188_s7 + $0x180] sm:$0xf]  ;;  %v2887_v12 = vld [vmem:[%s3188_s7 + $0x184] sm:$0xf0]  ;;  %v2790_v15 = vld [vmem:[%s3190_s8 + $0x4] sm:$0xf]  ;;  %v2530_v24 = vor.u32 %v2871_v9, %v2529_v8 }
  0x86   : > { %1468 = vmatpush.bf16.msra.mxu3 %v2618_v47  ;;  %v2209_v13 = vld [vmem:[%s3190_s8] sm:$0xf]  ;;  %v2211_v16 = vld [vmem:[%s3190_s8 + $0x18] sm:$0xf0]  ;;  %v2852_v17 = vld [vmem:[%s3188_s7 + $0x74] sm:$0xf]  ;;  %v2594_v28 = vor.u32 %v2887_v12, %v2593_v10 }
  0x87   : > { %1322 = vmatpush.bf16.msra.mxu0 %v2418_v53  ;;  %v2459_v18 = vld [vmem:[%s3188_s7 + $0x78] sm:$0xf0]  ;;  %v2217_v20 = vld [vmem:[%s3190_s8 + $0x8] sm:$0xf]  ;;  %v2868_v21 = vld [vmem:[%s3188_s7 + $0xf4] sm:$0xf]  ;;  %v3272_v33 = vor.u32 %v2793_v14, %v2209_v13  ;;  %v3277_v38 = vor.u32 %v2790_v15, %v2211_v16 }
  0x88   : > { %1371 = vmatpush.bf16.msra.mxu1 %v2482_v54  ;;  %v2523_v22 = vld [vmem:[%s3188_s7 + $0xf8] sm:$0xf0]  ;;  %v2794_v25 = vld [vmem:[%s3190_s8 + $0x1c] sm:$0xf0]  ;;  %v2791_v26 = vld [vmem:[%s3190_s8 + $0xc] sm:$0xf]  ;;  %v2462_v29 = vor.u32 %v2852_v17, %v2459_v18 }
  0x89   : > { %1420 = vmatpush.bf16.msra.mxu2 %v2546_v55  ;;  %v2219_v27 = vld [vmem:[%s3190_s8 + $0x20] sm:$0xf0]  ;;  %v2713_v30 = vld [vmem:[%s3188_s7 + $0x270] sm:$0xf]  ;;  %v2917_v31 = vld [vmem:[%s3188_s7 + $0x274] sm:$0xf0]  ;;  %v2526_v34 = vor.u32 %v2868_v21, %v2523_v22  ;;  %v3279_v39 = vor.u32 %v2794_v25, %v2217_v20 }
  0x8a   : > { %1469 = vmatpush.bf16.msra.mxu3 %v2610_v59  ;;  %v2777_v32 = vld [vmem:[%s3188_s7 + $0x2f0] sm:$0xf]  ;;  %v2933_v35 = vld [vmem:[%s3188_s7 + $0x2f4] sm:$0xf0]  ;;  %v2850_v36 = vld [vmem:[%s3188_s7 + $0x64] sm:$0xf]  ;;  %v3283_v42 = vor.u32 %v2791_v26, %v2219_v27  ;;  %v2714_v43 = vor.u32 %v2917_v31, %v2713_v30 }
  0x8b   : > { %1323 = vmatpush.bf16.msra.mxu0 %v2410_v2  ;;  %v2451_v37 = vld [vmem:[%s3188_s7 + $0x68] sm:$0xf0]  ;;  %v2866_v40 = vld [vmem:[%s3188_s7 + $0xe4] sm:$0xf]  ;;  %v2778_v44 = vor.u32 %v2933_v35, %v2777_v32  ;;  %v2705_v46 = vld [vmem:[%s3188_s7 + $0x260] sm:$0xf] }
  0x8c   : > { %1372 = vmatpush.bf16.msra.mxu1 %v2474_v6  ;;  %v2515_v41 = vld [vmem:[%s3188_s7 + $0xe8] sm:$0xf0]  ;;  %v2454_v45 = vor.u32 %v2850_v36, %v2451_v37  ;;  %v2915_v47 = vld [vmem:[%s3188_s7 + $0x264] sm:$0xf0]  ;;  %v2769_v49 = vld [vmem:[%s3188_s7 + $0x2e0] sm:$0xf] }
  0x8d   : > { %1421 = vmatpush.bf16.msra.mxu2 %v2538_v7  ;;  %v2518_v48 = vor.u32 %v2866_v40, %v2515_v41  ;;  %v2931_v50 = vld [vmem:[%s3188_s7 + $0x2e4] sm:$0xf0]  ;;  %v2706_v51 = vor.u32 %v2915_v47, %v2705_v46  ;;  %v2848_v52 = vld [vmem:[%s3188_s7 + $0x54] sm:$0xf]  ;;  %v2443_v53 = vld [vmem:[%s3188_s7 + $0x58] sm:$0xf0] }
  0x8e   : > { %1470 = vmatpush.bf16.msra.mxu3 %v2602_v11  ;;  %v2697_v54 = vld [vmem:[%s3188_s7 + $0x250] sm:$0xf]  ;;  %v2770_v55 = vor.u32 %v2931_v50, %v2769_v49  ;;  %v2446_v56 = vor.u32 %v2848_v52, %v2443_v53  ;;  %v2913_v57 = vld [vmem:[%s3188_s7 + $0x254] sm:$0xf0]  ;;  %v2864_v58 = vld [vmem:[%s3188_s7 + $0xd4] sm:$0xf] }
  0x8f   : > { %1324 = vmatpush.bf16.msra.mxu0 %v2402_v19  ;;  %v2507_v59 = vld [vmem:[%s3188_s7 + $0xd8] sm:$0xf0]  ;;  %v2761_v61 = vld [vmem:[%s3188_s7 + $0x2d0] sm:$0xf]  ;;  %v2929_v62 = vld [vmem:[%s3188_s7 + $0x2d4] sm:$0xf0]  ;;  %v2698_v63 = vor.u32 %v2913_v57, %v2697_v54 }
  0x90   : > { %1373 = vmatpush.bf16.msra.mxu1 %v2466_v23  ;;  %v2510_v60 = vor.u32 %v2864_v58, %v2507_v59  ;;  %v2762_v0 = vor.u32 %v2929_v62, %v2761_v61  ;;  %v2233_v1 = vld [vmem:[%s3190_s8 + $0x30] sm:$0xf]  ;;  %v2799_v2 = vld [vmem:[%s3190_s8 + $0x44] sm:$0xf0]  ;;  %v2796_v3 = vld [vmem:[%s3190_s8 + $0x34] sm:$0xf] }
  0x91   : > { %1422 = vmatpush.bf16.msra.mxu2 %v2530_v24  ;;  %v2235_v4 = vld [vmem:[%s3190_s8 + $0x48] sm:$0xf0]  ;;  %v2241_v5 = vld [vmem:[%s3190_s8 + $0x38] sm:$0xf]  ;;  %v2800_v6 = vld [vmem:[%s3190_s8 + $0x4c] sm:$0xf0]  ;;  %v3309_v9 = vor.u32 %v2799_v2, %v2233_v1 }
  0x92   : > { %1471 = vmatpush.bf16.msra.mxu3 %v2594_v28  ;;  %1325 = vmatmul.bf16.vlgmr.msra.gmra.mxu0 %v3272_v33  ;;  %v2797_v7 = vld [vmem:[%s3190_s8 + $0x3c] sm:$0xf]  ;;  %v2243_v8 = vld [vmem:[%s3190_s8 + $0x50] sm:$0xf0]  ;;  %v3311_v10 = vor.u32 %v2796_v3, %v2235_v4  ;;  %v3313_v11 = vor.u32 %v2800_v6, %v2241_v5  ;;  %v2846_v13 = vld [vmem:[%s3188_s7 + $0x44] sm:$0xf] }
  0x93   : > { %1374 = vmatmul.bf16.vlgmr.msra.gmra.mxu1 %v3277_v38  ;;  %1513 = vmatpush.bf16.msrb.mxu0 %v2714_v43  ;;  %v3315_v12 = vor.u32 %v2797_v7, %v2243_v8  ;;  %v2435_v14 = vld [vmem:[%s3188_s7 + $0x48] sm:$0xf0]  ;;  %v2689_v15 = vld [vmem:[%s3188_s7 + $0x240] sm:$0xf]  ;;  %v2911_v17 = vld [vmem:[%s3188_s7 + $0x244] sm:$0xf0] }
  0x94   : > { %1423 = vmatmul.bf16.vlgmr.msra.gmra.mxu2 %v3279_v39  ;;  %1562 = vmatpush.bf16.msrb.mxu1 %v2778_v44  ;;  %v2438_v16 = vor.u32 %v2846_v13, %v2435_v14  ;;  %v2862_v18 = vld [vmem:[%s3188_s7 + $0xc4] sm:$0xf]  ;;  %v2499_v19 = vld [vmem:[%s3188_s7 + $0xc8] sm:$0xf0]  ;;  %v2690_v20 = vor.u32 %v2911_v17, %v2689_v15  ;;  %v2753_v22 = vld [vmem:[%s3188_s7 + $0x2c0] sm:$0xf] }
  0x95   : > { %1611 = vmatpush.bf16.msrb.mxu2 %v2462_v29  ;;  %1472 = vmatmul.bf16.vlgmr.msra.gmra.mxu3 %v3283_v42  ;;  %v2502_v21 = vor.u32 %v2862_v18, %v2499_v19  ;;  %v2927_v23 = vld [vmem:[%s3188_s7 + $0x2c4] sm:$0xf0]  ;;  %v2257_v25 = vld [vmem:[%s3190_s8 + $0x60] sm:$0xf]  ;;  %v2805_v26 = vld [vmem:[%s3190_s8 + $0x74] sm:$0xf0] }
  0x96   : > { %1660 = vmatpush.bf16.msrb.mxu3 %v2526_v34  ;;  %v2754_v24 = vor.u32 %v2927_v23, %v2753_v22  ;;  %v2802_v27 = vld [vmem:[%s3190_s8 + $0x64] sm:$0xf]  ;;  %v2259_v28 = vld [vmem:[%s3190_s8 + $0x78] sm:$0xf0]  ;;  %v2265_v29 = vld [vmem:[%s3190_s8 + $0x68] sm:$0xf]  ;;  %v3337_v34 = vor.u32 %v2805_v26, %v2257_v25 }
  0x97   : > { %1514 = vmatpush.bf16.msrb.mxu0 %v2706_v51  ;;  %v2806_v30 = vld [vmem:[%s3190_s8 + $0x7c] sm:$0xf0]  ;;  %v2803_v31 = vld [vmem:[%s3190_s8 + $0x6c] sm:$0xf]  ;;  %v2267_v32 = vld [vmem:[%s3190_s8 + $0x80] sm:$0xf0]  ;;  %v3339_v35 = vor.u32 %v2802_v27, %v2259_v28 }
  0x98   : > { %1563 = vmatpush.bf16.msrb.mxu1 %v2770_v55  ;;  %v3341_v36 = vor.u32 %v2806_v30, %v2265_v29  ;;  %v3343_v37 = vor.u32 %v2803_v31, %v2267_v32  ;;  %v2844_v40 = vld [vmem:[%s3188_s7 + $0x34] sm:$0xf]  ;;  %v2427_v41 = vld [vmem:[%s3188_s7 + $0x38] sm:$0xf0]  ;;  %v2681_v43 = vld [vmem:[%s3188_s7 + $0x230] sm:$0xf] }
  0x99   : > { %1612 = vmatpush.bf16.msrb.mxu2 %v2454_v45  ;;  %v2430_v44 = vor.u32 %v2844_v40, %v2427_v41  ;;  %v2909_v45 = vld [vmem:[%s3188_s7 + $0x234] sm:$0xf0]  ;;  %v2860_v46 = vld [vmem:[%s3188_s7 + $0xb4] sm:$0xf]  ;;  %v2491_v47 = vld [vmem:[%s3188_s7 + $0xb8] sm:$0xf0] }
  0x9a   : > { %1661 = vmatpush.bf16.msrb.mxu3 %v2518_v48  ;;  %v2682_v48 = vor.u32 %v2909_v45, %v2681_v43  ;;  %v2494_v49 = vor.u32 %v2860_v46, %v2491_v47  ;;  %v2745_v50 = vld [vmem:[%s3188_s7 + $0x2b0] sm:$0xf]  ;;  %v2925_v51 = vld [vmem:[%s3188_s7 + $0x2b4] sm:$0xf0]  ;;  %v2811_v54 = vld [vmem:[%s3190_s8 + $0xa4] sm:$0xf0] }
  0x9b   : > { %1515 = vmatpush.bf16.msrb.mxu0 %v2698_v63  ;;  %v2746_v52 = vor.u32 %v2925_v51, %v2745_v50  ;;  %v2281_v53 = vld [vmem:[%s3190_s8 + $0x90] sm:$0xf]  ;;  %v2808_v55 = vld [vmem:[%s3190_s8 + $0x94] sm:$0xf]  ;;  %v2289_v57 = vld [vmem:[%s3190_s8 + $0x98] sm:$0xf] }
  0x9c   : > { %1564 = vmatpush.bf16.msrb.mxu1 %v2762_v0  ;;  %v2812_v58 = vld [vmem:[%s3190_s8 + $0xac] sm:$0xf0]  ;;  %v2809_v59 = vld [vmem:[%s3190_s8 + $0x9c] sm:$0xf]  ;;  %v3365_v61 = vor.u32 %v2811_v54, %v2281_v53  ;;  %v2842_v1 = vld [vmem:[%s3188_s7 + $0x24] sm:$0xf] }
  0x9d   : > { %1613 = vmatpush.bf16.msrb.mxu2 %v2446_v56  ;;  %v2283_v56 = vld [vmem:[%s3190_s8 + $0xa8] sm:$0xf0]  ;;  %v3369_v63 = vor.u32 %v2812_v58, %v2289_v57  ;;  %v2673_v3 = vld [vmem:[%s3188_s7 + $0x220] sm:$0xf]  ;;  %v2907_v5 = vld [vmem:[%s3188_s7 + $0x224] sm:$0xf0] }
  0x9e   : > { %1662 = vmatpush.bf16.msrb.mxu3 %v2510_v60  ;;  %v2291_v60 = vld [vmem:[%s3190_s8 + $0xb0] sm:$0xf0]  ;;  %v3367_v62 = vor.u32 %v2808_v55, %v2283_v56  ;;  %v2419_v2 = vld [vmem:[%s3188_s7 + $0x28] sm:$0xf0]  ;;  %v2858_v6 = vld [vmem:[%s3188_s7 + $0xa4] sm:$0xf]  ;;  %v2674_v8 = vor.u32 %v2907_v5, %v2673_v3 }
  0x9f   : > { %1516 = vmatpush.bf16.msrb.mxu0 %v2690_v20  ;;  %v3371_v0 = vor.u32 %v2809_v59, %v2291_v60  ;;  %v2422_v4 = vor.u32 %v2842_v1, %v2419_v2  ;;  %v2483_v7 = vld [vmem:[%s3188_s7 + $0xa8] sm:$0xf0]  ;;  %v2737_v14 = vld [vmem:[%s3188_s7 + $0x2a0] sm:$0xf]  ;;  %v2923_v15 = vld [vmem:[%s3188_s7 + $0x2a4] sm:$0xf0] }
  0xa0   : > { %1565 = vmatpush.bf16.msrb.mxu1 %v2754_v24  ;;  %v2486_v13 = vor.u32 %v2858_v6, %v2483_v7  ;;  %v2305_v17 = vld [vmem:[%s3190_s8 + $0xc0] sm:$0xf]  ;;  %v2817_v18 = vld [vmem:[%s3190_s8 + $0xd4] sm:$0xf0]  ;;  %v2814_v19 = vld [vmem:[%s3190_s8 + $0xc4] sm:$0xf] }
  0xa1   : > { %1614 = vmatpush.bf16.msrb.mxu2 %v2438_v16  ;;  %v2738_v16 = vor.u32 %v2923_v15, %v2737_v14  ;;  %v2307_v20 = vld [vmem:[%s3190_s8 + $0xd8] sm:$0xf0]  ;;  %v2818_v22 = vld [vmem:[%s3190_s8 + $0xdc] sm:$0xf0]  ;;  %v2815_v23 = vld [vmem:[%s3190_s8 + $0xcc] sm:$0xf]  ;;  %v3393_v25 = vor.u32 %v2817_v18, %v2305_v17 }
  0xa2   : > { %1330 = vmatmul.bf16.gmra.mxu0 %v3309_v9  ;;  %1663 = vmatpush.bf16.msrb.mxu3 %v2502_v21  ;;  %v2313_v21 = vld [vmem:[%s3190_s8 + $0xc8] sm:$0xf]  ;;  %v2315_v24 = vld [vmem:[%s3190_s8 + $0xe0] sm:$0xf0]  ;;  %v3395_v26 = vor.u32 %v2814_v19, %v2307_v20  ;;  %v2840_v29 = vld [vmem:[%s3188_s7 + $0x14] sm:$0xf] }
  0xa3   : > { %1379 = vmatmul.bf16.gmra.mxu1 %v3311_v10  ;;  %1517 = vmatpush.bf16.msrb.mxu0 %v2682_v48  ;;  %v3397_v27 = vor.u32 %v2818_v22, %v2313_v21  ;;  %v3399_v28 = vor.u32 %v2815_v23, %v2315_v24  ;;  %v2411_v30 = vld [vmem:[%s3188_s7 + $0x18] sm:$0xf0]  ;;  %v2665_v31 = vld [vmem:[%s3188_s7 + $0x210] sm:$0xf]  ;;  %v2905_v40 = vld [vmem:[%s3188_s7 + $0x214] sm:$0xf0] }
  0xa4   : > { %1428 = vmatmul.bf16.gmra.mxu2 %v3313_v11  ;;  %1566 = vmatpush.bf16.msrb.mxu1 %v2746_v52  ;;  %v2414_v32 = vor.u32 %v2840_v29, %v2411_v30  ;;  %v2856_v41 = vld [vmem:[%s3188_s7 + $0x94] sm:$0xf]  ;;  %v2475_v43 = vld [vmem:[%s3188_s7 + $0x98] sm:$0xf0]  ;;  %v2729_v46 = vld [vmem:[%s3188_s7 + $0x290] sm:$0xf] }
  0xa5   : > { %1477 = vmatmul.bf16.gmra.mxu3 %v3315_v12  ;;  %1615 = vmatpush.bf16.msrb.mxu2 %v2430_v44  ;;  %v2666_v44 = vor.u32 %v2905_v40, %v2665_v31  ;;  %v2478_v45 = vor.u32 %v2856_v41, %v2475_v43  ;;  %v2921_v47 = vld [vmem:[%s3188_s7 + $0x294] sm:$0xf0]  ;;  %v2823_v50 = vld [vmem:[%s3190_s8 + $0x104] sm:$0xf0]  ;;  %v2820_v51 = vld [vmem:[%s3190_s8 + $0xf4] sm:$0xf] }
  0xa6   : > { %1664 = vmatpush.bf16.msrb.mxu3 %v2494_v49  ;;  %v2730_v48 = vor.u32 %v2921_v47, %v2729_v46  ;;  %v2329_v49 = vld [vmem:[%s3190_s8 + $0xf0] sm:$0xf]  ;;  %v2331_v52 = vld [vmem:[%s3190_s8 + $0x108] sm:$0xf0]  ;;  %v2337_v53 = vld [vmem:[%s3190_s8 + $0xf8] sm:$0xf] }
  0xa7   : > { %1518 = vmatpush.bf16.msrb.mxu0 %v2674_v8  ;;  %v2824_v54 = vld [vmem:[%s3190_s8 + $0x10c] sm:$0xf0]  ;;  %v2821_v55 = vld [vmem:[%s3190_s8 + $0xfc] sm:$0xf]  ;;  %v2339_v56 = vld [vmem:[%s3190_s8 + $0x110] sm:$0xf0]  ;;  %v3421_v57 = vor.u32 %v2823_v50, %v2329_v49  ;;  %v3423_v58 = vor.u32 %v2820_v51, %v2331_v52 }
  0xa8   : > { %1567 = vmatpush.bf16.msrb.mxu1 %v2738_v16  ;;  %v3425_v59 = vor.u32 %v2824_v54, %v2337_v53  ;;  %v3427_v60 = vor.u32 %v2821_v55, %v2339_v56  ;;  %v2838_v1 = vld [vmem:[%s3188_s7 + $0x4] sm:$0xf]  ;;  %v2403_v2 = vld [vmem:[%s3188_s7 + $0x8] sm:$0xf0]  ;;  %v2657_v3 = vld [vmem:[%s3188_s7 + $0x200] sm:$0xf] }
  0xa9   : > { %1616 = vmatpush.bf16.msrb.mxu2 %v2422_v4  ;;  %v2406_v4 = vor.u32 %v2838_v1, %v2403_v2  ;;  %v2903_v5 = vld [vmem:[%s3188_s7 + $0x204] sm:$0xf0]  ;;  %v2854_v6 = vld [vmem:[%s3188_s7 + $0x84] sm:$0xf]  ;;  %v2467_v7 = vld [vmem:[%s3188_s7 + $0x88] sm:$0xf0] }
  0xaa   : > { %1665 = vmatpush.bf16.msrb.mxu3 %v2486_v13  ;;  %v2658_v8 = vor.u32 %v2903_v5, %v2657_v3  ;;  %v2470_v13 = vor.u32 %v2854_v6, %v2467_v7  ;;  %v2721_v14 = vld [vmem:[%s3188_s7 + $0x280] sm:$0xf]  ;;  %v2919_v15 = vld [vmem:[%s3188_s7 + $0x284] sm:$0xf0]  ;;  %v2829_v18 = vld [vmem:[%s3190_s8 + $0x134] sm:$0xf0] }
  0xab   : > { %1519 = vmatpush.bf16.msrb.mxu0 %v2666_v44  ;;  %v2722_v16 = vor.u32 %v2919_v15, %v2721_v14  ;;  %v2353_v17 = vld [vmem:[%s3190_s8 + $0x120] sm:$0xf]  ;;  %v2826_v19 = vld [vmem:[%s3190_s8 + $0x124] sm:$0xf]  ;;  %v2355_v20 = vld [vmem:[%s3190_s8 + $0x138] sm:$0xf0] }
  0xac   : > { %1568 = vmatpush.bf16.msrb.mxu1 %v2730_v48  ;;  %v2361_v21 = vld [vmem:[%s3190_s8 + $0x128] sm:$0xf]  ;;  %v2830_v22 = vld [vmem:[%s3190_s8 + $0x13c] sm:$0xf0]  ;;  %v2827_v23 = vld [vmem:[%s3190_s8 + $0x12c] sm:$0xf]  ;;  %v3449_v29 = vor.u32 %v2829_v18, %v2353_v17  ;;  %v3451_v30 = vor.u32 %v2826_v19, %v2355_v20 }
  0xad   : > { %1617 = vmatpush.bf16.msrb.mxu2 %v2414_v32  ;;  %v2363_v24 = vld [vmem:[%s3190_s8 + $0x140] sm:$0xf0]  ;;  %v3453_v31 = vor.u32 %v2830_v22, %v2361_v21  ;;  %v2916_v40 = vld [vmem:[%s3188_s7 + $0x274] sm:$0xf]  ;;  %v2715_v41 = vld [vmem:[%s3188_s7 + $0x278] sm:$0xf0] }
  0xae   : > { %1666 = vmatpush.bf16.msrb.mxu3 %v2478_v45  ;;  %v3455_v32 = vor.u32 %v2827_v23, %v2363_v24  ;;  %v2884_v43 = vld [vmem:[%s3188_s7 + $0x174] sm:$0xf]  ;;  %v2718_v44 = vor.u32 %v2916_v40, %v2715_v41  ;;  %v2587_v45 = vld [vmem:[%s3188_s7 + $0x178] sm:$0xf0]  ;;  %v2377_v53 = vld [vmem:[%s3190_s8 + $0x150] sm:$0xf] }
  0xaf   : > { %1520 = vmatpush.bf16.msrb.mxu0 %v2658_v8  ;;  %v2932_v46 = vld [vmem:[%s3188_s7 + $0x2f4] sm:$0xf]  ;;  %v2779_v47 = vld [vmem:[%s3188_s7 + $0x2f8] sm:$0xf0]  ;;  %v2590_v48 = vor.u32 %v2884_v43, %v2587_v45  ;;  %v2835_v54 = vld [vmem:[%s3190_s8 + $0x164] sm:$0xf0] }
  0xb0   : > { %1569 = vmatpush.bf16.msrb.mxu1 %v2722_v16  ;;  %v2782_v49 = vor.u32 %v2932_v46, %v2779_v47  ;;  %v2900_v50 = vld [vmem:[%s3188_s7 + $0x1f4] sm:$0xf]  ;;  %v2651_v51 = vld [vmem:[%s3188_s7 + $0x1f8] sm:$0xf0]  ;;  %v2379_v56 = vld [vmem:[%s3190_s8 + $0x168] sm:$0xf0]  ;;  %v3477_v5 = vor.u32 %v2835_v54, %v2377_v53 }
  0xb1   : > { %1618 = vmatpush.bf16.msrb.mxu2 %v2406_v4  ;;  %v2654_v52 = vor.u32 %v2900_v50, %v2651_v51  ;;  %v2832_v55 = vld [vmem:[%s3190_s8 + $0x154] sm:$0xf]  ;;  %v2385_v1 = vld [vmem:[%s3190_s8 + $0x158] sm:$0xf]  ;;  %v2836_v2 = vld [vmem:[%s3190_s8 + $0x16c] sm:$0xf0] }
  0xb2   : > { %1335 = vmatmul.bf16.gmra.mxu0 %v3337_v34  ;;  %1667 = vmatpush.bf16.msrb.mxu3 %v2470_v13  ;;  %v2833_v3 = vld [vmem:[%s3190_s8 + $0x15c] sm:$0xf]  ;;  %v2387_v4 = vld [vmem:[%s3190_s8 + $0x170] sm:$0xf0]  ;;  %v3479_v6 = vor.u32 %v2832_v55, %v2379_v56  ;;  %v3481_v7 = vor.u32 %v2836_v2, %v2385_v1  ;;  %v2914_v13 = vld [vmem:[%s3188_s7 + $0x264] sm:$0xf] }
  0xb3   : > { %1384 = vmatmul.bf16.gmra.mxu1 %v3339_v35  ;;  %1709 = vmatpush.bf16.msra.mxu0 %v2590_v48  ;;  %v3483_v8 = vor.u32 %v2833_v3, %v2387_v4  ;;  %v2707_v14 = vld [vmem:[%s3188_s7 + $0x268] sm:$0xf0]  ;;  %v2882_v15 = vld [vmem:[%s3188_s7 + $0x164] sm:$0xf]  ;;  %v2225_v40 = vld [vmem:[%s3190_s8 + $0x10] sm:$0xf] }
  0xb4   : > { %1433 = vmatmul.bf16.gmra.mxu2 %v3341_v36  ;;  %1758 = vmatpush.bf16.msra.mxu1 %v2654_v52  ;;  %v2710_v16 = vor.u32 %v2914_v13, %v2707_v14  ;;  %v2579_v17 = vld [vmem:[%s3188_s7 + $0x168] sm:$0xf0]  ;;  %v2930_v18 = vld [vmem:[%s3188_s7 + $0x2e4] sm:$0xf]  ;;  %v2795_v41 = vld [vmem:[%s3190_s8 + $0x24] sm:$0xf0] }
  0xb5   : > { %1482 = vmatmul.bf16.gmra.mxu3 %v3343_v37  ;;  %1807 = vmatpush.bf16.msra.mxu2 %v2718_v44  ;;  %v2771_v19 = vld [vmem:[%s3188_s7 + $0x2e8] sm:$0xf0]  ;;  %v2582_v20 = vor.u32 %v2882_v15, %v2579_v17  ;;  %v2898_v22 = vld [vmem:[%s3188_s7 + $0x1e4] sm:$0xf]  ;;  %v2792_v43 = vld [vmem:[%s3190_s8 + $0x14] sm:$0xf]  ;;  %v3501_v45 = vor.u32 %v2795_v41, %v2225_v40 }
  0xb6   : > { %1856 = vmatpush.bf16.msra.mxu3 %v2782_v49  ;;  %v2774_v21 = vor.u32 %v2930_v18, %v2771_v19  ;;  %v2643_v23 = vld [vmem:[%s3188_s7 + $0x1e8] sm:$0xf0]  ;;  %v2912_v50 = vld [vmem:[%s3188_s7 + $0x254] sm:$0xf]  ;;  %v2699_v51 = vld [vmem:[%s3188_s7 + $0x258] sm:$0xf0] }
  0xb7   : > { %1710 = vmatpush.bf16.msra.mxu0 %v2582_v20  ;;  %v2646_v24 = vor.u32 %v2898_v22, %v2643_v23  ;;  %v2227_v44 = vld [vmem:[%s3190_s8 + $0x28] sm:$0xf0]  ;;  %v2880_v52 = vld [vmem:[%s3188_s7 + $0x154] sm:$0xf]  ;;  %v2702_v53 = vor.u32 %v2912_v50, %v2699_v51  ;;  %v2571_v54 = vld [vmem:[%s3188_s7 + $0x158] sm:$0xf0] }
  0xb8   : > { %v3503_v47 = vor.u32 %v2792_v43, %v2227_v44  ;;  %v2928_v55 = vld [vmem:[%s3188_s7 + $0x2d4] sm:$0xf]  ;;  %v2763_v56 = vld [vmem:[%s3188_s7 + $0x2d8] sm:$0xf0]  ;;  %v2574_v2 = vor.u32 %v2880_v52, %v2571_v54  ;;  %v2249_v19 = vld [vmem:[%s3190_s8 + $0x40] sm:$0xf] }
  0xb9   : > { %1808 = vmatpush.bf16.msra.mxu2 %v2710_v16  ;;  %1759 = vmatpush.bf16.msra.mxu1 %v2646_v24  ;;  %v2766_v3 = vor.u32 %v2928_v55, %v2763_v56  ;;  %v2896_v16 = vld [vmem:[%s3188_s7 + $0x1d4] sm:$0xf]  ;;  %v2635_v17 = vld [vmem:[%s3188_s7 + $0x1d8] sm:$0xf0]  ;;  %v2801_v20 = vld [vmem:[%s3190_s8 + $0x54] sm:$0xf0] }
  0xba   : > { %1857 = vmatpush.bf16.msra.mxu3 %v2774_v21  ;;  %v2638_v18 = vor.u32 %v2896_v16, %v2635_v17  ;;  %v2798_v21 = vld [vmem:[%s3190_s8 + $0x44] sm:$0xf]  ;;  %v2251_v22 = vld [vmem:[%s3190_s8 + $0x58] sm:$0xf0]  ;;  %v3523_v24 = vor.u32 %v2801_v20, %v2249_v19  ;;  %v2691_v51 = vld [vmem:[%s3188_s7 + $0x248] sm:$0xf0] }
  0xbb   : > { %1711 = vmatpush.bf16.msra.mxu0 %v2574_v2  ;;  %v3525_v44 = vor.u32 %v2798_v21, %v2251_v22  ;;  %v2910_v50 = vld [vmem:[%s3188_s7 + $0x244] sm:$0xf]  ;;  %v2563_v54 = vld [vmem:[%s3188_s7 + $0x148] sm:$0xf0]  ;;  %v2807_v19 = vld [vmem:[%s3190_s8 + $0x84] sm:$0xf0] }
  0xbc   : > { %v2878_v52 = vld [vmem:[%s3188_s7 + $0x144] sm:$0xf]  ;;  %v2755_v56 = vld [vmem:[%s3188_s7 + $0x2c8] sm:$0xf0]  ;;  %v2804_v20 = vld [vmem:[%s3190_s8 + $0x74] sm:$0xf] }
  0xbd   : > { %1809 = vmatpush.bf16.msra.mxu2 %v2702_v53  ;;  %1760 = vmatpush.bf16.msra.mxu1 %v2638_v18  ;;  %v2694_v53 = vor.u32 %v2910_v50, %v2691_v51  ;;  %v2926_v55 = vld [vmem:[%s3188_s7 + $0x2c4] sm:$0xf]  ;;  %v2566_v2 = vor.u32 %v2878_v52, %v2563_v54  ;;  %v2627_v16 = vld [vmem:[%s3188_s7 + $0x1c8] sm:$0xf0]  ;;  %v2273_v18 = vld [vmem:[%s3190_s8 + $0x70] sm:$0xf] }
  0xbe   : > { %1858 = vmatpush.bf16.msra.mxu3 %v2766_v3  ;;  %v2758_v3 = vor.u32 %v2926_v55, %v2755_v56  ;;  %v2275_v21 = vld [vmem:[%s3190_s8 + $0x88] sm:$0xf0]  ;;  %v2908_v52 = vld [vmem:[%s3188_s7 + $0x234] sm:$0xf]  ;;  %v2555_v56 = vld [vmem:[%s3188_s7 + $0x138] sm:$0xf0] }
  0xbf   : > { %1712 = vmatpush.bf16.msra.mxu0 %v2566_v2  ;;  %v2876_v54 = vld [vmem:[%s3188_s7 + $0x134] sm:$0xf]  ;;  %v2747_v2 = vld [vmem:[%s3188_s7 + $0x2b8] sm:$0xf0]  ;;  %p2783_p11 = scmp.ne.s32.totalorder %s3007_s14, 2 }
  0xc1   : > { %1810 = vmatpush.bf16.msra.mxu2 %v2694_v53  ;;  %v2683_v53 = vld [vmem:[%s3188_s7 + $0x238] sm:$0xf0] }
  0xc2   : > { %1340 = vmatmul.bf16.gmra.mxu0 %v3365_v61  ;;  %1859 = vmatpush.bf16.msra.mxu3 %v2758_v3  ;;  %v2686_v55 = vor.u32 %v2908_v52, %v2683_v53 }
  0xc3   : > { %1389 = vmatmul.bf16.gmra.mxu1 %v3367_v62 }
  0xc4   : > { %1438 = vmatmul.bf16.gmra.mxu2 %v3369_v63 }
  0xc5   : > { %1487 = vmatmul.bf16.gmra.mxu3 %v3371_v0  ;;  %1811 = vmatpush.bf16.msra.mxu2 %v2686_v55 }
  0xd2   : > { %1345 = vmatmul.bf16.gmra.mxu0 %v3393_v25 }
  0xd3   : > { %1394 = vmatmul.bf16.gmra.mxu1 %v3395_v26 }
  0xd4   : > { %1443 = vmatmul.bf16.gmra.mxu2 %v3397_v27 }
  0xd5   : > { %1492 = vmatmul.bf16.gmra.mxu3 %v3399_v28 }
  0xe2   : > { %1350 = vmatmul.bf16.gmra.mxu0 %v3421_v57 }
  0xe3   : > { %1399 = vmatmul.bf16.gmra.mxu1 %v3423_v58 }
  0xe4   : > { %1448 = vmatmul.bf16.gmra.mxu2 %v3425_v59 }
  0xe5   : > { %1497 = vmatmul.bf16.gmra.mxu3 %v3427_v60 }
  0xf2   : > { %1355 = vmatmul.bf16.gmra.mxu0 %v3449_v29 }
  0xf3   : > { %1404 = vmatmul.bf16.gmra.mxu1 %v3451_v30 }
  0xf4   : > { %1453 = vmatmul.bf16.gmra.mxu2 %v3453_v31 }
  0xf5   : > { %1502 = vmatmul.bf16.gmra.mxu3 %v3455_v32 }
 0x102   : > { %1360 = vmatmul.bf16.gmra.mxu0 %v3477_v5 }
 0x103   : > { %1409 = vmatmul.bf16.gmra.mxu1 %v3479_v6 }
 0x104   : > { %1458 = vmatmul.bf16.gmra.mxu2 %v3481_v7 }
 0x105   : > { %1507 = vmatmul.bf16.gmra.mxu3 %v3483_v8 }
 0x10f   : > { %v1326_v46 = vpop.f32.mrf.mxu0 }
 0x110   : > { %v1375_v48 = vpop.f32.mrf.mxu1 }
 0x111   : > { %v1376_v49 = vadd.f32 %v1375_v48, %v1326_v46 }
 0x112   : > { %1521 = vmatmul.bf16.vlgmr.msrb.gmra.mxu0 %v3501_v45 }
 0x113   : > { %1570 = vmatmul.bf16.vlgmr.msrb.gmra.mxu1 %v3503_v47 }
 0x114   : > { %1619 = vmatmul.bf16.vlgmr.msrb.gmra.mxu2 %v3272_v33 }
 0x115   : > { %1668 = vmatmul.bf16.vlgmr.msrb.gmra.mxu3 %v3277_v38 }
 0x117   : > { %v1424_v1 = vpop.f32.mrf.mxu2  ;;  %v1328_v13 = vpop.f32.mrf.mxu0 }
 0x118   : > { %v1425_v4 = vadd.f32 %v1424_v1, %v1376_v49  ;;  %v1473_v33 = vpop.f32.mrf.mxu3  ;;  %v1377_v38 = vpop.f32.mrf.mxu1 }
 0x119   : > { %v1378_v15 = vadd.f32 %v1377_v38, %v1328_v13 }
 0x11a   : > { %v3515_v14 = vadd.f32 %v1473_v33, %v1425_v4 }
 0x11f   : > { %v1426_v23 = vpop.f32.mrf.mxu2  ;;  %v1331_v43 = vpop.f32.mrf.mxu0 }
 0x120   : > { %v1427_v40 = vadd.f32 %v1426_v23, %v1378_v15  ;;  %v1475_v41 = vpop.f32.mrf.mxu3  ;;  %v1380_v46 = vpop.f32.mrf.mxu1  ;;  %v2894_v15 = vld [vmem:[%s3188_s7 + $0x1c4] sm:$0xf]  ;;  %v3547_v23 = vor.u32 %v2807_v19, %v2273_v18  ;;  %v2297_v19 = vld [vmem:[%s3190_s8 + $0xa0] sm:$0xf] }
 0x121   : > { %v1381_v49 = vadd.f32 %v1380_v46, %v1331_v43  ;;  %v2630_v17 = vor.u32 %v2894_v15, %v2627_v16  ;;  %v3549_v46 = vor.u32 %v2804_v20, %v2275_v21  ;;  %v2892_v16 = vld [vmem:[%s3188_s7 + $0x1b4] sm:$0xf]  ;;  %v2813_v20 = vld [vmem:[%s3190_s8 + $0xb4] sm:$0xf0]  ;;  %v2810_v21 = vld [vmem:[%s3190_s8 + $0xa4] sm:$0xf] }
 0x122   : > { %v3527_v48 = vadd.f32 %v1475_v41, %v1427_v40  ;;  %1526 = vmatmul.bf16.gmra.mxu0 %v3523_v24 }
 0x123   : > { %1575 = vmatmul.bf16.gmra.mxu1 %v3525_v44 }
 0x124   : > { %1624 = vmatmul.bf16.gmra.mxu2 %v3309_v9  ;;  %1761 = vmatpush.bf16.msra.mxu1 %v2630_v17  ;;  %v2619_v17 = vld [vmem:[%s3188_s7 + $0x1b8] sm:$0xf0] }
 0x125   : > { %1673 = vmatmul.bf16.gmra.mxu3 %v3311_v10  ;;  %v2622_v18 = vor.u32 %v2892_v16, %v2619_v17 }
 0x127   : > { %v1429_v1 = vpop.f32.mrf.mxu2  ;;  %v1333_v33 = vpop.f32.mrf.mxu0 }
 0x128   : > { %v1430_v4 = vadd.f32 %v1429_v1, %v1381_v49  ;;  %v1478_v9 = vpop.f32.mrf.mxu3  ;;  %v1382_v10 = vpop.f32.mrf.mxu1  ;;  %v2924_v1 = vld [vmem:[%s3188_s7 + $0x2b4] sm:$0xf]  ;;  %1762 = vmatpush.bf16.msra.mxu1 %v2622_v18 }
 0x129   : > { %v1383_v38 = vadd.f32 %v1382_v10, %v1333_v33 }
 0x12a   : > { %v3539_v13 = vadd.f32 %v1478_v9, %v1430_v4  ;;  %v2558_v4 = vor.u32 %v2876_v54, %v2555_v56  ;;  %v2750_v9 = vor.u32 %v2924_v1, %v2747_v2  ;;  %v2906_v56 = vld [vmem:[%s3188_s7 + $0x224] sm:$0xf]  ;;  %v2675_v1 = vld [vmem:[%s3188_s7 + $0x228] sm:$0xf0] }
 0x12b   : > { %v2874_v2 = vld [vmem:[%s3188_s7 + $0x124] sm:$0xf] }
 0x12c   : > { %1713 = vmatpush.bf16.msra.mxu0 %v2558_v4  ;;  %1860 = vmatpush.bf16.msra.mxu3 %v2750_v9  ;;  %v2547_v4 = vld [vmem:[%s3188_s7 + $0x128] sm:$0xf0]  ;;  %v2922_v9 = vld [vmem:[%s3188_s7 + $0x2a4] sm:$0xf] }
 0x12f   : > { %v1431_v22 = vpop.f32.mrf.mxu2  ;;  %v1336_v43 = vpop.f32.mrf.mxu0 }
 0x130   : > { %v1432_v40 = vadd.f32 %v1431_v22, %v1383_v38  ;;  %v1480_v41 = vpop.f32.mrf.mxu3  ;;  %v1385_v49 = vpop.f32.mrf.mxu1  ;;  %v2299_v22 = vld [vmem:[%s3190_s8 + $0xb8] sm:$0xf0] }
 0x131   : > { %v1386_v51 = vadd.f32 %v1385_v49, %v1336_v43  ;;  %v3573_v52 = vor.u32 %v2810_v21, %v2299_v22  ;;  %v2321_v22 = vld [vmem:[%s3190_s8 + $0xd0] sm:$0xf] }
 0x132   : > { %v3551_v50 = vadd.f32 %v1480_v41, %v1432_v40  ;;  %1531 = vmatmul.bf16.gmra.mxu0 %v3547_v23  ;;  %v3571_v41 = vor.u32 %v2813_v20, %v2297_v19  ;;  %v2890_v19 = vld [vmem:[%s3188_s7 + $0x1a4] sm:$0xf]  ;;  %v2611_v20 = vld [vmem:[%s3188_s7 + $0x1a8] sm:$0xf0] }
 0x133   : > { %1580 = vmatmul.bf16.gmra.mxu1 %v3549_v46  ;;  %v2614_v21 = vor.u32 %v2890_v19, %v2611_v20 }
 0x134   : > { %1629 = vmatmul.bf16.gmra.mxu2 %v3337_v34 }
 0x135   : > { %1678 = vmatmul.bf16.gmra.mxu3 %v3339_v35  ;;  %1763 = vmatpush.bf16.msra.mxu1 %v2614_v21 }
 0x137   : > { %v1434_v3 = vpop.f32.mrf.mxu2  ;;  %v1338_v10 = vpop.f32.mrf.mxu0 }
 0x138   : > { %v1435_v33 = vadd.f32 %v1434_v3, %v1386_v51  ;;  %v1483_v34 = vpop.f32.mrf.mxu3  ;;  %v1387_v35 = vpop.f32.mrf.mxu1  ;;  %v2678_v3 = vor.u32 %v2906_v56, %v2675_v1 }
 0x139   : > { %v1388_v15 = vadd.f32 %v1387_v35, %v1338_v10  ;;  %v2550_v10 = vor.u32 %v2874_v2, %v2547_v4 }
 0x13a   : > { %v3563_v38 = vadd.f32 %v1483_v34, %v1435_v33  ;;  %v2739_v33 = vld [vmem:[%s3188_s7 + $0x2a8] sm:$0xf0]  ;;  %1812 = vmatpush.bf16.msra.mxu2 %v2678_v3 }
 0x13b   : > { %v2742_v35 = vor.u32 %v2922_v9, %v2739_v33  ;;  %1714 = vmatpush.bf16.msra.mxu0 %v2550_v10  ;;  %v2904_v33 = vld [vmem:[%s3188_s7 + $0x214] sm:$0xf] }
 0x13c   : > { %v2872_v10 = vld [vmem:[%s3188_s7 + $0x114] sm:$0xf] }
 0x13d   : > { %1861 = vmatpush.bf16.msra.mxu3 %v2742_v35 }
 0x13f   : > { %v1436_v40 = vpop.f32.mrf.mxu2  ;;  %v1341_v51 = vpop.f32.mrf.mxu0 }
 0x140   : > { %v1437_v43 = vadd.f32 %v1436_v40, %v1388_v15  ;;  %v1485_v49 = vpop.f32.mrf.mxu3  ;;  %v1390_v53 = vpop.f32.mrf.mxu1  ;;  %v2819_v40 = vld [vmem:[%s3190_s8 + $0xe4] sm:$0xf0] }
 0x141   : > { %v1391_v55 = vadd.f32 %v1390_v53, %v1341_v51  ;;  %v3595_v53 = vor.u32 %v2819_v40, %v2321_v22 }
 0x142   : > { %v3575_v54 = vadd.f32 %v1485_v49, %v1437_v43  ;;  %1536 = vmatmul.bf16.gmra.mxu0 %v3571_v41  ;;  %v2816_v43 = vld [vmem:[%s3190_s8 + $0xd4] sm:$0xf]  ;;  %v2323_v49 = vld [vmem:[%s3190_s8 + $0xe8] sm:$0xf0] }
 0x143   : > { %1585 = vmatmul.bf16.gmra.mxu1 %v3573_v52  ;;  %v3597_v2 = vor.u32 %v2816_v43, %v2323_v49  ;;  %v2888_v43 = vld [vmem:[%s3188_s7 + $0x194] sm:$0xf]  ;;  %v2603_v49 = vld [vmem:[%s3188_s7 + $0x198] sm:$0xf0] }
 0x144   : > { %1634 = vmatmul.bf16.gmra.mxu2 %v3365_v61 }
 0x145   : > { %1683 = vmatmul.bf16.gmra.mxu3 %v3367_v62 }
 0x147   : > { %v1439_v34 = vpop.f32.mrf.mxu2  ;;  %v1343_v16 = vpop.f32.mrf.mxu0 }
 0x148   : > { %v1440_v15 = vadd.f32 %v1439_v34, %v1391_v55  ;;  %v1488_v61 = vpop.f32.mrf.mxu3  ;;  %v1392_v62 = vpop.f32.mrf.mxu1  ;;  %v2667_v34 = vld [vmem:[%s3188_s7 + $0x218] sm:$0xf0] }
 0x149   : > { %v1393_v18 = vadd.f32 %v1392_v62, %v1343_v16  ;;  %v2670_v35 = vor.u32 %v2904_v33, %v2667_v34  ;;  %v2731_v16 = vld [vmem:[%s3188_s7 + $0x298] sm:$0xf0] }
 0x14a   : > { %v3587_v17 = vadd.f32 %v1488_v61, %v1440_v15  ;;  %v2539_v15 = vld [vmem:[%s3188_s7 + $0x118] sm:$0xf0]  ;;  %v2920_v61 = vld [vmem:[%s3188_s7 + $0x294] sm:$0xf] }
 0x14b   : > { %v2734_v19 = vor.u32 %v2920_v61, %v2731_v16  ;;  %1813 = vmatpush.bf16.msra.mxu2 %v2670_v35 }
 0x14d   : > { %1862 = vmatpush.bf16.msra.mxu3 %v2734_v19  ;;  %v2659_v19 = vld [vmem:[%s3188_s7 + $0x208] sm:$0xf0] }
 0x14f   : > { %v1441_v51 = vpop.f32.mrf.mxu2  ;;  %v1346_v1 = vpop.f32.mrf.mxu0 }
 0x150   : > { %v1442_v55 = vadd.f32 %v1441_v51, %v1393_v18  ;;  %v1490_v56 = vpop.f32.mrf.mxu3  ;;  %v1395_v3 = vpop.f32.mrf.mxu1  ;;  %v2542_v18 = vor.u32 %v2872_v10, %v2539_v15  ;;  %v2606_v51 = vor.u32 %v2888_v43, %v2603_v49 }
 0x151   : > { %v1396_v9 = vadd.f32 %v1395_v3, %v1346_v1  ;;  %v2822_v1 = vld [vmem:[%s3190_s8 + $0x104] sm:$0xf]  ;;  %v2347_v3 = vld [vmem:[%s3190_s8 + $0x118] sm:$0xf0] }
 0x152   : > { %v3599_v4 = vadd.f32 %v1490_v56, %v1442_v55  ;;  %1541 = vmatmul.bf16.gmra.mxu0 %v3595_v53  ;;  %v2345_v55 = vld [vmem:[%s3190_s8 + $0x100] sm:$0xf]  ;;  %v2825_v56 = vld [vmem:[%s3190_s8 + $0x114] sm:$0xf0]  ;;  %1764 = vmatpush.bf16.msra.mxu1 %v2606_v51  ;;  %v3621_v15 = vor.u32 %v2822_v1, %v2347_v3 }
 0x153   : > { %1590 = vmatmul.bf16.gmra.mxu1 %v3597_v2  ;;  %1715 = vmatpush.bf16.msra.mxu0 %v2542_v18  ;;  %v3619_v33 = vor.u32 %v2825_v56, %v2345_v55  ;;  %v2902_v18 = vld [vmem:[%s3188_s7 + $0x204] sm:$0xf] }
 0x154   : > { %1639 = vmatmul.bf16.gmra.mxu2 %v3393_v25 }
 0x155   : > { %1688 = vmatmul.bf16.gmra.mxu3 %v3395_v26 }
 0x157   : > { %v1444_v62 = vpop.f32.mrf.mxu2  ;;  %v1348_v21 = vpop.f32.mrf.mxu0 }
 0x158   : > { %v1445_v20 = vadd.f32 %v1444_v62, %v1396_v9  ;;  %v1493_v25 = vpop.f32.mrf.mxu3  ;;  %v1397_v26 = vpop.f32.mrf.mxu1 }
 0x159   : > { %v1398_v40 = vadd.f32 %v1397_v26, %v1348_v21  ;;  %v2531_v21 = vld [vmem:[%s3188_s7 + $0x108] sm:$0xf0]  ;;  %v2918_v26 = vld [vmem:[%s3188_s7 + $0x284] sm:$0xf] }
 0x15a   : > { %v3611_v22 = vadd.f32 %v1493_v25, %v1445_v20  ;;  %v2870_v20 = vld [vmem:[%s3188_s7 + $0x104] sm:$0xf]  ;;  %v2662_v25 = vor.u32 %v2902_v18, %v2659_v19  ;;  %v2828_v18 = vld [vmem:[%s3190_s8 + $0x134] sm:$0xf]  ;;  %v2371_v19 = vld [vmem:[%s3190_s8 + $0x148] sm:$0xf0] }
 0x15b   : > { %v2534_v49 = vor.u32 %v2870_v20, %v2531_v21 }
 0x15c   : > { %1814 = vmatpush.bf16.msra.mxu2 %v2662_v25 }
 0x15d   : > { %1716 = vmatpush.bf16.msra.mxu0 %v2534_v49 }
 0x15f   : > { %v1446_v9 = vpop.f32.mrf.mxu2  ;;  %v1351_v35 = vpop.f32.mrf.mxu0 }
 0x160   : > { %v1447_v34 = vadd.f32 %v1446_v9, %v1398_v40  ;;  %v1495_v10 = vpop.f32.mrf.mxu3  ;;  %v1400_v61 = vpop.f32.mrf.mxu1  ;;  %v2723_v40 = vld [vmem:[%s3188_s7 + $0x288] sm:$0xf0]  ;;  %v2886_v9 = vld [vmem:[%s3188_s7 + $0x184] sm:$0xf] }
 0x161   : > { %v1401_v62 = vadd.f32 %v1400_v61, %v1351_v35  ;;  %v2726_v51 = vor.u32 %v2918_v26, %v2723_v40  ;;  %v2369_v35 = vld [vmem:[%s3190_s8 + $0x130] sm:$0xf]  ;;  %v2831_v61 = vld [vmem:[%s3190_s8 + $0x144] sm:$0xf0]  ;;  %v3645_v40 = vor.u32 %v2828_v18, %v2371_v19  ;;  %v2395_v18 = vld [vmem:[%s3190_s8 + $0x178] sm:$0xf0] }
 0x162   : > { %v3623_v16 = vadd.f32 %v1495_v10, %v1447_v34  ;;  %1546 = vmatmul.bf16.gmra.mxu0 %v3619_v33  ;;  %v2595_v34 = vld [vmem:[%s3188_s7 + $0x188] sm:$0xf0]  ;;  %v3643_v21 = vor.u32 %v2831_v61, %v2369_v35  ;;  %v2837_v35 = vld [vmem:[%s3190_s8 + $0x174] sm:$0xf0]  ;;  %v2834_v61 = vld [vmem:[%s3190_s8 + $0x164] sm:$0xf] }
 0x163   : > { %1595 = vmatmul.bf16.gmra.mxu1 %v3621_v15  ;;  %1863 = vmatpush.bf16.msra.mxu3 %v2726_v51  ;;  %v2598_v10 = vor.u32 %v2886_v9, %v2595_v34 }
 0x164   : > { %1644 = vmatmul.bf16.gmra.mxu2 %v3421_v57 }
 0x165   : > { %1693 = vmatmul.bf16.gmra.mxu3 %v3423_v58  ;;  %1765 = vmatpush.bf16.msra.mxu1 %v2598_v10  ;;  %v2393_v10 = vld [vmem:[%s3190_s8 + $0x160] sm:$0xf] }
 0x167   : > { %v1449_v43 = vpop.f32.mrf.mxu2  ;;  %v1353_v56 = vpop.f32.mrf.mxu0 }
 0x168   : > { %v1450_v55 = vadd.f32 %v1449_v43, %v1401_v62  ;;  %v1498_v57 = vpop.f32.mrf.mxu3  ;;  %v1402_v58 = vpop.f32.mrf.mxu1 }
 0x169   : > { %v1403_v3 = vadd.f32 %v1402_v58, %v1353_v56 }
 0x16a   : > { %v3635_v1 = vadd.f32 %v1498_v57, %v1450_v55 }
 0x16f   : > { %v1451_v20 = vpop.f32.mrf.mxu2  ;;  %v1356_v25 = vpop.f32.mrf.mxu0 }
 0x170   : > { %v1452_v62 = vadd.f32 %v1451_v20, %v1403_v3  ;;  %v1500_v26 = vpop.f32.mrf.mxu3  ;;  %v1405_v43 = vpop.f32.mrf.mxu1  ;;  %v3659_v20 = vor.u32 %v2837_v35, %v2393_v10 }
 0x171   : > { %v1406_v51 = vadd.f32 %v1405_v43, %v1356_v25  ;;  %v3661_v25 = vor.u32 %v2834_v61, %v2395_v18 }
 0x172   : > { %v3647_v49 = vadd.f32 %v1500_v26, %v1452_v62  ;;  %1551 = vmatmul.bf16.gmra.mxu0 %v3643_v21 }
 0x173   : > { %1600 = vmatmul.bf16.gmra.mxu1 %v3645_v40 }
 0x174   : > { %1649 = vmatmul.bf16.gmra.mxu2 %v3449_v29 }
 0x175   : > { %1698 = vmatmul.bf16.gmra.mxu3 %v3451_v30 }
 0x177   : > { %v1454_v55 = vpop.f32.mrf.mxu2  ;;  %v1358_v58 = vpop.f32.mrf.mxu0 }
 0x178   : > { %v1455_v57 = vadd.f32 %v1454_v55, %v1406_v51  ;;  %v1503_v56 = vpop.f32.mrf.mxu3  ;;  %v1407_v3 = vpop.f32.mrf.mxu1 }
 0x179   : > { %v1408_v34 = vadd.f32 %v1407_v3, %v1358_v58 }
 0x17a   : > { %v3653_v9 = vadd.f32 %v1503_v56, %v1455_v57 }
 0x17f   : > { %v1456_v19 = vpop.f32.mrf.mxu2  ;;  %v1361_v29 = vpop.f32.mrf.mxu0 }
 0x180   : > { %v1457_v62 = vadd.f32 %v1456_v19, %v1408_v34  ;;  %v1505_v26 = vpop.f32.mrf.mxu3  ;;  %v1410_v30 = vpop.f32.mrf.mxu1 }
 0x181   : > { %v1411_v51 = vadd.f32 %v1410_v30, %v1361_v29 }
 0x182   : > { %v3663_v43 = vadd.f32 %v1505_v26, %v1457_v62  ;;  %1556 = vmatmul.bf16.gmra.mxu0 %v3659_v20 }
 0x183   : > { %1605 = vmatmul.bf16.gmra.mxu1 %v3661_v25 }
 0x184   : > { %1654 = vmatmul.bf16.gmra.mxu2 %v3477_v5  ;;  %v421_v5 = vld [vmem:[#allocation2 + $0xb0] sm:$0xff] }
 0x185   : > { %1703 = vmatmul.bf16.gmra.mxu3 %v3479_v6 }
 0x187   : > { %v1459_v55 = vpop.f32.mrf.mxu2  ;;  %v1363_v58 = vpop.f32.mrf.mxu0 }
 0x188   : > { %v1460_v57 = vadd.f32 %v1459_v55, %v1411_v51  ;;  %v1508_v56 = vpop.f32.mrf.mxu3  ;;  %v1412_v3 = vpop.f32.mrf.mxu1 }
 0x189   : > { %v1413_v10 = vadd.f32 %v1412_v3, %v1363_v58  ;;  %v423_v3 = vld [vmem:[#allocation2 + $0xd8] sm:$0xff] }
 0x18a   : > { %v3669_v34 = vadd.f32 %v1508_v56, %v1460_v57 }
 0x18f   : > { %v1461_v35 = vpop.f32.mrf.mxu2  ;;  %v1522_v19 = vpop.f32.mrf.mxu0 }
 0x190   : > { %v1462_v61 = vadd.f32 %v1461_v35, %v1413_v10  ;;  %v1510_v18 = vpop.f32.mrf.mxu3  ;;  %v1523_v62 = vadd.f32 %v1522_v19, %v3515_v14  ;;  %v1571_v26 = vpop.f32.mrf.mxu1  ;;  %v425_v19 = vld [vmem:[#allocation2 + $0x50] sm:$0xff] }
 0x192   : > { %v3672_v29 = vadd.f32 %v1510_v18, %v1462_v61  ;;  %v1572_v30 = vadd.f32 %v1571_v26, %v1523_v62  ;;  %1717 = vmatmul.bf16.vlgmr.msra.gmra.mxu0 %v3279_v39 }
 0x193   : > { %1766 = vmatmul.bf16.vlgmr.msra.gmra.mxu1 %v3283_v42 }
 0x194   : > { %1815 = vmatmul.bf16.vlgmr.msra.gmra.mxu2 %v3501_v45  ;;  %v1905_v6 = vadd.f32 %v1572_v30, %v421_v5 }
 0x195   : > { %1864 = vmatmul.bf16.vlgmr.msra.gmra.mxu3 %v3503_v47 }
 0x196   : > { %1937 = vst [vmem:[#allocation2 + $0xb0] sm:$0xff] %v1905_v6 }
 0x197   : > { %v1620_v51 = vpop.f32.mrf.mxu2  ;;  %v1524_v57 = vpop.f32.mrf.mxu0 }
 0x198   : > { %v1669_v55 = vpop.f32.mrf.mxu3  ;;  %v1525_v14 = vadd.f32 %v1524_v57, %v3527_v48  ;;  %v1573_v58 = vpop.f32.mrf.mxu1 }
 0x199   : > { %v3678_v56 = vadd.f32 %v1669_v55, %v1620_v51  ;;  %v427_v55 = vld [vmem:[#allocation2 + $0x30] sm:$0xff] }
 0x19a   : > { %v1574_v10 = vadd.f32 %v1573_v58, %v1525_v14 }
 0x19c   : > { %v1907_v35 = vadd.f32 %v1574_v10, %v423_v3  ;;  %v429_v10 = vld [vmem:[#allocation2 + $0x80] sm:$0xff] }
 0x19e   : > { %1939 = vst [vmem:[#allocation2 + $0xd8] sm:$0xff] %v1907_v35 }
 0x19f   : > { %v1622_v39 = vpop.f32.mrf.mxu2  ;;  %v1527_v61 = vpop.f32.mrf.mxu0 }
 0x1a0   : > { %v1671_v42 = vpop.f32.mrf.mxu3  ;;  %v1528_v47 = vadd.f32 %v1527_v61, %v3539_v13  ;;  %v1576_v18 = vpop.f32.mrf.mxu1 }
 0x1a1   : > { %v3681_v45 = vadd.f32 %v1671_v42, %v1622_v39 }
 0x1a2   : > { %v1577_v62 = vadd.f32 %v1576_v18, %v1528_v47  ;;  %1722 = vmatmul.bf16.gmra.mxu0 %v3313_v11 }
 0x1a3   : > { %1771 = vmatmul.bf16.gmra.mxu1 %v3315_v12 }
 0x1a4   : > { %1820 = vmatmul.bf16.gmra.mxu2 %v3523_v24  ;;  %v1909_v48 = vadd.f32 %v1577_v62, %v425_v19  ;;  %v431_v19 = vld [vmem:[#allocation2 + $0xe8] sm:$0xff] }
 0x1a5   : > { %1869 = vmatmul.bf16.gmra.mxu3 %v3525_v44 }
 0x1a6   : > { %1941 = vst [vmem:[#allocation2 + $0x50] sm:$0xff] %v1909_v48 }
 0x1a7   : > { %v1625_v26 = vpop.f32.mrf.mxu2  ;;  %v1529_v30 = vpop.f32.mrf.mxu0 }
 0x1a8   : > { %v1674_v5 = vpop.f32.mrf.mxu3  ;;  %v1530_v13 = vadd.f32 %v1529_v30, %v3551_v50  ;;  %v1578_v51 = vpop.f32.mrf.mxu1  ;;  %v433_v30 = vld [vmem:[#allocation2 + $0x60] sm:$0xff] }
 0x1a9   : > { %v3688_v6 = vadd.f32 %v1674_v5, %v1625_v26 }
 0x1aa   : > { %v1579_v57 = vadd.f32 %v1578_v51, %v1530_v13 }
 0x1ac   : > { %v1911_v14 = vadd.f32 %v1579_v57, %v427_v55 }
 0x1ae   : > { %1943 = vst [vmem:[#allocation2 + $0x30] sm:$0xff] %v1911_v14 }
 0x1af   : > { %v1627_v11 = vpop.f32.mrf.mxu2  ;;  %v1532_v58 = vpop.f32.mrf.mxu0 }
 0x1b0   : > { %v1676_v12 = vpop.f32.mrf.mxu3  ;;  %v1533_v44 = vadd.f32 %v1532_v58, %v3563_v38  ;;  %v1581_v3 = vpop.f32.mrf.mxu1 }
 0x1b1   : > { %v3691_v24 = vadd.f32 %v1676_v12, %v1627_v11  ;;  %v435_v12 = vld [vmem:[#allocation2 + $0x8] sm:$0xff] }
 0x1b2   : > { %v1582_v35 = vadd.f32 %v1581_v3, %v1533_v44  ;;  %1727 = vmatmul.bf16.gmra.mxu0 %v3341_v36 }
 0x1b3   : > { %1776 = vmatmul.bf16.gmra.mxu1 %v3343_v37 }
 0x1b4   : > { %1825 = vmatmul.bf16.gmra.mxu2 %v3547_v23  ;;  %v1913_v50 = vadd.f32 %v1582_v35, %v429_v10  ;;  %v437_v35 = vld [vmem:[#allocation2 + $0x38] sm:$0xff] }
 0x1b5   : > { %1874 = vmatmul.bf16.gmra.mxu3 %v3549_v46 }
 0x1b6   : > { %1945 = vst [vmem:[#allocation2 + $0x80] sm:$0xff] %v1913_v50 }
 0x1b7   : > { %v1630_v39 = vpop.f32.mrf.mxu2  ;;  %v1534_v61 = vpop.f32.mrf.mxu0 }
 0x1b8   : > { %v1679_v42 = vpop.f32.mrf.mxu3  ;;  %v1535_v38 = vadd.f32 %v1534_v61, %v3575_v54  ;;  %v1583_v18 = vpop.f32.mrf.mxu1 }
 0x1b9   : > { %v3698_v47 = vadd.f32 %v1679_v42, %v1630_v39 }
 0x1ba   : > { %v1584_v62 = vadd.f32 %v1583_v18, %v1535_v38 }
 0x1bc   : > { %v1915_v48 = vadd.f32 %v1584_v62, %v431_v19  ;;  %v439_v19 = vld [vmem:[#allocation2 + $0x40] sm:$0xff] }
 0x1be   : > { %1947 = vst [vmem:[#allocation2 + $0xe8] sm:$0xff] %v1915_v48 }
 0x1bf   : > { %v1632_v36 = vpop.f32.mrf.mxu2  ;;  %v1537_v26 = vpop.f32.mrf.mxu0 }
 0x1c0   : > { %v1681_v37 = vpop.f32.mrf.mxu3  ;;  %v1538_v46 = vadd.f32 %v1537_v26, %v3587_v17  ;;  %v1586_v5 = vpop.f32.mrf.mxu1  ;;  %v441_v26 = vld [vmem:[#allocation2 + $0xe0] sm:$0xff] }
 0x1c1   : > { %v3701_v23 = vadd.f32 %v1681_v37, %v1632_v36 }
 0x1c2   : > { %v1587_v13 = vadd.f32 %v1586_v5, %v1538_v46  ;;  %1732 = vmatmul.bf16.gmra.mxu0 %v3369_v63 }
 0x1c3   : > { %1781 = vmatmul.bf16.gmra.mxu1 %v3371_v0 }
 0x1c4   : > { %1830 = vmatmul.bf16.gmra.mxu2 %v3571_v41  ;;  %v1917_v54 = vadd.f32 %v1587_v13, %v433_v30 }
 0x1c5   : > { %1879 = vmatmul.bf16.gmra.mxu3 %v3573_v52 }
 0x1c6   : > { %1949 = vst [vmem:[#allocation2 + $0x60] sm:$0xff] %v1917_v54 }
 0x1c7   : > { %v1635_v51 = vpop.f32.mrf.mxu2  ;;  %v1539_v57 = vpop.f32.mrf.mxu0 }
 0x1c8   : > { %v1684_v55 = vpop.f32.mrf.mxu3  ;;  %v1540_v17 = vadd.f32 %v1539_v57, %v3599_v4  ;;  %v1588_v11 = vpop.f32.mrf.mxu1 }
 0x1c9   : > { %v3708_v14 = vadd.f32 %v1684_v55, %v1635_v51  ;;  %v443_v55 = vld [vmem:[#allocation2 + $0x70] sm:$0xff] }
 0x1ca   : > { %v1589_v58 = vadd.f32 %v1588_v11, %v1540_v17 }
 0x1cc   : > { %v1919_v44 = vadd.f32 %v1589_v58, %v435_v12  ;;  %v445_v58 = vld [vmem:[#allocation2 + $0xa8] sm:$0xff] }
 0x1ce   : > { %1951 = vst [vmem:[#allocation2 + $0x8] sm:$0xff] %v1919_v44 }
 0x1cf   : > { %v1637_v63 = vpop.f32.mrf.mxu2  ;;  %v1542_v3 = vpop.f32.mrf.mxu0 }
 0x1d0   : > { %v1686_v0 = vpop.f32.mrf.mxu3  ;;  %v1543_v52 = vadd.f32 %v1542_v3, %v3611_v22  ;;  %v1591_v10 = vpop.f32.mrf.mxu1 }
 0x1d1   : > { %v3711_v41 = vadd.f32 %v1686_v0, %v1637_v63 }
 0x1d2   : > { %v1592_v50 = vadd.f32 %v1591_v10, %v1543_v52  ;;  %1737 = vmatmul.bf16.gmra.mxu0 %v3397_v27 }
 0x1d3   : > { %1786 = vmatmul.bf16.gmra.mxu1 %v3399_v28 }
 0x1d4   : > { %1835 = vmatmul.bf16.gmra.mxu2 %v3595_v53  ;;  %v1921_v4 = vadd.f32 %v1592_v50, %v437_v35  ;;  %v447_v35 = vld [vmem:[#allocation2 + $0x10] sm:$0xff] }
 0x1d5   : > { %1884 = vmatmul.bf16.gmra.mxu3 %v3597_v2 }
 0x1d6   : > { %1953 = vst [vmem:[#allocation2 + $0x38] sm:$0xff] %v1921_v4 }
 0x1d7   : > { %v1640_v39 = vpop.f32.mrf.mxu2  ;;  %v1544_v61 = vpop.f32.mrf.mxu0 }
 0x1d8   : > { %v1689_v42 = vpop.f32.mrf.mxu3  ;;  %v1545_v22 = vadd.f32 %v1544_v61, %v3623_v16  ;;  %v1593_v18 = vpop.f32.mrf.mxu1  ;;  %v449_v61 = vld [vmem:[#allocation2 + $0xa0] sm:$0xff] }
 0x1d9   : > { %v3718_v38 = vadd.f32 %v1689_v42, %v1640_v39 }
 0x1da   : > { %v1594_v62 = vadd.f32 %v1593_v18, %v1545_v22 }
 0x1dc   : > { %v1923_v48 = vadd.f32 %v1594_v62, %v439_v19 }
 0x1de   : > { %1955 = vst [vmem:[#allocation2 + $0x40] sm:$0xff] %v1923_v48 }
 0x1df   : > { %v1642_v27 = vpop.f32.mrf.mxu2  ;;  %v1547_v36 = vpop.f32.mrf.mxu0 }
 0x1e0   : > { %v1691_v28 = vpop.f32.mrf.mxu3  ;;  %v1548_v2 = vadd.f32 %v1547_v36, %v3635_v1  ;;  %v1596_v37 = vpop.f32.mrf.mxu1 }
 0x1e1   : > { %v3721_v53 = vadd.f32 %v1691_v28, %v1642_v27  ;;  %v451_v28 = vld [vmem:[#allocation2 + $0x20] sm:$0xff] }
 0x1e2   : > { %v1597_v46 = vadd.f32 %v1596_v37, %v1548_v2  ;;  %1742 = vmatmul.bf16.gmra.mxu0 %v3425_v59 }
 0x1e3   : > { %1791 = vmatmul.bf16.gmra.mxu1 %v3427_v60 }
 0x1e4   : > { %1840 = vmatmul.bf16.gmra.mxu2 %v3619_v33  ;;  %v1925_v16 = vadd.f32 %v1597_v46, %v441_v26 }
 0x1e5   : > { %1889 = vmatmul.bf16.gmra.mxu3 %v3621_v15 }
 0x1e6   : > { %1957 = vst [vmem:[#allocation2 + $0xe0] sm:$0xff] %v1925_v16 }
 0x1e7   : > { %v1645_v5 = vpop.f32.mrf.mxu2  ;;  %v1549_v13 = vpop.f32.mrf.mxu0 }
 0x1e8   : > { %v1694_v30 = vpop.f32.mrf.mxu3  ;;  %v1550_v1 = vadd.f32 %v1549_v13, %v3647_v49  ;;  %v1598_v51 = vpop.f32.mrf.mxu1 }
 0x1e9   : > { %v3728_v54 = vadd.f32 %v1694_v30, %v1645_v5 }
 0x1ea   : > { %v1599_v57 = vadd.f32 %v1598_v51, %v1550_v1  ;;  %v422_v1 = vld [vmem:[#allocation2] sm:$0xff] }
 0x1ec   : > { %v1927_v17 = vadd.f32 %v1599_v57, %v443_v55 }
 0x1ee   : > { %1959 = vst [vmem:[#allocation2 + $0x70] sm:$0xff] %v1927_v17 }
 0x1ef   : > { %v1647_v59 = vpop.f32.mrf.mxu2  ;;  %v1552_v11 = vpop.f32.mrf.mxu0 }
 0x1f0   : > { %v1696_v60 = vpop.f32.mrf.mxu3  ;;  %v1553_v15 = vadd.f32 %v1552_v11, %v3653_v9  ;;  %v1601_v12 = vpop.f32.mrf.mxu1 }
 0x1f1   : > { %v3731_v33 = vadd.f32 %v1696_v60, %v1647_v59 }
 0x1f2   : > { %v1602_v44 = vadd.f32 %v1601_v12, %v1553_v15  ;;  %1747 = vmatmul.bf16.gmra.mxu0 %v3453_v31  ;;  %v424_v12 = vld [vmem:[#allocation2 + $0x18] sm:$0xff] }
 0x1f3   : > { %1796 = vmatmul.bf16.gmra.mxu1 %v3455_v32 }
 0x1f4   : > { %1845 = vmatmul.bf16.gmra.mxu2 %v3643_v21  ;;  %v1929_v49 = vadd.f32 %v1602_v44, %v445_v58 }
 0x1f5   : > { %1894 = vmatmul.bf16.gmra.mxu3 %v3645_v40 }
 0x1f6   : > { %1961 = vst [vmem:[#allocation2 + $0xa8] sm:$0xff] %v1929_v49 }
 0x1f7   : > { %v1650_v63 = vpop.f32.mrf.mxu2  ;;  %v1554_v3 = vpop.f32.mrf.mxu0 }
 0x1f8   : > { %v1699_v0 = vpop.f32.mrf.mxu3  ;;  %v1555_v9 = vadd.f32 %v1554_v3, %v3663_v43  ;;  %v1603_v10 = vpop.f32.mrf.mxu1 }
 0x1f9   : > { %v3738_v52 = vadd.f32 %v1699_v0, %v1650_v63 }
 0x1fa   : > { %v1604_v50 = vadd.f32 %v1603_v10, %v1555_v9 }
 0x1fc   : > { %v1931_v4 = vadd.f32 %v1604_v50, %v447_v35 }
 0x1fe   : > { %1963 = vst [vmem:[#allocation2 + $0x10] sm:$0xff] %v1931_v4 }
 0x1ff   : > { %v1652_v31 = vpop.f32.mrf.mxu2  ;;  %v1557_v39 = vpop.f32.mrf.mxu0 }
 0x200   : > { %v1701_v32 = vpop.f32.mrf.mxu3  ;;  %v1558_v40 = vadd.f32 %v1557_v39, %v3669_v34  ;;  %v1606_v42 = vpop.f32.mrf.mxu1 }
 0x201   : > { %v3741_v21 = vadd.f32 %v1701_v32, %v1652_v31 }
 0x202   : > { %v1607_v22 = vadd.f32 %v1606_v42, %v1558_v40  ;;  %1752 = vmatmul.bf16.gmra.mxu0 %v3481_v7 }
 0x203   : > { %1801 = vmatmul.bf16.gmra.mxu1 %v3483_v8 }
 0x204   : > { %1850 = vmatmul.bf16.gmra.mxu2 %v3659_v20  ;;  %v1933_v43 = vadd.f32 %v1607_v22, %v449_v61 }
 0x205   : > { %1899 = vmatmul.bf16.gmra.mxu3 %v3661_v25 }
 0x206   : > { %1965 = vst [vmem:[#allocation2 + $0xa0] sm:$0xff] %v1933_v43 }
 0x207   : > { %v1655_v18 = vpop.f32.mrf.mxu2  ;;  %v1559_v62 = vpop.f32.mrf.mxu0 }
 0x208   : > { %v1704_v19 = vpop.f32.mrf.mxu3  ;;  %v1560_v34 = vadd.f32 %v1559_v62, %v3672_v29  ;;  %v1608_v27 = vpop.f32.mrf.mxu1 }
 0x209   : > { %v3748_v48 = vadd.f32 %v1704_v19, %v1655_v18 }
 0x20a   : > { %v1609_v36 = vadd.f32 %v1608_v27, %v1560_v34 }
 0x20c   : > { %v1935_v2 = vadd.f32 %v1609_v36, %v451_v28 }
 0x20e   : > { %1967 = vst [vmem:[#allocation2 + $0x20] sm:$0xff] %v1935_v2 }
 0x20f   : > { %v1657_v7 = vpop.f32.mrf.mxu2  ;;  %v1718_v37 = vpop.f32.mrf.mxu0 }
 0x210   : > { %v1706_v8 = vpop.f32.mrf.mxu3  ;;  %v1767_v26 = vpop.f32.mrf.mxu1  ;;  %v1719_v25 = vadd.f32 %v1718_v37, %v3678_v56 }
 0x211   : > { %v3751_v20 = vadd.f32 %v1706_v8, %v1657_v7 }
 0x212   : > { %v1768_v46 = vadd.f32 %v1767_v26, %v1719_v25 }
 0x217   : > { %v1816_v16 = vpop.f32.mrf.mxu2  ;;  %v1720_v13 = vpop.f32.mrf.mxu0 }
 0x218   : > { %v1817_v5 = vadd.f32 %v1816_v16, %v1768_v46  ;;  %v1865_v30 = vpop.f32.mrf.mxu3  ;;  %v1769_v29 = vpop.f32.mrf.mxu1  ;;  %v1721_v55 = vadd.f32 %v1720_v13, %v3681_v45  ;;  %v426_v45 = vld [vmem:[#allocation2 + $0x68] sm:$0xff] }
 0x21a   : > { %v1866_v51 = vadd.f32 %v1865_v30, %v1817_v5  ;;  %v1770_v17 = vadd.f32 %v1769_v29, %v1721_v55 }
 0x21c   : > { %v1906_v57 = vadd.f32 %v1866_v51, %v422_v1 }
 0x21e   : > { %1938 = vst [vmem:[#allocation2] sm:$0xff] %v1906_v57 }
 0x21f   : > { %v1818_v59 = vpop.f32.mrf.mxu2  ;;  %v1723_v15 = vpop.f32.mrf.mxu0 }
 0x220   : > { %v1819_v60 = vadd.f32 %v1818_v59, %v1770_v17  ;;  %v1867_v11 = vpop.f32.mrf.mxu3  ;;  %v1772_v58 = vpop.f32.mrf.mxu1  ;;  %v1724_v44 = vadd.f32 %v1723_v15, %v3688_v6  ;;  %v428_v6 = vld [vmem:[#allocation2 + $0x48] sm:$0xff] }
 0x222   : > { %v1868_v56 = vadd.f32 %v1867_v11, %v1819_v60  ;;  %v1773_v63 = vadd.f32 %v1772_v58, %v1724_v44 }
 0x224   : > { %v1908_v49 = vadd.f32 %v1868_v56, %v424_v12 }
 0x226   : > { %1940 = vst [vmem:[#allocation2 + $0x18] sm:$0xff] %v1908_v49 }
 0x227   : > { %v1821_v0 = vpop.f32.mrf.mxu2  ;;  %v1725_v10 = vpop.f32.mrf.mxu0 }
 0x228   : > { %v1822_v3 = vadd.f32 %v1821_v0, %v1773_v63  ;;  %v1870_v9 = vpop.f32.mrf.mxu3  ;;  %v1774_v35 = vpop.f32.mrf.mxu1  ;;  %v1726_v4 = vadd.f32 %v1725_v10, %v3691_v24  ;;  %v430_v24 = vld [vmem:[#allocation2 + $0x88] sm:$0xff] }
 0x22a   : > { %v1871_v50 = vadd.f32 %v1870_v9, %v1822_v3  ;;  %v1775_v32 = vadd.f32 %v1774_v35, %v1726_v4 }
 0x22c   : > { %v1910_v31 = vadd.f32 %v1871_v50, %v426_v45 }
 0x22e   : > { %1942 = vst [vmem:[#allocation2 + $0x68] sm:$0xff] %v1910_v31 }
 0x22f   : > { %v1823_v39 = vpop.f32.mrf.mxu2  ;;  %v1728_v61 = vpop.f32.mrf.mxu0 }
 0x230   : > { %v1824_v40 = vadd.f32 %v1823_v39, %v1775_v32  ;;  %v1872_v42 = vpop.f32.mrf.mxu3  ;;  %v1777_v22 = vpop.f32.mrf.mxu1  ;;  %v1729_v18 = vadd.f32 %v1728_v61, %v3698_v47  ;;  %v432_v47 = vld [vmem:[#allocation2 + $0xb8] sm:$0xff] }
 0x232   : > { %v1873_v43 = vadd.f32 %v1872_v42, %v1824_v40  ;;  %v1778_v62 = vadd.f32 %v1777_v22, %v1729_v18 }
 0x234   : > { %v1912_v19 = vadd.f32 %v1873_v43, %v428_v6 }
 0x236   : > { %1944 = vst [vmem:[#allocation2 + $0x48] sm:$0xff] %v1912_v19 }
 0x237   : > { %v1826_v34 = vpop.f32.mrf.mxu2  ;;  %v1730_v36 = vpop.f32.mrf.mxu0 }
 0x238   : > { %v1827_v27 = vadd.f32 %v1826_v34, %v1778_v62  ;;  %v1875_v28 = vpop.f32.mrf.mxu3  ;;  %v1779_v2 = vpop.f32.mrf.mxu1  ;;  %v1731_v8 = vadd.f32 %v1730_v36, %v3701_v23  ;;  %v434_v23 = vld [vmem:[#allocation2 + $0xf0] sm:$0xff] }
 0x23a   : > { %v1876_v7 = vadd.f32 %v1875_v28, %v1827_v27  ;;  %v1780_v26 = vadd.f32 %v1779_v2, %v1731_v8 }
 0x23c   : > { %v1914_v37 = vadd.f32 %v1876_v7, %v430_v24 }
 0x23e   : > { %1946 = vst [vmem:[#allocation2 + $0x88] sm:$0xff] %v1914_v37 }
 0x23f   : > { %v1828_v25 = vpop.f32.mrf.mxu2  ;;  %v1733_v5 = vpop.f32.mrf.mxu0 }
 0x240   : > { %v1829_v46 = vadd.f32 %v1828_v25, %v1780_v26  ;;  %v1877_v16 = vpop.f32.mrf.mxu3  ;;  %v1782_v30 = vpop.f32.mrf.mxu1  ;;  %v1734_v1 = vadd.f32 %v1733_v5, %v3708_v14  ;;  %v436_v14 = vld [vmem:[#allocation2 + $0x78] sm:$0xff] }
 0x242   : > { %v1878_v13 = vadd.f32 %v1877_v16, %v1829_v46  ;;  %v1783_v51 = vadd.f32 %v1782_v30, %v1734_v1 }
 0x244   : > { %v1916_v29 = vadd.f32 %v1878_v13, %v432_v47 }
 0x246   : > { %1948 = vst [vmem:[#allocation2 + $0xb8] sm:$0xff] %v1916_v29 }
 0x247   : > { %v1831_v55 = vpop.f32.mrf.mxu2  ;;  %v1735_v59 = vpop.f32.mrf.mxu0 }
 0x248   : > { %v1832_v57 = vadd.f32 %v1831_v55, %v1783_v51  ;;  %v1880_v17 = vpop.f32.mrf.mxu3  ;;  %v1784_v60 = vpop.f32.mrf.mxu1  ;;  %v1736_v15 = vadd.f32 %v1735_v59, %v3711_v41  ;;  %v438_v41 = vld [vmem:[#allocation2 + $0x58] sm:$0xff] }
 0x24a   : > { %v1881_v11 = vadd.f32 %v1880_v17, %v1832_v57  ;;  %v1785_v58 = vadd.f32 %v1784_v60, %v1736_v15 }
 0x24c   : > { %v1918_v12 = vadd.f32 %v1881_v11, %v434_v23 }
 0x24e   : > { %1950 = vst [vmem:[#allocation2 + $0xf0] sm:$0xff] %v1918_v12 }
 0x24f   : > { %v1833_v56 = vpop.f32.mrf.mxu2  ;;  %v1738_v63 = vpop.f32.mrf.mxu0 }
 0x250   : > { %v1834_v44 = vadd.f32 %v1833_v56, %v1785_v58  ;;  %v1882_v49 = vpop.f32.mrf.mxu3  ;;  %v1787_v0 = vpop.f32.mrf.mxu1  ;;  %v1739_v9 = vadd.f32 %v1738_v63, %v3718_v38  ;;  %v440_v38 = vld [vmem:[#allocation2 + $0xc8] sm:$0xff] }
 0x252   : > { %v1883_v3 = vadd.f32 %v1882_v49, %v1834_v44  ;;  %v1788_v45 = vadd.f32 %v1787_v0, %v1739_v9 }
 0x254   : > { %v1920_v10 = vadd.f32 %v1883_v3, %v436_v14 }
 0x256   : > { %1952 = vst [vmem:[#allocation2 + $0x78] sm:$0xff] %v1920_v10 }
 0x257   : > { %v1836_v35 = vpop.f32.mrf.mxu2  ;;  %v1740_v31 = vpop.f32.mrf.mxu0 }
 0x258   : > { %v1837_v50 = vadd.f32 %v1836_v35, %v1788_v45  ;;  %v1885_v4 = vpop.f32.mrf.mxu3  ;;  %v1789_v32 = vpop.f32.mrf.mxu1  ;;  %v1741_v40 = vadd.f32 %v1740_v31, %v3721_v53  ;;  %v442_v53 = vld [vmem:[#allocation2 + $0x90] sm:$0xff] }
 0x25a   : > { %v1886_v39 = vadd.f32 %v1885_v4, %v1837_v50  ;;  %v1790_v61 = vadd.f32 %v1789_v32, %v1741_v40 }
 0x25c   : > { %v1922_v42 = vadd.f32 %v1886_v39, %v438_v41 }
 0x25e   : > { %1954 = vst [vmem:[#allocation2 + $0x58] sm:$0xff] %v1922_v42 }
 0x25f   : > { %v1838_v6 = vpop.f32.mrf.mxu2  ;;  %v1743_v18 = vpop.f32.mrf.mxu0 }
 0x260   : > { %v1839_v22 = vadd.f32 %v1838_v6, %v1790_v61  ;;  %v1887_v43 = vpop.f32.mrf.mxu3  ;;  %v1792_v19 = vpop.f32.mrf.mxu1  ;;  %v1744_v34 = vadd.f32 %v1743_v18, %v3728_v54  ;;  %v444_v54 = vld [vmem:[#allocation2 + $0xc0] sm:$0xff]  ;;  %v452_v6 = vld [vmem:[#allocation2 + $0x98] sm:$0xff] }
 0x262   : > { %v1888_v62 = vadd.f32 %v1887_v43, %v1839_v22  ;;  %v1793_v28 = vadd.f32 %v1792_v19, %v1744_v34 }
 0x264   : > { %v1924_v27 = vadd.f32 %v1888_v62, %v440_v38 }
 0x266   : > { %1956 = vst [vmem:[#allocation2 + $0xc8] sm:$0xff] %v1924_v27 }
 0x267   : > { %v1841_v36 = vpop.f32.mrf.mxu2  ;;  %v1745_v7 = vpop.f32.mrf.mxu0 }
 0x268   : > { %v1842_v24 = vadd.f32 %v1841_v36, %v1793_v28  ;;  %v1890_v2 = vpop.f32.mrf.mxu3  ;;  %v1794_v8 = vpop.f32.mrf.mxu1  ;;  %v1746_v26 = vadd.f32 %v1745_v7, %v3731_v33  ;;  %v446_v33 = vld [vmem:[#allocation2 + $0xd0] sm:$0xff] }
 0x26a   : > { %v1891_v37 = vadd.f32 %v1890_v2, %v1842_v24  ;;  %v1795_v46 = vadd.f32 %v1794_v8, %v1746_v26 }
 0x26c   : > { %v1926_v25 = vadd.f32 %v1891_v37, %v442_v53 }
 0x26e   : > { %1958 = vst [vmem:[#allocation2 + $0x90] sm:$0xff] %v1926_v25 }
 0x26f   : > { %v1843_v16 = vpop.f32.mrf.mxu2  ;;  %v1748_v30 = vpop.f32.mrf.mxu0 }
 0x270   : > { %v1844_v5 = vadd.f32 %v1843_v16, %v1795_v46  ;;  %v1892_v47 = vpop.f32.mrf.mxu3  ;;  %v1797_v13 = vpop.f32.mrf.mxu1  ;;  %v1749_v29 = vadd.f32 %v1748_v30, %v3738_v52  ;;  %v448_v52 = vld [vmem:[#allocation2 + $0x28] sm:$0xff] }
 0x272   : > { %v1893_v1 = vadd.f32 %v1892_v47, %v1844_v5  ;;  %v1798_v55 = vadd.f32 %v1797_v13, %v1749_v29 }
 0x274   : > { %v1928_v51 = vadd.f32 %v1893_v1, %v444_v54 }
 0x276   : > { %1960 = vst [vmem:[#allocation2 + $0xc0] sm:$0xff] %v1928_v51 }
 0x277   : > { %v1846_v57 = vpop.f32.mrf.mxu2  ;;  %v1750_v23 = vpop.f32.mrf.mxu0 }
 0x278   : > { %v1847_v17 = vadd.f32 %v1846_v57, %v1798_v55  ;;  %v1895_v59 = vpop.f32.mrf.mxu3  ;;  %v1799_v60 = vpop.f32.mrf.mxu1  ;;  %v1751_v15 = vadd.f32 %v1750_v23, %v3741_v21  ;;  %v450_v21 = vld [vmem:[#allocation2 + $0xf8] sm:$0xff] }
 0x27a   : > { %v1896_v11 = vadd.f32 %v1895_v59, %v1847_v17  ;;  %v1800_v58 = vadd.f32 %v1799_v60, %v1751_v15 }
 0x27c   : > { %v1930_v12 = vadd.f32 %v1896_v11, %v446_v33 }
 0x27e   : > { %1962 = vst [vmem:[#allocation2 + $0xd0] sm:$0xff] %v1930_v12 }
 0x27f   : > { %v1848_v56 = vpop.f32.mrf.mxu2  ;;  %v1753_v63 = vpop.f32.mrf.mxu0 }
 0x280   : > { %v1849_v44 = vadd.f32 %v1848_v56, %v1800_v58  ;;  %v1897_v49 = vpop.f32.mrf.mxu3  ;;  %v1754_v0 = vadd.f32 %v1753_v63, %v3748_v48  ;;  %v1802_v3 = vpop.f32.mrf.mxu1 }
 0x282   : > { %v1898_v14 = vadd.f32 %v1897_v49, %v1849_v44  ;;  %v1803_v10 = vadd.f32 %v1802_v3, %v1754_v0 }
 0x284   : > { %v1932_v9 = vadd.f32 %v1898_v14, %v448_v52 }
 0x286   : > { %1964 = vst [vmem:[#allocation2 + $0x28] sm:$0xff] %v1932_v9 }
 0x287   : > { %v1851_v45 = vpop.f32.mrf.mxu2  ;;  %v1755_v4 = vpop.f32.mrf.mxu0 }
 0x288   : > { %v1852_v35 = vadd.f32 %v1851_v45, %v1803_v10  ;;  %v1900_v50 = vpop.f32.mrf.mxu3  ;;  %v1756_v41 = vadd.f32 %v1755_v4, %v3751_v20  ;;  %v1804_v39 = vpop.f32.mrf.mxu1 }
 0x28a   : > { %v1901_v31 = vadd.f32 %v1900_v50, %v1852_v35  ;;  %v1805_v40 = vadd.f32 %v1804_v39, %v1756_v41 }
 0x28c   : > { %v1934_v32 = vadd.f32 %v1901_v31, %v450_v21 }
 0x28e   : > { %1966 = vst [vmem:[#allocation2 + $0xf8] sm:$0xff] %v1934_v32 }
 0x28f   : > { %v1853_v42 = vpop.f32.mrf.mxu2 }
 0x290   : > { %v1854_v61 = vadd.f32 %v1853_v42, %v1805_v40  ;;  %v1902_v48 = vpop.f32.mrf.mxu3 }
 0x292   : > { %v1903_v22 = vadd.f32 %v1902_v48, %v1854_v61  ;;  %1972 = sbr.rel (%p2783_p11) target bundleno = 700 (0x2bc), region = 63 }
 0x294   : > { %v1936_v43 = vadd.f32 %v1903_v22, %v452_v6 }
 0x296   : > { %1968 = vst [vmem:[#allocation2 + $0x98] sm:$0xff] %v1936_v43 }
 0x297   : > { %v1973_v18 = vld [vmem:[#allocation2 + $0xb0] sm:$0xff]  ;;  %v2005_v38 = vld [vmem:[%s3922_s2] sm:$0x3]  ;;  %v1975_v34 = vld [vmem:[#allocation2 + $0xd8] sm:$0xff] }
 0x298   : > { %v1974_v20 = vld [vmem:[#allocation2] sm:$0xff]  ;;  %v3773_v19 = vperm.slane %v2005_v38, 0  ;;  %v3775_v62 = vperm.slane %v2005_v38, 1  ;;  %v1976_v27 = vld [vmem:[#allocation2 + $0x18] sm:$0xff]  ;;  %v1977_v28 = vld [vmem:[#allocation2 + $0x50] sm:$0xff] }
 0x299   : > { %v1978_v7 = vld [vmem:[#allocation2 + $0x68] sm:$0xff]  ;;  %v1979_v8 = vld [vmem:[#allocation2 + $0x30] sm:$0xff]  ;;  %v1981_v46 = vld [vmem:[#allocation2 + $0x80] sm:$0xff] }
 0x29a   : > { %v2011_v36 = vadd.f32 %v3773_v19, %v1973_v18  ;;  %v2012_v24 = vadd.f32 %v3775_v62, %v1974_v20  ;;  %v2013_v2 = vadd.f32 %v3773_v19, %v1975_v34  ;;  %v2014_v53 = vadd.f32 %v3775_v62, %v1976_v27  ;;  %v1980_v26 = vld [vmem:[#allocation2 + $0x48] sm:$0xff]  ;;  %v1984_v13 = vld [vmem:[#allocation2 + $0xb8] sm:$0xff]  ;;  %v1985_v29 = vld [vmem:[#allocation2 + $0x60] sm:$0xff] }
 0x29b   : > { %v2015_v37 = vadd.f32 %v3773_v19, %v1977_v28  ;;  %v2016_v25 = vadd.f32 %v3775_v62, %v1978_v7  ;;  %v2017_v16 = vadd.f32 %v3773_v19, %v1979_v8  ;;  %v1982_v5 = vld [vmem:[#allocation2 + $0x88] sm:$0xff]  ;;  %v2018_v47 = vadd.f32 %v3775_v62, %v1980_v26  ;;  %v1986_v55 = vld [vmem:[#allocation2 + $0xf0] sm:$0xff]  ;;  %v1988_v23 = vld [vmem:[#allocation2 + $0x78] sm:$0xff] }
 0x29c   : > { %2043 = vst [vmem:[%s3923_s3] sm:$0xff] %v2011_v36  ;;  %v1983_v30 = vld [vmem:[#allocation2 + $0xe8] sm:$0xff]  ;;  %v2019_v54 = vadd.f32 %v3773_v19, %v1981_v46  ;;  %v2020_v1 = vadd.f32 %v3775_v62, %v1982_v5  ;;  %v2022_v57 = vadd.f32 %v3775_v62, %v1984_v13  ;;  %v2023_v59 = vadd.f32 %v3773_v19, %v1985_v29  ;;  %v1989_v60 = vld [vmem:[#allocation2 + $0x38] sm:$0xff]  ;;  %v1991_v58 = vld [vmem:[#allocation2 + $0x40] sm:$0xff] }
 0x29d   : > { %2044 = vst [vmem:[%s3923_s3 + $0x8] sm:$0xff] %v2012_v24  ;;  %v2021_v51 = vadd.f32 %v3773_v19, %v1983_v30  ;;  %v1987_v17 = vld [vmem:[#allocation2 + $0x8] sm:$0xff]  ;;  %v2024_v33 = vadd.f32 %v3775_v62, %v1986_v55  ;;  %v1990_v15 = vld [vmem:[#allocation2 + $0x58] sm:$0xff]  ;;  %v2026_v12 = vadd.f32 %v3775_v62, %v1988_v23  ;;  %v2027_v56 = vadd.f32 %v3773_v19, %v1989_v60  ;;  %v1993_v63 = vld [vmem:[#allocation2 + $0xe0] sm:$0xff] }
 0x29e   : > { %2045 = vst [vmem:[%s3923_s3 + $0x10] sm:$0xff] %v2013_v2  ;;  %v2025_v11 = vadd.f32 %v3773_v19, %v1987_v17  ;;  %v1992_v44 = vld [vmem:[#allocation2 + $0xc8] sm:$0xff]  ;;  %v2028_v49 = vadd.f32 %v3775_v62, %v1990_v15  ;;  %v2029_v52 = vadd.f32 %v3773_v19, %v1991_v58  ;;  %v1994_v14 = vld [vmem:[#allocation2 + $0x90] sm:$0xff]  ;;  %v2031_v9 = vadd.f32 %v3773_v19, %v1993_v63  ;;  %v1996_v10 = vld [vmem:[#allocation2 + $0xc0] sm:$0xff] }
 0x29f   : > { %2046 = vst [vmem:[%s3923_s3 + $0x18] sm:$0xff] %v2014_v53  ;;  %v2030_v0 = vadd.f32 %v3775_v62, %v1992_v44  ;;  %v1995_v3 = vld [vmem:[#allocation2 + $0x70] sm:$0xff]  ;;  %v2032_v45 = vadd.f32 %v3775_v62, %v1994_v14  ;;  %v1997_v35 = vld [vmem:[#allocation2 + $0xa8] sm:$0xff]  ;;  %v2034_v21 = vadd.f32 %v3775_v62, %v1996_v10  ;;  %v2001_v40 = vld [vmem:[#allocation2 + $0xa0] sm:$0xff] }
 0x2a0   : > { %2047 = vst [vmem:[%s3923_s3 + $0x20] sm:$0xff] %v2015_v37  ;;  %v2033_v50 = vadd.f32 %v3773_v19, %v1995_v3  ;;  %v1998_v4 = vld [vmem:[#allocation2 + $0xd0] sm:$0xff]  ;;  %v2035_v41 = vadd.f32 %v3773_v19, %v1997_v35  ;;  %v2000_v32 = vld [vmem:[#allocation2 + $0x28] sm:$0xff]  ;;  %v2002_v61 = vld [vmem:[#allocation2 + $0xf8] sm:$0xff]  ;;  %v2039_v22 = vadd.f32 %v3773_v19, %v2001_v40 }
 0x2a1   : > { %2048 = vst [vmem:[%s3923_s3 + $0x28] sm:$0xff] %v2016_v25  ;;  %v1999_v31 = vld [vmem:[#allocation2 + $0x10] sm:$0xff]  ;;  %v2036_v39 = vadd.f32 %v3775_v62, %v1998_v4  ;;  %v2038_v6 = vadd.f32 %v3775_v62, %v2000_v32  ;;  %v2003_v48 = vld [vmem:[#allocation2 + $0x20] sm:$0xff]  ;;  %v2004_v43 = vld [vmem:[#allocation2 + $0x98] sm:$0xff]  ;;  %v2040_v18 = vadd.f32 %v3775_v62, %v2002_v61 }
 0x2a2   : > { %2049 = vst [vmem:[%s3923_s3 + $0x30] sm:$0xff] %v2017_v16  ;;  %v2037_v42 = vadd.f32 %v3773_v19, %v1999_v31  ;;  %v2041_v38 = vadd.f32 %v3773_v19, %v2003_v48  ;;  %v2042_v20 = vadd.f32 %v3775_v62, %v2004_v43 }
 0x2a3   : > { %2050 = vst [vmem:[%s3923_s3 + $0x38] sm:$0xff] %v2018_v47 }
 0x2a4   : > { %2051 = vst [vmem:[%s3923_s3 + $0x40] sm:$0xff] %v2019_v54 }
 0x2a5   : > { %2052 = vst [vmem:[%s3923_s3 + $0x48] sm:$0xff] %v2020_v1 }
 0x2a6   : > { %2053 = vst [vmem:[%s3923_s3 + $0x50] sm:$0xff] %v2021_v51 }
 0x2a7   : > { %2054 = vst [vmem:[%s3923_s3 + $0x58] sm:$0xff] %v2022_v57 }
 0x2a8   : > { %2055 = vst [vmem:[%s3923_s3 + $0x60] sm:$0xff] %v2023_v59 }
 0x2a9   : > { %2056 = vst [vmem:[%s3923_s3 + $0x68] sm:$0xff] %v2024_v33 }
 0x2aa   : > { %2057 = vst [vmem:[%s3923_s3 + $0x70] sm:$0xff] %v2025_v11 }
 0x2ab   : > { %2058 = vst [vmem:[%s3923_s3 + $0x78] sm:$0xff] %v2026_v12 }
 0x2ac   : > { %2059 = vst [vmem:[%s3923_s3 + $0x80] sm:$0xff] %v2027_v56 }
 0x2ad   : > { %2060 = vst [vmem:[%s3923_s3 + $0x88] sm:$0xff] %v2028_v49 }
 0x2ae   : > { %2061 = vst [vmem:[%s3923_s3 + $0x90] sm:$0xff] %v2029_v52 }
 0x2af   : > { %2062 = vst [vmem:[%s3923_s3 + $0x98] sm:$0xff] %v2030_v0 }
 0x2b0   : > { %2063 = vst [vmem:[%s3923_s3 + $0xa0] sm:$0xff] %v2031_v9 }
 0x2b1   : > { %2064 = vst [vmem:[%s3923_s3 + $0xa8] sm:$0xff] %v2032_v45 }
 0x2b2   : > { %2065 = vst [vmem:[%s3923_s3 + $0xb0] sm:$0xff] %v2033_v50 }
 0x2b3   : > { %2066 = vst [vmem:[%s3923_s3 + $0xb8] sm:$0xff] %v2034_v21 }
 0x2b4   : > { %2067 = vst [vmem:[%s3923_s3 + $0xc0] sm:$0xff] %v2035_v41 }
 0x2b5   : > { %2068 = vst [vmem:[%s3923_s3 + $0xc8] sm:$0xff] %v2036_v39 }
 0x2b6   : > { %2069 = vst [vmem:[%s3923_s3 + $0xd0] sm:$0xff] %v2037_v42 }
 0x2b7   : > { %2070 = vst [vmem:[%s3923_s3 + $0xd8] sm:$0xff] %v2038_v6 }
 0x2b8   : > { %2071 = vst [vmem:[%s3923_s3 + $0xe0] sm:$0xff] %v2039_v22 }
 0x2b9   : > { %2072 = vst [vmem:[%s3923_s3 + $0xe8] sm:$0xff] %v2040_v18 }
 0x2ba   : > { %2073 = vst [vmem:[%s3923_s3 + $0xf0] sm:$0xff] %v2041_v38 }
 0x2bb   : > { %2074 = vst [vmem:[%s3923_s3 + $0xf8] sm:$0xff] %v2042_v20 }
 0x2bc PF: > { %s13_s16 = sadd.s32 1, %s3015_s16   ;;  %s3924_s12 = smov %s3003_s13 }
 0x2bd   : > { %p10_p12 = scmp.ge.s32.totalorder %s13_s16, 5   ;;  %s3925_s13 = smov %s3073_s20 }
 0x2be   : > { %s3926_s14 = smov %s3011_s15  ;;  %s3927_s15 = smov %s3929_s17 }
 0x2bf   :  { %12 = sbr.rel (!%p10_p12) target bundleno = 3 (0x3), region = 104 }

</bundles_post_ra>
